<compile_context>
chip_gen: v5e
topology: v5e:2x2
jax: 0.10.0
libtpu: 0.0.40
codegen_flags: <defaults>
</compile_context>

<pallas_src>
import functools

import jax
import jax.numpy as jnp
from jax.experimental import pallas as pl
from jax.experimental.pallas import tpu as pltpu


def _convpoint_kernel(pts_ref, sup_ref, feat_ref,
                      w1_ref, b1_ref, w2_ref, b2_ref, w3_ref, b3_ref,
                      cvw_ref, cvb_ref, out_ref, *,
                      compute_dtype, normalize_pts):
    T, KN, D = pts_ref.shape          # queries in tile, neighbors, spatial dim
    CI = feat_ref.shape[2]            # input channels
    KS = w2_ref.shape[0]              # kernel size
    M2 = T * KN

    # --- relative coordinates: points - support (broadcast over neighbors) ---
    rel = pts_ref[...] - sup_ref[...][:, None, :]                     # (T, KN, D)

    # --- normalize_points: divide by max neighbor L2 norm per query ----------
    if normalize_pts:
        sq = jnp.sum(rel * rel, axis=2, keepdims=True)                # (T, KN, 1)
        maxi = jnp.sqrt(jnp.max(sq, axis=1, keepdims=True))           # (T, 1, 1)
        maxi = maxi + (maxi == 0.0).astype(jnp.float32)
        rel = rel / maxi

    # --- projector MLP (layer 1 folded into rel @ w1f + b1f) -----------------
    rel2 = rel.reshape(M2, D).astype(compute_dtype)                   # (M2, D)
    h = jnp.dot(rel2, w1_ref[...],
                preferred_element_type=jnp.float32) + b1_ref[...]
    h = jnp.maximum(h, 0.0).astype(compute_dtype)
    h = jnp.dot(h, w2_ref[...],
                preferred_element_type=jnp.float32) + b2_ref[...]
    h = jnp.maximum(h, 0.0).astype(compute_dtype)
    mat = jnp.dot(h, w3_ref[...],
                  preferred_element_type=jnp.float32) + b3_ref[...]
    mat = jnp.maximum(mat, 0.0)                                       # (M2, KS) f32
    mat3 = mat.reshape(T, KN, KS)                                     # (T, KN, KS)

    # --- features @ mat fused with Conv2d(C_in, C_out, (1, KS)) + bias -------
    # out[o, t] = sum_s W_s[o, :] @ ( sum_k feat[t, k, :] * mat[t, k, s] ) + b[o]
    # KS static matmuls with K = C_in, accumulated in lane-dense (C_out, T).
    feat = feat_ref[...]                                              # (T, KN, CI)
    CO = out_ref.shape[0]
    acc = jnp.zeros((CO, T), jnp.float32)
    for s in range(KS):                                               # static unroll
        fm_s = jnp.sum(feat * mat3[:, :, s:s + 1], axis=1)            # (T, CI)
        acc = acc + jax.lax.dot_general(
            cvw_ref[s], fm_s.astype(compute_dtype),
            dimension_numbers=(((1,), (1,)), ((), ())),
            preferred_element_type=jnp.float32)                       # (CO, T)
    out_ref[...] = (acc + cvb_ref[...]).astype(out_ref.dtype)


def convpoint_forward(params, features, points, support_points, *,
                      tile_q=256, compute_dtype=jnp.float32,
                      normalize_pts=True):
    B, CI, NQ, KN = features.shape
    D = points.shape[1]
    KS = params["w2"].shape[0]
    CO = params["cv_b"].shape[1]
    cd = compute_dtype

    # --- fold projector layer 1 (exact algebra) -------------------------------
    w1 = params["w1"]                                    # (D*KS, KS)
    centers = params["centers"]                          # (D, KS)
    w1f = w1.reshape(D, KS, KS).sum(axis=1).astype(cd)   # (D, KS)
    b1f = (params["b1"] - centers.reshape(1, D * KS) @ w1).astype(jnp.float32)

    w2 = params["w2"].astype(cd)
    w3 = params["w3"].astype(cd)
    b2 = params["b2"]
    b3 = params["b3"]
    # conv weight as (KS, C_out, C_in) for the per-s (C_out, C_in) matmuls
    cvw = jnp.transpose(params["cv_w"], (1, 2, 0)).astype(cd)   # (KS, CO, CI)
    cvb = params["cv_b"].reshape(CO, 1)

    # --- channels-last relayout of the point/feature tensors ------------------
    # TODO(synk): these are extra XLA HBM relayout passes; folding them into the
    #             kernel (original-layout BlockSpecs + in-kernel einshape) is left
    #             out for lowering safety.
    feat_cl = jnp.transpose(features, (0, 2, 3, 1))      # (B, NQ, KN, CI)
    pts_cl = jnp.transpose(points, (0, 2, 3, 1))         # (B, NQ, KN, D)
    sup_cl = jnp.transpose(support_points, (0, 2, 1))    # (B, NQ, D)

    # --- query tile: large, lane-dense (multiple of 128 unless NQ is small) ---
    if NQ <= tile_q:
        t, nq_p = NQ, NQ
    else:
        t = max(128, (min(tile_q, NQ) // 128) * 128)
        nq_p = pl.cdiv(NQ, t) * t
        if nq_p != NQ:
            pn = nq_p - NQ
            feat_cl = jnp.pad(feat_cl, ((0, 0), (0, pn), (0, 0), (0, 0)))
            pts_cl = jnp.pad(pts_cl, ((0, 0), (0, pn), (0, 0), (0, 0)))
            sup_cl = jnp.pad(sup_cl, ((0, 0), (0, pn), (0, 0)))

    def _w(shape):
        return pl.BlockSpec(shape, lambda b, n: (0,) * len(shape))

    kernel = functools.partial(_convpoint_kernel, compute_dtype=cd,
                               normalize_pts=normalize_pts)

    out = pl.pallas_call(
        kernel,
        out_shape=jax.ShapeDtypeStruct((B, CO, nq_p), jnp.float32),
        grid=(B, nq_p // t),
        in_specs=[
            pl.BlockSpec((None, t, KN, D), lambda b, n: (b, n, 0, 0)),    # pts
            pl.BlockSpec((None, t, D), lambda b, n: (b, n, 0)),           # support
            pl.BlockSpec((None, t, KN, CI), lambda b, n: (b, n, 0, 0)),   # features
            _w((D, KS)), _w((1, KS)),                                     # folded L1
            _w((KS, KS)), _w((1, KS)),                                    # projector L2
            _w((KS, KS)), _w((1, KS)),                                    # projector L3
            _w((KS, CO, CI)), _w((CO, 1)),                                # conv W / b
        ],
        out_specs=pl.BlockSpec((None, CO, t), lambda b, n: (b, 0, n)),
        compiler_params=pltpu.CompilerParams(
            dimension_semantics=("parallel", "parallel"),
            vmem_limit_bytes=48 * 1024 * 1024),
    )(pts_cl, sup_cl, feat_cl, w1f, b1f, w2, b2, w3, b3, cvw, cvb)

    if nq_p != NQ:
        out = out[:, :, :NQ]
    return out, support_points


def init_params(key, in_channels, out_channels, kernel_size, dim=3):
    """Deterministic synthetic parameters matching the module's shapes."""
    ks = jax.random.split(key, 5)

    # centers: deterministic points inside the unit ball
    # (torch uses rejection sampling; here we project onto the ball).
    c = jax.random.uniform(ks[0], (dim, kernel_size), minval=-1.0, maxval=1.0)
    c = c / jnp.maximum(jnp.sqrt(jnp.sum(c * c, axis=0, keepdims=True)), 1.0)

    def linear(k, fan_in, fan_out):
        bound = 1.0 / jnp.sqrt(fan_in)
        kw, kb = jax.random.split(k)
        w = jax.random.uniform(kw, (fan_in, fan_out), minval=-bound, maxval=bound)
        b = jax.random.uniform(kb, (1, fan_out), minval=-bound, maxval=bound)
        return w.astype(jnp.float32), b.astype(jnp.float32)

    w1, b1 = linear(ks[1], dim * kernel_size, kernel_size)
    w2, b2 = linear(ks[2], kernel_size, kernel_size)
    w3, b3 = linear(ks[3], kernel_size, kernel_size)
    # Conv2d(in, out, (1, kernel_size)): torch weight is (out, in, 1, ks);
    # we store it as (in, ks, out).
    cw, cb = linear(ks[4], in_channels * kernel_size, out_channels)
    cv_w = cw.reshape(in_channels, kernel_size, out_channels)

    return dict(centers=c.astype(jnp.float32), w1=w1, b1=b1, w2=w2, b2=b2,
                w3=w3, b3=b3, cv_w=cv_w, cv_b=cb)


def convpoint_reference(params, features, points, support_points):
    """Pure-JAX mirror of the PyTorch forward (for validation)."""
    B, CI, NQ, KN = features.shape
    D = points.shape[1]
    KS = params["centers"].shape[1]
    pts = points - support_points[:, :, :, None]                       # (B, D, Nq, Kn)
    maxi = jnp.sqrt(jnp.max(jnp.sum(pts ** 2, axis=1), axis=2))        # (B, Nq)
    maxi = maxi + (maxi == 0.0).astype(maxi.dtype)
    pts = pts / maxi[:, None, :, None]
    x = jnp.transpose(pts, (0, 2, 3, 1))[..., None] - params["centers"]  # (B,Nq,Kn,D,KS)
    x = x.reshape(B, NQ, KN, D * KS)
    h = jax.nn.relu(x @ params["w1"] + params["b1"][0])
    h = jax.nn.relu(h @ params["w2"] + params["b2"][0])
    mat = jax.nn.relu(h @ params["w3"] + params["b3"][0])              # (B,Nq,Kn,KS)
    f = jnp.transpose(features, (0, 2, 1, 3))                          # (B,Nq,CI,Kn)
    fm = jnp.einsum("bnik,bnks->bnis", f, mat)                         # (B,Nq,CI,KS)
    out = jnp.einsum("bnis,iso->bno", fm, params["cv_w"]) + params["cv_b"][0]
    return jnp.transpose(out, (0, 2, 1)), support_points


if __name__ == "__main__":
    B, CI, CO, KS, D, NQ, KN = 2, 4, 8, 16, 3, 16, 8

    key = jax.random.PRNGKey(0)
    kp, kf, kpt, ksup = jax.random.split(key, 4)
    params = init_params(kp, CI, CO, KS, D)

    features = jax.random.normal(kf, (B, CI, NQ, KN), dtype=jnp.float32)
    points = jax.random.normal(kpt, (B, D, NQ, KN), dtype=jnp.float32)
    support = jax.random.normal(ksup, (B, D, NQ), dtype=jnp.float32)

    ref, _ = convpoint_reference(params, features, points, support)

    # f32 path (tight check).
    out, sup_out = convpoint_forward(params, features, points, support)
    out = jax.block_until_ready(out)
    assert out.shape == (B, CO, NQ)
    assert sup_out.shape == support.shape
    err = float(jnp.max(jnp.abs(out - ref)))
    assert err < 2e-3, f"f32 max abs error vs reference: {err}"

    # bf16 MXU-operand path (v6e/v7x fast path), looser tolerance.
    out_bf, _ = convpoint_forward(params, features, points, support,
                                  compute_dtype=jnp.bfloat16)
    out_bf = jax.block_until_ready(out_bf)
    err_bf = float(jnp.max(jnp.abs(out_bf - ref)))
    assert err_bf < 1e-1, f"bf16 max abs error vs reference: {err_bf}"

    print("KERNEL_OK")
</pallas_src>

<mosaic_0001>
module attributes {stable_mosaic.version = 11 : i64} {
  func.func @_convpoint_kernel(%arg0: i32, %arg1: i32, %arg2: memref<1x16x8x3xf32, #tpu.memory_space<vmem>>, %arg3: memref<1x16x3xf32, #tpu.memory_space<vmem>>, %arg4: memref<1x16x8x4xf32, #tpu.memory_space<vmem>>, %arg5: memref<3x16xf32, #tpu.memory_space<vmem>>, %arg6: memref<1x16xf32, #tpu.memory_space<vmem>>, %arg7: memref<16x16xf32, #tpu.memory_space<vmem>>, %arg8: memref<1x16xf32, #tpu.memory_space<vmem>>, %arg9: memref<16x16xf32, #tpu.memory_space<vmem>>, %arg10: memref<1x16xf32, #tpu.memory_space<vmem>>, %arg11: memref<16x8x4xf32, #tpu.memory_space<vmem>>, %arg12: memref<8x1xf32, #tpu.memory_space<vmem>>, %arg13: memref<1x8x16xf32, #tpu.memory_space<vmem>>) attributes {dimension_semantics = [#tpu.dimension_semantics<parallel>, #tpu.dimension_semantics<parallel>], iteration_bounds = array<i64: 2, 1>, scalar_prefetch = 0 : i64, scratch_operands = 0 : i64, tpu.core_type = #tpu.core_type<tc>, window_params = [{transform_indices = @transform_0, window_bounds = array<i64: 1, 16, 8, 3>}, {transform_indices = @transform_1, window_bounds = array<i64: 1, 16, 3>}, {transform_indices = @transform_2, window_bounds = array<i64: 1, 16, 8, 4>}, {pipeline_mode = #tpu.pipeline_mode<synchronous>, transform_indices = @transform_3, window_bounds = array<i64: 3, 16>}, {pipeline_mode = #tpu.pipeline_mode<synchronous>, transform_indices = @transform_4, window_bounds = array<i64: 1, 16>}, {pipeline_mode = #tpu.pipeline_mode<synchronous>, transform_indices = @transform_5, window_bounds = array<i64: 16, 16>}, {pipeline_mode = #tpu.pipeline_mode<synchronous>, transform_indices = @transform_6, window_bounds = array<i64: 1, 16>}, {pipeline_mode = #tpu.pipeline_mode<synchronous>, transform_indices = @transform_7, window_bounds = array<i64: 16, 16>}, {pipeline_mode = #tpu.pipeline_mode<synchronous>, transform_indices = @transform_8, window_bounds = array<i64: 1, 16>}, {pipeline_mode = #tpu.pipeline_mode<synchronous>, transform_indices = @transform_9, window_bounds = array<i64: 16, 8, 4>}, {pipeline_mode = #tpu.pipeline_mode<synchronous>, transform_indices = @transform_10, window_bounds = array<i64: 8, 1>}, {transform_indices = @transform_11, window_bounds = array<i64: 1, 8, 16>}]} {
    %c0 = arith.constant 0 : index
    %c0_0 = arith.constant 0 : index
    %c0_1 = arith.constant 0 : index
    %c0_2 = arith.constant 0 : index
    %0 = vector.load %arg2[%c0, %c0_0, %c0_1, %c0_2] : memref<1x16x8x3xf32, #tpu.memory_space<vmem>>, vector<1x16x8x3xf32>
    %1 = vector.shape_cast %0 : vector<1x16x8x3xf32> to vector<16x8x3xf32>
    %c0_3 = arith.constant 0 : index
    %c0_4 = arith.constant 0 : index
    %c0_5 = arith.constant 0 : index
    %2 = vector.load %arg3[%c0_3, %c0_4, %c0_5] : memref<1x16x3xf32, #tpu.memory_space<vmem>>, vector<1x16x3xf32>
    %3 = vector.shape_cast %2 : vector<1x16x3xf32> to vector<16x3xf32>
    %4 = vector.shape_cast %3 : vector<16x3xf32> to vector<16x1x3xf32>
    %5 = vector.broadcast %4 : vector<16x1x3xf32> to vector<16x8x3xf32>
    %6 = arith.subf %1, %5 : vector<16x8x3xf32>
    %7 = arith.mulf %6, %6 : vector<16x8x3xf32>
    %cst = arith.constant dense<0.000000e+00> : vector<16x8xf32>
    %8 = vector.multi_reduction <add>, %7, %cst [2] : vector<16x8x3xf32> to vector<16x8xf32>
    %9 = vector.shape_cast %8 : vector<16x8xf32> to vector<16x8x1xf32>
    %cst_6 = arith.constant dense<0xFF800000> : vector<16x1xf32>
    %10 = vector.multi_reduction <maximumf>, %9, %cst_6 [1] : vector<16x8x1xf32> to vector<16x1xf32>
    %11 = vector.shape_cast %10 : vector<16x1xf32> to vector<16x1x1xf32>
    %12 = math.sqrt %11 : vector<16x1x1xf32>
    %cst_7 = arith.constant 0.000000e+00 : f32
    %13 = vector.broadcast %cst_7 : f32 to vector<16x1x1xf32>
    %14 = arith.cmpf oeq, %12, %13 : vector<16x1x1xf32>
    %15 = arith.extui %14 : vector<16x1x1xi1> to vector<16x1x1xi32>
    %16 = arith.sitofp %15 : vector<16x1x1xi32> to vector<16x1x1xf32>
    %17 = arith.addf %12, %16 : vector<16x1x1xf32>
    %18 = vector.broadcast %17 : vector<16x1x1xf32> to vector<16x8x3xf32>
    %19 = arith.divf %6, %18 : vector<16x8x3xf32>
    %20 = vector.shape_cast %19 : vector<16x8x3xf32> to vector<128x3xf32>
    %c0_8 = arith.constant 0 : index
    %c0_9 = arith.constant 0 : index
    %21 = vector.load %arg5[%c0_8, %c0_9] : memref<3x16xf32, #tpu.memory_space<vmem>>, vector<3x16xf32>
    %cst_10 = arith.constant dense<0.000000e+00> : vector<128x16xf32>
    %22 = tpu.matmul %20, %21, %cst_10 {dimension_numbers = #tpu.dot_dimension_numbers<[1], [0], [0], [1], [0, 0, 1, 1], [], []>} : vector<128x3xf32>, vector<3x16xf32>, vector<128x16xf32> -> vector<128x16xf32>
    %c0_11 = arith.constant 0 : index
    %c0_12 = arith.constant 0 : index
    %23 = vector.load %arg6[%c0_11, %c0_12] : memref<1x16xf32, #tpu.memory_space<vmem>>, vector<1x16xf32>
    %24 = vector.broadcast %23 : vector<1x16xf32> to vector<128x16xf32>
    %25 = arith.addf %22, %24 : vector<128x16xf32>
    %cst_13 = arith.constant 0.000000e+00 : f32
    %26 = vector.broadcast %cst_13 : f32 to vector<128x16xf32>
    %27 = arith.maximumf %25, %26 : vector<128x16xf32>
    %c0_14 = arith.constant 0 : index
    %c0_15 = arith.constant 0 : index
    %28 = vector.load %arg7[%c0_14, %c0_15] : memref<16x16xf32, #tpu.memory_space<vmem>>, vector<16x16xf32>
    %cst_16 = arith.constant dense<0.000000e+00> : vector<128x16xf32>
    %29 = tpu.matmul %27, %28, %cst_16 {dimension_numbers = #tpu.dot_dimension_numbers<[1], [0], [0], [1], [0, 0, 1, 1], [], []>} : vector<128x16xf32>, vector<16x16xf32>, vector<128x16xf32> -> vector<128x16xf32>
    %c0_17 = arith.constant 0 : index
    %c0_18 = arith.constant 0 : index
    %30 = vector.load %arg8[%c0_17, %c0_18] : memref<1x16xf32, #tpu.memory_space<vmem>>, vector<1x16xf32>
    %31 = vector.broadcast %30 : vector<1x16xf32> to vector<128x16xf32>
    %32 = arith.addf %29, %31 : vector<128x16xf32>
    %cst_19 = arith.constant 0.000000e+00 : f32
    %33 = vector.broadcast %cst_19 : f32 to vector<128x16xf32>
    %34 = arith.maximumf %32, %33 : vector<128x16xf32>
    %c0_20 = arith.constant 0 : index
    %c0_21 = arith.constant 0 : index
    %35 = vector.load %arg9[%c0_20, %c0_21] : memref<16x16xf32, #tpu.memory_space<vmem>>, vector<16x16xf32>
    %cst_22 = arith.constant dense<0.000000e+00> : vector<128x16xf32>
    %36 = tpu.matmul %34, %35, %cst_22 {dimension_numbers = #tpu.dot_dimension_numbers<[1], [0], [0], [1], [0, 0, 1, 1], [], []>} : vector<128x16xf32>, vector<16x16xf32>, vector<128x16xf32> -> vector<128x16xf32>
    %c0_23 = arith.constant 0 : index
    %c0_24 = arith.constant 0 : index
    %37 = vector.load %arg10[%c0_23, %c0_24] : memref<1x16xf32, #tpu.memory_space<vmem>>, vector<1x16xf32>
    %38 = vector.broadcast %37 : vector<1x16xf32> to vector<128x16xf32>
    %39 = arith.addf %36, %38 : vector<128x16xf32>
    %cst_25 = arith.constant 0.000000e+00 : f32
    %40 = vector.broadcast %cst_25 : f32 to vector<128x16xf32>
    %41 = arith.maximumf %39, %40 : vector<128x16xf32>
    %42 = vector.shape_cast %41 : vector<128x16xf32> to vector<16x8x16xf32>
    %c0_26 = arith.constant 0 : index
    %c0_27 = arith.constant 0 : index
    %c0_28 = arith.constant 0 : index
    %c0_29 = arith.constant 0 : index
    %43 = vector.load %arg4[%c0_26, %c0_27, %c0_28, %c0_29] : memref<1x16x8x4xf32, #tpu.memory_space<vmem>>, vector<1x16x8x4xf32>
    %44 = vector.shape_cast %43 : vector<1x16x8x4xf32> to vector<16x8x4xf32>
    %cst_30 = arith.constant 0.000000e+00 : f32
    %45 = vector.broadcast %cst_30 : f32 to vector<8x16xf32>
    %46 = vector.extract_strided_slice %42 {offsets = [0, 0, 0], sizes = [16, 8, 1], strides = [1, 1, 1]} : vector<16x8x16xf32> to vector<16x8x1xf32>
    %47 = vector.broadcast %46 : vector<16x8x1xf32> to vector<16x8x4xf32>
    %48 = arith.mulf %44, %47 : vector<16x8x4xf32>
    %cst_31 = arith.constant dense<0.000000e+00> : vector<16x4xf32>
    %49 = vector.multi_reduction <add>, %48, %cst_31 [1] : vector<16x8x4xf32> to vector<16x4xf32>
    %c0_32 = arith.constant 0 : index
    %c0_33 = arith.constant 0 : index
    %c0_34 = arith.constant 0 : index
    %50 = vector.load %arg11[%c0_32, %c0_33, %c0_34] : memref<16x8x4xf32, #tpu.memory_space<vmem>>, vector<1x8x4xf32>
    %51 = vector.shape_cast %50 : vector<1x8x4xf32> to vector<8x4xf32>
    %cst_35 = arith.constant dense<0.000000e+00> : vector<8x16xf32>
    %52 = tpu.matmul %51, %49, %cst_35 {dimension_numbers = #tpu.dot_dimension_numbers<[1], [1], [0], [0], [0, 0, 1, 0], [], []>} : vector<8x4xf32>, vector<16x4xf32>, vector<8x16xf32> -> vector<8x16xf32>
    %53 = arith.addf %45, %52 : vector<8x16xf32>
    %54 = vector.extract_strided_slice %42 {offsets = [0, 0, 1], sizes = [16, 8, 1], strides = [1, 1, 1]} : vector<16x8x16xf32> to vector<16x8x1xf32>
    %55 = vector.broadcast %54 : vector<16x8x1xf32> to vector<16x8x4xf32>
    %56 = arith.mulf %44, %55 : vector<16x8x4xf32>
    %cst_36 = arith.constant dense<0.000000e+00> : vector<16x4xf32>
    %57 = vector.multi_reduction <add>, %56, %cst_36 [1] : vector<16x8x4xf32> to vector<16x4xf32>
    %c1 = arith.constant 1 : index
    %c0_37 = arith.constant 0 : index
    %c0_38 = arith.constant 0 : index
    %58 = vector.load %arg11[%c1, %c0_37, %c0_38] : memref<16x8x4xf32, #tpu.memory_space<vmem>>, vector<1x8x4xf32>
    %59 = vector.shape_cast %58 : vector<1x8x4xf32> to vector<8x4xf32>
    %cst_39 = arith.constant dense<0.000000e+00> : vector<8x16xf32>
    %60 = tpu.matmul %59, %57, %cst_39 {dimension_numbers = #tpu.dot_dimension_numbers<[1], [1], [0], [0], [0, 0, 1, 0], [], []>} : vector<8x4xf32>, vector<16x4xf32>, vector<8x16xf32> -> vector<8x16xf32>
    %61 = arith.addf %53, %60 : vector<8x16xf32>
    %62 = vector.extract_strided_slice %42 {offsets = [0, 0, 2], sizes = [16, 8, 1], strides = [1, 1, 1]} : vector<16x8x16xf32> to vector<16x8x1xf32>
    %63 = vector.broadcast %62 : vector<16x8x1xf32> to vector<16x8x4xf32>
    %64 = arith.mulf %44, %63 : vector<16x8x4xf32>
    %cst_40 = arith.constant dense<0.000000e+00> : vector<16x4xf32>
    %65 = vector.multi_reduction <add>, %64, %cst_40 [1] : vector<16x8x4xf32> to vector<16x4xf32>
    %c2 = arith.constant 2 : index
    %c0_41 = arith.constant 0 : index
    %c0_42 = arith.constant 0 : index
    %66 = vector.load %arg11[%c2, %c0_41, %c0_42] : memref<16x8x4xf32, #tpu.memory_space<vmem>>, vector<1x8x4xf32>
    %67 = vector.shape_cast %66 : vector<1x8x4xf32> to vector<8x4xf32>
    %cst_43 = arith.constant dense<0.000000e+00> : vector<8x16xf32>
    %68 = tpu.matmul %67, %65, %cst_43 {dimension_numbers = #tpu.dot_dimension_numbers<[1], [1], [0], [0], [0, 0, 1, 0], [], []>} : vector<8x4xf32>, vector<16x4xf32>, vector<8x16xf32> -> vector<8x16xf32>
    %69 = arith.addf %61, %68 : vector<8x16xf32>
    %70 = vector.extract_strided_slice %42 {offsets = [0, 0, 3], sizes = [16, 8, 1], strides = [1, 1, 1]} : vector<16x8x16xf32> to vector<16x8x1xf32>
    %71 = vector.broadcast %70 : vector<16x8x1xf32> to vector<16x8x4xf32>
    %72 = arith.mulf %44, %71 : vector<16x8x4xf32>
    %cst_44 = arith.constant dense<0.000000e+00> : vector<16x4xf32>
    %73 = vector.multi_reduction <add>, %72, %cst_44 [1] : vector<16x8x4xf32> to vector<16x4xf32>
    %c3 = arith.constant 3 : index
    %c0_45 = arith.constant 0 : index
    %c0_46 = arith.constant 0 : index
    %74 = vector.load %arg11[%c3, %c0_45, %c0_46] : memref<16x8x4xf32, #tpu.memory_space<vmem>>, vector<1x8x4xf32>
    %75 = vector.shape_cast %74 : vector<1x8x4xf32> to vector<8x4xf32>
    %cst_47 = arith.constant dense<0.000000e+00> : vector<8x16xf32>
    %76 = tpu.matmul %75, %73, %cst_47 {dimension_numbers = #tpu.dot_dimension_numbers<[1], [1], [0], [0], [0, 0, 1, 0], [], []>} : vector<8x4xf32>, vector<16x4xf32>, vector<8x16xf32> -> vector<8x16xf32>
    %77 = arith.addf %69, %76 : vector<8x16xf32>
    %78 = vector.extract_strided_slice %42 {offsets = [0, 0, 4], sizes = [16, 8, 1], strides = [1, 1, 1]} : vector<16x8x16xf32> to vector<16x8x1xf32>
    %79 = vector.broadcast %78 : vector<16x8x1xf32> to vector<16x8x4xf32>
    %80 = arith.mulf %44, %79 : vector<16x8x4xf32>
    %cst_48 = arith.constant dense<0.000000e+00> : vector<16x4xf32>
    %81 = vector.multi_reduction <add>, %80, %cst_48 [1] : vector<16x8x4xf32> to vector<16x4xf32>
    %c4 = arith.constant 4 : index
    %c0_49 = arith.constant 0 : index
    %c0_50 = arith.constant 0 : index
    %82 = vector.load %arg11[%c4, %c0_49, %c0_50] : memref<16x8x4xf32, #tpu.memory_space<vmem>>, vector<1x8x4xf32>
    %83 = vector.shape_cast %82 : vector<1x8x4xf32> to vector<8x4xf32>
    %cst_51 = arith.constant dense<0.000000e+00> : vector<8x16xf32>
    %84 = tpu.matmul %83, %81, %cst_51 {dimension_numbers = #tpu.dot_dimension_numbers<[1], [1], [0], [0], [0, 0, 1, 0], [], []>} : vector<8x4xf32>, vector<16x4xf32>, vector<8x16xf32> -> vector<8x16xf32>
    %85 = arith.addf %77, %84 : vector<8x16xf32>
    %86 = vector.extract_strided_slice %42 {offsets = [0, 0, 5], sizes = [16, 8, 1], strides = [1, 1, 1]} : vector<16x8x16xf32> to vector<16x8x1xf32>
    %87 = vector.broadcast %86 : vector<16x8x1xf32> to vector<16x8x4xf32>
    %88 = arith.mulf %44, %87 : vector<16x8x4xf32>
    %cst_52 = arith.constant dense<0.000000e+00> : vector<16x4xf32>
    %89 = vector.multi_reduction <add>, %88, %cst_52 [1] : vector<16x8x4xf32> to vector<16x4xf32>
    %c5 = arith.constant 5 : index
    %c0_53 = arith.constant 0 : index
    %c0_54 = arith.constant 0 : index
    %90 = vector.load %arg11[%c5, %c0_53, %c0_54] : memref<16x8x4xf32, #tpu.memory_space<vmem>>, vector<1x8x4xf32>
    %91 = vector.shape_cast %90 : vector<1x8x4xf32> to vector<8x4xf32>
    %cst_55 = arith.constant dense<0.000000e+00> : vector<8x16xf32>
    %92 = tpu.matmul %91, %89, %cst_55 {dimension_numbers = #tpu.dot_dimension_numbers<[1], [1], [0], [0], [0, 0, 1, 0], [], []>} : vector<8x4xf32>, vector<16x4xf32>, vector<8x16xf32> -> vector<8x16xf32>
    %93 = arith.addf %85, %92 : vector<8x16xf32>
    %94 = vector.extract_strided_slice %42 {offsets = [0, 0, 6], sizes = [16, 8, 1], strides = [1, 1, 1]} : vector<16x8x16xf32> to vector<16x8x1xf32>
    %95 = vector.broadcast %94 : vector<16x8x1xf32> to vector<16x8x4xf32>
    %96 = arith.mulf %44, %95 : vector<16x8x4xf32>
    %cst_56 = arith.constant dense<0.000000e+00> : vector<16x4xf32>
    %97 = vector.multi_reduction <add>, %96, %cst_56 [1] : vector<16x8x4xf32> to vector<16x4xf32>
    %c6 = arith.constant 6 : index
    %c0_57 = arith.constant 0 : index
    %c0_58 = arith.constant 0 : index
    %98 = vector.load %arg11[%c6, %c0_57, %c0_58] : memref<16x8x4xf32, #tpu.memory_space<vmem>>, vector<1x8x4xf32>
    %99 = vector.shape_cast %98 : vector<1x8x4xf32> to vector<8x4xf32>
    %cst_59 = arith.constant dense<0.000000e+00> : vector<8x16xf32>
    %100 = tpu.matmul %99, %97, %cst_59 {dimension_numbers = #tpu.dot_dimension_numbers<[1], [1], [0], [0], [0, 0, 1, 0], [], []>} : vector<8x4xf32>, vector<16x4xf32>, vector<8x16xf32> -> vector<8x16xf32>
    %101 = arith.addf %93, %100 : vector<8x16xf32>
    %102 = vector.extract_strided_slice %42 {offsets = [0, 0, 7], sizes = [16, 8, 1], strides = [1, 1, 1]} : vector<16x8x16xf32> to vector<16x8x1xf32>
    %103 = vector.broadcast %102 : vector<16x8x1xf32> to vector<16x8x4xf32>
    %104 = arith.mulf %44, %103 : vector<16x8x4xf32>
    %cst_60 = arith.constant dense<0.000000e+00> : vector<16x4xf32>
    %105 = vector.multi_reduction <add>, %104, %cst_60 [1] : vector<16x8x4xf32> to vector<16x4xf32>
    %c7 = arith.constant 7 : index
    %c0_61 = arith.constant 0 : index
    %c0_62 = arith.constant 0 : index
    %106 = vector.load %arg11[%c7, %c0_61, %c0_62] : memref<16x8x4xf32, #tpu.memory_space<vmem>>, vector<1x8x4xf32>
    %107 = vector.shape_cast %106 : vector<1x8x4xf32> to vector<8x4xf32>
    %cst_63 = arith.constant dense<0.000000e+00> : vector<8x16xf32>
    %108 = tpu.matmul %107, %105, %cst_63 {dimension_numbers = #tpu.dot_dimension_numbers<[1], [1], [0], [0], [0, 0, 1, 0], [], []>} : vector<8x4xf32>, vector<16x4xf32>, vector<8x16xf32> -> vector<8x16xf32>
    %109 = arith.addf %101, %108 : vector<8x16xf32>
    %110 = vector.extract_strided_slice %42 {offsets = [0, 0, 8], sizes = [16, 8, 1], strides = [1, 1, 1]} : vector<16x8x16xf32> to vector<16x8x1xf32>
    %111 = vector.broadcast %110 : vector<16x8x1xf32> to vector<16x8x4xf32>
    %112 = arith.mulf %44, %111 : vector<16x8x4xf32>
    %cst_64 = arith.constant dense<0.000000e+00> : vector<16x4xf32>
    %113 = vector.multi_reduction <add>, %112, %cst_64 [1] : vector<16x8x4xf32> to vector<16x4xf32>
    %c8 = arith.constant 8 : index
    %c0_65 = arith.constant 0 : index
    %c0_66 = arith.constant 0 : index
    %114 = vector.load %arg11[%c8, %c0_65, %c0_66] : memref<16x8x4xf32, #tpu.memory_space<vmem>>, vector<1x8x4xf32>
    %115 = vector.shape_cast %114 : vector<1x8x4xf32> to vector<8x4xf32>
    %cst_67 = arith.constant dense<0.000000e+00> : vector<8x16xf32>
    %116 = tpu.matmul %115, %113, %cst_67 {dimension_numbers = #tpu.dot_dimension_numbers<[1], [1], [0], [0], [0, 0, 1, 0], [], []>} : vector<8x4xf32>, vector<16x4xf32>, vector<8x16xf32> -> vector<8x16xf32>
    %117 = arith.addf %109, %116 : vector<8x16xf32>
    %118 = vector.extract_strided_slice %42 {offsets = [0, 0, 9], sizes = [16, 8, 1], strides = [1, 1, 1]} : vector<16x8x16xf32> to vector<16x8x1xf32>
    %119 = vector.broadcast %118 : vector<16x8x1xf32> to vector<16x8x4xf32>
    %120 = arith.mulf %44, %119 : vector<16x8x4xf32>
    %cst_68 = arith.constant dense<0.000000e+00> : vector<16x4xf32>
    %121 = vector.multi_reduction <add>, %120, %cst_68 [1] : vector<16x8x4xf32> to vector<16x4xf32>
    %c9 = arith.constant 9 : index
    %c0_69 = arith.constant 0 : index
    %c0_70 = arith.constant 0 : index
    %122 = vector.load %arg11[%c9, %c0_69, %c0_70] : memref<16x8x4xf32, #tpu.memory_space<vmem>>, vector<1x8x4xf32>
    %123 = vector.shape_cast %122 : vector<1x8x4xf32> to vector<8x4xf32>
    %cst_71 = arith.constant dense<0.000000e+00> : vector<8x16xf32>
    %124 = tpu.matmul %123, %121, %cst_71 {dimension_numbers = #tpu.dot_dimension_numbers<[1], [1], [0], [0], [0, 0, 1, 0], [], []>} : vector<8x4xf32>, vector<16x4xf32>, vector<8x16xf32> -> vector<8x16xf32>
    %125 = arith.addf %117, %124 : vector<8x16xf32>
    %126 = vector.extract_strided_slice %42 {offsets = [0, 0, 10], sizes = [16, 8, 1], strides = [1, 1, 1]} : vector<16x8x16xf32> to vector<16x8x1xf32>
    %127 = vector.broadcast %126 : vector<16x8x1xf32> to vector<16x8x4xf32>
    %128 = arith.mulf %44, %127 : vector<16x8x4xf32>
    %cst_72 = arith.constant dense<0.000000e+00> : vector<16x4xf32>
    %129 = vector.multi_reduction <add>, %128, %cst_72 [1] : vector<16x8x4xf32> to vector<16x4xf32>
    %c10 = arith.constant 10 : index
    %c0_73 = arith.constant 0 : index
    %c0_74 = arith.constant 0 : index
    %130 = vector.load %arg11[%c10, %c0_73, %c0_74] : memref<16x8x4xf32, #tpu.memory_space<vmem>>, vector<1x8x4xf32>
    %131 = vector.shape_cast %130 : vector<1x8x4xf32> to vector<8x4xf32>
    %cst_75 = arith.constant dense<0.000000e+00> : vector<8x16xf32>
    %132 = tpu.matmul %131, %129, %cst_75 {dimension_numbers = #tpu.dot_dimension_numbers<[1], [1], [0], [0], [0, 0, 1, 0], [], []>} : vector<8x4xf32>, vector<16x4xf32>, vector<8x16xf32> -> vector<8x16xf32>
    %133 = arith.addf %125, %132 : vector<8x16xf32>
    %134 = vector.extract_strided_slice %42 {offsets = [0, 0, 11], sizes = [16, 8, 1], strides = [1, 1, 1]} : vector<16x8x16xf32> to vector<16x8x1xf32>
    %135 = vector.broadcast %134 : vector<16x8x1xf32> to vector<16x8x4xf32>
    %136 = arith.mulf %44, %135 : vector<16x8x4xf32>
    %cst_76 = arith.constant dense<0.000000e+00> : vector<16x4xf32>
    %137 = vector.multi_reduction <add>, %136, %cst_76 [1] : vector<16x8x4xf32> to vector<16x4xf32>
    %c11 = arith.constant 11 : index
    %c0_77 = arith.constant 0 : index
    %c0_78 = arith.constant 0 : index
    %138 = vector.load %arg11[%c11, %c0_77, %c0_78] : memref<16x8x4xf32, #tpu.memory_space<vmem>>, vector<1x8x4xf32>
    %139 = vector.shape_cast %138 : vector<1x8x4xf32> to vector<8x4xf32>
    %cst_79 = arith.constant dense<0.000000e+00> : vector<8x16xf32>
    %140 = tpu.matmul %139, %137, %cst_79 {dimension_numbers = #tpu.dot_dimension_numbers<[1], [1], [0], [0], [0, 0, 1, 0], [], []>} : vector<8x4xf32>, vector<16x4xf32>, vector<8x16xf32> -> vector<8x16xf32>
    %141 = arith.addf %133, %140 : vector<8x16xf32>
    %142 = vector.extract_strided_slice %42 {offsets = [0, 0, 12], sizes = [16, 8, 1], strides = [1, 1, 1]} : vector<16x8x16xf32> to vector<16x8x1xf32>
    %143 = vector.broadcast %142 : vector<16x8x1xf32> to vector<16x8x4xf32>
    %144 = arith.mulf %44, %143 : vector<16x8x4xf32>
    %cst_80 = arith.constant dense<0.000000e+00> : vector<16x4xf32>
    %145 = vector.multi_reduction <add>, %144, %cst_80 [1] : vector<16x8x4xf32> to vector<16x4xf32>
    %c12 = arith.constant 12 : index
    %c0_81 = arith.constant 0 : index
    %c0_82 = arith.constant 0 : index
    %146 = vector.load %arg11[%c12, %c0_81, %c0_82] : memref<16x8x4xf32, #tpu.memory_space<vmem>>, vector<1x8x4xf32>
    %147 = vector.shape_cast %146 : vector<1x8x4xf32> to vector<8x4xf32>
    %cst_83 = arith.constant dense<0.000000e+00> : vector<8x16xf32>
    %148 = tpu.matmul %147, %145, %cst_83 {dimension_numbers = #tpu.dot_dimension_numbers<[1], [1], [0], [0], [0, 0, 1, 0], [], []>} : vector<8x4xf32>, vector<16x4xf32>, vector<8x16xf32> -> vector<8x16xf32>
    %149 = arith.addf %141, %148 : vector<8x16xf32>
    %150 = vector.extract_strided_slice %42 {offsets = [0, 0, 13], sizes = [16, 8, 1], strides = [1, 1, 1]} : vector<16x8x16xf32> to vector<16x8x1xf32>
    %151 = vector.broadcast %150 : vector<16x8x1xf32> to vector<16x8x4xf32>
    %152 = arith.mulf %44, %151 : vector<16x8x4xf32>
    %cst_84 = arith.constant dense<0.000000e+00> : vector<16x4xf32>
    %153 = vector.multi_reduction <add>, %152, %cst_84 [1] : vector<16x8x4xf32> to vector<16x4xf32>
    %c13 = arith.constant 13 : index
    %c0_85 = arith.constant 0 : index
    %c0_86 = arith.constant 0 : index
    %154 = vector.load %arg11[%c13, %c0_85, %c0_86] : memref<16x8x4xf32, #tpu.memory_space<vmem>>, vector<1x8x4xf32>
    %155 = vector.shape_cast %154 : vector<1x8x4xf32> to vector<8x4xf32>
    %cst_87 = arith.constant dense<0.000000e+00> : vector<8x16xf32>
    %156 = tpu.matmul %155, %153, %cst_87 {dimension_numbers = #tpu.dot_dimension_numbers<[1], [1], [0], [0], [0, 0, 1, 0], [], []>} : vector<8x4xf32>, vector<16x4xf32>, vector<8x16xf32> -> vector<8x16xf32>
    %157 = arith.addf %149, %156 : vector<8x16xf32>
    %158 = vector.extract_strided_slice %42 {offsets = [0, 0, 14], sizes = [16, 8, 1], strides = [1, 1, 1]} : vector<16x8x16xf32> to vector<16x8x1xf32>
    %159 = vector.broadcast %158 : vector<16x8x1xf32> to vector<16x8x4xf32>
    %160 = arith.mulf %44, %159 : vector<16x8x4xf32>
    %cst_88 = arith.constant dense<0.000000e+00> : vector<16x4xf32>
    %161 = vector.multi_reduction <add>, %160, %cst_88 [1] : vector<16x8x4xf32> to vector<16x4xf32>
    %c14 = arith.constant 14 : index
    %c0_89 = arith.constant 0 : index
    %c0_90 = arith.constant 0 : index
    %162 = vector.load %arg11[%c14, %c0_89, %c0_90] : memref<16x8x4xf32, #tpu.memory_space<vmem>>, vector<1x8x4xf32>
    %163 = vector.shape_cast %162 : vector<1x8x4xf32> to vector<8x4xf32>
    %cst_91 = arith.constant dense<0.000000e+00> : vector<8x16xf32>
    %164 = tpu.matmul %163, %161, %cst_91 {dimension_numbers = #tpu.dot_dimension_numbers<[1], [1], [0], [0], [0, 0, 1, 0], [], []>} : vector<8x4xf32>, vector<16x4xf32>, vector<8x16xf32> -> vector<8x16xf32>
    %165 = arith.addf %157, %164 : vector<8x16xf32>
    %166 = vector.extract_strided_slice %42 {offsets = [0, 0, 15], sizes = [16, 8, 1], strides = [1, 1, 1]} : vector<16x8x16xf32> to vector<16x8x1xf32>
    %167 = vector.broadcast %166 : vector<16x8x1xf32> to vector<16x8x4xf32>
    %168 = arith.mulf %44, %167 : vector<16x8x4xf32>
    %cst_92 = arith.constant dense<0.000000e+00> : vector<16x4xf32>
    %169 = vector.multi_reduction <add>, %168, %cst_92 [1] : vector<16x8x4xf32> to vector<16x4xf32>
    %c15 = arith.constant 15 : index
    %c0_93 = arith.constant 0 : index
    %c0_94 = arith.constant 0 : index
    %170 = vector.load %arg11[%c15, %c0_93, %c0_94] : memref<16x8x4xf32, #tpu.memory_space<vmem>>, vector<1x8x4xf32>
    %171 = vector.shape_cast %170 : vector<1x8x4xf32> to vector<8x4xf32>
    %cst_95 = arith.constant dense<0.000000e+00> : vector<8x16xf32>
    %172 = tpu.matmul %171, %169, %cst_95 {dimension_numbers = #tpu.dot_dimension_numbers<[1], [1], [0], [0], [0, 0, 1, 0], [], []>} : vector<8x4xf32>, vector<16x4xf32>, vector<8x16xf32> -> vector<8x16xf32>
    %173 = arith.addf %165, %172 : vector<8x16xf32>
    %c0_96 = arith.constant 0 : index
    %c0_97 = arith.constant 0 : index
    %174 = vector.load %arg12[%c0_96, %c0_97] : memref<8x1xf32, #tpu.memory_space<vmem>>, vector<8x1xf32>
    %175 = vector.broadcast %174 : vector<8x1xf32> to vector<8x16xf32>
    %176 = arith.addf %173, %175 : vector<8x16xf32>
    %c0_98 = arith.constant 0 : index
    %c0_99 = arith.constant 0 : index
    %c0_100 = arith.constant 0 : index
    %177 = vector.load %arg13[%c0_98, %c0_99, %c0_100] : memref<1x8x16xf32, #tpu.memory_space<vmem>>, vector<1x8x16xf32>
    %178 = vector.shape_cast %177 : vector<1x8x16xf32> to vector<8x16xf32>
    %179 = vector.shape_cast %176 : vector<8x16xf32> to vector<1x8x16xf32>
    tpu.vector_store %arg13[%c0_98, %c0_99, %c0_100], %179 {strides = array<i32>} : memref<1x8x16xf32, #tpu.memory_space<vmem>>, vector<1x8x16xf32>,
    return
  }
  func.func @transform_0(%arg0: i32, %arg1: i32) -> (i32, i32, i32, i32) {
    %c0_i32 = arith.constant 0 : i32
    %c0_i32_0 = arith.constant 0 : i32
    %c0_i32_1 = arith.constant 0 : i32
    return %arg0, %arg1, %c0_i32, %c0_i32_0 : i32, i32, i32, i32
  }
  func.func @transform_1(%arg0: i32, %arg1: i32) -> (i32, i32, i32) {
    %c0_i32 = arith.constant 0 : i32
    %c0_i32_0 = arith.constant 0 : i32
    return %arg0, %arg1, %c0_i32 : i32, i32, i32
  }
  func.func @transform_2(%arg0: i32, %arg1: i32) -> (i32, i32, i32, i32) {
    %c0_i32 = arith.constant 0 : i32
    %c0_i32_0 = arith.constant 0 : i32
    %c0_i32_1 = arith.constant 0 : i32
    return %arg0, %arg1, %c0_i32, %c0_i32_0 : i32, i32, i32, i32
  }
  func.func @transform_3(%arg0: i32, %arg1: i32) -> (i32, i32) {
    %c0_i32 = arith.constant 0 : i32
    %c0_i32_0 = arith.constant 0 : i32
    %c0_i32_1 = arith.constant 0 : i32
    return %c0_i32, %c0_i32_0 : i32, i32
  }
  func.func @transform_4(%arg0: i32, %arg1: i32) -> (i32, i32) {
    %c0_i32 = arith.constant 0 : i32
    %c0_i32_0 = arith.constant 0 : i32
    %c0_i32_1 = arith.constant 0 : i32
    return %c0_i32, %c0_i32_0 : i32, i32
  }
  func.func @transform_5(%arg0: i32, %arg1: i32) -> (i32, i32) {
    %c0_i32 = arith.constant 0 : i32
    %c0_i32_0 = arith.constant 0 : i32
    %c0_i32_1 = arith.constant 0 : i32
    return %c0_i32, %c0_i32_0 : i32, i32
  }
  func.func @transform_6(%arg0: i32, %arg1: i32) -> (i32, i32) {
    %c0_i32 = arith.constant 0 : i32
    %c0_i32_0 = arith.constant 0 : i32
    %c0_i32_1 = arith.constant 0 : i32
    return %c0_i32, %c0_i32_0 : i32, i32
  }
  func.func @transform_7(%arg0: i32, %arg1: i32) -> (i32, i32) {
    %c0_i32 = arith.constant 0 : i32
    %c0_i32_0 = arith.constant 0 : i32
    %c0_i32_1 = arith.constant 0 : i32
    return %c0_i32, %c0_i32_0 : i32, i32
  }
  func.func @transform_8(%arg0: i32, %arg1: i32) -> (i32, i32) {
    %c0_i32 = arith.constant 0 : i32
    %c0_i32_0 = arith.constant 0 : i32
    %c0_i32_1 = arith.constant 0 : i32
    return %c0_i32, %c0_i32_0 : i32, i32
  }
  func.func @transform_9(%arg0: i32, %arg1: i32) -> (i32, i32, i32) {
    %c0_i32 = arith.constant 0 : i32
    %c0_i32_0 = arith.constant 0 : i32
    %c0_i32_1 = arith.constant 0 : i32
    %c0_i32_2 = arith.constant 0 : i32
    return %c0_i32, %c0_i32_0, %c0_i32_1 : i32, i32, i32
  }
  func.func @transform_10(%arg0: i32, %arg1: i32) -> (i32, i32) {
    %c0_i32 = arith.constant 0 : i32
    %c0_i32_0 = arith.constant 0 : i32
    %c0_i32_1 = arith.constant 0 : i32
    return %c0_i32, %c0_i32_0 : i32, i32
  }
  func.func @transform_11(%arg0: i32, %arg1: i32) -> (i32, i32, i32) {
    %c0_i32 = arith.constant 0 : i32
    %c0_i32_0 = arith.constant 0 : i32
    return %arg0, %c0_i32, %arg1 : i32, i32, i32
  }
}

</mosaic_0001>

<bundles_post_ra>
// kernel: tpu_custom_call.1
= control target key start
LH: loop header
LB: loop body
LE: loop exit
PB: predicated region body
PF: predicated region fallthrough
CT: control target
= control target key end

     0   :  { %s9750_s0 = inlined_call_operand.vmem [shape: f32[2,16,8,3], index: 0, kind: input, shape index: {}]   ;;  %s9751_s1 = inlined_call_operand.vmem [shape: f32[2,16,3], index: 1, kind: input, shape index: {}]   ;;  %s9752_s2 = inlined_call_operand.vmem [shape: f32[2,16,8,4], index: 2, kind: input, shape index: {}]   ;;  %s9753_s3 = inlined_call_operand.vmem [shape: f32[3,16], index: 3, kind: input, shape index: {}]   ;;  %s9754_s4 = inlined_call_operand.vmem [shape: f32[1,16], index: 4, kind: input, shape index: {}]   ;;  %s9755_s5 = inlined_call_operand.vmem [shape: f32[16,16], index: 5, kind: input, shape index: {}]   ;;  %s9756_s6 = inlined_call_operand.vmem [shape: f32[1,16], index: 6, kind: input, shape index: {}]   ;;  %s9757_s7 = inlined_call_operand.vmem [shape: f32[16,16], index: 7, kind: input, shape index: {}]   ;;  %s9758_s8 = inlined_call_operand.vmem [shape: f32[1,16], index: 8, kind: input, shape index: {}]   ;;  %s9759_s9 = inlined_call_operand.vmem [shape: f32[16,8,4], index: 9, kind: input, shape index: {}]   ;;  %s9760_s10 = inlined_call_operand.vmem [shape: f32[8,1], index: 10, kind: input, shape index: {}]   ;;  %s9761_s11 = inlined_call_operand.hbm [shape: f32[2,8,16], index: 11, kind: output, shape index: {}]  }
   0x1   :  { %9858 = sst [smem:[#allocation102_spill]] %s9750_s0 }
   0x2   :  { %9859 = sst [smem:[#allocation103_spill]] %s9751_s1 }
   0x3   :  { %16 = vsyncpa [#allocation3], 0 }
   0x4   :  { %18 = vsyncpa [#allocation3 + $0x1], 0  ;;  %s6542_s17 = smov 0   ;;  %s6544_s18 = smov 0  }
   0x5   :  { %s6546_s19 = smov 0   ;;  %s6548_s20 = smov 0  }
   0x6   :  { %s6550_s21 = smov 0   ;;  %s6552_s22 = smov 0  }
   0x7 LB: > { %s5839_s23 = sadd.s32 4294967295, %s6463_s22   ;;  %s5840_s24 = sadd.s32 4294967294, %s6463_s22   ;;  %s6463_s22 = sphi %s6552_s22, %s24_s22   ;;  %s6459_s21 = sphi %s6550_s21, %s10336_s21   ;;  %s6455_s20 = sphi %s6548_s20, %s10335_s20   ;;  %s6451_s19 = sphi %s6546_s19, %s10334_s19   ;;  %s6447_s18 = sphi %s6544_s18, %s10333_s18   ;;  %s6443_s17 = sphi %s6542_s17, %s10332_s17  }
   0x8   : > { %s36_s25 = sadd.s32 1, %s6459_s21  ;;  %s297_s26 = sadd.s32 1, %s6451_s19 }
   0x9   : > { %p38_p0 = scmp.ge.s32.totalorder %s36_s25, 2  ;;  %p307_p1 = scmp.ne.s32.totalorder %s6451_s19, %s6447_s18 }
   0xa   : > { %p308_p2 = scmp.eq.s32.totalorder %s5839_s23, 1  ;;  %p313_p3 = scmp.ne.s32.totalorder %s6447_s18, %s6443_s17 }
   0xb   : > { %s10338_s25 = smov (%p38_p0, %s36_s25), 0  ;;  %p314_p5 = scmp.eq.s32.totalorder %s5840_s24, 1 }
   0xc   : > { %p6582_p4 = por %p308_p2, %p307_p1  ;;  %s292_s28 = ssub.s32 %s6459_s21, %s10338_s25 }
   0xd   : > { %p5843_p6 = scmp.ge.s32.totalorder %s6463_s22, 1  ;;  %p295_p7 = scmp.eq.s32.totalorder %s292_s28, 0 }
   0xe   : > { %p6589_p8 = por %p314_p5, %p313_p3  ;;  %p395_p9 = scmp.lt.s32.totalorder %s6463_s22, 3 }
   0xf   : > { %s6595_s30 = scalar_select %p295_p7, %s6451_s19, %s297_s26  }
  0x10   : > { %p396_p10 = pnand %p5843_p6, %p395_p9 }
  0x12   : > { %399 = sbr.rel (%p396_p10) target bundleno = 1718 (0x6b6), region = 64 }
  0x17   : > { %p458_p11 = scmp.lt.s32.totalorder %s6455_s20, 1  ;;  %s9862_s0 = sld [smem:[#allocation102_spill]]  ;;  %vm585_vm0 = vcmask 23552   ;;  %v1226_v54 = vld [vmem:[%s9753_s3] sm:$0x7]  ;;  %vm1279_vm1 = vcmask 1042432  }
  0x18   : > { %s9863_s1 = sld [smem:[#allocation103_spill]]  ;;  %5867 = vmatpush.msk.msra.mxu0 %vm1279_vm1, %v1226_v54 }
  0x19   : > { %s6599_s12 = scalar_select %p458_p11, %s6455_s20, 1 }
  0x1b   : > { %s5983_s13 = sshll.u32 %s6599_s12, 7  ;;  %s5984_s14 = sshll.u32 %s6599_s12, 4 }
  0x1c   : > { %s7463_s24 = scalar_lea.vmem %s9752_s2, %s5983_s13 }
  0x1d   : > { %s6608_s23 = scalar_lea.vmem %s9862_s0, %s5983_s13 }
  0x1e   : > { %s6613_s28 = scalar_lea.vmem %s9863_s1, %s5984_s14  ;;  %v487_v0 = vld [vmem:[%s6608_s23] sm:$0xff]  ;;  %v488_v7 = vld [vmem:[%s6608_s23 + $0x8] sm:$0xff]  ;;  %v489_v8 = vld [vmem:[%s6608_s23 + $0x10] sm:$0xff] }
  0x1f   : > { %v503_v1 = vld [vmem:[%s6613_s28] sm:$0xff]  ;;  %v6619_v6 = vld [vmem:[%s6613_s28 + $0x8] sm:$0xff]  ;;  %v490_v17 = vld [vmem:[%s6608_s23 + $0x18] sm:$0xff] }
  0x20   : > { %v521_v2 = vperm.slane %v503_v1, 0  ;;  %v507_v3 = vrot.slane %v503_v1, 1  ;;  %v508_v4 = vrot.slane %v503_v1, 2  ;;  %v495_v5 = vld [vmem:[%s6608_s23 + $0x40] sm:$0xff]  ;;  %v529_v9 = vperm.slane %v6619_v6, 0  ;;  %v493_v37 = vld [vmem:[%s6608_s23 + $0x30] sm:$0xff] }
  0x21   : > { %v509_v10 = vrot.slane %v503_v1, 3  ;;  %v510_v11 = vrot.slane %v503_v1, 4  ;;  %v491_v15 = vld [vmem:[%s6608_s23 + $0x20] sm:$0xff]  ;;  %v512_v23 = vrot.slane %v503_v1, 6  ;;  %v511_v26 = vrot.slane %v503_v1, 5  ;;  %v492_v39 = vld [vmem:[%s6608_s23 + $0x28] sm:$0xff] }
  0x22   : > { %v6624_v12 = vsub.f32 %v487_v0, %v521_v2  ;;  %v522_v13 = vperm.slane %v507_v3, 0  ;;  %v523_v14 = vperm.slane %v508_v4, 0  ;;  %v6627_v16 = vsub.f32 %v495_v5, %v529_v9  ;;  %v494_v41 = vld [vmem:[%s6608_s23 + $0x38] sm:$0xff] }
  0x23   : > { %v524_v18 = vperm.slane %v509_v10, 0  ;;  %v525_v19 = vperm.slane %v510_v11, 0  ;;  %v527_v33 = vperm.slane %v512_v23, 0  ;;  %v513_v34 = vrot.slane %v503_v1, 7 }
  0x24   : > { %v569_v20 = vmul.f32 %v6624_v12, %v6624_v12  ;;  %v6632_v21 = vsub.f32 %v488_v7, %v522_v13  ;;  %v6634_v22 = vsub.f32 %v489_v8, %v523_v14  ;;  %v577_v24 = vmul.f32 %v6627_v16, %v6627_v16 }
  0x25   : > { %v6638_v25 = vsub.f32 %v491_v15, %v525_v19  ;;  %v6643_v29 = vsub.f32 %v490_v17, %v524_v18  ;;  %v526_v36 = vperm.slane %v511_v26, 0  ;;  %v528_v40 = vperm.slane %v513_v34, 0 }
  0x26   : > { %v586_v27 = vsel %vm585_vm0, %v569_v20, 0.0  ;;  %v571_v28 = vmul.f32 %v6634_v22, %v6634_v22  ;;  %v610_v30 = vsel %vm585_vm0, %v577_v24, 0.0  ;;  %v570_v31 = vmul.f32 %v6632_v21, %v6632_v21 }
  0x27   : > { %587 = vadd.xlane.f32.xlu0 %v586_v27  ;;  %611 = vadd.xlane.f32.xlu2 %v610_v30  ;;  %v573_v35 = vmul.f32 %v6638_v25, %v6638_v25  ;;  %v572_v38 = vmul.f32 %v6643_v29, %v6643_v29  ;;  %v6657_v43 = vsub.f32 %v493_v37, %v527_v33  ;;  %v6465_v37 = vmov 0.0  }
  0x28   : > { %v592_v32 = vsel %vm585_vm0, %v571_v28, 0.0  ;;  %v589_v42 = vsel %vm585_vm0, %v570_v31, 0.0  ;;  %v6660_v45 = vsub.f32 %v492_v39, %v526_v36  ;;  %v6663_v47 = vsub.f32 %v494_v41, %v528_v40 }
  0x29   : > { %593 = vadd.xlane.f32.xlu1 %v592_v32  ;;  %v598_v44 = vsel %vm585_vm0, %v573_v35, 0.0  ;;  %v595_v46 = vsel %vm585_vm0, %v572_v38, 0.0  ;;  %v575_v48 = vmul.f32 %v6657_v43, %v6657_v43 }
  0x2a   : > { %v574_v49 = vmul.f32 %v6660_v45, %v6660_v45  ;;  %v576_v50 = vmul.f32 %v6663_v47, %v6663_v47 }
  0x2b   : > { %v604_v51 = vsel %vm585_vm0, %v575_v48, 0.0 }
  0x2c   : > { %v601_v52 = vsel %vm585_vm0, %v574_v49, 0.0  ;;  %v607_v53 = vsel %vm585_vm0, %v576_v50, 0.0 }
  0x2f   : > { %590 = vadd.xlane.f32.xlu0 %v589_v42  ;;  %599 = vadd.xlane.f32.xlu2 %v598_v44 }
  0x31   : > { %596 = vadd.xlane.f32.xlu1 %v595_v46 }
  0x37   : > { %605 = vadd.xlane.f32.xlu0 %v604_v51  ;;  %602 = vadd.xlane.f32.xlu2 %v601_v52 }
  0x39   : > { %608 = vadd.xlane.f32.xlu1 %v607_v53 }
  0x9a   : > { %v588_v55 = vpop.xlane.xlu0 %587  ;;  %v612_v35 = vpop.xlane.xlu2 %611 }
  0x9b   : > { %v634_v56 = vrot.slane %v588_v55, 4 }
  0x9c   : > { %v594_v57 = vpop.xlane.xlu1 %593 }
  0x9d   : > { %v635_v58 = vmax.f32 %v588_v55, %v634_v56  ;;  %v646_v59 = vrot.slane %v594_v57, 4 }
  0x9f   : > { %v636_v60 = vrot.slane %v635_v58, 2  ;;  %v647_v62 = vmax.f32 %v594_v57, %v646_v59 }
  0xa1   : > { %v637_v61 = vmax.f32 %v635_v58, %v636_v60  ;;  %v648_v4 = vrot.slane %v647_v62, 2 }
  0xa2   : > { %v591_v63 = vpop.xlane.xlu0 %590  ;;  %v600_v55 = vpop.xlane.xlu2 %599 }
  0xa3   : > { %v638_v0 = vrot.slane %v637_v61, 1  ;;  %v640_v1 = vrot.slane %v591_v63, 4  ;;  %v649_v8 = vmax.f32 %v647_v62, %v648_v4  ;;  %v658_v60 = vrot.slane %v600_v55, 4 }
  0xa4   : > { %v597_v36 = vpop.xlane.xlu1 %596 }
  0xa5   : > { %v639_v2 = vmax.f32 %v637_v61, %v638_v0  ;;  %v641_v3 = vmax.f32 %v591_v63, %v640_v1  ;;  %v650_v13 = vrot.slane %v649_v8, 1  ;;  %v652_v39 = vrot.slane %v597_v36, 4 }
  0xa6   : > { %v659_v4 = vmax.f32 %v600_v55, %v658_v60 }
  0xa7   : > { %6290 = vrsqrt.f32 %v639_v2  ;;  %v642_v5 = vrot.slane %v641_v3, 2  ;;  %v6677_v17 = vmax.f32 %v649_v8, %v650_v13  ;;  %vm737_vm2 = vcmp.eq.f32.partialorder %v639_v2, inf }
  0xa8   : > { %v740_v28 = vand.u32 2147483648, %v639_v2  ;;  %vm739_vm3 = vcmp.eq.f32.partialorder %v639_v2, 0.0  ;;  %v653_v44 = vmax.f32 %v597_v36, %v652_v39  ;;  %v660_v13 = vrot.slane %v659_v4, 2 }
  0xa9   : > { %v643_v7 = vmax.f32 %v641_v3, %v642_v5  ;;  %vm761_vm12 = vcmp.eq.f32.partialorder %v6677_v17, inf  ;;  %vm763_vm13 = vcmp.eq.f32.partialorder %v6677_v17, 0.0  ;;  %v764_v36 = vand.u32 2147483648, %v6677_v17 }
  0xaa   : > { %v654_v49 = vrot.slane %v653_v44, 2  ;;  %v606_v50 = vpop.xlane.xlu0 %605 }
  0xab   : > { %v644_v9 = vrot.slane %v643_v7, 1  ;;  %v670_v56 = vrot.slane %v606_v50, 4 }
  0xac   : > { %v655_v53 = vmax.f32 %v653_v44, %v654_v49  ;;  %v609_v57 = vpop.xlane.xlu1 %608 }
  0xad   : > { %v6291_v10 = vpop.eup %6290  ;;  %v645_v11 = vmax.f32 %v643_v7, %v644_v9  ;;  %v676_v63 = vrot.slane %v609_v57, 4  ;;  %v671_v5 = vmax.f32 %v606_v50, %v670_v56 }
  0xae   : > { %v731_v14 = vmul.f32 %v6291_v10, %v639_v2  ;;  %v656_v59 = vrot.slane %v655_v53, 1 }
  0xaf   : > { %6292 = vrsqrt.f32 %v645_v11  ;;  %vm749_vm5 = vcmp.eq.f32.partialorder %v645_v11, inf  ;;  %v752_v46 = vand.u32 2147483648, %v645_v11  ;;  %vm751_vm6 = vcmp.eq.f32.partialorder %v645_v11, 0.0 }
  0xb0   : > { %v732_v15 = vmul.f32 %v6291_v10, %v731_v14  ;;  %6294 = vrsqrt.f32 %v6677_v17  ;;  %v6685_v3 = vmax.f32 %v655_v53, %v656_v59 }
  0xb2   : > { %v733_v18 = vmul.f32 0.5, %v732_v15 }
  0xb4   : > { %v734_v19 = vsub.f32 1.5, %v733_v18  ;;  %v661_v18 = vmax.f32 %v659_v4, %v660_v13 }
  0xb5   : > { %v6293_v20 = vpop.eup %6292 }
  0xb6   : > { %v743_v23 = vmul.f32 %v6293_v20, %v645_v11  ;;  %v735_v24 = vmul.f32 %v6291_v10, %v734_v19  ;;  %v6295_v32 = vpop.eup %6294  ;;  %v677_v10 = vmax.f32 %v609_v57, %v676_v63  ;;  %v603_v19 = vpop.xlane.xlu2 %602 }
  0xb7   : > { %v755_v40 = vmul.f32 %v6295_v32, %v6677_v17 }
  0xb8   : > { %v736_v26 = vmul.f32 %v735_v24, %v639_v2  ;;  %v744_v27 = vmul.f32 %v6293_v20, %v743_v23 }
  0xb9   : > { %v756_v51 = vmul.f32 %v6295_v32, %v755_v40 }
  0xba   : > { %v738_v30 = vsel %vm737_vm2, %v639_v2, %v736_v26  ;;  %v745_v31 = vmul.f32 0.5, %v744_v27  ;;  %v682_v2 = vrot.slane %v612_v35, 4  ;;  %v664_v26 = vrot.slane %v603_v19, 4 }
  0xbb   : > { %v741_v33 = vsel %vm739_vm3, %v740_v28, %v738_v30  ;;  %v757_v58 = vmul.f32 0.5, %v756_v51  ;;  %v678_v27 = vrot.slane %v677_v10, 2  ;;  %v662_v30 = vrot.slane %v661_v18, 1 }
  0xbc   : > { %vm922_vm4 = vcmp.eq.f32.partialorder %v741_v33, 0.0  ;;  %v746_v34 = vsub.f32 1.5, %v745_v31  ;;  %v6688_v15 = vmax.f32 %v612_v35, %v682_v2  ;;  %v665_v35 = vmax.f32 %v603_v19, %v664_v26 }
  0xbd   : > { %v5851_v38 = vsel %vm922_vm4, 1.0, %v6465_v37  ;;  %v758_v7 = vsub.f32 1.5, %v757_v58  ;;  %v6696_v39 = vmax.f32 %v661_v18, %v662_v30  ;;  %vm773_vm4 = vcmp.eq.f32.partialorder %v6685_v3, inf }
  0xbe   : > { %v970_v41 = vadd.f32 %v5851_v38, %v741_v33  ;;  %v747_v42 = vmul.f32 %v6293_v20, %v746_v34  ;;  %v672_v20 = vrot.slane %v671_v5, 2  ;;  %v666_v44 = vrot.slane %v665_v35, 2 }
  0xbf   : > { %v759_v23 = vmul.f32 %v6295_v32, %v758_v7  ;;  %v684_v56 = vrot.slane %v6688_v15, 2  ;;  %v776_v18 = vand.u32 2147483648, %v6685_v3 }
  0xc0   : > { %6296 = vrcp.f32 %v970_v41  ;;  %v748_v48 = vmul.f32 %v747_v42, %v645_v11  ;;  %v995_v9 = vand.u32 2147483647, %v970_v41  ;;  %vm991_vm9 = vweird.f32 %v970_v41 }
  0xc1   : > { %v760_v31 = vmul.f32 %v759_v23, %v6677_v17  ;;  %v673_v40 = vmax.f32 %v671_v5, %v672_v20 }
  0xc2   : > { %v750_v52 = vsel %vm749_vm5, %v645_v11, %v748_v48  ;;  %v997_v11 = vand.u32 2147483648, %v970_v41  ;;  %vm996_vm10 = vcmp.eq.f32.partialorder %v995_v9, 8.507059e+37  ;;  %vm775_vm5 = vcmp.eq.f32.partialorder %v6685_v3, 0.0 }
  0xc3   : > { %v753_v54 = vsel %vm751_vm6, %v752_v46, %v750_v52  ;;  %v679_v46 = vmax.f32 %v677_v10, %v678_v27  ;;  %v762_v50 = vsel %vm761_vm12, %v6677_v17, %v760_v31  ;;  %v674_v58 = vrot.slane %v673_v40, 1 }
  0xc4   : > { %vm923_vm7 = vcmp.eq.f32.partialorder %v753_v54, 0.0  ;;  %v998_v28 = vor.u32 1.1754944e-38, %v997_v11  ;;  %v765_v53 = vsel %vm763_vm13, %v764_v36, %v762_v50  ;;  %v685_v10 = vmax.f32 %v6688_v15, %v684_v56 }
  0xc5   : > { %v5852_v62 = vsel %vm923_vm7, 1.0, %v6465_v37  ;;  %vm924_vm1 = vcmp.eq.f32.partialorder %v765_v53, 0.0  ;;  %v514_v36 = vrot.slane %v6619_v6, 1 }
  0xc6   : > { %v6297_v61 = vpop.eup %6296  ;;  %v6683_v1 = vadd.f32 %v5852_v62, %v753_v54  ;;  %v5853_v59 = vsel %vm924_vm1, 1.0, %v6465_v37  ;;  %v686_v23 = vrot.slane %v685_v10, 1 }
  0xc7   : > { %v987_v0 = vmul.f32 %v6297_v61, %v970_v41  ;;  %vm992_vm8 = vweird.f32 %v6297_v61  ;;  %v972_v62 = vadd.f32 %v5853_v59, %v765_v53 }
  0xc8   : > { %6298 = vrcp.f32 %v6683_v1  ;;  %vm993_vm11 = vmor %vm991_vm9, %vm992_vm8  ;;  %vm1006_vm14 = vweird.f32 %v6683_v1  ;;  %v1010_v51 = vand.u32 2147483647, %v6683_v1  ;;  %v1012_v52 = vand.u32 2147483648, %v6683_v1 }
  0xc9   : > { %v988_v8 = vsub.f32 1.0, %v987_v0  ;;  %6300 = vrsqrt.f32 %v6685_v3  ;;  %vm1021_vm6 = vweird.f32 %v972_v62  ;;  %v1025_v26 = vand.u32 2147483647, %v972_v62 }
  0xca   : > { %6302 = vrsqrt.f32 %v6696_v39  ;;  %v1013_v0 = vor.u32 1.1754944e-38, %v1012_v52  ;;  %vm1011_vm3 = vcmp.eq.f32.partialorder %v1010_v51, 8.507059e+37  ;;  %v1027_v30 = vand.u32 2147483648, %v972_v62 }
  0xcb   : > { %v989_v14 = vmul.f32 %v6297_v61, %v988_v8  ;;  %6304 = vrcp.f32 %v972_v62  ;;  %v6718_v8 = vmax.f32 %v673_v40, %v674_v58  ;;  %vm785_vm9 = vcmp.eq.f32.partialorder %v6696_v39, inf }
  0xcc   : > { %v1028_v50 = vor.u32 1.1754944e-38, %v1027_v30  ;;  %vm1026_vm12 = vcmp.eq.f32.partialorder %v1025_v26, 8.507059e+37 }
  0xcd   : > { %v990_v24 = vadd.f32 %v6297_v61, %v989_v14 }
  0xce   : > { %v6299_v33 = vpop.eup %6298 }
  0xcf   : > { %v994_v34 = vsel %vm993_vm11, %v6297_v61, %v990_v24  ;;  %v1002_v32 = vmul.f32 %v6299_v33, %v6683_v1  ;;  %v6301_v41 = vpop.eup %6300  ;;  %vm1007_vm15 = vweird.f32 %v6299_v33  ;;  %v680_v61 = vrot.slane %v679_v46, 1 }
  0xd0   : > { %v999_v38 = vsel %vm996_vm10, %v998_v28, %v994_v34  ;;  %v767_v49 = vmul.f32 %v6301_v41, %v6685_v3  ;;  %vm1008_vm2 = vmor %vm1006_vm14, %vm1007_vm15  ;;  %v6303_v2 = vpop.eup %6302  ;;  %vm787_vm11 = vcmp.eq.f32.partialorder %v6696_v39, 0.0 }
  0xd1   : > { %v1000_v42 = vmul.f32 %v999_v38, %v6624_v12  ;;  %v1003_v48 = vsub.f32 1.0, %v1002_v32  ;;  %v667_v12 = vmax.f32 %v665_v35, %v666_v44  ;;  %v779_v7 = vmul.f32 %v6303_v2, %v6696_v39  ;;  %v6305_v20 = vpop.eup %6304  ;;  %v496_v32 = vld [vmem:[%s6608_s23 + $0x48] sm:$0xff] }
  0xd2   : > { %v768_v55 = vmul.f32 %v6301_v41, %v767_v49  ;;  %v6722_v1 = vmax.f32 %v679_v46, %v680_v61  ;;  %v1017_v24 = vmul.f32 %v6305_v20, %v972_v62  ;;  %vm1022_vm7 = vweird.f32 %v6305_v20 }
  0xd3   : > { %5868 = vmatmul.msk.f32.vlgmr.msra.gmra.mxu0 %vm585_vm0, %v1000_v42  ;;  %v1004_v54 = vmul.f32 %v6299_v33, %v1003_v48  ;;  %v668_v57 = vrot.slane %v667_v12, 1  ;;  %v780_v13 = vmul.f32 %v6303_v2, %v779_v7  ;;  %v788_v38 = vand.u32 2147483648, %v6696_v39  ;;  %vm6745_vm10 = vmor %vm1021_vm6, %vm1022_vm7 }
  0xd4   : > { %v769_v63 = vmul.f32 0.5, %v768_v55  ;;  %v530_v48 = vperm.slane %v514_v36, 0  ;;  %v6755_v55 = vmax.f32 %v685_v10, %v686_v23  ;;  %vm809_vm6 = vcmp.eq.f32.partialorder %v6718_v8, inf }
  0xd5   : > { %v1005_v60 = vadd.f32 %v6299_v33, %v1004_v54  ;;  %v6714_v17 = vmax.f32 %v667_v12, %v668_v57  ;;  %v781_v19 = vmul.f32 0.5, %v780_v13 }
  0xd6   : > { %v770_v11 = vsub.f32 1.5, %v769_v63  ;;  %v6753_v54 = vsub.f32 %v496_v32, %v530_v48  ;;  %v812_v32 = vand.u32 2147483648, %v6718_v8 }
  0xd7   : > { %v1009_v4 = vsel %vm1008_vm2, %v6299_v33, %v1005_v60  ;;  %6306 = vrsqrt.f32 %v6714_v17  ;;  %v782_v27 = vsub.f32 1.5, %v781_v19  ;;  %v1018_v33 = vsub.f32 1.0, %v1017_v24 }
  0xd8   : > { %v1014_v5 = vsel %vm1011_vm3, %v1013_v0, %v1009_v4  ;;  %v771_v14 = vmul.f32 %v6301_v41, %v770_v11  ;;  %6308 = vrsqrt.f32 %v6718_v8  ;;  %v578_v59 = vmul.f32 %v6753_v54, %v6753_v54 }
  0xd9   : > { %v1015_v9 = vmul.f32 %v1014_v5, %v6632_v21  ;;  %6310 = vrsqrt.f32 %v6722_v1  ;;  %v783_v35 = vmul.f32 %v6303_v2, %v782_v27  ;;  %v1019_v42 = vmul.f32 %v6305_v20, %v1018_v33 }
  0xda   : > { %v772_v21 = vmul.f32 %v771_v14, %v6685_v3  ;;  %v613_v63 = vsel %vm585_vm0, %v578_v59, 0.0  ;;  %vm797_vm14 = vcmp.eq.f32.partialorder %v6714_v17, inf  ;;  %v800_v4 = vand.u32 2147483648, %v6714_v17 }
  0xdb   : > { %5869 = vmatmul.msk.f32.gmra.mxu0 %vm585_vm0, %v1015_v9  ;;  %v784_v46 = vmul.f32 %v783_v35, %v6696_v39  ;;  %v1020_v12 = vadd.f32 %v6305_v20, %v1019_v42  ;;  %614 = vadd.xlane.f32.xlu0 %v613_v63  ;;  %vm799_vm15 = vcmp.eq.f32.partialorder %v6714_v17, 0.0 }
  0xdc   : > { %v774_v31 = vsel %vm773_vm4, %v6685_v3, %v772_v21 }
  0xdd   : > { %v6307_v15 = vpop.eup %6306  ;;  %v777_v34 = vsel %vm775_vm5, %v776_v18, %v774_v31  ;;  %v786_v53 = vsel %vm785_vm9, %v6696_v39, %v784_v46  ;;  %v1024_v57 = vsel %vm6745_vm10, %v6305_v20, %v1020_v12  ;;  %v497_v31 = vld [vmem:[%s6608_s23 + $0x50] sm:$0xff] }
  0xde   : > { %v791_v28 = vmul.f32 %v6307_v15, %v6714_v17  ;;  %vm925_vm8 = vcmp.eq.f32.partialorder %v777_v34, 0.0  ;;  %v6309_v41 = vpop.eup %6308  ;;  %v789_v58 = vsel %vm787_vm11, %v788_v38, %v786_v53  ;;  %v1029_v61 = vsel %vm1026_vm12, %v1028_v50, %v1024_v57 }
  0xdf   : > { %v5854_v44 = vsel %vm925_vm8, 1.0, %v6465_v37  ;;  %v6741_v3 = vpop.eup %6310  ;;  %v803_v56 = vmul.f32 %v6309_v41, %v6718_v8  ;;  %vm926_vm13 = vcmp.eq.f32.partialorder %v789_v58, 0.0  ;;  %v1030_v62 = vmul.f32 %v1029_v61, %v6634_v22 }
  0xe0   : > { %v792_v40 = vmul.f32 %v6307_v15, %v791_v28  ;;  %v973_v51 = vadd.f32 %v5854_v44, %v777_v34  ;;  %v5855_v39 = vsel %vm926_vm13, 1.0, %v6465_v37  ;;  %v815_v10 = vmul.f32 %v6741_v3, %v6722_v1 }
  0xe1   : > { %v974_v2 = vadd.f32 %v5855_v39, %v789_v58  ;;  %v804_v5 = vmul.f32 %v6309_v41, %v803_v56  ;;  %vm811_vm8 = vcmp.eq.f32.partialorder %v6718_v8, 0.0  ;;  %vm821_vm13 = vcmp.eq.f32.partialorder %v6722_v1, inf }
  0xe2   : > { %v793_v52 = vmul.f32 0.5, %v792_v40  ;;  %6312 = vrcp.f32 %v973_v51  ;;  %v1040_v9 = vand.u32 2147483647, %v973_v51  ;;  %vm1036_vm1 = vweird.f32 %v973_v51 }
  0xe3   : > { %6314 = vrsqrt.f32 %v6755_v55  ;;  %5870 = vmatmul.msk.f32.gmra.mxu0 %vm585_vm0, %v1030_v62  ;;  %v805_v14 = vmul.f32 0.5, %v804_v5  ;;  %v1042_v18 = vand.u32 2147483648, %v973_v51  ;;  %v1055_v34 = vand.u32 2147483647, %v974_v2 }
  0xe4   : > { %v794_v60 = vsub.f32 1.5, %v793_v52  ;;  %6316 = vrcp.f32 %v974_v2  ;;  %vm6774_vm4 = vcmp.eq.f32.partialorder %v1040_v9, 8.507059e+37  ;;  %v1057_v35 = vand.u32 2147483648, %v974_v2 }
  0xe5   : > { %v806_v23 = vsub.f32 1.5, %v805_v14  ;;  %v1043_v33 = vor.u32 1.1754944e-38, %v1042_v18  ;;  %vm1051_vm7 = vweird.f32 %v974_v2  ;;  %vm6797_vm10 = vcmp.eq.f32.partialorder %v1055_v34, 8.507059e+37 }
  0xe6   : > { %v795_v0 = vmul.f32 %v6307_v15, %v794_v60  ;;  %v1058_v50 = vor.u32 1.1754944e-38, %v1057_v35  ;;  %v824_v58 = vand.u32 2147483648, %v6722_v1 }
  0xe7   : > { %v807_v28 = vmul.f32 %v6309_v41, %v806_v23 }
  0xe8   : > { %v796_v7 = vmul.f32 %v795_v0, %v6714_v17  ;;  %v6313_v22 = vpop.eup %6312 }
  0xe9   : > { %v1032_v11 = vmul.f32 %v6313_v22, %v973_v51  ;;  %vm1037_vm2 = vweird.f32 %v6313_v22  ;;  %v6779_v24 = vpop.eup %6314  ;;  %v808_v41 = vmul.f32 %v807_v28, %v6718_v8 }
  0xea   : > { %v798_v13 = vsel %vm797_vm14, %v6714_v17, %v796_v7  ;;  %v816_v17 = vmul.f32 %v6741_v3, %v815_v10  ;;  %v6317_v30 = vpop.eup %6316  ;;  %vm6783_vm5 = vmor %vm1036_vm1, %vm1037_vm2  ;;  %v827_v40 = vmul.f32 %v6779_v24, %v6755_v55  ;;  %vm823_vm14 = vcmp.eq.f32.partialorder %v6722_v1, 0.0 }
  0xeb   : > { %v801_v19 = vsel %vm799_vm15, %v800_v4, %v798_v13  ;;  %v1033_v20 = vsub.f32 1.0, %v1032_v11  ;;  %v1047_v38 = vmul.f32 %v6317_v30, %v974_v2  ;;  %vm1052_vm9 = vweird.f32 %v6317_v30 }
  0xec   : > { %vm927_vm3 = vcmp.eq.f32.partialorder %v801_v19, 0.0  ;;  %v817_v46 = vmul.f32 0.5, %v816_v17  ;;  %v810_v51 = vsel %vm809_vm6, %v6718_v8, %v808_v41  ;;  %vm6806_vm11 = vmor %vm1051_vm7, %vm1052_vm9  ;;  %v828_v61 = vmul.f32 %v6779_v24, %v827_v40 }
  0xed   : > { %v5856_v15 = vsel %vm927_vm3, 1.0, %v6465_v37  ;;  %v1034_v26 = vmul.f32 %v6313_v22, %v1033_v20  ;;  %v1048_v44 = vsub.f32 1.0, %v1047_v38  ;;  %v813_v53 = vsel %vm811_vm8, %v812_v32, %v810_v51 }
  0xee   : > { %v975_v27 = vadd.f32 %v5856_v15, %v801_v19  ;;  %v818_v56 = vsub.f32 1.5, %v817_v46  ;;  %vm928_vm12 = vcmp.eq.f32.partialorder %v813_v53, 0.0  ;;  %v829_v5 = vmul.f32 0.5, %v828_v61 }
  0xef   : > { %v1035_v36 = vadd.f32 %v6313_v22, %v1034_v26  ;;  %v1049_v12 = vmul.f32 %v6317_v30, %v1048_v44  ;;  %vm835_vm6 = vcmp.eq.f32.partialorder %v6755_v55, 0.0 }
  0xf0   : > { %6318 = vrcp.f32 %v975_v27  ;;  %v819_v60 = vmul.f32 %v6741_v3, %v818_v56  ;;  %vm1066_vm15 = vweird.f32 %v975_v27  ;;  %v1070_v39 = vand.u32 2147483647, %v975_v27 }
  0xf1   : > { %v1039_v42 = vsel %vm6783_vm5, %v6313_v22, %v1035_v36  ;;  %v1050_v8 = vadd.f32 %v6317_v30, %v1049_v12  ;;  %v1072_v2 = vand.u32 2147483648, %v975_v27  ;;  %v830_v13 = vsub.f32 1.5, %v829_v5 }
  0xf2   : > { %v1044_v48 = vsel %vm6774_vm4, %v1043_v33, %v1039_v42  ;;  %v820_v4 = vmul.f32 %v819_v60, %v6722_v1  ;;  %vm1071_vm4 = vcmp.eq.f32.partialorder %v1070_v39, 8.507059e+37  ;;  %vm833_vm5 = vcmp.eq.f32.partialorder %v6755_v55, inf }
  0xf3   : > { %v1045_v52 = vmul.f32 %v1044_v48, %v6643_v29  ;;  %v5857_v29 = vsel %vm928_vm12, 1.0, %v6465_v37  ;;  %v1054_v0 = vsel %vm6806_vm11, %v6317_v30, %v1050_v8  ;;  %v1073_v18 = vor.u32 1.1754944e-38, %v1072_v2 }
  0xf4   : > { %v976_v63 = vadd.f32 %v5857_v29, %v813_v53  ;;  %v1059_v7 = vsel %vm6797_vm10, %v1058_v50, %v1054_v0  ;;  %v822_v9 = vsel %vm821_vm13, %v6722_v1, %v820_v4  ;;  %v831_v20 = vmul.f32 %v6779_v24, %v830_v13 }
  0xf5   : > { %5871 = vmatmul.msk.f32.gmra.mxu0 %vm585_vm0, %v1045_v52  ;;  %v1060_v3 = vmul.f32 %v1059_v7, %v6638_v25  ;;  %v825_v11 = vsel %vm823_vm14, %v824_v58, %v822_v9  ;;  %v515_v1 = vrot.slane %v6619_v6, 2  ;;  %v1365_v9 = vld [vmem:[%s9755_s5 + $0x8] sm:$0xff] }
  0xf6   : > { %v6319_v59 = vpop.eup %6318  ;;  %6320 = vrcp.f32 %v976_v63  ;;  %vm929_vm3 = vcmp.eq.f32.partialorder %v825_v11, 0.0  ;;  %v832_v26 = vmul.f32 %v831_v20, %v6755_v55  ;;  %vm1081_vm7 = vweird.f32 %v976_v63  ;;  %1433 = vmatpush.msra.mxu1 %v1365_v9 }
  0xf7   : > { %v1062_v62 = vmul.f32 %v6319_v59, %v975_v27  ;;  %vm1067_vm1 = vweird.f32 %v6319_v59  ;;  %v5858_v25 = vsel %vm929_vm3, 1.0, %v6465_v37  ;;  %v836_v27 = vand.u32 2147483648, %v6755_v55 }
  0xf8   : > { %vm6829_vm2 = vmor %vm1066_vm15, %vm1067_vm1  ;;  %v977_v23 = vadd.f32 %v5858_v25, %v825_v11  ;;  %v1085_v24 = vand.u32 2147483647, %v976_v63  ;;  %v1087_v30 = vand.u32 2147483648, %v976_v63  ;;  %v834_v35 = vsel %vm833_vm5, %v6755_v55, %v832_v26  ;;  %v498_v11 = vld [vmem:[%s6608_s23 + $0x58] sm:$0xff] }
  0xf9   : > { %v1063_v22 = vsub.f32 1.0, %v1062_v62  ;;  %v531_v36 = vperm.slane %v515_v1, 0  ;;  %v837_v38 = vsel %vm835_vm6, %v836_v27, %v834_v35  ;;  %vm1370_vm5 = vcmask 130048   ;;  %v499_v27 = vld [vmem:[%s6608_s23 + $0x60] sm:$0xff] }
  0xfa   : > { %6322 = vrcp.f32 %v977_v23  ;;  %vm930_vm9 = vcmp.eq.f32.partialorder %v837_v38, 0.0  ;;  %v1088_v42 = vor.u32 1.1754944e-38, %v1087_v30  ;;  %vm1086_vm11 = vcmp.eq.f32.partialorder %v1085_v24, 8.507059e+37 }
  0xfb   : > { %v1064_v10 = vmul.f32 %v6319_v59, %v1063_v22  ;;  %v6846_v40 = vsub.f32 %v497_v31, %v531_v36  ;;  %v5859_v44 = vsel %vm930_vm9, 1.0, %v6465_v37  ;;  %vm1096_vm12 = vweird.f32 %v977_v23 }
  0xfc   : > { %v6321_v21 = vpop.eup %6320  ;;  %v978_v48 = vadd.f32 %v5859_v44, %v837_v38  ;;  %v1100_v51 = vand.u32 2147483647, %v977_v23  ;;  %v1102_v52 = vand.u32 2147483648, %v977_v23 }
  0xfd   : > { %v1065_v19 = vadd.f32 %v6319_v59, %v1064_v10  ;;  %5872 = vmatmul.msk.f32.gmra.mxu0 %vm585_vm0, %v1060_v3  ;;  %v1077_v17 = vmul.f32 %v6321_v21, %v976_v63  ;;  %vm1082_vm8 = vweird.f32 %v6321_v21  ;;  %v579_v55 = vmul.f32 %v6846_v40, %v6846_v40 }
  0xfe   : > { %vm6848_vm10 = vmor %vm1081_vm7, %vm1082_vm8  ;;  %6324 = vrcp.f32 %v978_v48  ;;  %vm1101_vm15 = vcmp.eq.f32.partialorder %v1100_v51, 8.507059e+37  ;;  %v1117_v39 = vand.u32 2147483648, %v978_v48  ;;  %vm1111_vm1 = vweird.f32 %v978_v48  ;;  %v500_v51 = vld [vmem:[%s6608_s23 + $0x68] sm:$0xff] }
  0xff   : > { %v1069_v15 = vsel %vm6829_vm2, %v6319_v59, %v1065_v19  ;;  %v1078_v34 = vsub.f32 1.0, %v1077_v17  ;;  %v616_v56 = vsel %vm585_vm0, %v579_v55, 0.0  ;;  %v1103_v59 = vor.u32 1.1754944e-38, %v1102_v52  ;;  %v6881_v19 = vld [vmem:[%s9754_s4] ss:$0 sm:$0xff] }
 0x100   : > { %v1074_v28 = vsel %vm1071_vm4, %v1073_v18, %v1069_v15  ;;  %v6323_v46 = vpop.eup %6322  ;;  %617 = vadd.xlane.f32.xlu1 %v616_v56  ;;  %v1115_v0 = vand.u32 2147483647, %v978_v48  ;;  %v1118_v4 = vor.u32 1.1754944e-38, %v1117_v39  ;;  %v516_v10 = vrot.slane %v6619_v6, 3 }
 0x101   : > { %v1075_v33 = vmul.f32 %v1074_v28, %v6660_v45  ;;  %v1079_v32 = vmul.f32 %v6321_v21, %v1078_v34  ;;  %v1092_v49 = vmul.f32 %v6323_v46, %v977_v23  ;;  %vm1097_vm13 = vweird.f32 %v6323_v46 }
 0x102   : > { %vm1098_vm14 = vmor %vm1096_vm12, %vm1097_vm13  ;;  %vm1116_vm4 = vcmp.eq.f32.partialorder %v1115_v0, 8.507059e+37  ;;  %v532_v13 = vperm.slane %v516_v10, 0  ;;  %v517_v15 = vrot.slane %v6619_v6, 4 }
 0x103   : > { %v1080_v45 = vadd.f32 %v6321_v21, %v1079_v32  ;;  %v1093_v53 = vsub.f32 1.0, %v1092_v49 }
 0x104   : > { %v6325_v29 = vpop.eup %6324  ;;  %v6873_v14 = vsub.f32 %v498_v11, %v532_v13  ;;  %v533_v28 = vperm.slane %v517_v15, 0 }
 0x105   : > { %5873 = vmatmul.msk.f32.gmra.mxu0 %vm585_vm0, %v1075_v33  ;;  %v1084_v50 = vsel %vm6848_vm10, %v6321_v21, %v1080_v45  ;;  %v1094_v58 = vmul.f32 %v6323_v46, %v1093_v53  ;;  %v1107_v61 = vmul.f32 %v6325_v29, %v978_v48  ;;  %vm1112_vm2 = vweird.f32 %v6325_v29 }
 0x106   : > { %v1089_v12 = vsel %vm1086_vm11, %v1088_v42, %v1084_v50  ;;  %vm1113_vm3 = vmor %vm1111_vm1, %vm1112_vm2  ;;  %v6889_v17 = vsub.f32 %v499_v27, %v533_v28  ;;  %v518_v50 = vrot.slane %v6619_v6, 5 }
 0x107   : > { %v1090_v57 = vmul.f32 %v1089_v12, %v6657_v43  ;;  %v1095_v8 = vadd.f32 %v6323_v46, %v1094_v58  ;;  %v1108_v63 = vsub.f32 1.0, %v1107_v61 }
 0x108   : > { %v581_v24 = vmul.f32 %v6889_v17, %v6889_v17  ;;  %v534_v52 = vperm.slane %v518_v50, 0 }
 0x109   : > { %v1099_v60 = vsel %vm1098_vm14, %v6323_v46, %v1095_v8  ;;  %v1109_v43 = vmul.f32 %v6325_v29, %v1108_v63 }
 0x10a   : > { %v1104_v62 = vsel %vm1101_vm15, %v1103_v59, %v1099_v60  ;;  %v622_v30 = vsel %vm585_vm0, %v581_v24, 0.0  ;;  %v6902_v53 = vsub.f32 %v500_v51, %v534_v52  ;;  %v501_v52 = vld [vmem:[%s6608_s23 + $0x70] sm:$0xff] }
 0x10b   : > { %v1105_v2 = vmul.f32 %v1104_v62, %v6663_v47  ;;  %v1110_v5 = vadd.f32 %v6325_v29, %v1109_v43  ;;  %v1364_v47 = vld [vmem:[%s9755_s5] sm:$0xff]  ;;  %623 = vadd.xlane.f32.xlu0 %v622_v30 }
 0x10c   : > { %1434 = vmatpush.msra.mxu1 %v1364_v47  ;;  %v582_v58 = vmul.f32 %v6902_v53, %v6902_v53 }
 0x10d   : > { %5874 = vmatmul.msk.f32.gmra.mxu0 %vm585_vm0, %v1090_v57  ;;  %v1114_v7 = vsel %vm1113_vm3, %v6325_v29, %v1110_v5 }
 0x10e   : > { %v1119_v22 = vsel %vm1116_vm4, %v1118_v4, %v1114_v7  ;;  %v625_v8 = vsel %vm585_vm0, %v582_v58, 0.0 }
 0x10f   : > { %v1120_v3 = vmul.f32 %v1119_v22, %v6627_v16  ;;  %v580_v16 = vmul.f32 %v6873_v14, %v6873_v14  ;;  %626 = vadd.xlane.f32.xlu1 %v625_v8 }
 0x111   : > { %v619_v18 = vsel %vm585_vm0, %v580_v16, 0.0 }
 0x112   : > { %620 = vadd.xlane.f32.xlu2 %v619_v18 }
 0x115   : > { %5875 = vmatmul.msk.f32.gmra.mxu0 %vm585_vm0, %v1105_v2 }
 0x11d   : > { %5876 = vmatmul.msk.f32.gmra.mxu0 %vm585_vm0, %v1120_v3 }
 0x14e   : > { %v615_v35 = vpop.xlane.xlu0 %614 }
 0x14f   : > { %v688_v36 = vrot.slane %v615_v35, 4 }
 0x150   : > { %v1300_v25 = vpop.f32.mrf.mxu0 }
 0x151   : > { %v1301_v20 = vadd.f32 %v6881_v19, %v1300_v25  ;;  %v689_v38 = vmax.f32 %v615_v35, %v688_v36  ;;  %v1501_v35 = vld [vmem:[%s9757_s7 + $0x8] sm:$0xff] }
 0x152   : > { %1568 = vmatpush.msra.mxu2 %v1501_v35 }
 0x153   : > { %v1348_v23 = vmax.f32 %v1301_v20, 0.0  ;;  %v690_v44 = vrot.slane %v689_v38, 2 }
 0x155   : > { %5884 = vmatmul.msk.f32.vlgmr.msra.gmra.mxu1 %vm1370_vm5, %v1348_v23  ;;  %v691_v46 = vmax.f32 %v689_v38, %v690_v44  ;;  %v1500_v38 = vld [vmem:[%s9757_s7] sm:$0xff] }
 0x156   : > { %1569 = vmatpush.msra.mxu2 %v1500_v38 }
 0x157   : > { %v692_v55 = vrot.slane %v691_v46, 1 }
 0x158   : > { %v1303_v1 = vpop.f32.mrf.mxu0 }
 0x159   : > { %v1304_v21 = vadd.f32 %v6881_v19, %v1303_v1  ;;  %v693_v12 = vmax.f32 %v691_v46, %v692_v55  ;;  %v6354_v55 = vld [vmem:[%s6613_s28 + $0x8] sm:$0xff]  ;;  %s454_s28 = sand.u32 1, %s6447_s18  }
 0x15a   : > { %s5844_s16 = sshll.u32 %s454_s28, 3 }
 0x15b   : > { %v1349_v26 = vmax.f32 %v1304_v21, 0.0  ;;  %6326 = vrsqrt.f32 %v693_v12  ;;  %vm845_vm6 = vcmp.eq.f32.partialorder %v693_v12, inf  ;;  %v848_v13 = vand.u32 2147483648, %v693_v12  ;;  %s456_s26 = scalar_lea.vmem [#allocation2], %s5844_s16  ;;  %s6405_s16 = scalar_lea.hbm %s9761_s11, 16 }
 0x15c   : > { %vm847_vm7 = vcmp.eq.f32.partialorder %v693_v12, 0.0  ;;  %s5726_s14 = sshll.u32 %s456_s26, 4  ;;  %s5727_s14 = int_to_ptr.vmem [resolvable:$true] %s5726_s14 }
 0x15d   : > { %5885 = vmatmul.msk.f32.gmra.mxu1 %vm1370_vm5, %v1349_v26 }
 0x160   : > { %v1306_v31 = vpop.f32.mrf.mxu0 }
 0x161   : > { %v1307_v33 = vadd.f32 %v6881_v19, %v1306_v31  ;;  %v6327_v29 = vpop.eup %6326 }
 0x162   : > { %v839_v62 = vmul.f32 %v6327_v29, %v693_v12 }
 0x163   : > { %v1350_v34 = vmax.f32 %v1307_v33, 0.0 }
 0x164   : > { %v840_v2 = vmul.f32 %v6327_v29, %v839_v62 }
 0x165   : > { %5886 = vmatmul.msk.f32.gmra.mxu1 %vm1370_vm5, %v1350_v34 }
 0x166   : > { %v841_v4 = vmul.f32 0.5, %v840_v2  ;;  %v6935_v2 = vld [vmem:[%s9756_s6] ss:$0 sm:$0xff] }
 0x168   : > { %v842_v22 = vsub.f32 1.5, %v841_v4 }
 0x16a   : > { %v843_v3 = vmul.f32 %v6327_v29, %v842_v22 }
 0x16c   : > { %v844_v10 = vmul.f32 %v843_v3, %v693_v12 }
 0x16e   : > { %v846_v16 = vsel %vm845_vm6, %v693_v12, %v844_v10 }
 0x16f   : > { %v849_v20 = vsel %vm847_vm7, %v848_v13, %v846_v16 }
 0x170   : > { %vm931_vm8 = vcmp.eq.f32.partialorder %v849_v20, 0.0 }
 0x171   : > { %v5860_v23 = vsel %vm931_vm8, 1.0, %v6465_v37 }
 0x172   : > { %v1309_v32 = vpop.f32.mrf.mxu0  ;;  %v979_v1 = vadd.f32 %v5860_v23, %v849_v20 }
 0x173   : > { %v1310_v41 = vadd.f32 %v6881_v19, %v1309_v32  ;;  %v618_v39 = vpop.xlane.xlu1 %617 }
 0x174   : > { %v694_v63 = vrot.slane %v618_v39, 4  ;;  %6328 = vrcp.f32 %v979_v1  ;;  %v1132_v30 = vand.u32 2147483648, %v979_v1  ;;  %vm1126_vm9 = vweird.f32 %v979_v1 }
 0x175   : > { %v1351_v42 = vmax.f32 %v1310_v41, 0.0  ;;  %v1130_v34 = vand.u32 2147483647, %v979_v1 }
 0x176   : > { %v695_v7 = vmax.f32 %v618_v39, %v694_v63  ;;  %v1133_v36 = vor.u32 1.1754944e-38, %v1132_v30 }
 0x177   : > { %5887 = vmatmul.msk.f32.gmra.mxu1 %vm1370_vm5, %v1351_v42  ;;  %vm1131_vm12 = vcmp.eq.f32.partialorder %v1130_v34, 8.507059e+37 }
 0x178   : > { %v696_v9 = vrot.slane %v695_v7, 2 }
 0x17a   : > { %v1312_v45 = vpop.f32.mrf.mxu0  ;;  %v697_v25 = vmax.f32 %v695_v7, %v696_v9  ;;  %v6329_v26 = vpop.eup %6328 }
 0x17b   : > { %v1313_v48 = vadd.f32 %v6881_v19, %v1312_v45  ;;  %v1122_v27 = vmul.f32 %v6329_v26, %v979_v1  ;;  %vm1127_vm10 = vweird.f32 %v6329_v26 }
 0x17c   : > { %v698_v21 = vrot.slane %v697_v25, 1  ;;  %vm1128_vm11 = vmor %vm1126_vm9, %vm1127_vm10 }
 0x17d   : > { %v1352_v49 = vmax.f32 %v1313_v48, 0.0  ;;  %v1123_v28 = vsub.f32 1.0, %v1122_v27 }
 0x17e   : > { %v699_v15 = vmax.f32 %v697_v25, %v698_v21 }
 0x17f   : > { %5888 = vmatmul.msk.f32.gmra.mxu1 %vm1370_vm5, %v1352_v49  ;;  %v1124_v24 = vmul.f32 %v6329_v26, %v1123_v28  ;;  %v519_v49 = vrot.slane %v6354_v55, 6 }
 0x180   : > { %6330 = vrsqrt.f32 %v699_v15  ;;  %vm857_vm13 = vcmp.eq.f32.partialorder %v699_v15, inf  ;;  %vm859_vm14 = vcmp.eq.f32.partialorder %v699_v15, 0.0 }
 0x181   : > { %v1125_v33 = vadd.f32 %v6329_v26, %v1124_v24 }
 0x182   : > { %v1315_v56 = vpop.f32.mrf.mxu0 }
 0x183   : > { %v1316_v57 = vadd.f32 %v6881_v19, %v1315_v56  ;;  %v1129_v32 = vsel %vm1128_vm11, %v6329_v26, %v1125_v33  ;;  %v860_v56 = vand.u32 2147483648, %v699_v15 }
 0x184   : > { %v1134_v42 = vsel %vm1131_vm12, %v1133_v36, %v1129_v32 }
 0x185   : > { %v1353_v59 = vmax.f32 %v1316_v57, 0.0  ;;  %v1135_v44 = vmul.f32 %v1134_v42, %v6753_v54  ;;  %v621_v50 = vpop.xlane.xlu2 %620  ;;  %v535_v57 = vperm.slane %v519_v49, 0 }
 0x186   : > { %v6331_v31 = vpop.eup %6330  ;;  %v700_v12 = vrot.slane %v621_v50, 4 }
 0x187   : > { %5889 = vmatmul.msk.f32.gmra.mxu1 %vm1370_vm5, %v1353_v59  ;;  %v851_v41 = vmul.f32 %v6331_v31, %v699_v15  ;;  %5877 = vmatmul.msk.f32.gmra.mxu0 %vm585_vm0, %v1135_v44  ;;  %v6926_v8 = vsub.f32 %v501_v52, %v535_v57 }
 0x188   : > { %v701_v59 = vmax.f32 %v621_v50, %v700_v12 }
 0x189   : > { %v852_v46 = vmul.f32 %v6331_v31, %v851_v41  ;;  %v583_v29 = vmul.f32 %v6926_v8, %v6926_v8 }
 0x18a   : > { %v1318_v6 = vpop.f32.mrf.mxu0 }
 0x18b   : > { %v1319_v60 = vadd.f32 %v6881_v19, %v1318_v6  ;;  %v853_v45 = vmul.f32 0.5, %v852_v46  ;;  %v628_v62 = vsel %vm585_vm0, %v583_v29, 0.0 }
 0x18c   : > { %629 = vadd.xlane.f32.xlu2 %v628_v62 }
 0x18d   : > { %v1354_v61 = vmax.f32 %v1319_v60, 0.0  ;;  %v854_v48 = vsub.f32 1.5, %v853_v45  ;;  %v702_v60 = vrot.slane %v701_v59, 2 }
 0x18f   : > { %5890 = vmatmul.msk.f32.gmra.mxu1 %vm1370_vm5, %v1354_v61  ;;  %v855_v51 = vmul.f32 %v6331_v31, %v854_v48  ;;  %v703_v63 = vmax.f32 %v701_v59, %v702_v60  ;;  %v624_v31 = vpop.xlane.xlu0 %623 }
 0x190   : > { %v706_v35 = vrot.slane %v624_v31, 4 }
 0x191   : > { %v856_v58 = vmul.f32 %v855_v51, %v699_v15 }
 0x192   : > { %v1321_v0 = vpop.f32.mrf.mxu0  ;;  %v707_v38 = vmax.f32 %v624_v31, %v706_v35 }
 0x193   : > { %v1322_v43 = vadd.f32 %v6881_v19, %v1321_v0  ;;  %v858_v54 = vsel %vm857_vm13, %v699_v15, %v856_v58  ;;  %v704_v0 = vrot.slane %v703_v63, 1 }
 0x194   : > { %v861_v6 = vsel %vm859_vm14, %v860_v56, %v858_v54  ;;  %v708_v42 = vrot.slane %v707_v38, 2 }
 0x195   : > { %v1355_v5 = vmax.f32 %v1322_v43, 0.0  ;;  %vm932_vm15 = vcmp.eq.f32.partialorder %v861_v6, 0.0  ;;  %v520_v43 = vrot.slane %v6354_v55, 7  ;;  %v705_v9 = vmax.f32 %v703_v63, %v704_v0 }
 0x196   : > { %v5861_v61 = vsel %vm932_vm15, 1.0, %v6465_v37  ;;  %v709_v55 = vmax.f32 %v707_v38, %v708_v42 }
 0x197   : > { %5891 = vmatmul.msk.f32.gmra.mxu1 %vm1370_vm5, %v1355_v5  ;;  %v980_v39 = vadd.f32 %v5861_v61, %v861_v6  ;;  %v502_v5 = vld [vmem:[%s6608_s23 + $0x78] sm:$0xff]  ;;  %v536_v22 = vperm.slane %v520_v43, 0  ;;  %vm869_vm6 = vcmp.eq.f32.partialorder %v705_v9, inf  ;;  %vm871_vm7 = vcmp.eq.f32.partialorder %v705_v9, 0.0  ;;  %s5980_s23 = sshll.u32 %s6455_s20, 3  ;;  %s5713_s20 = scalar_lea.sflag [#allocation3], %s454_s28 }
 0x198   : > { %v710_v52 = vrot.slane %v709_v55, 1 }
 0x199   : > { %6332 = vrcp.f32 %v980_v39  ;;  %vm1141_vm1 = vweird.f32 %v980_v39  ;;  %v1147_v10 = vand.u32 2147483648, %v980_v39  ;;  %v6939_v16 = vsub.f32 %v502_v5, %v536_v22 }
 0x19a   : > { %v1324_v47 = vpop.f32.mrf.mxu0  ;;  %6334 = vrsqrt.f32 %v705_v9  ;;  %v711_v57 = vmax.f32 %v709_v55, %v710_v52 }
 0x19b   : > { %v1325_v11 = vadd.f32 %v6881_v19, %v1324_v47  ;;  %v1145_v47 = vand.u32 2147483647, %v980_v39  ;;  %v584_v20 = vmul.f32 %v6939_v16, %v6939_v16  ;;  %v1148_v23 = vor.u32 1.1754944e-38, %v1147_v10 }
 0x19c   : > { %vm881_vm13 = vcmp.eq.f32.partialorder %v711_v57, inf  ;;  %vm883_vm14 = vcmp.eq.f32.partialorder %v711_v57, 0.0 }
 0x19d   : > { %v1356_v18 = vmax.f32 %v1325_v11, 0.0  ;;  %vm1146_vm4 = vcmp.eq.f32.partialorder %v1145_v47, 8.507059e+37  ;;  %v631_v21 = vsel %vm585_vm0, %v584_v20, 0.0 }
 0x19e   : > { %632 = vadd.xlane.f32.xlu0 %v631_v21 }
 0x19f   : > { %5892 = vmatmul.msk.f32.gmra.mxu1 %vm1370_vm5, %v1356_v18  ;;  %v6333_v4 = vpop.eup %6332 }
 0x1a0   : > { %v1137_v7 = vmul.f32 %v6333_v4, %v980_v39  ;;  %vm1142_vm2 = vweird.f32 %v6333_v4  ;;  %v6335_v24 = vpop.eup %6334 }
 0x1a1   : > { %vm1143_vm3 = vmor %vm1141_vm1, %vm1142_vm2  ;;  %v863_v34 = vmul.f32 %v6335_v24, %v705_v9 }
 0x1a2   : > { %v1138_v13 = vsub.f32 1.0, %v1137_v7 }
 0x1a3   : > { %v864_v36 = vmul.f32 %v6335_v24, %v863_v34 }
 0x1a4   : > { %v1139_v25 = vmul.f32 %v6333_v4, %v1138_v13 }
 0x1a5   : > { %v865_v32 = vmul.f32 0.5, %v864_v36 }
 0x1a6   : > { %v1140_v1 = vadd.f32 %v6333_v4, %v1139_v25 }
 0x1a7   : > { %v866_v41 = vsub.f32 1.5, %v865_v32 }
 0x1a8   : > { %v1144_v15 = vsel %vm1143_vm3, %v6333_v4, %v1140_v1 }
 0x1a9   : > { %v1149_v26 = vsel %vm1146_vm4, %v1148_v23, %v1144_v15  ;;  %v867_v44 = vmul.f32 %v6335_v24, %v866_v41  ;;  %v884_v15 = vand.u32 2147483648, %v711_v57 }
 0x1aa   : > { %v1150_v28 = vmul.f32 %v1149_v26, %v6846_v40  ;;  %v872_v40 = vand.u32 2147483648, %v705_v9 }
 0x1ab   : > { %v868_v48 = vmul.f32 %v867_v44, %v705_v9 }
 0x1ac   : > { %5878 = vmatmul.msk.f32.gmra.mxu0 %vm585_vm0, %v1150_v28 }
 0x1ad   : > { %v870_v50 = vsel %vm869_vm6, %v705_v9, %v868_v48 }
 0x1ae   : > { %v873_v51 = vsel %vm871_vm7, %v872_v40, %v870_v50 }
 0x1af   : > { %vm933_vm8 = vcmp.eq.f32.partialorder %v873_v51, 0.0 }
 0x1b0   : > { %v5862_v12 = vsel %vm933_vm8, 1.0, %v6465_v37 }
 0x1b1   : > { %v981_v56 = vadd.f32 %v5862_v12, %v873_v51 }
 0x1b3   : > { %6336 = vrcp.f32 %v981_v56  ;;  %v1162_v60 = vand.u32 2147483648, %v981_v56  ;;  %vm1156_vm9 = vweird.f32 %v981_v56  ;;  %v1160_v62 = vand.u32 2147483647, %v981_v56 }
 0x1b4   : > { %6338 = vrsqrt.f32 %v711_v57 }
 0x1b5   : > { %v1163_v0 = vor.u32 1.1754944e-38, %v1162_v60  ;;  %vm1161_vm12 = vcmp.eq.f32.partialorder %v1160_v62, 8.507059e+37 }
 0x1b9   : > { %v6337_v59 = vpop.eup %6336 }
 0x1ba   : > { %v1152_v6 = vmul.f32 %v6337_v59, %v981_v56  ;;  %vm1157_vm10 = vweird.f32 %v6337_v59  ;;  %v6339_v39 = vpop.eup %6338 }
 0x1bb   : > { %vm1158_vm11 = vmor %vm1156_vm9, %vm1157_vm10  ;;  %v875_v5 = vmul.f32 %v6339_v39, %v711_v57 }
 0x1bc   : > { %v1153_v61 = vsub.f32 1.0, %v1152_v6 }
 0x1bd   : > { %v876_v10 = vmul.f32 %v6339_v39, %v875_v5 }
 0x1be   : > { %v1154_v63 = vmul.f32 %v6337_v59, %v1153_v61 }
 0x1c0   : > { %v1155_v4 = vadd.f32 %v6337_v59, %v1154_v63 }
 0x1c2   : > { %v1159_v22 = vsel %vm1158_vm11, %v6337_v59, %v1155_v4 }
 0x1c3   : > { %v1164_v9 = vsel %vm1161_vm12, %v1163_v0, %v1159_v22 }
 0x1c4   : > { %v1165_v47 = vmul.f32 %v1164_v9, %v6873_v14  ;;  %v9776_v9 = vmov 2  }
 0x1c5   : > { %6060 = vset.pattern.permute.xlu0 %v9776_v9 }
 0x1c6   : > { %5879 = vmatmul.msk.f32.gmra.mxu0 %vm585_vm0, %v1165_v47  ;;  %v9766_v47 = vmov 1  }
 0x1c7   : > { %6059 = vset.pattern.permute.xlu2 %v9766_v47 }
 0x1d2   : > { %v1436_v3 = vpop.f32.mrf.mxu1 }
 0x1d3   : > { %v1437_v11 = vadd.f32 %v6935_v2, %v1436_v3 }
 0x1d5   : > { %v1484_v18 = vmax.f32 %v1437_v11, 0.0  ;;  %v877_v11 = vmul.f32 0.5, %v876_v10 }
 0x1d7   : > { %5900 = vmatmul.msk.f32.vlgmr.msra.gmra.mxu2 %vm1370_vm5, %v1484_v18  ;;  %v627_v18 = vpop.xlane.xlu1 %626  ;;  %v878_v20 = vsub.f32 1.5, %v877_v11  ;;  %v9768_v11 = vmov 0  }
 0x1d8   : > { %v712_v1 = vrot.slane %v627_v18, 4  ;;  %6058 = vset.pattern.permute.xlu1 %v9768_v11 }
 0x1d9   : > { %v879_v21 = vmul.f32 %v6339_v39, %v878_v20 }
 0x1da   : > { %v1439_v27 = vpop.f32.mrf.mxu1  ;;  %v713_v14 = vmax.f32 %v627_v18, %v712_v1 }
 0x1db   : > { %v1440_v30 = vadd.f32 %v6935_v2, %v1439_v27  ;;  %v880_v26 = vmul.f32 %v879_v21, %v711_v57 }
 0x1dc   : > { %v714_v34 = vrot.slane %v713_v14, 2 }
 0x1dd   : > { %v1485_v33 = vmax.f32 %v1440_v30, 0.0  ;;  %v882_v27 = vsel %vm881_vm13, %v711_v57, %v880_v26 }
 0x1de   : > { %v885_v24 = vsel %vm883_vm14, %v884_v15, %v882_v27  ;;  %v715_v36 = vmax.f32 %v713_v14, %v714_v34 }
 0x1df   : > { %5901 = vmatmul.msk.f32.gmra.mxu2 %vm1370_vm5, %v1485_v33  ;;  %vm934_vm15 = vcmp.eq.f32.partialorder %v885_v24, 0.0 }
 0x1e0   : > { %v5863_v31 = vsel %vm934_vm15, 1.0, %v6465_v37  ;;  %v716_v42 = vrot.slane %v715_v36, 1 }
 0x1e1   : > { %v982_v35 = vadd.f32 %v5863_v31, %v885_v24 }
 0x1e2   : > { %v1442_v46 = vpop.f32.mrf.mxu1  ;;  %v717_v55 = vmax.f32 %v715_v36, %v716_v42 }
 0x1e3   : > { %v1443_v45 = vadd.f32 %v6935_v2, %v1442_v46  ;;  %6340 = vrcp.f32 %v982_v35  ;;  %v1177_v40 = vand.u32 2147483648, %v982_v35  ;;  %vm1171_vm1 = vweird.f32 %v982_v35 }
 0x1e4   : > { %v1175_v48 = vand.u32 2147483647, %v982_v35  ;;  %6342 = vrsqrt.f32 %v717_v55  ;;  %vm893_vm6 = vcmp.eq.f32.partialorder %v717_v55, inf  ;;  %v896_v4 = vand.u32 2147483648, %v717_v55 }
 0x1e5   : > { %v1486_v49 = vmax.f32 %v1443_v45, 0.0  ;;  %v1178_v52 = vor.u32 1.1754944e-38, %v1177_v40  ;;  %vm895_vm7 = vcmp.eq.f32.partialorder %v717_v55, 0.0 }
 0x1e6   : > { %vm1176_vm4 = vcmp.eq.f32.partialorder %v1175_v48, 8.507059e+37 }
 0x1e7   : > { %5902 = vmatmul.msk.f32.gmra.mxu2 %vm1370_vm5, %v1486_v49 }
 0x1e9   : > { %v6341_v41 = vpop.eup %6340 }
 0x1ea   : > { %v1167_v46 = vmul.f32 %v6341_v41, %v982_v35  ;;  %vm1172_vm2 = vweird.f32 %v6341_v41 }
 0x1eb   : > { %vm1173_vm3 = vmor %vm1171_vm1, %vm1172_vm2 }
 0x1ec   : > { %v1168_v45 = vsub.f32 1.0, %v1167_v46 }
 0x1ee   : > { %v1169_v50 = vmul.f32 %v6341_v41, %v1168_v45 }
 0x1f0   : > { %v1170_v12 = vadd.f32 %v6341_v41, %v1169_v50 }
 0x1f2   : > { %v1174_v57 = vsel %vm1173_vm3, %v6341_v41, %v1170_v12 }
 0x1f4   : > { %v1445_v58 = vpop.f32.mrf.mxu1 }
 0x1f5   : > { %v1446_v54 = vadd.f32 %v6935_v2, %v1445_v58  ;;  %v1179_v58 = vsel %vm1176_vm4, %v1178_v52, %v1174_v57 }
 0x1f6   : > { %v1180_v59 = vmul.f32 %v1179_v58, %v6889_v17 }
 0x1f7   : > { %v1487_v29 = vmax.f32 %v1446_v54, 0.0  ;;  %v6343_v54 = vpop.eup %6342 }
 0x1f8   : > { %5880 = vmatmul.msk.f32.gmra.mxu0 %vm585_vm0, %v1180_v59  ;;  %v887_v6 = vmul.f32 %v6343_v54, %v717_v55 }
 0x1f9   : > { %5903 = vmatmul.msk.f32.gmra.mxu2 %vm1370_vm5, %v1487_v29 }
 0x1fa   : > { %v888_v29 = vmul.f32 %v6343_v54, %v887_v6  ;;  %v9784_v6 = vmov 5  }
 0x1fc   : > { %v1448_v43 = vpop.f32.mrf.mxu1  ;;  %v889_v60 = vmul.f32 0.5, %v888_v29  ;;  %v9764_v29 = vmov 4  }
 0x1fd   : > { %v1449_v7 = vadd.f32 %v6935_v2, %v1448_v43 }
 0x1fe   : > { %v890_v61 = vsub.f32 1.5, %v889_v60 }
 0x1ff   : > { %v1488_v3 = vmax.f32 %v1449_v7, 0.0  ;;  %v630_v7 = vpop.xlane.xlu2 %629 }
 0x200   : > { %v891_v39 = vmul.f32 %v6343_v54, %v890_v61  ;;  %v9772_v61 = vmov 3  }
 0x201   : > { %5904 = vmatmul.msk.f32.gmra.mxu2 %vm1370_vm5, %v1488_v3  ;;  %v718_v3 = vrot.slane %v630_v7, 4 }
 0x202   : > { %v892_v0 = vmul.f32 %v891_v39, %v717_v55 }
 0x204   : > { %v1451_v13 = vpop.f32.mrf.mxu1  ;;  %v1327_v62 = vpop.f32.mrf.mxu0  ;;  %v894_v5 = vsel %vm893_vm6, %v717_v55, %v892_v0 }
 0x205   : > { %v1452_v25 = vadd.f32 %v6935_v2, %v1451_v13  ;;  %v1328_v63 = vadd.f32 %v6881_v19, %v1327_v62  ;;  %v897_v17 = vsel %vm895_vm7, %v896_v4, %v894_v5  ;;  %v719_v13 = vmax.f32 %v630_v7, %v718_v3 }
 0x206   : > { %vm935_vm8 = vcmp.eq.f32.partialorder %v897_v17, 0.0  ;;  %v9762_v4 = vmov 7   ;;  %v9780_v5 = vmov 6  }
 0x207   : > { %v1489_v23 = vmax.f32 %v1452_v25, 0.0  ;;  %v1357_v43 = vmax.f32 %v1328_v63, 0.0  ;;  %v5864_v22 = vsel %vm935_vm8, 1.0, %v6465_v37  ;;  %v720_v18 = vrot.slane %v719_v13, 2 }
 0x208   : > { %v983_v10 = vadd.f32 %v5864_v22, %v897_v17 }
 0x209   : > { %5905 = vmatmul.msk.f32.gmra.mxu2 %vm1370_vm5, %v1489_v23  ;;  %5893 = vmatmul.msk.f32.gmra.mxu1 %vm1370_vm5, %v1357_v43  ;;  %v721_v25 = vmax.f32 %v719_v13, %v720_v18  ;;  %v9770_v43 = vmov 8  }
 0x20a   : > { %6344 = vrcp.f32 %v983_v10  ;;  %v1192_v14 = vand.u32 2147483648, %v983_v10  ;;  %vm1186_vm9 = vweird.f32 %v983_v10 }
 0x20b   : > { %v722_v23 = vrot.slane %v721_v25, 1 }
 0x20c   : > { %v1454_v28 = vpop.f32.mrf.mxu1  ;;  %v1193_v24 = vor.u32 1.1754944e-38, %v1192_v14 }
 0x20d   : > { %v1455_v30 = vadd.f32 %v6935_v2, %v1454_v28  ;;  %v723_v21 = vmax.f32 %v721_v25, %v722_v23  ;;  %v1190_v28 = vand.u32 2147483647, %v983_v10 }
 0x20f   : > { %v1490_v33 = vmax.f32 %v1455_v30, 0.0  ;;  %6346 = vrsqrt.f32 %v723_v21  ;;  %vm1191_vm12 = vcmp.eq.f32.partialorder %v1190_v28, 8.507059e+37  ;;  %vm905_vm13 = vcmp.eq.f32.partialorder %v723_v21, inf }
 0x210   : > { %v6345_v20 = vpop.eup %6344  ;;  %v908_v52 = vand.u32 2147483648, %v723_v21  ;;  %vm907_vm14 = vcmp.eq.f32.partialorder %v723_v21, 0.0 }
 0x211   : > { %5906 = vmatmul.msk.f32.gmra.mxu2 %vm1370_vm5, %v1490_v33  ;;  %v1182_v1 = vmul.f32 %v6345_v20, %v983_v10  ;;  %vm1187_vm10 = vweird.f32 %v6345_v20  ;;  %v633_v45 = vpop.xlane.xlu0 %632 }
 0x212   : > { %vm1188_vm11 = vmor %vm1186_vm9, %vm1187_vm10  ;;  %v724_v55 = vrot.slane %v633_v45, 4 }
 0x213   : > { %v1183_v15 = vsub.f32 1.0, %v1182_v1  ;;  %v9782_v1 = vmov 11  }
 0x214   : > { %v1457_v38 = vpop.f32.mrf.mxu1 }
 0x215   : > { %v1458_v32 = vadd.f32 %v6935_v2, %v1457_v38  ;;  %v1184_v26 = vmul.f32 %v6345_v20, %v1183_v15  ;;  %v6347_v31 = vpop.eup %6346  ;;  %v6980_v38 = vld [vmem:[%s9758_s8] ss:$0 sm:$0xff]  ;;  %v9786_v15 = vmov 9  }
 0x216   : > { %v899_v35 = vmul.f32 %v6347_v31, %v723_v21 }
 0x217   : > { %v1491_v44 = vmax.f32 %v1458_v32, 0.0  ;;  %v1185_v27 = vadd.f32 %v6345_v20, %v1184_v26 }
 0x218   : > { %v900_v36 = vmul.f32 %v6347_v31, %v899_v35 }
 0x219   : > { %5907 = vmatmul.msk.f32.gmra.mxu2 %vm1370_vm5, %v1491_v44  ;;  %v1189_v30 = vsel %vm1188_vm11, %v6345_v20, %v1185_v27 }
 0x21a   : > { %v1194_v33 = vsel %vm1191_vm12, %v1193_v24, %v1189_v30  ;;  %v901_v32 = vmul.f32 0.5, %v900_v36 }
 0x21b   : > { %v1195_v34 = vmul.f32 %v1194_v33, %v6902_v53  ;;  %v9774_v33 = vmov 12  }
 0x21c   : > { %v1460_v49 = vpop.f32.mrf.mxu1  ;;  %v902_v42 = vsub.f32 1.5, %v901_v32 }
 0x21d   : > { %v1461_v51 = vadd.f32 %v6935_v2, %v1460_v49  ;;  %5881 = vmatmul.msk.f32.gmra.mxu0 %vm585_vm0, %v1195_v34 }
 0x21e   : > { %v903_v48 = vmul.f32 %v6347_v31, %v902_v42  ;;  %v9796_v31 = vmov 13  }
 0x21f   : > { %v1492_v56 = vmax.f32 %v1461_v51, 0.0  ;;  %v725_v51 = vmax.f32 %v633_v45, %v724_v55 }
 0x220   : > { %v904_v50 = vmul.f32 %v903_v48, %v723_v21 }
 0x221   : > { %5908 = vmatmul.msk.f32.gmra.mxu2 %vm1370_vm5, %v1492_v56  ;;  %v726_v56 = vrot.slane %v725_v51, 2 }
 0x222   : > { %v906_v12 = vsel %vm905_vm13, %v723_v21, %v904_v50  ;;  %v9778_v21 = vmov 10   ;;  %vm2071_vm13 = vcmask 1041409  }
 0x223   : > { %v909_v57 = vsel %vm907_vm14, %v908_v52, %v906_v12  ;;  %v727_v58 = vmax.f32 %v725_v51, %v726_v56  ;;  %vm2073_vm14 = vcmask 1042434  }
 0x224   : > { %vm936_vm15 = vcmp.eq.f32.partialorder %v909_v57, 0.0 }
 0x225   : > { %v5865_v59 = vsel %vm936_vm15, 1.0, %v6465_v37  ;;  %v728_v60 = vrot.slane %v727_v58, 1  ;;  %vm2075_vm15 = vcmask 1043459  }
 0x226   : > { %v984_v54 = vadd.f32 %v5865_v59, %v909_v57 }
 0x227   : > { %v729_v62 = vmax.f32 %v727_v58, %v728_v60 }
 0x228   : > { %6348 = vrcp.f32 %v984_v54  ;;  %v1207_v7 = vand.u32 2147483648, %v984_v54  ;;  %vm1201_vm1 = vweird.f32 %v984_v54  ;;  %v1205_v3 = vand.u32 2147483647, %v984_v54 }
 0x229   : > { %v1330_v46 = vpop.f32.mrf.mxu0  ;;  %6350 = vrsqrt.f32 %v729_v62  ;;  %vm917_vm6 = vcmp.eq.f32.partialorder %v729_v62, inf  ;;  %v920_v35 = vand.u32 2147483648, %v729_v62  ;;  %vm919_vm7 = vcmp.eq.f32.partialorder %v729_v62, 0.0 }
 0x22a   : > { %v1331_v40 = vadd.f32 %v6881_v19, %v1330_v46  ;;  %v1208_v10 = vor.u32 1.1754944e-38, %v1207_v7  ;;  %vm1206_vm4 = vcmp.eq.f32.partialorder %v1205_v3, 8.507059e+37 }
 0x22c   : > { %v1358_v49 = vmax.f32 %v1331_v40, 0.0 }
 0x22e   : > { %5894 = vmatmul.msk.f32.gmra.mxu1 %vm1370_vm5, %v1358_v49  ;;  %v6349_v39 = vpop.eup %6348 }
 0x22f   : > { %v1197_v63 = vmul.f32 %v6349_v39, %v984_v54  ;;  %vm1202_vm2 = vweird.f32 %v6349_v39  ;;  %v6351_v13 = vpop.eup %6350 }
 0x230   : > { %vm1203_vm3 = vmor %vm1201_vm1, %vm1202_vm2  ;;  %v911_v20 = vmul.f32 %v6351_v13, %v729_v62  ;;  %vm2077_vm1 = vcmask 1044484   ;;  %vm2079_vm2 = vcmask 1045509  }
 0x231   : > { %v1198_v0 = vsub.f32 1.0, %v1197_v63 }
 0x232   : > { %v912_v26 = vmul.f32 %v6351_v13, %v911_v20 }
 0x233   : > { %v1199_v17 = vmul.f32 %v6349_v39, %v1198_v0 }
 0x235   : > { %v1200_v22 = vadd.f32 %v6349_v39, %v1199_v17 }
 0x237   : > { %v1204_v18 = vsel %vm1203_vm3, %v6349_v39, %v1200_v22  ;;  %vm2081_vm3 = vcmask 1046534  }
 0x238   : > { %v1209_v25 = vsel %vm1206_vm4, %v1208_v10, %v1204_v18  ;;  %vm2083_vm4 = vcmask 1047559  }
 0x239   : > { %v1210_v23 = vmul.f32 %v1209_v25, %v6926_v8  ;;  %v913_v8 = vmul.f32 0.5, %v912_v26 }
 0x23b   : > { %5882 = vmatmul.msk.f32.gmra.mxu0 %vm585_vm0, %v1210_v23  ;;  %v914_v28 = vsub.f32 1.5, %v913_v8 }
 0x23d   : > { %v915_v24 = vmul.f32 %v6351_v13, %v914_v28 }
 0x23f   : > { %v916_v34 = vmul.f32 %v915_v24, %v729_v62 }
 0x241   : > { %v918_v36 = vsel %vm917_vm6, %v729_v62, %v916_v34 }
 0x242   : > { %v921_v32 = vsel %vm919_vm7, %v920_v35, %v918_v36 }
 0x243   : > { %vm937_vm8 = vcmp.eq.f32.partialorder %v921_v32, 0.0  ;;  %v1333_v42 = vpop.f32.mrf.mxu0 }
 0x244   : > { %v1334_v46 = vadd.f32 %v6881_v19, %v1333_v42 }
 0x246   : > { %v1359_v40 = vmax.f32 %v1334_v46, 0.0 }
 0x248   : > { %5895 = vmatmul.msk.f32.gmra.mxu1 %vm1370_vm5, %v1359_v40 }
 0x25a   : > { %v1571_v41 = vpop.f32.mrf.mxu2 }
 0x25b   : > { %v1572_v44 = vadd.f32 %v6980_v38, %v1571_v41  ;;  %v5866_v41 = vsel %vm937_vm8, 1.0, %v6465_v37 }
 0x25d   : > { %v6984_v53 = vmax.f32 %v1572_v44, 0.0  ;;  %v985_v44 = vadd.f32 %v5866_v41, %v921_v32 }
 0x25f   : > { %9878 = vst [vmem:[#allocation5_spill] sm:$0xff] %v6984_v53  ;;  %2177 = vperm.xlu0 %6060, %v6984_v53   ;;  %1862 = vperm.xlu2 %6059, %v6984_v53   ;;  %6352 = vrcp.f32 %v985_v44  ;;  %v1222_v50 = vand.u32 2147483648, %v985_v44  ;;  %vm1216_vm9 = vweird.f32 %v985_v44  ;;  %v1220_v52 = vand.u32 2147483647, %v985_v44 }
 0x260   : > { %1653 = vperm.xlu1 %6058, %v6984_v53  }
 0x261   : > { %v1223_v12 = vor.u32 1.1754944e-38, %v1222_v50  ;;  %vm1221_vm12 = vcmp.eq.f32.partialorder %v1220_v52, 8.507059e+37 }
 0x262   : > { %v1574_v14 = vpop.f32.mrf.mxu2 }
 0x263   : > { %v1575_v27 = vadd.f32 %v6980_v38, %v1574_v14  ;;  %v7100_v14 = vld [vmem:[%s9754_s4] ss:$0 sm:$0xff] }
 0x265   : > { %v7013_v30 = vmax.f32 %v1575_v27, 0.0  ;;  %v6353_v37 = vpop.eup %6352 }
 0x266   : > { %v1212_v45 = vmul.f32 %v6353_v37, %v985_v44  ;;  %vm1217_vm10 = vweird.f32 %v6353_v37 }
 0x267   : > { %6063 = vset.pattern.permute.xlu0 %v9784_v6  ;;  %6062 = vset.pattern.permute.xlu2 %v9764_v29  ;;  %9879 = vst [vmem:[#allocation6_spill] sm:$0xff] %v7013_v30  ;;  %vm1218_vm11 = vmor %vm1216_vm9, %vm1217_vm10 }
 0x268   : > { %6061 = vset.pattern.permute.xlu1 %v9772_v61  ;;  %2933 = vperm.xlu0 %6063, %v6984_v53   ;;  %v1213_v48 = vsub.f32 1.0, %v1212_v45 }
 0x269   : > { %2681 = vperm.xlu2 %6062, %v6984_v53   ;;  %2429 = vperm.xlu1 %6061, %v6984_v53  }
 0x26a   : > { %v1214_v55 = vmul.f32 %v6353_v37, %v1213_v48  ;;  %v1577_v49 = vpop.f32.mrf.mxu2 }
 0x26b   : > { %v1578_v56 = vadd.f32 %v6980_v38, %v1577_v49 }
 0x26c   : > { %v1215_v51 = vadd.f32 %v6353_v37, %v1214_v55 }
 0x26d   : > { %v7037_v54 = vmax.f32 %v1578_v56, 0.0 }
 0x26e   : > { %v1219_v57 = vsel %vm1218_vm11, %v6353_v37, %v1215_v51 }
 0x26f   : > { %v1224_v58 = vsel %vm1221_vm12, %v1223_v12, %v1219_v57  ;;  %9880 = vst [vmem:[#allocation7_spill] sm:$0xff] %v7037_v54 }
 0x270   : > { %6066 = vset.pattern.permute.xlu0 %v9770_v43  ;;  %v1225_v59 = vmul.f32 %v1224_v58, %v6939_v16 }
 0x271   : > { %6065 = vset.pattern.permute.xlu2 %v9762_v4  ;;  %6064 = vset.pattern.permute.xlu1 %v9780_v5 }
 0x272   : > { %3689 = vperm.xlu0 %6066, %v6984_v53   ;;  %3437 = vperm.xlu2 %6065, %v6984_v53  }
 0x273   : > { %3185 = vperm.xlu1 %6064, %v6984_v53   ;;  %5883 = vmatmul.msk.f32.gmra.mxu0 %vm585_vm0, %v1225_v59  ;;  %vm1747_vm0 = vcmask 31744  }
 0x275   : > { %v1336_v16 = vpop.f32.mrf.mxu0 }
 0x276   : > { %v1337_v60 = vadd.f32 %v6881_v19, %v1336_v16 }
 0x278   : > { %v1360_v62 = vmax.f32 %v1337_v60, 0.0 }
 0x27a   : > { %6069 = vset.pattern.permute.xlu0 %v9782_v1  ;;  %6068 = vset.pattern.permute.xlu2 %v9778_v21 }
 0x27b   : > { %6067 = vset.pattern.permute.xlu1 %v9786_v15  ;;  %4445 = vperm.xlu0 %6069, %v6984_v53  }
 0x27c   : > { %4193 = vperm.xlu2 %6068, %v6984_v53   ;;  %3941 = vperm.xlu1 %6067, %v6984_v53   ;;  %v1580_v19 = vpop.f32.mrf.mxu2 }
 0x27d   : > { %5896 = vmatmul.msk.f32.gmra.mxu1 %vm1370_vm5, %v1360_v62  ;;  %v1581_v34 = vadd.f32 %v6980_v38, %v1580_v19 }
 0x27f   : > { %v7117_v36 = vmax.f32 %v1581_v34, 0.0 }
 0x281   : > { %9882 = vst [vmem:[#allocation9_spill] sm:$0xff] %v7117_v36 }
 0x283   : > { %6077 = vset.pattern.permute.xlu0 %v9780_v5 }
 0x284   : > { %6071 = vset.pattern.permute.xlu2 %v9796_v31  ;;  %6070 = vset.pattern.permute.xlu1 %v9774_v33  ;;  %v7074_v22 = vpop.f32.mrf.mxu2 }
 0x285   : > { %4949 = vperm.xlu2 %6071, %v6984_v53   ;;  %4697 = vperm.xlu1 %6070, %v6984_v53   ;;  %v1584_v60 = vadd.f32 %v6980_v38, %v7074_v22 }
 0x286   : > { %3189 = vperm.xlu0 %6077, %v7013_v30   ;;  %v1463_v63 = vpop.f32.mrf.mxu1 }
 0x287   : > { %v1464_v0 = vadd.f32 %v6935_v2, %v1463_v63  ;;  %v7176_v19 = vmax.f32 %v1584_v60, 0.0 }
 0x289   : > { %v1493_v17 = vmax.f32 %v1464_v0, 0.0  ;;  %9884 = vst [vmem:[#allocation11_spill] sm:$0xff] %v7176_v19 }
 0x28b   : > { %5909 = vmatmul.msk.f32.gmra.mxu2 %vm1370_vm5, %v1493_v17 }
 0x28c   : > { %v1586_v10 = vpop.f32.mrf.mxu2 }
 0x28d   : > { %6072 = vset.pattern.permute.xlu2 %v9768_v11  ;;  %6073 = vset.pattern.permute.xlu1 %v9766_v47  ;;  %v1587_v18 = vadd.f32 %v6980_v38, %v1586_v10 }
 0x28e   : > { %6080 = vset.pattern.permute.xlu0 %v9786_v15  ;;  %1866 = vperm.xlu1 %6073, %v7013_v30  }
 0x28f   : > { %3945 = vperm.xlu0 %6080, %v7013_v30   ;;  %1658 = vperm.xlu2 %6072, %v7013_v30   ;;  %v7093_v20 = vmax.f32 %v1587_v18, 0.0 }
 0x291   : > { %9881 = vst [vmem:[#allocation8_spill] sm:$0xff] %v7093_v20 }
 0x294   : > { %v1589_v49 = vpop.f32.mrf.mxu2 }
 0x295   : > { %v1590_v51 = vadd.f32 %v6980_v38, %v1589_v49 }
 0x296   : > { %6075 = vset.pattern.permute.xlu1 %v9764_v29 }
 0x297   : > { %6083 = vset.pattern.permute.xlu0 %v9774_v33  ;;  %6074 = vset.pattern.permute.xlu2 %v9776_v9  ;;  %v7158_v56 = vmax.f32 %v1590_v51, 0.0 }
 0x298   : > { %4701 = vperm.xlu0 %6083, %v7013_v30   ;;  %2685 = vperm.xlu1 %6075, %v7013_v30  }
 0x299   : > { %2181 = vperm.xlu2 %6074, %v7013_v30   ;;  %9883 = vst [vmem:[#allocation10_spill] sm:$0xff] %v7158_v56 }
 0x29a   : > { %v1339_v26 = vpop.f32.mrf.mxu0 }
 0x29b   : > { %v1340_v8 = vadd.f32 %v7100_v14, %v1339_v26 }
 0x29c   : > { %v1592_v26 = vpop.f32.mrf.mxu2 }
 0x29d   : > { %v1361_v27 = vmax.f32 %v1340_v8, 0.0 }
 0x29f   : > { %5897 = vmatmul.msk.f32.gmra.mxu1 %vm1370_vm5, %v1361_v27  ;;  %v1593_v27 = vadd.f32 %v6980_v38, %v1592_v26 }
 0x2a0   : > { %6085 = vset.pattern.permute.xlu0 %v9768_v11  ;;  %6078 = vset.pattern.permute.xlu1 %v9762_v4 }
 0x2a1   : > { %6076 = vset.pattern.permute.xlu2 %v9784_v6  ;;  %1663 = vperm.xlu0 %6085, %v7037_v54  }
 0x2a2   : > { %3441 = vperm.xlu1 %6078, %v7013_v30   ;;  %2937 = vperm.xlu2 %6076, %v7013_v30  }
 0x2a9   : > { %6086 = vset.pattern.permute.xlu0 %v9766_v47 }
 0x2aa   : > { %6081 = vset.pattern.permute.xlu1 %v9778_v21  ;;  %6079 = vset.pattern.permute.xlu2 %v9770_v43 }
 0x2ab   : > { %1870 = vperm.xlu0 %6086, %v7037_v54   ;;  %4197 = vperm.xlu1 %6081, %v7013_v30   ;;  %v1466_v41 = vpop.f32.mrf.mxu1 }
 0x2ac   : > { %3693 = vperm.xlu2 %6079, %v7013_v30   ;;  %v1467_v44 = vadd.f32 %v6935_v2, %v1466_v41 }
 0x2ae   : > { %v1494_v46 = vmax.f32 %v1467_v44, 0.0  ;;  %v7205_v44 = vmax.f32 %v1593_v27, 0.0 }
 0x2b0   : > { %5910 = vmatmul.msk.f32.gmra.mxu2 %vm1370_vm5, %v1494_v46  ;;  %9885 = vst [vmem:[#allocation12_spill] sm:$0xff] %v7205_v44 }
 0x2b3   : > { %6089 = vset.pattern.permute.xlu0 %v9764_v29  ;;  %6084 = vset.pattern.permute.xlu1 %v9796_v31 }
 0x2b4   : > { %6082 = vset.pattern.permute.xlu2 %v9782_v1  ;;  %2689 = vperm.xlu0 %6089, %v7037_v54  }
 0x2b5   : > { %4953 = vperm.xlu1 %6084, %v7013_v30   ;;  %4449 = vperm.xlu2 %6082, %v7013_v30  }
 0x2b8   : > { %v1342_v12 = vpop.f32.mrf.mxu0 }
 0x2b9   : > { %v7060_v39 = vpop.permute.xlu2 %1862  ;;  %v1343_v57 = vadd.f32 %v7100_v14, %v1342_v12 }
 0x2bb   : > { %v1362_v58 = vmax.f32 %v1343_v57, 0.0 }
 0x2bc   : > { %6092 = vset.pattern.permute.xlu0 %v9762_v4 }
 0x2bd   : > { %6087 = vset.pattern.permute.xlu1 %v9776_v9  ;;  %6088 = vset.pattern.permute.xlu2 %v9772_v61 }
 0x2be   : > { %3445 = vperm.xlu0 %6092, %v7037_v54   ;;  %2185 = vperm.xlu1 %6087, %v7037_v54  }
 0x2bf   : > { %2437 = vperm.xlu2 %6088, %v7037_v54   ;;  %5898 = vmatmul.msk.f32.gmra.mxu1 %vm1370_vm5, %v1362_v58 }
 0x2c3   : > { %v7069_v7 = vpop.permute.xlu2 %2681 }
 0x2c5   : > { %v1469_v18 = vpop.f32.mrf.mxu1 }
 0x2c6   : > { %6095 = vset.pattern.permute.xlu0 %v9778_v21  ;;  %6090 = vset.pattern.permute.xlu1 %v9784_v6  ;;  %v1470_v8 = vadd.f32 %v6935_v2, %v1469_v18 }
 0x2c7   : > { %6091 = vset.pattern.permute.xlu2 %v9780_v5  ;;  %4201 = vperm.xlu0 %6095, %v7037_v54  }
 0x2c8   : > { %2941 = vperm.xlu1 %6090, %v7037_v54   ;;  %3193 = vperm.xlu2 %6091, %v7037_v54   ;;  %v1495_v34 = vmax.f32 %v1470_v8, 0.0 }
 0x2ca   : > { %5911 = vmatmul.msk.f32.gmra.mxu2 %vm1370_vm5, %v1495_v34 }
 0x2cc   : > { %v7080_v3 = vpop.permute.xlu2 %3437 }
 0x2cf   : > { %6098 = vset.pattern.permute.xlu0 %v9796_v31 }
 0x2d0   : > { %6093 = vset.pattern.permute.xlu1 %v9770_v43  ;;  %6094 = vset.pattern.permute.xlu2 %v9786_v15 }
 0x2d1   : > { %4957 = vperm.xlu0 %6098, %v7037_v54   ;;  %3697 = vperm.xlu1 %6093, %v7037_v54   ;;  %v7087_v13 = vpop.permute.xlu0 %2177 }
 0x2d2   : > { %3949 = vperm.xlu2 %6094, %v7037_v54   ;;  %v7091_v25 = vpop.permute.xlu1 %1653 }
 0x2d6   : > { %v7095_v23 = vpop.permute.xlu2 %4193 }
 0x2d9   : > { %6129 = vset.pattern.permute.xlu0 %v9776_v9  ;;  %6096 = vset.pattern.permute.xlu1 %v9782_v1 }
 0x2da   : > { %6097 = vset.pattern.permute.xlu2 %v9774_v33  ;;  %2197 = vperm.xlu0 %6129, %v7093_v20   ;;  %v7107_v28 = vpop.permute.xlu0 %2933 }
 0x2db   : > { %4453 = vperm.xlu1 %6096, %v7037_v54   ;;  %4705 = vperm.xlu2 %6097, %v7037_v54   ;;  %v7111_v24 = vpop.permute.xlu1 %2429 }
 0x2df   : > { %v7115_v35 = vpop.permute.xlu2 %4949 }
 0x2e2   : > { %6132 = vset.pattern.permute.xlu0 %v9784_v6 }
 0x2e3   : > { %6102 = vset.pattern.permute.xlu1 %v9772_v61  ;;  %6099 = vset.pattern.permute.xlu2 %v9768_v11 }
 0x2e4   : > { %2953 = vperm.xlu0 %6132, %v7093_v20   ;;  %2441 = vperm.xlu1 %6102, %v7117_v36   ;;  %v7124_v32 = vpop.permute.xlu0 %3689 }
 0x2e5   : > { %1668 = vperm.xlu2 %6099, %v7117_v36   ;;  %v7127_v42 = vpop.permute.xlu1 %3185 }
 0x2e9   : > { %v7130_v40 = vpop.permute.xlu2 %1658 }
 0x2ec   : > { %6135 = vset.pattern.permute.xlu0 %v9770_v43  ;;  %6105 = vset.pattern.permute.xlu1 %v9780_v5 }
 0x2ed   : > { %6100 = vset.pattern.permute.xlu2 %v9766_v47  ;;  %3709 = vperm.xlu0 %6135, %v7093_v20   ;;  %v7141_v45 = vpop.permute.xlu0 %4445 }
 0x2ee   : > { %3197 = vperm.xlu1 %6105, %v7117_v36   ;;  %1874 = vperm.xlu2 %6100, %v7117_v36   ;;  %v7139_v37 = vpop.permute.xlu1 %3941 }
 0x2f0   : > { %v1345_v51 = vpop.f32.mrf.mxu0 }
 0x2f1   : > { %v1346_v12 = vadd.f32 %v7100_v14, %v1345_v51 }
 0x2f3   : > { %v7143_v48 = vpop.permute.xlu2 %2181  ;;  %v1363_v57 = vmax.f32 %v1346_v12, 0.0  ;;  %v7258_v12 = vld [vmem:[%s9756_s6] ss:$0 sm:$0xff] }
 0x2f5   : > { %6138 = vset.pattern.permute.xlu0 %v9782_v1  ;;  %5899 = vmatmul.msk.f32.gmra.mxu1 %vm1370_vm5, %v1363_v57 }
 0x2f6   : > { %6108 = vset.pattern.permute.xlu1 %v9786_v15  ;;  %6101 = vset.pattern.permute.xlu2 %v9776_v9 }
 0x2f7   : > { %4465 = vperm.xlu0 %6138, %v7093_v20   ;;  %3953 = vperm.xlu1 %6108, %v7117_v36   ;;  %v7150_v55 = vpop.permute.xlu1 %4697 }
 0x2f8   : > { %2189 = vperm.xlu2 %6101, %v7117_v36   ;;  %v7153_v50 = vpop.permute.xlu0 %3189 }
 0x2fa   : > { %v1472_v51 = vpop.f32.mrf.mxu1 }
 0x2fb   : > { %v1473_v57 = vadd.f32 %v7258_v12, %v1472_v51 }
 0x2fc   : > { %v7156_v52 = vpop.permute.xlu2 %2937 }
 0x2ff   : > { %6146 = vset.pattern.permute.xlu0 %v9780_v5  ;;  %6111 = vset.pattern.permute.xlu1 %v9774_v33 }
 0x300   : > { %6103 = vset.pattern.permute.xlu2 %v9764_v29  ;;  %4709 = vperm.xlu1 %6111, %v7117_v36   ;;  %v7165_v59 = vpop.permute.xlu1 %1866 }
 0x301   : > { %2693 = vperm.xlu2 %6103, %v7117_v36   ;;  %3209 = vperm.xlu0 %6146, %v7158_v56   ;;  %v7169_v16 = vpop.permute.xlu0 %3945 }
 0x306   : > { %v7174_v62 = vpop.permute.xlu2 %3693 }
 0x308   : > { %6113 = vset.pattern.permute.xlu1 %v9768_v11  ;;  %v1595_v11 = vpop.f32.mrf.mxu2 }
 0x309   : > { %6104 = vset.pattern.permute.xlu2 %v9784_v6  ;;  %6149 = vset.pattern.permute.xlu0 %v9786_v15 }
 0x30a   : > { %1673 = vperm.xlu1 %6113, %v7176_v19   ;;  %2945 = vperm.xlu2 %6104, %v7117_v36   ;;  %v7183_v63 = vpop.permute.xlu1 %2685  ;;  %v7185_v0 = vpop.permute.xlu0 %4701 }
 0x30b   : > { %3965 = vperm.xlu0 %6149, %v7158_v56  }
 0x30f   : > { %v7188_v17 = vpop.permute.xlu2 %4449 }
 0x312   : > { %6114 = vset.pattern.permute.xlu1 %v9766_v47  ;;  %6106 = vset.pattern.permute.xlu2 %v9762_v4 }
 0x313   : > { %6152 = vset.pattern.permute.xlu0 %v9774_v33  ;;  %1878 = vperm.xlu1 %6114, %v7176_v19   ;;  %v7194_v22 = vpop.permute.xlu0 %1663 }
 0x314   : > { %3449 = vperm.xlu2 %6106, %v7117_v36   ;;  %4721 = vperm.xlu0 %6152, %v7158_v56   ;;  %v7198_v10 = vpop.permute.xlu1 %3441 }
 0x319   : > { %v7202_v41 = vpop.permute.xlu2 %2437 }
 0x31b   : > { %6115 = vset.pattern.permute.xlu1 %v9776_v9 }
 0x31c   : > { %6107 = vset.pattern.permute.xlu2 %v9770_v43  ;;  %6155 = vset.pattern.permute.xlu0 %v9766_v47 }
 0x31d   : > { %2193 = vperm.xlu1 %6115, %v7176_v19   ;;  %3701 = vperm.xlu2 %6107, %v7117_v36   ;;  %v7212_v2 = vpop.permute.xlu1 %4197  ;;  %v7214_v46 = vpop.permute.xlu0 %1870 }
 0x31e   : > { %1890 = vperm.xlu0 %6155, %v7205_v44  }
 0x322   : > { %v7217_v49 = vpop.permute.xlu2 %3193 }
 0x325   : > { %6117 = vset.pattern.permute.xlu1 %v9764_v29  ;;  %6109 = vset.pattern.permute.xlu2 %v9778_v21 }
 0x326   : > { %6158 = vset.pattern.permute.xlu0 %v9764_v29  ;;  %2697 = vperm.xlu1 %6117, %v7176_v19   ;;  %v7224_v58 = vpop.permute.xlu0 %2689 }
 0x327   : > { %4205 = vperm.xlu2 %6109, %v7117_v36   ;;  %2709 = vperm.xlu0 %6158, %v7205_v44   ;;  %v7228_v60 = vpop.permute.xlu1 %4953 }
 0x328   : > { %9886 = vst [vmem:[#allocation13_spill] sm:$0xff] %v7228_v60 }
 0x32c   : > { %v7231_v14 = vpop.permute.xlu2 %3949 }
 0x32d   : > { %9887 = vst [vmem:[#allocation14_spill] sm:$0xff] %v7231_v14 }
 0x32e   : > { %6118 = vset.pattern.permute.xlu1 %v9784_v6 }
 0x32f   : > { %6110 = vset.pattern.permute.xlu2 %v9782_v1  ;;  %6161 = vset.pattern.permute.xlu0 %v9762_v4 }
 0x330   : > { %2949 = vperm.xlu1 %6118, %v7176_v19   ;;  %4457 = vperm.xlu2 %6110, %v7117_v36   ;;  %v7238_v18 = vpop.permute.xlu1 %2185  ;;  %v7240_v26 = vpop.permute.xlu0 %3445 }
 0x331   : > { %9888 = vst [vmem:[#allocation15_spill] sm:$0xff] %v7238_v18  ;;  %3465 = vperm.xlu0 %6161, %v7205_v44  }
 0x332   : > { %9889 = vst [vmem:[#allocation16_spill] sm:$0xff] %v7240_v26 }
 0x335   : > { %v7243_v8 = vpop.permute.xlu2 %4705 }
 0x336   : > { %9890 = vst [vmem:[#allocation17_spill] sm:$0xff] %v7243_v8 }
 0x338   : > { %6120 = vset.pattern.permute.xlu1 %v9762_v4  ;;  %6112 = vset.pattern.permute.xlu2 %v9796_v31  ;;  %v1496_v4 = vmax.f32 %v1473_v57, 0.0  ;;  %v1596_v57 = vadd.f32 %v6980_v38, %v1595_v11 }
 0x339   : > { %6164 = vset.pattern.permute.xlu0 %v9778_v21  ;;  %3453 = vperm.xlu1 %6120, %v7176_v19   ;;  %v7249_v27 = vpop.permute.xlu0 %4201 }
 0x33a   : > { %9891 = vst [vmem:[#allocation18_spill] sm:$0xff] %v7249_v27  ;;  %4961 = vperm.xlu2 %6112, %v7117_v36   ;;  %4221 = vperm.xlu0 %6164, %v7205_v44   ;;  %v7253_v34 = vpop.permute.xlu1 %2941  ;;  %v1475_v36 = vpop.f32.mrf.mxu1 }
 0x33b   : > { %9892 = vst [vmem:[#allocation19_spill] sm:$0xff] %v7253_v34  ;;  %5912 = vmatmul.msk.f32.gmra.mxu2 %vm1370_vm5, %v1496_v4  ;;  %v1476_v54 = vadd.f32 %v7258_v12, %v1475_v36 }
 0x33d   : > { %v1497_v53 = vmax.f32 %v1476_v54, 0.0 }
 0x33f   : > { %v7261_v29 = vpop.permute.xlu2 %1668 }
 0x340   : > { %9893 = vst [vmem:[#allocation20_spill] sm:$0xff] %v7261_v29 }
 0x341   : > { %6121 = vset.pattern.permute.xlu1 %v9770_v43  ;;  %v7277_v43 = vmax.f32 %v1596_v57, 0.0 }
 0x342   : > { %6116 = vset.pattern.permute.xlu2 %v9772_v61  ;;  %6167 = vset.pattern.permute.xlu0 %v9796_v31 }
 0x343   : > { %3705 = vperm.xlu1 %6121, %v7176_v19   ;;  %2445 = vperm.xlu2 %6116, %v7176_v19   ;;  %v7269_v47 = vpop.permute.xlu1 %3697  ;;  %v7272_v51 = vpop.permute.xlu0 %4957  ;;  %9897 = vst [vmem:[#allocation24_spill] sm:$0xff] %v7277_v43 }
 0x344   : > { %9894 = vst [vmem:[#allocation21_spill] sm:$0xff] %v7269_v47  ;;  %4977 = vperm.xlu0 %6167, %v7205_v44   ;;  %5913 = vmatmul.msk.f32.gmra.mxu2 %vm1370_vm5, %v1497_v53  ;;  %v9935_v47 = vmov 13  }
 0x345   : > { %9895 = vst [vmem:[#allocation22_spill] sm:$0xff] %v7272_v51  ;;  %v9930_v51 = vmov 10  }
 0x348   : > { %v7275_v4 = vpop.permute.xlu2 %1874 }
 0x349   : > { %9896 = vst [vmem:[#allocation23_spill] sm:$0xff] %v7275_v4 }
 0x34b   : > { %6123 = vset.pattern.permute.xlu1 %v9778_v21  ;;  %6119 = vset.pattern.permute.xlu2 %v9780_v5  ;;  %v9904_v5 = vmov 12  }
 0x34c   : > { %6170 = vset.pattern.permute.xlu0 %v9776_v9  ;;  %4209 = vperm.xlu1 %6123, %v7176_v19   ;;  %v7283_v61 = vpop.permute.xlu0 %2197 }
 0x34d   : > { %9898 = vst [vmem:[#allocation25_spill] sm:$0xff] %v7283_v61  ;;  %3201 = vperm.xlu2 %6119, %v7176_v19   ;;  %2209 = vperm.xlu0 %6170, %v7277_v43   ;;  %v7287_v33 = vpop.permute.xlu1 %4453 }
 0x34e   : > { %9899 = vst [vmem:[#allocation26_spill] sm:$0xff] %v7287_v33  ;;  %v1478_v33 = vpop.f32.mrf.mxu1 }
 0x352   : > { %v7289_v11 = vpop.permute.xlu2 %2189 }
 0x353   : > { %9900 = vst [vmem:[#allocation27_spill] sm:$0xff] %v7289_v11 }
 0x354   : > { %6124 = vset.pattern.permute.xlu1 %v9782_v1  ;;  %v9905_v1 = vmov 8  }
 0x355   : > { %6122 = vset.pattern.permute.xlu2 %v9786_v15  ;;  %6173 = vset.pattern.permute.xlu0 %v9784_v6 }
 0x356   : > { %4461 = vperm.xlu1 %6124, %v7176_v19   ;;  %3957 = vperm.xlu2 %6122, %v7176_v19   ;;  %v7296_v57 = vpop.permute.xlu1 %2441  ;;  %v7298_v9 = vpop.permute.xlu0 %2953 }
 0x357   : > { %9901 = vst [vmem:[#allocation28_spill] sm:$0xff] %v7296_v57  ;;  %2965 = vperm.xlu0 %6173, %v7277_v43   ;;  %v9911_v57 = vmov 11  }
 0x358   : > { %9902 = vst [vmem:[#allocation29_spill] sm:$0xff] %v7298_v9  ;;  %v9910_v9 = vmov 0  }
 0x35b   : > { %v7301_v21 = vpop.permute.xlu2 %2693 }
 0x35c   : > { %9903 = vst [vmem:[#allocation30_spill] sm:$0xff] %v7301_v21  ;;  %v9917_v21 = vmov 1  }
 0x35e   : > { %6126 = vset.pattern.permute.xlu1 %v9796_v31  ;;  %6125 = vset.pattern.permute.xlu2 %v9904_v5  ;;  %v9909_v31 = vmov 3  }
 0x35f   : > { %6176 = vset.pattern.permute.xlu0 %v9905_v1  ;;  %4965 = vperm.xlu1 %6126, %v7176_v19   ;;  %v7307_v6 = vpop.permute.xlu0 %3709 }
 0x360   : > { %9906 = vst [vmem:[#allocation31_spill] sm:$0xff] %v7307_v6  ;;  %4713 = vperm.xlu2 %6125, %v7176_v19   ;;  %3721 = vperm.xlu0 %6176, %v7277_v43   ;;  %v7311_v15 = vpop.permute.xlu1 %3197  ;;  %v1598_v6 = vpop.f32.mrf.mxu2 }
 0x361   : > { %9907 = vst [vmem:[#allocation32_spill] sm:$0xff] %v7311_v15  ;;  %v1599_v54 = vadd.f32 %v6980_v38, %v1598_v6 }
 0x363   : > { %v7330_v36 = vmax.f32 %v1599_v54, 0.0  ;;  %v9921_v54 = vmov 9  }
 0x364   : > { %v7314_v30 = vpop.permute.xlu2 %2945 }
 0x365   : > { %9908 = vst [vmem:[#allocation33_spill] sm:$0xff] %v7314_v30  ;;  %v9916_v30 = vmov 6  }
 0x366   : > { %9915 = vst [vmem:[#allocation37_spill] sm:$0xff] %v7330_v36 }
 0x367   : > { %6130 = vset.pattern.permute.xlu1 %v9909_v31 }
 0x368   : > { %6127 = vset.pattern.permute.xlu2 %v9910_v9  ;;  %6179 = vset.pattern.permute.xlu0 %v9911_v57 }
 0x369   : > { %2449 = vperm.xlu1 %6130, %v7093_v20   ;;  %1678 = vperm.xlu2 %6127, %v7093_v20   ;;  %v7322_v19 = vpop.permute.xlu1 %3953  ;;  %v7324_v15 = vpop.permute.xlu0 %4465 }
 0x36a   : > { %9912 = vst [vmem:[#allocation34_spill] sm:$0xff] %v7322_v19  ;;  %4477 = vperm.xlu0 %6179, %v7277_v43  }
 0x36b   : > { %9913 = vst [vmem:[#allocation35_spill] sm:$0xff] %v7324_v15 }
 0x36e   : > { %v7328_v53 = vpop.permute.xlu2 %3449 }
 0x36f   : > { %9914 = vst [vmem:[#allocation36_spill] sm:$0xff] %v7328_v53  ;;  %v9922_v53 = vmov 4  }
 0x371   : > { %6133 = vset.pattern.permute.xlu1 %v9916_v30  ;;  %6128 = vset.pattern.permute.xlu2 %v9917_v21 }
 0x372   : > { %6182 = vset.pattern.permute.xlu0 %v9910_v9  ;;  %3205 = vperm.xlu1 %6133, %v7093_v20   ;;  %v7336_v61 = vpop.permute.xlu1 %4709 }
 0x373   : > { %9918 = vst [vmem:[#allocation38_spill] sm:$0xff] %v7336_v61  ;;  %1882 = vperm.xlu2 %6128, %v7093_v20   ;;  %1698 = vperm.xlu0 %6182, %v7330_v36   ;;  %v7340_v15 = vpop.permute.xlu0 %3209 }
 0x374   : > { %9919 = vst [vmem:[#allocation39_spill] sm:$0xff] %v7340_v15  ;;  %v9926_v15 = vmov 7  }
 0x377   : > { %v7342_v6 = vpop.permute.xlu2 %3701 }
 0x378   : > { %9920 = vst [vmem:[#allocation40_spill] sm:$0xff] %v7342_v6 }
 0x37a   : > { %6136 = vset.pattern.permute.xlu1 %v9921_v54 }
 0x37b   : > { %6131 = vset.pattern.permute.xlu2 %v9922_v53  ;;  %6187 = vset.pattern.permute.xlu0 %v9916_v30 }
 0x37c   : > { %3961 = vperm.xlu1 %6136, %v7093_v20   ;;  %2701 = vperm.xlu2 %6131, %v7093_v20   ;;  %v7349_v19 = vpop.permute.xlu1 %1673 }
 0x37d   : > { %9923 = vst [vmem:[#allocation41_spill] sm:$0xff] %v7349_v19  ;;  %3221 = vperm.xlu0 %6187, %v7330_v36   ;;  %v7352_v61 = vpop.permute.xlu0 %3965 }
 0x37e   : > { %9924 = vst [vmem:[#allocation42_spill] sm:$0xff] %v7352_v61  ;;  %v1479_v61 = vadd.f32 %v7258_v12, %v1478_v33 }
 0x380   : > { %v1498_v4 = vmax.f32 %v1479_v61, 0.0 }
 0x381   : > { %v7354_v11 = vpop.permute.xlu2 %4205 }
 0x382   : > { %9925 = vst [vmem:[#allocation43_spill] sm:$0xff] %v7354_v11  ;;  %5914 = vmatmul.msk.f32.gmra.mxu2 %vm1370_vm5, %v1498_v4 }
 0x384   : > { %6139 = vset.pattern.permute.xlu1 %v9904_v5  ;;  %6134 = vset.pattern.permute.xlu2 %v9926_v15 }
 0x385   : > { %6190 = vset.pattern.permute.xlu0 %v9921_v54  ;;  %4717 = vperm.xlu1 %6139, %v7093_v20   ;;  %v7360_v6 = vpop.permute.xlu1 %1878 }
 0x386   : > { %9927 = vst [vmem:[#allocation44_spill] sm:$0xff] %v7360_v6  ;;  %3457 = vperm.xlu2 %6134, %v7093_v20   ;;  %3977 = vperm.xlu0 %6190, %v7330_v36   ;;  %v7364_v19 = vpop.permute.xlu0 %4721  ;;  %v1601_v6 = vpop.f32.mrf.mxu2 }
 0x387   : > { %9928 = vst [vmem:[#allocation45_spill] sm:$0xff] %v7364_v19  ;;  %v1602_v61 = vadd.f32 %v6980_v38, %v1601_v6 }
 0x38a   : > { %v7367_v11 = vpop.permute.xlu2 %4457 }
 0x38b   : > { %9929 = vst [vmem:[#allocation46_spill] sm:$0xff] %v7367_v11  ;;  %v7383_v11 = vmax.f32 %v1602_v61, 0.0  ;;  %v9939_v61 = vmov 2  }
 0x38d   : > { %6141 = vset.pattern.permute.xlu1 %v9910_v9  ;;  %9934 = vst [vmem:[#allocation50_spill] sm:$0xff] %v7383_v11 }
 0x38e   : > { %6137 = vset.pattern.permute.xlu2 %v9930_v51  ;;  %6193 = vset.pattern.permute.xlu0 %v9904_v5 }
 0x38f   : > { %4213 = vperm.xlu2 %6137, %v7093_v20   ;;  %1683 = vperm.xlu1 %6141, %v7158_v56   ;;  %v7375_v19 = vpop.permute.xlu1 %2193 }
 0x390   : > { %9931 = vst [vmem:[#allocation47_spill] sm:$0xff] %v7375_v19  ;;  %4733 = vperm.xlu0 %6193, %v7330_v36   ;;  %v7378_v33 = vpop.permute.xlu0 %1890 }
 0x391   : > { %9932 = vst [vmem:[#allocation48_spill] sm:$0xff] %v7378_v33 }
 0x394   : > { %v7381_v4 = vpop.permute.xlu2 %4961 }
 0x395   : > { %9933 = vst [vmem:[#allocation49_spill] sm:$0xff] %v7381_v4 }
 0x397   : > { %6140 = vset.pattern.permute.xlu2 %v9935_v47  ;;  %6142 = vset.pattern.permute.xlu1 %v9917_v21 }
 0x398   : > { %6196 = vset.pattern.permute.xlu0 %v9917_v21  ;;  %4969 = vperm.xlu2 %6140, %v7093_v20   ;;  %v7389_v29 = vpop.permute.xlu1 %2697 }
 0x399   : > { %9936 = vst [vmem:[#allocation51_spill] sm:$0xff] %v7389_v29  ;;  %1886 = vperm.xlu1 %6142, %v7158_v56   ;;  %1902 = vperm.xlu0 %6196, %v7383_v11   ;;  %v7393_v33 = vpop.permute.xlu0 %2709 }
 0x39a   : > { %9937 = vst [vmem:[#allocation52_spill] sm:$0xff] %v7393_v33  ;;  %v9943_v33 = vmov 5  }
 0x39d   : > { %v7395_v6 = vpop.permute.xlu2 %2445 }
 0x39e   : > { %9938 = vst [vmem:[#allocation53_spill] sm:$0xff] %v7395_v6 }
 0x3a0   : > { %6143 = vset.pattern.permute.xlu2 %v9939_v61 }
 0x3a1   : > { %6144 = vset.pattern.permute.xlu1 %v9922_v53  ;;  %6199 = vset.pattern.permute.xlu0 %v9922_v53 }
 0x3a2   : > { %2201 = vperm.xlu2 %6143, %v7158_v56   ;;  %2705 = vperm.xlu1 %6144, %v7158_v56   ;;  %v7402_v20 = vpop.permute.xlu1 %2949 }
 0x3a3   : > { %9940 = vst [vmem:[#allocation54_spill] sm:$0xff] %v7402_v20  ;;  %2721 = vperm.xlu0 %6199, %v7383_v11   ;;  %v7405_v29 = vpop.permute.xlu0 %3465  ;;  %v1481_v20 = vpop.f32.mrf.mxu1 }
 0x3a4   : > { %9941 = vst [vmem:[#allocation55_spill] sm:$0xff] %v7405_v29  ;;  %v1482_v19 = vadd.f32 %v7258_v12, %v1481_v20 }
 0x3a6   : > { %v1499_v27 = vmax.f32 %v1482_v19, 0.0  ;;  %v1604_v19 = vpop.f32.mrf.mxu2 }
 0x3a7   : > { %v7407_v4 = vpop.permute.xlu2 %3201 }
 0x3a8   : > { %9942 = vst [vmem:[#allocation56_spill] sm:$0xff] %v7407_v4  ;;  %5915 = vmatmul.msk.f32.gmra.mxu2 %vm1370_vm5, %v1499_v27 }
 0x3aa   : > { %6145 = vset.pattern.permute.xlu2 %v9943_v33  ;;  %6147 = vset.pattern.permute.xlu1 %v9926_v15 }
 0x3ab   : > { %6202 = vset.pattern.permute.xlu0 %v9926_v15  ;;  %2957 = vperm.xlu2 %6145, %v7158_v56   ;;  %v7413_v6 = vpop.permute.xlu1 %3453 }
 0x3ac   : > { %9944 = vst [vmem:[#allocation57_spill] sm:$0xff] %v7413_v6  ;;  %3461 = vperm.xlu1 %6147, %v7158_v56   ;;  %3477 = vperm.xlu0 %6202, %v7383_v11   ;;  %v7418_v29 = vpop.permute.xlu0 %4221 }
 0x3ad   : > { %9945 = vst [vmem:[#allocation58_spill] sm:$0xff] %v7418_v29 }
 0x3b0   : > { %v7420_v4 = vpop.permute.xlu2 %3957 }
 0x3b1   : > { %9946 = vst [vmem:[#allocation59_spill] sm:$0xff] %v7420_v4 }
 0x3b3   : > { %6148 = vset.pattern.permute.xlu2 %v9905_v1 }
 0x3b4   : > { %6150 = vset.pattern.permute.xlu1 %v9930_v51  ;;  %6205 = vset.pattern.permute.xlu0 %v9930_v51 }
 0x3b5   : > { %3713 = vperm.xlu2 %6148, %v7158_v56   ;;  %4217 = vperm.xlu1 %6150, %v7158_v56   ;;  %v7428_v6 = vpop.permute.xlu1 %3705 }
 0x3b6   : > { %9947 = vst [vmem:[#allocation60_spill] sm:$0xff] %v7428_v6  ;;  %4233 = vperm.xlu0 %6205, %v7383_v11   ;;  %v7431_v20 = vpop.permute.xlu0 %4977 }
 0x3b7   : > { %9948 = vst [vmem:[#allocation61_spill] sm:$0xff] %v7431_v20  ;;  %v1605_v20 = vadd.f32 %v6980_v38, %v1604_v19  ;;  %v7470_v19 = vld [vmem:[%s7463_s24] sm:$0xff] }
 0x3b9   : > { %v7448_v4 = vmax.f32 %v1605_v20, 0.0 }
 0x3ba   : > { %v7433_v12 = vpop.permute.xlu2 %4713 }
 0x3bb   : > { %9949 = vst [vmem:[#allocation62_spill] sm:$0xff] %v7433_v12 }
 0x3bc   : > { %9953 = vst [vmem:[#allocation66_spill] sm:$0xff] %v7448_v4 }
 0x3bd   : > { %6151 = vset.pattern.permute.xlu2 %v9911_v57  ;;  %6153 = vset.pattern.permute.xlu1 %v9935_v47 }
 0x3be   : > { %6208 = vset.pattern.permute.xlu0 %v9935_v47  ;;  %4469 = vperm.xlu2 %6151, %v7158_v56   ;;  %v7439_v27 = vpop.permute.xlu1 %4209 }
 0x3bf   : > { %9950 = vst [vmem:[#allocation63_spill] sm:$0xff] %v7439_v27  ;;  %4973 = vperm.xlu1 %6153, %v7158_v56   ;;  %4989 = vperm.xlu0 %6208, %v7383_v11   ;;  %v7444_v6 = vpop.permute.xlu0 %2209 }
 0x3c0   : > { %9951 = vst [vmem:[#allocation64_spill] sm:$0xff] %v7444_v6 }
 0x3c3   : > { %v7446_v12 = vpop.permute.xlu2 %1678 }
 0x3c4   : > { %9952 = vst [vmem:[#allocation65_spill] sm:$0xff] %v7446_v12  ;;  %v2744_v12 = vmul.f32 %v7069_v7, %v7470_v19  ;;  %v2240_v7 = vmul.f32 %v7087_v13, %v7470_v19  ;;  %v4256_v13 = vmul.f32 %v7095_v23, %v7470_v19 }
 0x3c6   : > { %6154 = vset.pattern.permute.xlu2 %v9910_v9  ;;  %v4272_v34 = vsel %vm1747_vm0, %v4256_v13, 0.0 }
 0x3c7   : > { %6156 = vset.pattern.permute.xlu1 %v9939_v61  ;;  %6211 = vset.pattern.permute.xlu0 %v9939_v61  ;;  %v1731_v61 = vmul.f32 %v7091_v25, %v7470_v19 }
 0x3c8   : > { %1688 = vperm.xlu2 %6154, %v7205_v44   ;;  %2205 = vperm.xlu1 %6156, %v7205_v44   ;;  %v7455_v27 = vpop.permute.xlu1 %4461 }
 0x3c9   : > { %9954 = vst [vmem:[#allocation67_spill] sm:$0xff] %v7455_v27  ;;  %2221 = vperm.xlu0 %6211, %v7448_v4   ;;  %v7465_v38 = vpop.permute.xlu0 %2965  ;;  %v1925_v27 = vmul.f32 %v7060_v39, %v7470_v19  ;;  %v2760_v39 = vsel %vm1747_vm0, %v2744_v12, 0.0  ;;  %v2996_v12 = vmul.f32 %v7107_v28, %v7470_v19 }
 0x3ca   : > { %9955 = vst [vmem:[#allocation68_spill] sm:$0xff] %v7465_v38 }
 0x3cb   : > { %v1941_v56 = vsel %vm1747_vm0, %v1925_v27, 0.0  ;;  %v2256_v27 = vsel %vm1747_vm0, %v2240_v7, 0.0  ;;  %v2492_v7 = vmul.f32 %v7111_v24, %v7470_v19  ;;  %v3012_v28 = vsel %vm1747_vm0, %v2996_v12, 0.0 }
 0x3cc   : > { %v1942_v11 = vrot.slane %v1941_v56, 4  ;;  %v3013_v26 = vrot.slane %v3012_v28, 4 }
 0x3cd   : > { %v7467_v20 = vpop.permute.xlu2 %1882 }
 0x3ce   : > { %9956 = vst [vmem:[#allocation69_spill] sm:$0xff] %v7467_v20  ;;  %v3500_v20 = vmul.f32 %v7080_v3, %v7470_v19 }
 0x3d0   : > { %6157 = vset.pattern.permute.xlu2 %v9909_v31  ;;  %6159 = vset.pattern.permute.xlu1 %v9943_v33 }
 0x3d1   : > { %6214 = vset.pattern.permute.xlu0 %v9943_v33  ;;  %2457 = vperm.xlu2 %6157, %v7205_v44   ;;  %v7480_v29 = vpop.permute.xlu1 %4965  ;;  %v2761_v33 = vrot.slane %v2760_v39, 4 }
 0x3d2   : > { %9957 = vst [vmem:[#allocation70_spill] sm:$0xff] %v7480_v29  ;;  %2961 = vperm.xlu1 %6159, %v7205_v44   ;;  %2977 = vperm.xlu0 %6214, %v7448_v4   ;;  %v7490_v38 = vpop.permute.xlu0 %3721  ;;  %v3516_v29 = vsel %vm1747_vm0, %v3500_v20, 0.0  ;;  %v1943_v20 = vadd.f32 %v1942_v11, %v1941_v56 }
 0x3d3   : > { %9958 = vst [vmem:[#allocation71_spill] sm:$0xff] %v7490_v38  ;;  %v3517_v3 = vrot.slane %v3516_v29, 4  ;;  %v1748_v38 = vsel %vm1747_vm0, %v1731_v61, 0.0 }
 0x3d4   : > { %v1944_v36 = vrot.slane %v1943_v20, 2  ;;  %v1749_v8 = vrot.slane %v1748_v38, 4 }
 0x3d5   : > { %v3518_v23 = vadd.f32 %v3517_v3, %v3516_v29  ;;  %v5012_v29 = vmul.f32 %v7115_v35, %v7470_v19 }
 0x3d6   : > { %v7492_v6 = vpop.permute.xlu2 %2701  ;;  %v1945_v3 = vadd.f32 %v1944_v36, %v1943_v20  ;;  %v1750_v12 = vadd.f32 %v1749_v8, %v1748_v38  ;;  %v7532_v36 = vld [vmem:[%s7463_s24 + $0x8] sm:$0xff]  ;;  %v3752_v8 = vmul.f32 %v7124_v32, %v7470_v19 }
 0x3d7   : > { %9959 = vst [vmem:[#allocation72_spill] sm:$0xff] %v7492_v6  ;;  %v2762_v6 = vadd.f32 %v2761_v33, %v2760_v39  ;;  %v3519_v33 = vrot.slane %v3518_v23, 2  ;;  %v4273_v39 = vrot.slane %v4272_v34, 4  ;;  %v5028_v18 = vsel %vm1747_vm0, %v5012_v29, 0.0 }
 0x3d8   : > { %v1946_v20 = vrot.slane %v1945_v3, 1  ;;  %v1732_v32 = vmul.f32 %v7130_v40, %v7532_v36 }
 0x3d9   : > { %6160 = vset.pattern.permute.xlu2 %v9916_v30  ;;  %v2763_v47 = vrot.slane %v2762_v6, 2  ;;  %v3520_v35 = vadd.f32 %v3519_v33, %v3518_v23  ;;  %v1751_v23 = vrot.slane %v1750_v12, 2 }
 0x3da   : > { %6162 = vset.pattern.permute.xlu1 %v9905_v1  ;;  %6217 = vset.pattern.permute.xlu0 %v9905_v1  ;;  %v2257_v1 = vrot.slane %v2256_v27, 4  ;;  %v1755_v60 = vsel %vm1747_vm0, %v1732_v32, 0.0 }
 0x3db   : > { %3213 = vperm.xlu2 %6160, %v7205_v44   ;;  %3717 = vperm.xlu1 %6162, %v7205_v44   ;;  %v7507_v25 = vpop.permute.xlu1 %2449  ;;  %v2764_v13 = vadd.f32 %v2763_v47, %v2762_v6  ;;  %v7539_v6 = vld [vmem:[%s9758_s8] ss:$0 sm:$0xff] }
 0x3dc   : > { %9960 = vst [vmem:[#allocation73_spill] sm:$0xff] %v7507_v25  ;;  %3733 = vperm.xlu0 %6217, %v7448_v4   ;;  %v2508_v25 = vsel %vm1747_vm0, %v2492_v7, 0.0  ;;  %v7516_v56 = vpop.permute.xlu0 %4477  ;;  %v2258_v24 = vadd.f32 %v2257_v1, %v2256_v27  ;;  %v1607_v1 = vpop.f32.mrf.mxu2 }
 0x3dd   : > { %9961 = vst [vmem:[#allocation74_spill] sm:$0xff] %v7516_v56  ;;  %v2509_v61 = vrot.slane %v2508_v25, 4  ;;  %v3014_v56 = vadd.f32 %v3013_v26, %v3012_v28  ;;  %v1608_v38 = vadd.f32 %v7539_v6, %v1607_v1  ;;  %v5029_v28 = vrot.slane %v5028_v18, 4 }
 0x3de   : > { %v2259_v7 = vrot.slane %v2258_v24, 2  ;;  %v3768_v1 = vsel %vm1747_vm0, %v3752_v8, 0.0 }
 0x3df   : > { %v2510_v47 = vadd.f32 %v2509_v61, %v2508_v25  ;;  %v3248_v25 = vmul.f32 %v7127_v42, %v7470_v19  ;;  %v3015_v61 = vrot.slane %v3014_v56, 2  ;;  %v1752_v42 = vadd.f32 %v1751_v23, %v1750_v12 }
 0x3e0   : > { %v7518_v11 = vpop.permute.xlu2 %3457  ;;  %v2260_v26 = vadd.f32 %v2259_v7, %v2258_v24  ;;  %v7555_v24 = vadd.f32 %v1946_v20, %v1945_v3  ;;  %v3769_v8 = vrot.slane %v3768_v1, 4  ;;  %v4004_v3 = vmul.f32 %v7139_v37, %v7470_v19 }
 0x3e1   : > { %9962 = vst [vmem:[#allocation75_spill] sm:$0xff] %v7518_v11  ;;  %v4274_v11 = vadd.f32 %v4273_v39, %v4272_v34  ;;  %v3521_v39 = vrot.slane %v3520_v35, 1  ;;  %v3264_v14 = vsel %vm1747_vm0, %v3248_v25, 0.0  ;;  %v1756_v23 = vrot.slane %v1755_v60, 4 }
 0x3e2   : > { %v2261_v40 = vrot.slane %v2260_v26, 1  ;;  %v4760_v37 = vmul.f32 %v7150_v55, %v7470_v19  ;;  %v1753_v25 = vrot.slane %v1752_v42, 1 }
 0x3e3   : > { %6163 = vset.pattern.permute.xlu2 %v9921_v54  ;;  %6165 = vset.pattern.permute.xlu1 %v9911_v57  ;;  %v4275_v29 = vrot.slane %v4274_v11, 2 }
 0x3e4   : > { %6220 = vset.pattern.permute.xlu0 %v9911_v57  ;;  %3969 = vperm.xlu2 %6163, %v7205_v44   ;;  %v7526_v27 = vpop.permute.xlu1 %3205  ;;  %v2241_v57 = vmul.f32 %v7143_v48, %v7532_v36  ;;  %v7564_v48 = vadd.f32 %v3521_v39, %v3520_v35  ;;  %v3265_v35 = vrot.slane %v3264_v14, 4  ;;  %v7582_v32 = vadd.f32 %v2261_v40, %v2260_v26 }
 0x3e5   : > { %9963 = vst [vmem:[#allocation76_spill] sm:$0xff] %v7526_v27  ;;  %4473 = vperm.xlu1 %6165, %v7205_v44   ;;  %4489 = vperm.xlu0 %6220, %v7448_v4   ;;  %v2765_v27 = vrot.slane %v2764_v13, 1  ;;  %v7542_v34 = vpop.permute.xlu0 %1698  ;;  %v2511_v4 = vrot.slane %v2510_v47, 2  ;;  %v4276_v12 = vadd.f32 %v4275_v29, %v4274_v11  ;;  %v1757_v40 = vadd.f32 %v1756_v23, %v1755_v60 }
 0x3e6   : > { %9964 = vst [vmem:[#allocation77_spill] sm:$0xff] %v7542_v34  ;;  %v7553_v34 = vmax.f32 %v1608_v38, 0.0  ;;  %v3016_v38 = vadd.f32 %v3015_v61, %v3014_v56  ;;  %v2263_v20 = vsel %vm1747_vm0, %v2241_v57, 0.0  ;;  %v3770_v57 = vadd.f32 %v3769_v8, %v3768_v1 }
 0x3e7   : > { %v7557_v7 = vadd.f32 %v2765_v27, %v2764_v13  ;;  %v4508_v13 = vmul.f32 %v7141_v45, %v7470_v19  ;;  %v2512_v27 = vadd.f32 %v2511_v4, %v2510_v47  ;;  %v3249_v45 = vmul.f32 %v7153_v50, %v7532_v36 }
 0x3e8   : > { %9966 = vst [vmem:[#allocation79_spill] sm:$0xff] %v7553_v34  ;;  %v2997_v4 = vmul.f32 %v7156_v52, %v7532_v36  ;;  %v4020_v56 = vsel %vm1747_vm0, %v4004_v3, 0.0  ;;  %v2264_v39 = vrot.slane %v2263_v20, 4  ;;  %v4277_v55 = vrot.slane %v4276_v12, 1 }
 0x3e9   : > { %v7548_v33 = vpop.permute.xlu2 %4213  ;;  %v4524_v47 = vsel %vm1747_vm0, %v4508_v13, 0.0  ;;  %v2513_v19 = vrot.slane %v2512_v27, 1  ;;  %v3017_v50 = vrot.slane %v3016_v38, 1  ;;  %v1926_v61 = vmul.f32 %v7165_v59, %v7532_v36 }
 0x3ea   : > { %9965 = vst [vmem:[#allocation78_spill] sm:$0xff] %v7548_v33  ;;  %v5030_v33 = vadd.f32 %v5029_v28, %v5028_v18  ;;  %v3266_v26 = vadd.f32 %v3265_v35, %v3264_v14  ;;  %v3271_v52 = vsel %vm1747_vm0, %v3249_v45, 0.0  ;;  %v4021_v1 = vrot.slane %v4020_v56, 4 }
 0x3eb   : > { %v4525_v8 = vrot.slane %v4524_v47, 4  ;;  %v3019_v3 = vsel %vm1747_vm0, %v2997_v4, 0.0  ;;  %v4005_v13 = vmul.f32 %v7169_v16, %v7532_v36  ;;  %v7601_v59 = vadd.f32 %v4277_v55, %v4276_v12 }
 0x3ec   : > { %6166 = vset.pattern.permute.xlu2 %v9904_v5  ;;  %v5031_v11 = vrot.slane %v5030_v33, 2  ;;  %v3272_v14 = vrot.slane %v3271_v52, 4  ;;  %v1948_v35 = vsel %vm1747_vm0, %v1926_v61, 0.0  ;;  %v3020_v23 = vrot.slane %v3019_v3, 4 }
 0x3ed   : > { %6168 = vset.pattern.permute.xlu1 %v9910_v9  ;;  %6223 = vset.pattern.permute.xlu0 %v9910_v9  ;;  %v2265_v9 = vadd.f32 %v2264_v39, %v2263_v20  ;;  %9970 = vst [vmem:[#allocation83_spill] sm:$0xff] %v7601_v59  ;;  %v3267_v20 = vrot.slane %v3266_v26, 2  ;;  %v1758_v12 = vrot.slane %v1757_v40, 2  ;;  %v4526_v45 = vadd.f32 %v4525_v8, %v4524_v47 }
 0x3ee   : > { %4725 = vperm.xlu2 %6166, %v7205_v44   ;;  %1693 = vperm.xlu1 %6168, %v7277_v43   ;;  %v7572_v18 = vpop.permute.xlu1 %3961  ;;  %v5032_v44 = vadd.f32 %v5031_v11, %v5030_v33  ;;  %v7610_v33 = vadd.f32 %v3017_v50, %v3016_v38  ;;  %v3273_v38 = vadd.f32 %v3272_v14, %v3271_v52 }
 0x3ef   : > { %9967 = vst [vmem:[#allocation80_spill] sm:$0xff] %v7572_v18  ;;  %1713 = vperm.xlu0 %6223, %v7553_v34   ;;  %v7580_v28 = vpop.permute.xlu0 %3221  ;;  %v4776_v18 = vsel %vm1747_vm0, %v4760_v37, 0.0  ;;  %v4022_v37 = vadd.f32 %v4021_v1, %v4020_v56  ;;  %v2266_v55 = vrot.slane %v2265_v9, 2  ;;  %v3753_v50 = vmul.f32 %v7174_v62, %v7532_v36 }
 0x3f0   : > { %9968 = vst [vmem:[#allocation81_spill] sm:$0xff] %v7580_v28  ;;  %v3771_v28 = vrot.slane %v3770_v57, 2  ;;  %v4777_v60 = vrot.slane %v4776_v18, 4  ;;  %v5033_v4 = vrot.slane %v5032_v44, 1  ;;  %v2745_v61 = vmul.f32 %v7183_v63, %v7532_v36 }
 0x3f1   : > { %v4761_v47 = vmul.f32 %v7185_v0, %v7532_v36  ;;  %v1759_v8 = vadd.f32 %v1758_v12, %v1757_v40 }
 0x3f2   : > { %v7588_v29 = vpop.permute.xlu2 %4969  ;;  %v3772_v39 = vadd.f32 %v3771_v28, %v3770_v57  ;;  %v4023_v28 = vrot.slane %v4022_v37, 2  ;;  %v4527_v57 = vrot.slane %v4526_v45, 2  ;;  %v7627_v52 = vadd.f32 %v5033_v4, %v5032_v44 }
 0x3f3   : > { %9969 = vst [vmem:[#allocation82_spill] sm:$0xff] %v7588_v29  ;;  %v7597_v29 = vadd.f32 %v1753_v25, %v1752_v42  ;;  %v7608_v42 = vadd.f32 %v2513_v19, %v2512_v27  ;;  %v4027_v25 = vsel %vm1747_vm0, %v4005_v13, 0.0  ;;  %v1949_v27 = vrot.slane %v1948_v35, 4 }
 0x3f4   : > { %v4778_v19 = vadd.f32 %v4777_v60, %v4776_v18  ;;  %v4028_v56 = vrot.slane %v4027_v25, 4  ;;  %v4509_v18 = vmul.f32 %v7188_v17, %v7532_v36  ;;  %9975 = vst [vmem:[#allocation88_spill] sm:$0xff] %v7627_v52  ;;  %v3773_v62 = vrot.slane %v3772_v39, 1 }
 0x3f5   : > { %9972 = vst [vmem:[#allocation85_spill] sm:$0xff] %v7608_v42  ;;  %v3268_v42 = vadd.f32 %v3267_v20, %v3266_v26  ;;  %v2267_v13 = vadd.f32 %v2266_v55, %v2265_v9  ;;  %v1950_v63 = vadd.f32 %v1949_v27, %v1948_v35  ;;  %v3775_v60 = vsel %vm1747_vm0, %v3753_v50, 0.0  ;;  %v7643_v50 = vld [vmem:[%s7463_s24 + $0x10] sm:$0xff] }
 0x3f6   : > { %6169 = vset.pattern.permute.xlu2 %v9917_v21  ;;  %6171 = vset.pattern.permute.xlu1 %v9909_v31  ;;  %v4779_v26 = vrot.slane %v4778_v19, 2  ;;  %v2767_v0 = vsel %vm1747_vm0, %v2745_v61, 0.0  ;;  %v4029_v20 = vadd.f32 %v4028_v56, %v4027_v25  ;;  %v4783_v17 = vsel %vm1747_vm0, %v4761_v47, 0.0 }
 0x3f7   : > { %6228 = vset.pattern.permute.xlu0 %v9916_v30  ;;  %1894 = vperm.xlu2 %6169, %v7277_v43   ;;  %v7606_v16 = vpop.permute.xlu1 %4717  ;;  %v3269_v40 = vrot.slane %v3268_v42, 1  ;;  %v1760_v9 = vrot.slane %v1759_v8, 1  ;;  %v4024_v44 = vadd.f32 %v4023_v28, %v4022_v37  ;;  %v4528_v35 = vadd.f32 %v4527_v57, %v4526_v45 }
 0x3f8   : > { %9971 = vst [vmem:[#allocation84_spill] sm:$0xff] %v7606_v16  ;;  %2461 = vperm.xlu1 %6171, %v7277_v43   ;;  %3233 = vperm.xlu0 %6228, %v7553_v34   ;;  %v7615_v11 = vpop.permute.xlu0 %3977  ;;  %v3021_v16 = vadd.f32 %v3020_v23, %v3019_v3  ;;  %v3274_v3 = vrot.slane %v3273_v38, 2  ;;  %v4531_v23 = vsel %vm1747_vm0, %v4509_v18, 0.0  ;;  %v1951_v4 = vrot.slane %v1950_v63, 2 }
 0x3f9   : > { %9973 = vst [vmem:[#allocation86_spill] sm:$0xff] %v7615_v11  ;;  %v3776_v55 = vrot.slane %v3775_v60, 4  ;;  %v2768_v25 = vrot.slane %v2767_v0, 4  ;;  %v3501_v27 = vmul.f32 %v7198_v10, %v7532_v36  ;;  %v2268_v45 = vrot.slane %v2267_v13, 1 }
 0x3fa   : > { %v3022_v14 = vrot.slane %v3021_v16, 2  ;;  %v4780_v61 = vadd.f32 %v4779_v26, %v4778_v19  ;;  %v3275_v56 = vadd.f32 %v3274_v3, %v3273_v38  ;;  %v4784_v47 = vrot.slane %v4783_v17, 4 }
 0x3fb   : > { %v7648_v28 = vadd.f32 %v3773_v62, %v3772_v39  ;;  %v4030_v18 = vrot.slane %v4029_v20, 2  ;;  %v4025_v11 = vrot.slane %v4024_v44, 1  ;;  %v1733_v10 = vmul.f32 %v7194_v22, %v7643_v50 }
 0x3fc   : > { %v7623_v1 = vpop.permute.xlu2 %2201  ;;  %v3023_v57 = vadd.f32 %v3022_v14, %v3021_v16  ;;  %v1952_v52 = vadd.f32 %v1951_v4, %v1950_v63  ;;  %v3777_v59 = vadd.f32 %v3776_v55, %v3775_v60  ;;  %v3523_v19 = vsel %vm1747_vm0, %v3501_v27, 0.0 }
 0x3fd   : > { %9974 = vst [vmem:[#allocation87_spill] sm:$0xff] %v7623_v1  ;;  %v1761_v1 = vadd.f32 %v1760_v9, %v1759_v8  ;;  %v2269_v38 = vadd.f32 %v2268_v45, %v2267_v13  ;;  %v4781_v26 = vrot.slane %v4780_v61, 1  ;;  %v3276_v39 = vrot.slane %v3275_v56, 1 }
 0x3fe   : > { %v4785_v62 = vadd.f32 %v4784_v47, %v4783_v17  ;;  %v3270_v16 = vadd.f32 %v3269_v40, %v3268_v42  ;;  %v3024_v3 = vrot.slane %v3023_v57, 1  ;;  %v4031_v14 = vadd.f32 %v4030_v18, %v4029_v20 }
 0x3ff   : > { %6172 = vset.pattern.permute.xlu2 %v9922_v53  ;;  %v7657_v9 = vsel %vm2071_vm13, %v1761_v1, %v7597_v29  ;;  %v1762_v63 = vsel %vm1747_vm0, %v1733_v10, 0.0  ;;  %v7664_v13 = vadd.f32 %v4025_v11, %v4024_v44  ;;  %v1953_v60 = vrot.slane %v1952_v52, 1  ;;  %v1610_v29 = vpop.f32.mrf.mxu2 }
 0x400   : > { %6174 = vset.pattern.permute.xlu1 %v9916_v30  ;;  %6231 = vset.pattern.permute.xlu0 %v9921_v54  ;;  %v4529_v30 = vrot.slane %v4528_v35, 1  ;;  %v3778_v42 = vrot.slane %v3777_v59, 2  ;;  %v7672_v1 = vadd.f32 %v4781_v26, %v4780_v61  ;;  %v3277_v40 = vadd.f32 %v3276_v39, %v3275_v56 }
 0x401   : > { %2713 = vperm.xlu2 %6172, %v7277_v43   ;;  %3217 = vperm.xlu1 %6174, %v7277_v43   ;;  %v7638_v12 = vpop.permute.xlu1 %1683  ;;  %v4786_v20 = vrot.slane %v4785_v62, 2  ;;  %v3025_v44 = vadd.f32 %v3024_v3, %v3023_v57  ;;  %v1927_v55 = vmul.f32 %v7214_v46, %v7643_v50  ;;  %v1954_v27 = vadd.f32 %v1953_v60, %v1952_v52 }
 0x402   : > { %9976 = vst [vmem:[#allocation89_spill] sm:$0xff] %v7638_v12  ;;  %3989 = vperm.xlu0 %6231, %v7553_v34   ;;  %v7646_v37 = vpop.permute.xlu0 %4733  ;;  %v4532_v12 = vrot.slane %v4531_v23, 4  ;;  %v7659_v22 = vadd.f32 %v4529_v30, %v4528_v35  ;;  %v7670_v30 = vsel %vm2071_vm13, %v2269_v38, %v7582_v32  ;;  %v4032_v35 = vrot.slane %v4031_v14, 1 }
 0x403   : > { %9977 = vst [vmem:[#allocation90_spill] sm:$0xff] %v7646_v37  ;;  %v2769_v37 = vadd.f32 %v2768_v25, %v2767_v0  ;;  %v4257_v32 = vmul.f32 %v7212_v2, %v7532_v36  ;;  %v1611_v25 = vadd.f32 %v7539_v6, %v1610_v29  ;;  %v3779_v45 = vadd.f32 %v3778_v42, %v3777_v59  ;;  %v9985_v42 = vld [vmem:[#allocation15_spill] sm:$0xff] }
 0x404   : > { %v4533_v8 = vadd.f32 %v4532_v12, %v4531_v23  ;;  %v1763_v12 = vrot.slane %v1762_v63, 4  ;;  %v3250_v56 = vmul.f32 %v7217_v49, %v7643_v50  ;;  %v7688_v47 = vsel %vm2071_vm13, %v3277_v40, %v3270_v16  ;;  %v9983_v16 = vld [vmem:[#allocation13_spill] sm:$0xff] }
 0x405   : > { %v7652_v31 = vpop.permute.xlu2 %2957  ;;  %v2770_v0 = vrot.slane %v2769_v37, 2  ;;  %v4787_v57 = vadd.f32 %v4786_v20, %v4785_v62  ;;  %v2746_v2 = vmul.f32 %v7224_v58, %v7643_v50  ;;  %v7698_v46 = vsel %vm2071_vm13, %v3025_v44, %v7610_v33 }
 0x406   : > { %9978 = vst [vmem:[#allocation91_spill] sm:$0xff] %v7652_v31  ;;  %v3524_v31 = vrot.slane %v3523_v19, 4  ;;  %v4534_v23 = vrot.slane %v4533_v8, 2  ;;  %v4033_v59 = vadd.f32 %v4032_v35, %v4031_v14  ;;  %v4279_v10 = vsel %vm1747_vm0, %v4257_v32, 0.0 }
 0x407   : > { %v2771_v61 = vadd.f32 %v2770_v0, %v2769_v37  ;;  %v1764_v37 = vadd.f32 %v1763_v12, %v1762_v63  ;;  %v7702_v38 = vmax.f32 %v1611_v25, 0.0  ;;  %v3780_v58 = vrot.slane %v3779_v45, 1  ;;  %v9984_v63 = vld [vmem:[#allocation14_spill] sm:$0xff] }
 0x408   : > { %v3525_v4 = vadd.f32 %v3524_v31, %v3523_v19  ;;  %v2494_v31 = vmul.f32 %v7202_v41, %v7643_v50  ;;  %v4535_v52 = vadd.f32 %v4534_v23, %v4533_v8  ;;  %v1955_v19 = vsel %vm1747_vm0, %v1927_v55, 0.0  ;;  %v9988_v55 = vld [vmem:[#allocation16_spill] sm:$0xff] }
 0x409   : > { %6175 = vset.pattern.permute.xlu2 %v9926_v15  ;;  %6177 = vset.pattern.permute.xlu1 %v9921_v54  ;;  %9982 = vst [vmem:[#allocation95_spill] sm:$0xff] %v7702_v38  ;;  %v7706_v41 = vsel %vm2071_vm13, %v1954_v27, %v7555_v24  ;;  %v2772_v26 = vrot.slane %v2771_v61, 1  ;;  %v3278_v39 = vsel %vm1747_vm0, %v3250_v56, 0.0  ;;  %v4788_v33 = vrot.slane %v4787_v57, 1 }
 0x40a   : > { %6234 = vset.pattern.permute.xlu0 %v9904_v5  ;;  %3469 = vperm.xlu2 %6175, %v7277_v43   ;;  %v3526_v49 = vrot.slane %v3525_v4, 2  ;;  %v2522_v62 = vsel %vm1747_vm0, %v2494_v31, 0.0  ;;  %v5013_v3 = vmul.f32 %v9983_v16, %v7532_v36  ;;  %v2774_v14 = vsel %vm1747_vm0, %v2746_v2, 0.0 }
 0x40b   : > { %3973 = vperm.xlu1 %6177, %v7277_v43   ;;  %4745 = vperm.xlu0 %6234, %v7553_v34   ;;  %v7676_v11 = vpop.permute.xlu1 %1886  ;;  %v7678_v17 = vpop.permute.xlu0 %1902  ;;  %v4280_v24 = vrot.slane %v4279_v10, 4  ;;  %v1956_v8 = vrot.slane %v1955_v19, 4  ;;  %v4006_v60 = vmul.f32 %v9984_v63, %v7643_v50  ;;  %v2242_v0 = vmul.f32 %v9985_v42, %v7643_v50 }
 0x40c   : > { %9979 = vst [vmem:[#allocation92_spill] sm:$0xff] %v7676_v11  ;;  %v4536_v36 = vrot.slane %v4535_v52, 1  ;;  %v3527_v40 = vadd.f32 %v3526_v49, %v3525_v4  ;;  %v1765_v20 = vrot.slane %v1764_v37, 2  ;;  %v3279_v44 = vrot.slane %v3278_v39, 4 }
 0x40d   : > { %9980 = vst [vmem:[#allocation93_spill] sm:$0xff] %v7678_v17  ;;  %v7729_v23 = vsel %vm2071_vm13, %v4033_v59, %v7664_v13  ;;  %v3781_v12 = vadd.f32 %v3780_v58, %v3779_v45  ;;  %v2775_v32 = vrot.slane %v2774_v14, 4  ;;  %v3502_v25 = vmul.f32 %v9988_v55, %v7643_v50 }
 0x40e   : > { %v2773_v27 = vadd.f32 %v2772_v26, %v2771_v61  ;;  %v4789_v56 = vadd.f32 %v4788_v33, %v4787_v57  ;;  %v2523_v31 = vrot.slane %v2522_v62, 4  ;;  %v5035_v4 = vsel %vm1747_vm0, %v5013_v3, 0.0  ;;  %v9990_v57 = vld [vmem:[#allocation17_spill] sm:$0xff] }
 0x40f   : > { %v7694_v18 = vpop.permute.xlu2 %3713  ;;  %v4281_v2 = vadd.f32 %v4280_v24, %v4279_v10  ;;  %v1957_v49 = vadd.f32 %v1956_v8, %v1955_v19  ;;  %v4034_v16 = vsel %vm1747_vm0, %v4006_v60, 0.0  ;;  %v2270_v63 = vsel %vm1747_vm0, %v2242_v0, 0.0  ;;  %v7760_v0 = vld [vmem:[%s7463_s24 + $0x18] sm:$0xff] }
 0x410   : > { %9981 = vst [vmem:[#allocation94_spill] sm:$0xff] %v7694_v18  ;;  %v4537_v13 = vadd.f32 %v4536_v36, %v4535_v52  ;;  %v3528_v59 = vrot.slane %v3527_v40, 1  ;;  %v1766_v45 = vadd.f32 %v1765_v20, %v1764_v37  ;;  %v3280_v58 = vadd.f32 %v3279_v44, %v3278_v39  ;;  %v9992_v44 = vld [vmem:[#allocation37_spill] sm:$0xff] }
 0x411   : > { %v2776_v18 = vadd.f32 %v2775_v32, %v2774_v14  ;;  %v3530_v61 = vsel %vm1747_vm0, %v3502_v25, 0.0  ;;  %v4762_v26 = vmul.f32 %v9990_v57, %v7643_v50  ;;  %v7743_v10 = vsel %vm2071_vm13, %v3781_v12, %v7648_v28  ;;  %v9995_v25 = vld [vmem:[#allocation19_spill] sm:$0xff] }
 0x412   : > { %6178 = vset.pattern.permute.xlu2 %v9930_v51  ;;  %v7747_v19 = vsel %vm2071_vm13, %v2773_v27, %v7557_v7  ;;  %v4035_v52 = vrot.slane %v4034_v16, 4  ;;  %v2271_v33 = vrot.slane %v2270_v63, 4  ;;  %v7751_v37 = vsel %vm2071_vm13, %v4789_v56, %v7672_v1  ;;  %v9996_v56 = vld [vmem:[#allocation18_spill] sm:$0xff] }
 0x413   : > { %6180 = vset.pattern.permute.xlu1 %v9904_v5  ;;  %6236 = vset.pattern.permute.xlu0 %v9917_v21  ;;  %v2524_v39 = vadd.f32 %v2523_v31, %v2522_v62  ;;  %v4282_v3 = vrot.slane %v4281_v2, 2  ;;  %v1958_v14 = vrot.slane %v1957_v49, 2  ;;  %v9991_v24 = vmov 13  }
 0x414   : > { %4225 = vperm.xlu2 %6178, %v7277_v43   ;;  %4729 = vperm.xlu1 %6180, %v7277_v43   ;;  %v7722_v29 = vpop.permute.xlu1 %2705  ;;  %v7757_v28 = vsel %vm2071_vm13, %v4537_v13, %v7659_v22  ;;  %v1767_v8 = vrot.slane %v1766_v45, 1  ;;  %v3281_v7 = vrot.slane %v3280_v58, 2  ;;  %v3531_v60 = vrot.slane %v3530_v61, 4  ;;  %v9997_v13 = vld [vmem:[#allocation20_spill] sm:$0xff] }
 0x415   : > { %9986 = vst [vmem:[#allocation13_spill] sm:$0xff] %v7722_v29  ;;  %1914 = vperm.xlu0 %6236, %v7702_v38   ;;  %v7725_v35 = vpop.permute.xlu0 %2721  ;;  %v5036_v29 = vrot.slane %v5035_v4, 4  ;;  %v3529_v1 = vadd.f32 %v3528_v59, %v3527_v40  ;;  %v2777_v36 = vrot.slane %v2776_v18, 2  ;;  %v4790_v20 = vsel %vm1747_vm0, %v4762_v26, 0.0 }
 0x416   : > { %9987 = vst [vmem:[#allocation14_spill] sm:$0xff] %v7725_v35  ;;  %v4036_v32 = vadd.f32 %v4035_v52, %v4034_v16  ;;  %v2272_v55 = vadd.f32 %v2271_v33, %v2270_v63  ;;  %v2998_v27 = vmul.f32 %v9995_v25, %v7643_v50  ;;  %v4258_v40 = vmul.f32 %v9996_v56, %v7643_v50  ;;  %v9998_v33 = vld [vmem:[#allocation21_spill] sm:$0xff]  ;;  %v10006_v35 = vld [vmem:[#allocation83_spill] sm:$0xff] }
 0x417   : > { %v5037_v62 = vadd.f32 %v5036_v29, %v5035_v4  ;;  %v2525_v29 = vrot.slane %v2524_v39, 2  ;;  %v4283_v31 = vadd.f32 %v4282_v3, %v4281_v2  ;;  %v1959_v4 = vadd.f32 %v1958_v14, %v1957_v49 }
 0x418   : > { %v7736_v42 = vpop.permute.xlu2 %4469  ;;  %v1734_v59 = vmul.f32 %v9997_v13, %v7760_v0  ;;  %v1768_v57 = vadd.f32 %v1767_v8, %v1766_v45  ;;  %v3282_v26 = vadd.f32 %v3281_v7, %v3280_v58  ;;  %v7779_v16 = vsel %vm2071_vm13, %v3529_v1, %v7564_v48 }
 0x419   : > { %9989 = vst [vmem:[#allocation15_spill] sm:$0xff] %v7736_v42  ;;  %v3532_v42 = vadd.f32 %v3531_v60, %v3530_v61  ;;  %v5038_v63 = vrot.slane %v5037_v62, 2  ;;  %v2778_v52 = vadd.f32 %v2777_v36, %v2776_v18  ;;  %v3754_v25 = vmul.f32 %v9998_v33, %v7643_v50  ;;  %v10000_v18 = vld [vmem:[#allocation22_spill] sm:$0xff] }
 0x41a   : > { %v4037_v2 = vrot.slane %v4036_v32, 2  ;;  %v2273_v49 = vrot.slane %v2272_v55, 2  ;;  %v3026_v3 = vsel %vm1747_vm0, %v2998_v27, 0.0  ;;  %v4286_v45 = vsel %vm1747_vm0, %v4258_v40, 0.0 }
 0x41b   : > { %v2526_v58 = vadd.f32 %v2525_v29, %v2524_v39  ;;  %v4284_v61 = vrot.slane %v4283_v31, 1  ;;  %v1960_v14 = vrot.slane %v1959_v4, 1  ;;  %v1769_v8 = vsel %vm1747_vm0, %v1734_v59, 0.0 }
 0x41c   : > { %6181 = vset.pattern.permute.xlu2 %v9991_v24  ;;  %6183 = vset.pattern.permute.xlu1 %v9917_v21  ;;  %v3283_v48 = vrot.slane %v3282_v26, 1  ;;  %v3533_v7 = vrot.slane %v3532_v42, 2  ;;  %v5014_v1 = vmul.f32 %v10000_v18, %v7643_v50  ;;  %v10001_v36 = vmov 2  }
 0x41d   : > { %6239 = vset.pattern.permute.xlu0 %v9922_v53  ;;  %4981 = vperm.xlu2 %6181, %v7277_v43   ;;  %v5039_v13 = vadd.f32 %v5038_v63, %v5037_v62  ;;  %v3027_v33 = vrot.slane %v3026_v3, 4  ;;  %v3782_v27 = vsel %vm1747_vm0, %v3754_v25, 0.0  ;;  %v2779_v39 = vrot.slane %v2778_v52, 1 }
 0x41e   : > { %1898 = vperm.xlu1 %6183, %v9992_v44   ;;  %2733 = vperm.xlu0 %6239, %v7702_v38   ;;  %v7767_v22 = vpop.permute.xlu1 %3461  ;;  %v7769_v12 = vpop.permute.xlu0 %3477  ;;  %v4038_v40 = vadd.f32 %v4037_v2, %v4036_v32  ;;  %v2274_v29 = vadd.f32 %v2273_v49, %v2272_v55  ;;  %v1770_v59 = vrot.slane %v1769_v8, 4  ;;  %v4285_v62 = vadd.f32 %v4284_v61, %v4283_v31 }
 0x41f   : > { %9993 = vst [vmem:[#allocation16_spill] sm:$0xff] %v7767_v22  ;;  %v4791_v22 = vrot.slane %v4790_v20, 4  ;;  %v1961_v63 = vadd.f32 %v1960_v14, %v1959_v4  ;;  %v7803_v18 = vsel %vm2073_vm14, %v1768_v57, %v7657_v9  ;;  %v3534_v32 = vadd.f32 %v3533_v7, %v3532_v42 }
 0x420   : > { %9994 = vst [vmem:[#allocation17_spill] sm:$0xff] %v7769_v12  ;;  %v3783_v2 = vrot.slane %v3782_v27, 4  ;;  %v5042_v49 = vsel %vm1747_vm0, %v5014_v1, 0.0  ;;  %v3284_v11 = vadd.f32 %v3283_v48, %v3282_v26  ;;  %v5040_v43 = vrot.slane %v5039_v13, 1 }
 0x421   : > { %v4792_v60 = vadd.f32 %v4791_v22, %v4790_v20  ;;  %v2527_v22 = vrot.slane %v2526_v58, 1  ;;  %v3028_v12 = vadd.f32 %v3027_v33, %v3026_v3  ;;  %v2780_v34 = vadd.f32 %v2779_v39, %v2778_v52  ;;  %v10007_v3 = vld [vmem:[#allocation23_spill] sm:$0xff]  ;;  %v7829_v39 = vld [vmem:[%s7463_s24 + $0x28] sm:$0xff] }
 0x422   : > { %v7783_v56 = vpop.permute.xlu2 %1688  ;;  %v4039_v31 = vrot.slane %v4038_v40, 1  ;;  %v2275_v4 = vrot.slane %v2274_v29, 1  ;;  %v1771_v61 = vadd.f32 %v1770_v59, %v1769_v8  ;;  %v7812_v9 = vsel %vm2071_vm13, %v4285_v62, %v10006_v35  ;;  %v10013_v62 = vld [vmem:[#allocation88_spill] sm:$0xff] }
 0x423   : > { %9999 = vst [vmem:[#allocation19_spill] sm:$0xff] %v7783_v56  ;;  %v4287_v56 = vrot.slane %v4286_v45, 4  ;;  %v4793_v55 = vrot.slane %v4792_v60, 2  ;;  %v5043_v42 = vrot.slane %v5042_v49, 4  ;;  %v7816_v57 = vsel %vm2073_vm14, %v1961_v63, %v7706_v41 }
 0x424   : > { %v3535_v26 = vrot.slane %v3534_v32, 1  ;;  %v3784_v52 = vadd.f32 %v3783_v2, %v3782_v27  ;;  %v5041_v8 = vadd.f32 %v5040_v43, %v5039_v13  ;;  %v3029_v48 = vrot.slane %v3028_v12, 2  ;;  %v10010_v43 = vld [vmem:[#allocation27_spill] sm:$0xff] }
 0x425   : > { %6184 = vset.pattern.permute.xlu2 %v10001_v36  ;;  %v7826_v35 = vsel %vm2073_vm14, %v2780_v34, %v7747_v19  ;;  %v4040_v1 = vadd.f32 %v4039_v31, %v4038_v40  ;;  %v2276_v41 = vadd.f32 %v2275_v4, %v2274_v29  ;;  %v1772_v33 = vrot.slane %v1771_v61, 2  ;;  %v1613_v34 = vpop.f32.mrf.mxu2 }
 0x426   : > { %6185 = vset.pattern.permute.xlu1 %v9922_v53  ;;  %6242 = vset.pattern.permute.xlu0 %v9926_v15  ;;  %v5044_v27 = vadd.f32 %v5043_v42, %v5042_v49  ;;  %v2243_v13 = vmul.f32 %v10010_v43, %v7760_v0  ;;  %v3536_v19 = vadd.f32 %v3535_v26, %v3534_v32  ;;  %v3785_v29 = vrot.slane %v3784_v52, 2  ;;  %v10014_v32 = vld [vmem:[#allocation25_spill] sm:$0xff] }
 0x427   : > { %2213 = vperm.xlu2 %6184, %v9992_v44   ;;  %2717 = vperm.xlu1 %6185, %v9992_v44   ;;  %v7796_v20 = vpop.permute.xlu1 %4217  ;;  %v7848_v63 = vsel %vm2071_vm13, %v5041_v8, %v10013_v62  ;;  %v2245_v49 = vmul.f32 %v10014_v32, %v7829_v39  ;;  %v7854_v31 = vsel %vm2073_vm14, %v4040_v1, %v7729_v23  ;;  %v10038_v17 = vmov 0  }
 0x428   : > { %10002 = vst [vmem:[#allocation18_spill] sm:$0xff] %v7796_v20  ;;  %3489 = vperm.xlu0 %6242, %v7702_v38   ;;  %v7799_v25 = vpop.permute.xlu0 %4233  ;;  %v4288_v20 = vadd.f32 %v4287_v56, %v4286_v45  ;;  %v4794_v56 = vadd.f32 %v4793_v55, %v4792_v60  ;;  %v1928_v45 = vmul.f32 %v10007_v3, %v7760_v0  ;;  %v10008_v60 = vmov 5  }
 0x429   : > { %10003 = vst [vmem:[#allocation20_spill] sm:$0xff] %v7799_v25  ;;  %v7808_v25 = vadd.f32 %v2527_v22, %v2526_v58  ;;  %v7822_v58 = vsel %vm2073_vm14, %v3284_v11, %v7688_v47  ;;  %v10009_v11 = vld [vmem:[#allocation26_spill] sm:$0xff]  ;;  %v3030_v55 = vadd.f32 %v3029_v48, %v3028_v12  ;;  %v7858_v4 = vsel %vm2073_vm14, %v2276_v41, %v7670_v30 }
 0x42a   : > { %v4289_v7 = vrot.slane %v4288_v20, 2  ;;  %v4510_v47 = vmul.f32 %v10009_v11, %v7643_v50  ;;  %v4795_v40 = vrot.slane %v4794_v56, 1  ;;  %v1962_v59 = vsel %vm1747_vm0, %v1928_v45, 0.0 }
 0x42b   : > { %v7806_v14 = vpop.permute.xlu2 %2457  ;;  %10005 = vst [vmem:[#allocation22_spill] sm:$0xff] %v7808_v25  ;;  %v1773_v42 = vadd.f32 %v1772_v33, %v1771_v61  ;;  %v1614_v26 = vadd.f32 %v7539_v6, %v1613_v34  ;;  %v5045_v3 = vrot.slane %v5044_v27, 2  ;;  %v1963_v45 = vrot.slane %v1962_v59, 4  ;;  %v10016_v61 = vld [vmem:[#allocation30_spill] sm:$0xff]  ;;  %v10019_v34 = vld [vmem:[#allocation28_spill] sm:$0xff] }
 0x42c   : > { %10004 = vst [vmem:[#allocation21_spill] sm:$0xff] %v7806_v14  ;;  %v4290_v2 = vadd.f32 %v4289_v7, %v4288_v20  ;;  %v4538_v8 = vsel %vm1747_vm0, %v4510_v47, 0.0  ;;  %v2277_v12 = vsel %vm1747_vm0, %v2243_v13, 0.0  ;;  %v7865_v20 = vsel %vm2073_vm14, %v3536_v19, %v7779_v16  ;;  %v10017_v47 = vld [vmem:[#allocation32_spill] sm:$0xff] }
 0x42d   : > { %v4796_v48 = vadd.f32 %v4795_v40, %v4794_v56  ;;  %v3786_v23 = vadd.f32 %v3785_v29, %v3784_v52  ;;  %v3031_v30 = vrot.slane %v3030_v55, 1  ;;  %v2747_v6 = vmul.f32 %v10016_v61, %v7760_v0 }
 0x42e   : > { %v4291_v1 = vrot.slane %v4290_v2, 1  ;;  %v2291_v41 = vsel %vm1747_vm0, %v2245_v49, 0.0  ;;  %v4539_v33 = vrot.slane %v4538_v8, 4  ;;  %v2278_v11 = vrot.slane %v2277_v12, 4  ;;  %v10021_v49 = vld [vmem:[#allocation29_spill] sm:$0xff] }
 0x42f   : > { %6186 = vset.pattern.permute.xlu2 %v10008_v60  ;;  %6188 = vset.pattern.permute.xlu1 %v9926_v15  ;;  %v3251_v43 = vmul.f32 %v10017_v47, %v7760_v0  ;;  %v7874_v13 = vmax.f32 %v1614_v26, 0.0  ;;  %v1774_v16 = vrot.slane %v1773_v42, 1  ;;  %v5046_v56 = vadd.f32 %v5045_v3, %v5044_v27  ;;  %v10022_v3 = vld [vmem:[#allocation31_spill] sm:$0xff] }
 0x430   : > { %6245 = vset.pattern.permute.xlu0 %v9930_v51  ;;  %2969 = vperm.xlu2 %6186, %v9992_v44   ;;  %v1964_v52 = vadd.f32 %v1963_v45, %v1962_v59  ;;  %v2495_v19 = vmul.f32 %v10019_v34, %v7760_v0  ;;  %v10020_v40 = vmov 8   ;;  %v7881_v29 = vsel %vm2073_vm14, %v4796_v48, %v7751_v37 }
 0x431   : > { %3473 = vperm.xlu1 %6188, %v9992_v44   ;;  %4245 = vperm.xlu0 %6245, %v7702_v38   ;;  %v7842_v22 = vpop.permute.xlu1 %4973  ;;  %v7844_v50 = vpop.permute.xlu0 %4989  ;;  %10018 = vst [vmem:[#allocation27_spill] sm:$0xff] %v7874_v13  ;;  %v3787_v62 = vrot.slane %v3786_v23, 1  ;;  %v2292_v32 = vrot.slane %v2291_v41, 4  ;;  %v3001_v61 = vmul.f32 %v10021_v49, %v7829_v39  ;;  %v3032_v27 = vadd.f32 %v3031_v30, %v3030_v55  ;;  %v10024_v49 = vld [vmem:[#allocation33_spill] sm:$0xff] }
 0x432   : > { %10011 = vst [vmem:[#allocation83_spill] sm:$0xff] %v7842_v22  ;;  %v4292_v59 = vadd.f32 %v4291_v1, %v4290_v2  ;;  %v2781_v26 = vsel %vm1747_vm0, %v2747_v6, 0.0  ;;  %v3757_v45 = vmul.f32 %v10022_v3, %v7829_v39  ;;  %v4540_v48 = vadd.f32 %v4539_v33, %v4538_v8 }
 0x433   : > { %10012 = vst [vmem:[#allocation23_spill] sm:$0xff] %v7844_v50  ;;  %v2279_v47 = vadd.f32 %v2278_v11, %v2277_v12  ;;  %v3285_v34 = vsel %vm1747_vm0, %v3251_v43, 0.0  ;;  %v2999_v22 = vmul.f32 %v10024_v49, %v7760_v0  ;;  %v1775_v2 = vadd.f32 %v1774_v16, %v1773_v42 }
 0x434   : > { %v5047_v30 = vrot.slane %v5046_v56, 1  ;;  %v1965_v1 = vrot.slane %v1964_v52, 2  ;;  %v2529_v6 = vsel %vm1747_vm0, %v2495_v19, 0.0  ;;  %v3788_v3 = vadd.f32 %v3787_v62, %v3786_v23 }
 0x435   : > { %v7867_v7 = vpop.permute.xlu2 %3213  ;;  %v2782_v25 = vrot.slane %v2781_v26, 4  ;;  %v3047_v8 = vsel %vm1747_vm0, %v3001_v61, 0.0  ;;  %v7904_v12 = vsel %vm2073_vm14, %v3032_v27, %v7698_v46  ;;  %v7908_v33 = vsel %vm2073_vm14, %v4292_v59, %v7812_v9 }
 0x436   : > { %10015 = vst [vmem:[#allocation26_spill] sm:$0xff] %v7867_v7  ;;  %v2293_v7 = vadd.f32 %v2292_v32, %v2291_v41  ;;  %v3286_v11 = vrot.slane %v3285_v34, 4  ;;  %v3803_v42 = vsel %vm1747_vm0, %v3757_v45, 0.0  ;;  %v4541_v16 = vrot.slane %v4540_v48, 2 }
 0x437   : > { %v2280_v19 = vrot.slane %v2279_v47, 2  ;;  %v2530_v23 = vrot.slane %v2529_v6, 4  ;;  %v3033_v41 = vsel %vm1747_vm0, %v2999_v22, 0.0  ;;  %v5048_v62 = vadd.f32 %v5047_v30, %v5046_v56  ;;  %v10028_v22 = vld [vmem:[#allocation36_spill] sm:$0xff] }
 0x438   : > { %6189 = vset.pattern.permute.xlu2 %v10020_v40  ;;  %v1966_v32 = vadd.f32 %v1965_v1, %v1964_v52  ;;  %v3048_v61 = vrot.slane %v3047_v8, 4  ;;  %v7916_v46 = vsel %vm2075_vm15, %v1775_v2, %v7803_v18  ;;  %v7920_v9 = vsel %vm2073_vm14, %v3788_v3, %v7743_v10 }
 0x439   : > { %6191 = vset.pattern.permute.xlu1 %v9930_v51  ;;  %6250 = vset.pattern.permute.xlu0 %v10001_v36  ;;  %v2783_v27 = vadd.f32 %v2782_v25, %v2781_v26  ;;  %v2294_v59 = vrot.slane %v2293_v7, 2  ;;  %v3804_v45 = vrot.slane %v3803_v42, 4  ;;  %v3287_v49 = vadd.f32 %v3286_v11, %v3285_v34  ;;  %v7943_v11 = vld [vmem:[%s7463_s24 + $0x30] sm:$0xff] }
 0x43a   : > { %3725 = vperm.xlu2 %6189, %v9992_v44   ;;  %4229 = vperm.xlu1 %6191, %v9992_v44   ;;  %v7892_v37 = vpop.permute.xlu1 %2205  ;;  %v3503_v56 = vmul.f32 %v10028_v22, %v7760_v0  ;;  %v10029_v52 = vmov 11   ;;  %v4542_v18 = vadd.f32 %v4541_v16, %v4540_v48  ;;  %v2281_v2 = vadd.f32 %v2280_v19, %v2279_v47 }
 0x43b   : > { %10023 = vst [vmem:[#allocation88_spill] sm:$0xff] %v7892_v37  ;;  %2233 = vperm.xlu0 %6250, %v7874_v13   ;;  %v7898_v55 = vpop.permute.xlu0 %2221  ;;  %v10027_v37 = vld [vmem:[#allocation34_spill] sm:$0xff]  ;;  %v2531_v10 = vadd.f32 %v2530_v23, %v2529_v6  ;;  %v7932_v25 = vsel %vm2073_vm14, %v5048_v62, %v7848_v63  ;;  %v3049_v26 = vadd.f32 %v3048_v61, %v3047_v8  ;;  %v1967_v30 = vrot.slane %v1966_v32, 1 }
 0x43c   : > { %10025 = vst [vmem:[#allocation25_spill] sm:$0xff] %v7898_v55  ;;  %v4007_v14 = vmul.f32 %v10027_v37, %v7760_v0  ;;  %v10031_v37 = vld [vmem:[#allocation35_spill] sm:$0xff]  ;;  %v2784_v1 = vrot.slane %v2783_v27, 2  ;;  %v2295_v6 = vadd.f32 %v2294_v59, %v2293_v7  ;;  %v3805_v3 = vadd.f32 %v3804_v45, %v3803_v42  ;;  %v10034_v61 = vld [vmem:[#allocation38_spill] sm:$0xff]  ;;  %v10035_v7 = vld [vmem:[#allocation40_spill] sm:$0xff] }
 0x43d   : > { %10030 = vst [vmem:[#allocation32_spill] sm:$0xff] %v7932_v25  ;;  %v4513_v34 = vmul.f32 %v10031_v37, %v7829_v39  ;;  %v3288_v63 = vrot.slane %v3287_v49, 2  ;;  %v3537_v39 = vsel %vm1747_vm0, %v3503_v56, 0.0  ;;  %v4543_v19 = vrot.slane %v4542_v18, 1  ;;  %v10036_v59 = vld [vmem:[#allocation39_spill] sm:$0xff] }
 0x43e   : > { %v7911_v43 = vpop.permute.xlu2 %3969  ;;  %v4041_v8 = vsel %vm1747_vm0, %v4007_v14, 0.0  ;;  %v2282_v23 = vrot.slane %v2281_v2, 1  ;;  %v2532_v62 = vrot.slane %v2531_v10, 2  ;;  %v4763_v22 = vmul.f32 %v10034_v61, %v7760_v0 }
 0x43f   : > { %10026 = vst [vmem:[#allocation30_spill] sm:$0xff] %v7911_v43  ;;  %v3034_v43 = vrot.slane %v3033_v41, 4  ;;  %v3050_v37 = vrot.slane %v3049_v26, 2  ;;  %v3755_v42 = vmul.f32 %v10035_v7, %v7760_v0  ;;  %v3254_v45 = vmul.f32 %v10036_v59, %v7943_v11 }
 0x440   : > { %v1968_v14 = vadd.f32 %v1967_v30, %v1966_v32  ;;  %v4042_v56 = vrot.slane %v4041_v8, 4  ;;  %v2296_v55 = vrot.slane %v2295_v6, 1  ;;  %v3289_v50 = vadd.f32 %v3288_v63, %v3287_v49 }
 0x441   : > { %v3035_v16 = vadd.f32 %v3034_v43, %v3033_v41  ;;  %v2785_v41 = vadd.f32 %v2784_v1, %v2783_v27  ;;  %v3806_v15 = vrot.slane %v3805_v3, 2  ;;  %v4544_v61 = vadd.f32 %v4543_v19, %v4542_v18 }
 0x442   : > { %6192 = vset.pattern.permute.xlu2 %v10029_v52  ;;  %6194 = vset.pattern.permute.xlu1 %v9991_v24  ;;  %v2283_v53 = vadd.f32 %v2282_v23, %v2281_v2  ;;  %v2533_v7 = vadd.f32 %v2532_v62, %v2531_v10  ;;  %v3051_v25 = vadd.f32 %v3050_v37, %v3049_v26  ;;  %v3789_v59 = vsel %vm1747_vm0, %v3755_v42, 0.0  ;;  %v10039_v2 = vld [vmem:[#allocation50_spill] sm:$0xff]  ;;  %v7971_v23 = vld [vmem:[%s7463_s24 + $0x20] sm:$0xff] }
 0x443   : > { %6253 = vset.pattern.permute.xlu0 %v10008_v60  ;;  %4481 = vperm.xlu2 %6192, %v9992_v44   ;;  %v3036_v51 = vrot.slane %v3035_v16, 2  ;;  %v3306_v32 = vsel %vm1747_vm0, %v3254_v45, 0.0  ;;  %v2786_v27 = vrot.slane %v2785_v41, 1  ;;  %v4043_v49 = vadd.f32 %v4042_v56, %v4041_v8 }
 0x444   : > { %4985 = vperm.xlu1 %6194, %v9992_v44   ;;  %2989 = vperm.xlu0 %6253, %v7874_v13   ;;  %v7938_v48 = vpop.permute.xlu1 %2961  ;;  %v7940_v47 = vpop.permute.xlu0 %2977  ;;  %v7968_v10 = vsel %vm2075_vm15, %v1968_v14, %v7816_v57  ;;  %v3290_v26 = vrot.slane %v3289_v50, 1  ;;  %v3807_v63 = vadd.f32 %v3806_v15, %v3805_v3  ;;  %v7976_v8 = vadd.f32 %v2296_v55, %v2295_v6  ;;  %v10042_v55 = vld [vmem:[#allocation41_spill] sm:$0xff] }
 0x445   : > { %10032 = vst [vmem:[#allocation28_spill] sm:$0xff] %v7938_v48  ;;  %v4559_v48 = vsel %vm1747_vm0, %v4513_v34, 0.0  ;;  %v4797_v34 = vsel %vm1747_vm0, %v4763_v22, 0.0  ;;  %v3037_v1 = vadd.f32 %v3036_v51, %v3035_v16  ;;  %v3790_v62 = vrot.slane %v3789_v59, 4  ;;  %v7983_v51 = vld [vmem:[%s7463_s24 + $0x48] sm:$0xff] }
 0x446   : > { %10033 = vst [vmem:[#allocation29_spill] sm:$0xff] %v7940_v47  ;;  %v3538_v47 = vrot.slane %v3537_v39, 4  ;;  %v4560_v44 = vrot.slane %v4559_v48, 4  ;;  %v4798_v19 = vrot.slane %v4797_v34, 4  ;;  %v3307_v22 = vrot.slane %v3306_v32, 4 }
 0x447   : > { %v7980_v37 = vsel %vm2073_vm14, %v4544_v61, %v7757_v28  ;;  %v2534_v57 = vrot.slane %v2533_v7, 1  ;;  %v3052_v42 = vrot.slane %v3051_v25, 1  ;;  %v7987_v15 = vsel %vm2075_vm15, %v2283_v53, %v7858_v4 }
 0x448   : > { %v7954_v43 = vpop.permute.xlu2 %4725  ;;  %v3539_v18 = vadd.f32 %v3538_v47, %v3537_v39  ;;  %v4561_v39 = vadd.f32 %v4560_v44, %v4559_v48  ;;  %v2787_v3 = vadd.f32 %v2786_v27, %v2785_v41  ;;  %v4044_v16 = vrot.slane %v4043_v49, 2  ;;  %v10047_v41 = vld [vmem:[#allocation43_spill] sm:$0xff] }
 0x449   : > { %10037 = vst [vmem:[#allocation31_spill] sm:$0xff] %v7954_v43  ;;  %v1735_v44 = vmul.f32 %v10042_v55, %v7971_v23  ;;  %v3291_v6 = vadd.f32 %v3290_v26, %v3289_v50  ;;  %v3038_v14 = vrot.slane %v3037_v1, 1  ;;  %v3808_v28 = vrot.slane %v3807_v63, 1  ;;  %v10048_v55 = vld [vmem:[#allocation42_spill] sm:$0xff] }
 0x44a   : > { %v3540_v45 = vrot.slane %v3539_v18, 2  ;;  %v4799_v56 = vadd.f32 %v4798_v19, %v4797_v34  ;;  %v4562_v61 = vrot.slane %v4561_v39, 2  ;;  %v3308_v43 = vadd.f32 %v3307_v22, %v3306_v32 }
 0x44b   : > { %6195 = vset.pattern.permute.xlu2 %v10038_v17  ;;  %v7995_v53 = vadd.f32 %v2534_v57, %v2533_v7  ;;  %v7997_v4 = vadd.f32 %v3052_v42, %v3051_v25  ;;  %v4259_v27 = vmul.f32 %v10047_v41, %v7760_v0  ;;  %v4045_v50 = vadd.f32 %v4044_v16, %v4043_v49  ;;  %v1616_v49 = vpop.f32.mrf.mxu2 }
 0x44c   : > { %6197 = vset.pattern.permute.xlu1 %v10001_v36  ;;  %6256 = vset.pattern.permute.xlu0 %v10020_v40  ;;  %v3541_v26 = vadd.f32 %v3540_v45, %v3539_v18  ;;  %v1776_v34 = vsel %vm1747_vm0, %v1735_v44, 0.0  ;;  %v10049_v19 = vmov 3   ;;  %v8008_v7 = vsel %vm2075_vm15, %v2787_v3, %v7826_v35 }
 0x44d   : > { %1703 = vperm.xlu2 %6195, %v10039_v2   ;;  %2217 = vperm.xlu1 %6197, %v10039_v2   ;;  %v7964_v30 = vpop.permute.xlu1 %3717  ;;  %10045 = vst [vmem:[#allocation35_spill] sm:$0xff] %v7995_v53  ;;  %v3039_v25 = vadd.f32 %v3038_v14, %v3037_v1  ;;  %v4800_v32 = vrot.slane %v4799_v56, 2  ;;  %v8016_v18 = vsel %vm2075_vm15, %v3291_v6, %v7822_v58  ;;  %v3309_v22 = vrot.slane %v3308_v43, 2  ;;  %v10055_v58 = vld [vmem:[#allocation44_spill] sm:$0xff]  ;;  %v6358_v6 = vld [vmem:[%s9758_s8] ss:$0 sm:$0xff] }
 0x44e   : > { %10040 = vst [vmem:[#allocation33_spill] sm:$0xff] %v7964_v30  ;;  %3745 = vperm.xlu0 %6256, %v7874_v13   ;;  %v7974_v47 = vpop.permute.xlu0 %3733  ;;  %v3791_v30 = vadd.f32 %v3790_v62, %v3789_v59  ;;  %v8010_v59 = vadd.f32 %v3808_v28, %v3807_v63  ;;  %v1777_v63 = vrot.slane %v1776_v34, 4  ;;  %v4293_v42 = vsel %vm1747_vm0, %v4259_v27, 0.0  ;;  %v10058_v27 = vld [vmem:[#allocation45_spill] sm:$0xff] }
 0x44f   : > { %10041 = vst [vmem:[#allocation34_spill] sm:$0xff] %v7974_v47  ;;  %v10044_v47 = vld [vmem:[#allocation77_spill] sm:$0xff]  ;;  %v4046_v16 = vrot.slane %v4045_v50, 1  ;;  %v3542_v45 = vrot.slane %v3541_v26, 1  ;;  %v1617_v14 = vadd.f32 %v6358_v6, %v1616_v49  ;;  %v4801_v28 = vadd.f32 %v4800_v32, %v4799_v56 }
 0x450   : > { %v1740_v36 = vmul.f32 %v10044_v47, %v7983_v51  ;;  %10046 = vst [vmem:[#allocation38_spill] sm:$0xff] %v7997_v4  ;;  %v4563_v47 = vadd.f32 %v4562_v61, %v4561_v39  ;;  %v3792_v62 = vrot.slane %v3791_v30, 2  ;;  %v1929_v39 = vmul.f32 %v10055_v58, %v7971_v23  ;;  %v10057_v61 = vld [vmem:[#allocation46_spill] sm:$0xff] }
 0x451   : > { %v7991_v48 = vpop.permute.xlu2 %1894  ;;  %10050 = vst [vmem:[#allocation40_spill] sm:$0xff] %v8008_v7  ;;  %v4511_v41 = vmul.f32 %v10057_v61, %v7760_v0  ;;  %v4294_v58 = vrot.slane %v4293_v42, 4  ;;  %v1778_v49 = vadd.f32 %v1777_v63, %v1776_v34  ;;  %v4047_v32 = vadd.f32 %v4046_v16, %v4045_v50  ;;  %v8056_v63 = vld [vmem:[%s7463_s24 + $0x40] sm:$0xff] }
 0x452   : > { %10043 = vst [vmem:[#allocation36_spill] sm:$0xff] %v7991_v48  ;;  %v4010_v48 = vmul.f32 %v10048_v55, %v7943_v11  ;;  %v1811_v57 = vsel %vm1747_vm0, %v1740_v36, 0.0  ;;  %v10056_v36 = vld [vmem:[#allocation47_spill] sm:$0xff]  ;;  %v1969_v56 = vsel %vm1747_vm0, %v1929_v39, 0.0  ;;  %v3543_v6 = vadd.f32 %v3542_v45, %v3541_v26 }
 0x453   : > { %10051 = vst [vmem:[#allocation39_spill] sm:$0xff] %v8010_v59  ;;  %v2244_v44 = vmul.f32 %v10056_v36, %v7971_v23  ;;  %v1812_v55 = vrot.slane %v1811_v57, 4  ;;  %v8042_v36 = vsel %vm2075_vm15, %v3039_v25, %v7904_v12  ;;  %v10060_v12 = vmov 6  }
 0x454   : > { %10052 = vst [vmem:[#allocation41_spill] sm:$0xff] %v8016_v18  ;;  %v4062_v3 = vsel %vm1747_vm0, %v4010_v48, 0.0  ;;  %v4766_v48 = vmul.f32 %v10058_v27, %v7943_v11  ;;  %v3310_v18 = vadd.f32 %v3309_v22, %v3308_v43  ;;  %v8046_v11 = vmax.f32 %v1617_v14, 0.0 }
 0x455   : > { %6198 = vset.pattern.permute.xlu2 %v10049_v19  ;;  %6200 = vset.pattern.permute.xlu1 %v10008_v60  ;;  %v4063_v53 = vrot.slane %v4062_v3, 4  ;;  %10059 = vst [vmem:[#allocation42_spill] sm:$0xff] %v8042_v36  ;;  %v2284_v61 = vsel %vm1747_vm0, %v2244_v44, 0.0  ;;  %v4802_v27 = vrot.slane %v4801_v28, 1  ;;  %v1813_v7 = vadd.f32 %v1812_v55, %v1811_v57 }
 0x456   : > { %6259 = vset.pattern.permute.xlu0 %v10029_v52  ;;  %2469 = vperm.xlu2 %6198, %v10039_v2   ;;  %v4818_v4 = vsel %vm1747_vm0, %v4766_v48, 0.0  ;;  %v4295_v43 = vadd.f32 %v4294_v58, %v4293_v42  ;;  %v1970_v25 = vrot.slane %v1969_v56, 4  ;;  %v3311_v26 = vrot.slane %v3310_v18, 1 }
 0x457   : > { %2973 = vperm.xlu1 %6200, %v10039_v2   ;;  %4501 = vperm.xlu0 %6259, %v7874_v13   ;;  %v8021_v35 = vpop.permute.xlu1 %4473  ;;  %v8023_v1 = vpop.permute.xlu0 %4489  ;;  %v3793_v13 = vadd.f32 %v3792_v62, %v3791_v30  ;;  %v4064_v34 = vadd.f32 %v4063_v53, %v4062_v3  ;;  %v1779_v62 = vrot.slane %v1778_v49, 2  ;;  %v2285_v22 = vrot.slane %v2284_v61, 4  ;;  %v10062_v53 = vld [vmem:[#allocation49_spill] sm:$0xff] }
 0x458   : > { %10053 = vst [vmem:[#allocation77_spill] sm:$0xff] %v8021_v35  ;;  %v4564_v35 = vrot.slane %v4563_v47, 1  ;;  %v5015_v42 = vmul.f32 %v10062_v53, %v7760_v0  ;;  %v4803_v16 = vadd.f32 %v4802_v27, %v4801_v28  ;;  %v1814_v45 = vrot.slane %v1813_v7, 2 }
 0x459   : > { %10054 = vst [vmem:[#allocation43_spill] sm:$0xff] %v8023_v1  ;;  %v4545_v1 = vsel %vm1747_vm0, %v4511_v41, 0.0  ;;  %v3794_v50 = vrot.slane %v3793_v13, 1  ;;  %v8068_v44 = vsel %vm2075_vm15, %v3543_v6, %v7865_v20  ;;  %v8072_v14 = vsel %vm2075_vm15, %v4047_v32, %v7854_v31 }
 0x45a   : > { %v8051_v30 = vadd.f32 %v4564_v35, %v4563_v47  ;;  %v4546_v47 = vrot.slane %v4545_v1, 4  ;;  %v4819_v35 = vrot.slane %v4818_v4, 4  ;;  %10064 = vst [vmem:[#allocation46_spill] sm:$0xff] %v8068_v44  ;;  %v4296_v41 = vrot.slane %v4295_v43, 2 }
 0x45b   : > { %v8038_v59 = vpop.permute.xlu2 %2713  ;;  %10065 = vst [vmem:[#allocation45_spill] sm:$0xff] %v8072_v14  ;;  %v4065_v48 = vrot.slane %v4064_v34, 2  ;;  %v1971_v55 = vadd.f32 %v1970_v25, %v1969_v56  ;;  %v3795_v58 = vadd.f32 %v3794_v50, %v3793_v13  ;;  %v8075_v53 = vadd.f32 %v3311_v26, %v3310_v18  ;;  %v10067_v14 = vld [vmem:[#allocation81_spill] sm:$0xff]  ;;  %v10069_v26 = vld [vmem:[#allocation48_spill] sm:$0xff] }
 0x45c   : > { %10061 = vst [vmem:[#allocation44_spill] sm:$0xff] %v8051_v30  ;;  %v8078_v30 = vld [vmem:[%s7463_s24 + $0x38] sm:$0xff]  ;;  %v1780_v20 = vadd.f32 %v1779_v62, %v1778_v49  ;;  %v4547_v6 = vadd.f32 %v4546_v47, %v4545_v1  ;;  %v4820_v44 = vadd.f32 %v4819_v35, %v4818_v4  ;;  %v5049_v31 = vsel %vm1747_vm0, %v5015_v42, 0.0  ;;  %v10070_v49 = vld [vmem:[#allocation51_spill] sm:$0xff] }
 0x45d   : > { %10066 = vst [vmem:[#allocation49_spill] sm:$0xff] %v8075_v53  ;;  %v1815_v32 = vadd.f32 %v1814_v45, %v1813_v7  ;;  %v3257_v56 = vmul.f32 %v10067_v14, %v7983_v51  ;;  %v8087_v13 = vsel %vm2075_vm15, %v4803_v16, %v7881_v29  ;;  %v4297_v18 = vadd.f32 %v4296_v41, %v4295_v43 }
 0x45e   : > { %6201 = vset.pattern.permute.xlu2 %v10060_v12  ;;  %10068 = vst [vmem:[#allocation81_spill] sm:$0xff] %v8087_v13  ;;  %v1972_v50 = vrot.slane %v1971_v55, 2  ;;  %v5050_v4 = vrot.slane %v5049_v31, 4  ;;  %v2748_v7 = vmul.f32 %v10070_v49, %v7971_v23  ;;  %v1781_v47 = vrot.slane %v1780_v20, 1 }
 0x45f   : > { %6203 = vset.pattern.permute.xlu1 %v10020_v40  ;;  %6261 = vset.pattern.permute.xlu0 %v10038_v17  ;;  %v4548_v29 = vrot.slane %v4547_v6, 2  ;;  %v4821_v35 = vrot.slane %v4820_v44, 2  ;;  %v8099_v43 = vsel %vm2075_vm15, %v3795_v58, %v7920_v9  ;;  %v3327_v16 = vsel %vm1747_vm0, %v3257_v56, 0.0 }
 0x460   : > { %3225 = vperm.xlu2 %6201, %v10039_v2   ;;  %3729 = vperm.xlu1 %6203, %v10039_v2   ;;  %v1694_v57 = vpop.permute.xlu1 %1693  ;;  %10071 = vst [vmem:[#allocation48_spill] sm:$0xff] %v8099_v43  ;;  %v2788_v49 = vsel %vm1747_vm0, %v2748_v7, 0.0  ;;  %v1782_v56 = vadd.f32 %v1781_v47, %v1780_v20  ;;  %v3328_v53 = vrot.slane %v3327_v16, 4  ;;  %v10076_v20 = vld [vmem:[#allocation64_spill] sm:$0xff] }
 0x461   : > { %1728 = vperm.xlu0 %6261, %v8046_v11   ;;  %v1739_v3 = vmul.f32 %v1694_v57, %v8056_v63  ;;  %v8064_v39 = vpop.permute.xlu0 %1713  ;;  %v2286_v57 = vadd.f32 %v2285_v22, %v2284_v61  ;;  %v4066_v61 = vadd.f32 %v4065_v48, %v4064_v34  ;;  %v1932_v22 = vmul.f32 %v10069_v26, %v8078_v30  ;;  %v10072_v34 = vld [vmem:[#allocation52_spill] sm:$0xff] }
 0x462   : > { %10063 = vst [vmem:[#allocation47_spill] sm:$0xff] %v8064_v39  ;;  %v2751_v42 = vmul.f32 %v10072_v34, %v8078_v30  ;;  %v4298_v48 = vrot.slane %v4297_v18, 1  ;;  %v5051_v26 = vadd.f32 %v5050_v4, %v5049_v31 }
 0x463   : > { %v1804_v0 = vsel %vm1747_vm0, %v1739_v3, 0.0  ;;  %v2287_v1 = vrot.slane %v2286_v57, 2  ;;  %v1816_v3 = vrot.slane %v1815_v32, 1  ;;  %v1990_v9 = vsel %vm1747_vm0, %v1932_v22, 0.0 }
 0x464   : > { %v1805_v28 = vrot.slane %v1804_v0, 4  ;;  %v8080_v27 = vpop.permute.xlu2 %3469  ;;  %v1991_v13 = vrot.slane %v1990_v9, 4  ;;  %v2809_v43 = vsel %vm1747_vm0, %v2751_v42, 0.0  ;;  %v4299_v36 = vadd.f32 %v4298_v48, %v4297_v18 }
 0x465   : > { %v2288_v58 = vadd.f32 %v2287_v1, %v2286_v57  ;;  %v10075_v57 = vld [vmem:[#allocation86_spill] sm:$0xff]  ;;  %v5052_v1 = vrot.slane %v5051_v26, 2  ;;  %v2810_v47 = vrot.slane %v2809_v43, 4 }
 0x466   : > { %v1806_v25 = vadd.f32 %v1805_v28, %v1804_v0  ;;  %v4067_v0 = vrot.slane %v4066_v61, 1  ;;  %v1973_v28 = vadd.f32 %v1972_v50, %v1971_v55  ;;  %v2789_v50 = vrot.slane %v2788_v49, 4 }
 0x467   : > { %v4013_v31 = vmul.f32 %v10075_v57, %v7983_v51  ;;  %v2289_v22 = vrot.slane %v2288_v58, 1  ;;  %v1992_v42 = vadd.f32 %v1991_v13, %v1990_v9  ;;  %v8138_v13 = vsel %vm2075_vm15, %v4299_v36, %v7908_v33  ;;  %v10082_v9 = vld [vmem:[#allocation6_spill] sm:$0xff] }
 0x468   : > { %v1807_v62 = vrot.slane %v1806_v25, 2  ;;  %6204 = vset.pattern.permute.xlu2 %v9921_v54  ;;  %6206 = vset.pattern.permute.xlu1 %v10029_v52  ;;  %v1974_v55 = vrot.slane %v1973_v28, 1  ;;  %v8125_v18 = vadd.f32 %v4067_v0, %v4066_v61  ;;  %v5053_v48 = vadd.f32 %v5052_v1, %v5051_v26 }
 0x469   : > { %6264 = vset.pattern.permute.xlu0 %v9991_v24  ;;  %3981 = vperm.xlu2 %6204, %v10039_v2   ;;  %v1993_v57 = vrot.slane %v1992_v42, 2 }
 0x46a   : > { %v1808_v45 = vadd.f32 %v1807_v62, %v1806_v25  ;;  %4485 = vperm.xlu1 %6206, %v10039_v2   ;;  %5001 = vperm.xlu0 %6264, %v7702_v38   ;;  %v8106_v14 = vpop.permute.xlu1 %2461  ;;  %v8108_v41 = vpop.permute.xlu0 %3233  ;;  %v4549_v25 = vadd.f32 %v4548_v29, %v4547_v6  ;;  %v4822_v62 = vadd.f32 %v4821_v35, %v4820_v44 }
 0x46b   : > { %10073 = vst [vmem:[#allocation51_spill] sm:$0xff] %v8106_v14  ;;  %v1817_v14 = vadd.f32 %v1816_v3, %v1815_v32  ;;  %v2248_v6 = vmul.f32 %v10076_v20, %v8056_v63  ;;  %v10077_v32 = vld [vmem:[#allocation53_spill] sm:$0xff]  ;;  %v3329_v29 = vadd.f32 %v3328_v53, %v3327_v16  ;;  %v1975_v3 = vadd.f32 %v1974_v55, %v1973_v28  ;;  %v10080_v53 = vld [vmem:[#allocation66_spill] sm:$0xff] }
 0x46c   : > { %10074 = vst [vmem:[#allocation52_spill] sm:$0xff] %v8108_v41  ;;  %v1809_v34 = vrot.slane %v1808_v45, 1  ;;  %v4823_v4 = vrot.slane %v4822_v62, 1  ;;  %v2496_v7 = vmul.f32 %v10077_v32, %v7971_v23  ;;  %v4550_v35 = vrot.slane %v4549_v25, 1 }
 0x46d   : > { %10078 = vst [vmem:[#allocation86_spill] sm:$0xff] %v8125_v18  ;;  %v2290_v16 = vadd.f32 %v2289_v22, %v2288_v58  ;;  %v2312_v0 = vsel %vm1747_vm0, %v2248_v6, 0.0  ;;  %v3330_v55 = vrot.slane %v3329_v29, 2  ;;  %v5054_v6 = vrot.slane %v5053_v48, 1 }
 0x46e   : > { %v1810_v39 = vadd.f32 %v1809_v34, %v1808_v45  ;;  %v8113_v41 = vpop.permute.xlu2 %4225  ;;  %v2790_v45 = vadd.f32 %v2789_v50, %v2788_v49  ;;  %10081 = vst [vmem:[#allocation53_spill] sm:$0xff] %v8138_v13  ;;  %v8145_v49 = vadd.f32 %v4823_v4, %v4822_v62  ;;  %v2536_v34 = vsel %vm1747_vm0, %v2496_v7, 0.0 }
 0x46f   : > { %v4551_v50 = vadd.f32 %v4550_v35, %v4549_v25  ;;  %v2313_v26 = vrot.slane %v2312_v0, 4  ;;  %v2537_v62 = vrot.slane %v2536_v34, 4  ;;  %v10086_v25 = vld [vmem:[#allocation68_spill] sm:$0xff]  ;;  %v3331_v7 = vadd.f32 %v3330_v55, %v3329_v29 }
 0x470   : > { %v8120_v44 = vsel %vm2071_vm13, %v1817_v14, %v1810_v39  ;;  %v8131_v39 = vsel %vm2077_vm1, %v1782_v56, %v7916_v46  ;;  %v4083_v14 = vsel %vm1747_vm0, %v4013_v31, 0.0  ;;  %10084 = vst [vmem:[#allocation97_spill] sm:$0xff] %v8145_v49  ;;  %v2811_v56 = vadd.f32 %v2810_v47, %v2809_v43  ;;  %v10085_v31 = vld [vmem:[#allocation90_spill] sm:$0xff] }
 0x471   : > { %6207 = vset.pattern.permute.xlu2 %v9904_v5  ;;  %10079 = vst [vmem:[#allocation64_spill] sm:$0xff] %v8131_v39  ;;  %v4084_v33 = vrot.slane %v4083_v14, 4  ;;  %v2791_v58 = vrot.slane %v2790_v45, 2  ;;  %v4769_v22 = vmul.f32 %v10085_v31, %v7983_v51  ;;  %v2389_v43 = vsel %vm2077_vm1, %v2290_v16, %v7987_v15 }
 0x472   : > { %6209 = vset.pattern.permute.xlu1 %v10038_v17  ;;  %6265 = vset.pattern.permute.xlu0 %v10049_v19  ;;  %v2812_v4 = vrot.slane %v2811_v56, 2  ;;  %v3004_v32 = vmul.f32 %v10086_v25, %v8056_v63  ;;  %v8157_v35 = vadd.f32 %v1993_v57, %v1992_v42  ;;  %v8165_v31 = vsel %vm2075_vm15, %v4551_v50, %v7980_v37  ;;  %v10098_v25 = vld [vmem:[#allocation71_spill] sm:$0xff] }
 0x473   : > { %4737 = vperm.xlu2 %6207, %v10039_v2   ;;  %1708 = vperm.xlu1 %6209, %v10080_v53   ;;  %v3218_v61 = vpop.permute.xlu1 %3217  ;;  %10089 = vst [vmem:[#allocation98_spill] sm:$0xff] %v8165_v31  ;;  %v2792_v49 = vadd.f32 %v2791_v58, %v2790_v45  ;;  %v2314_v18 = vadd.f32 %v2313_v26, %v2312_v0  ;;  %v4839_v15 = vsel %vm1747_vm0, %v4769_v22, 0.0  ;;  %v3332_v45 = vrot.slane %v3331_v7, 1 }
 0x474   : > { %2433 = vperm.xlu0 %6265, %v10082_v9   ;;  %v3256_v46 = vmul.f32 %v3218_v61, %v8056_v63  ;;  %v8143_v28 = vpop.permute.xlu0 %3989  ;;  %10087 = vst [vmem:[#allocation90_spill] sm:$0xff] %v8157_v35  ;;  %v4085_v61 = vadd.f32 %v4084_v33, %v4083_v14  ;;  %v5055_v29 = vadd.f32 %v5054_v6, %v5053_v48  ;;  %v10090_v14 = vld [vmem:[#allocation10_spill] sm:$0xff]  ;;  %v4840_v33 = vrot.slane %v4839_v15, 4  ;;  %v10106_v9 = vld [vmem:[#allocation79_spill] sm:$0xff] }
 0x475   : > { %10083 = vst [vmem:[#allocation96_spill] sm:$0xff] %v8143_v28  ;;  %v8170_v42 = vadd.f32 %v2537_v62, %v2536_v34  ;;  %v8178_v37 = vadd.f32 %v2812_v4, %v2811_v56  ;;  %v10094_v34 = vld [vmem:[#allocation54_spill] sm:$0xff]  ;;  %v10095_v56 = vld [vmem:[#allocation55_spill] sm:$0xff]  ;;  %v2315_v26 = vrot.slane %v2314_v18, 2 }
 0x476   : > { %v3320_v36 = vsel %vm1747_vm0, %v3256_v46, 0.0  ;;  %v8161_v46 = vsel %vm2077_vm1, %v1975_v3, %v7968_v10  ;;  %v8176_v10 = vsel %vm2079_vm2, %v7976_v8, %v2389_v43  ;;  %v3068_v3 = vsel %vm1747_vm0, %v3004_v32, 0.0  ;;  %v10096_v43 = vld [vmem:[#allocation32_spill] sm:$0xff] }
 0x477   : > { %v3321_v1 = vrot.slane %v3320_v36, 4  ;;  %v8151_v20 = vpop.permute.xlu2 %4981  ;;  %10088 = vst [vmem:[#allocation68_spill] sm:$0xff] %v8161_v46  ;;  %v3000_v50 = vmul.f32 %v10094_v34, %v7971_v23  ;;  %v4086_v57 = vrot.slane %v4085_v61, 2  ;;  %v8189_v58 = vmul.f32 %v10095_v56, %v8078_v30 }
 0x478   : > { %10091 = vst [vmem:[#allocation99_spill] sm:$0xff] %v8176_v10  ;;  %v3069_v6 = vrot.slane %v3068_v3, 4  ;;  %v8195_v4 = vsel %vm2075_vm15, %v5055_v29, %v10096_v43  ;;  %v3760_v32 = vmul.f32 %v10098_v25, %v8056_v63  ;;  %v2316_v29 = vadd.f32 %v2315_v26, %v2314_v18 }
 0x479   : > { %v3322_v47 = vadd.f32 %v3321_v1, %v3320_v36  ;;  %10092 = vst [vmem:[#allocation100_spill] sm:$0xff] %v8178_v37  ;;  %v2793_v36 = vrot.slane %v2792_v49, 1  ;;  %v4087_v10 = vadd.f32 %v4086_v57, %v4085_v61  ;;  %v10099_v1 = vld [vmem:[#allocation36_spill] sm:$0xff]  ;;  %v10102_v57 = vmov 4  }
 0x47a   : > { %10097 = vst [vmem:[#allocation54_spill] sm:$0xff] %v8195_v4  ;;  %v1933_v35 = vmul.f32 %v10099_v1, %v8056_v63  ;;  %v3824_v18 = vsel %vm1747_vm0, %v3760_v32, 0.0 }
 0x47b   : > { %v3323_v16 = vrot.slane %v3322_v47, 2  ;;  %6210 = vset.pattern.permute.xlu2 %v9917_v21  ;;  %6212 = vset.pattern.permute.xlu1 %v10049_v19 }
 0x47c   : > { %2453 = vperm.xlu0 %6265, %v10090_v14   ;;  %1906 = vperm.xlu2 %6210, %v10080_v53   ;;  %v4841_v14 = vadd.f32 %v4840_v33, %v4839_v15  ;;  %v10101_v15 = vld [vmem:[#allocation37_spill] sm:$0xff] }
 0x47d   : > { %v3324_v0 = vadd.f32 %v3323_v16, %v3322_v47  ;;  %2473 = vperm.xlu1 %6212, %v10080_v53   ;;  %v3974_v55 = vpop.permute.xlu1 %3973  ;;  %v8182_v48 = vpop.permute.xlu0 %4745  ;;  %v3333_v47 = vadd.f32 %v3332_v45, %v3331_v7  ;;  %v8200_v16 = vld [vmem:[%s7463_s24 + $0x50] sm:$0xff]  ;;  %v8210_v7 = vsel %vm1747_vm0, %v3000_v50, 0.0  ;;  %v3070_v45 = vadd.f32 %v3069_v6, %v3068_v3  ;;  %v10103_v3 = vld [vmem:[#allocation74_spill] sm:$0xff] }
 0x47e   : > { %10093 = vst [vmem:[#allocation101_spill] sm:$0xff] %v8182_v48  ;;  %v4012_v8 = vmul.f32 %v3974_v55, %v8056_v63  ;;  %v4516_v1 = vmul.f32 %v10103_v3, %v8056_v63  ;;  %v4088_v6 = vrot.slane %v4087_v10, 1  ;;  %v10105_v3 = vld [vmem:[#allocation14_spill] sm:$0xff] }
 0x47f   : > { %v3325_v22 = vrot.slane %v3324_v0, 1  ;;  %v2754_v37 = vmul.f32 %v10105_v3, %v8200_v16  ;;  %v2752_v3 = vmul.f32 %v8038_v59, %v8056_v63 }
 0x480   : > { %v4076_v62 = vsel %vm1747_vm0, %v4012_v8, 0.0  ;;  %v4580_v31 = vsel %vm1747_vm0, %v4516_v1, 0.0  ;;  %v10107_v1 = vmov 7  }
 0x481   : > { %v3326_v55 = vadd.f32 %v3325_v22, %v3324_v0  ;;  %v4077_v34 = vrot.slane %v4076_v62, 4  ;;  %v2214_v56 = vpop.permute.xlu2 %2213  ;;  %v10100_v0 = vld [vmem:[#allocation93_spill] sm:$0xff]  ;;  %v8217_v22 = vadd.f32 %v2793_v36, %v2792_v49  ;;  %v2317_v49 = vrot.slane %v2316_v29, 1 }
 0x482   : > { %v2249_v8 = vmul.f32 %v2214_v56, %v7983_v51  ;;  %v1935_v61 = vmul.f32 %v10100_v0, %v8200_v16  ;;  %v3825_v0 = vrot.slane %v3824_v18, 4  ;;  %v2830_v48 = vsel %vm1747_vm0, %v2754_v37, 0.0 }
 0x483   : > { %v8207_v43 = vsel %vm2071_vm13, %v3333_v47, %v3326_v55  ;;  %v4078_v25 = vadd.f32 %v4077_v34, %v4076_v62  ;;  %v4842_v62 = vrot.slane %v4841_v14, 2  ;;  %v1997_v47 = vsel %vm1747_vm0, %v1933_v35, 0.0 }
 0x484   : > { %2465 = vperm.xlu0 %6265, %v10101_v15   ;;  %6213 = vset.pattern.permute.xlu2 %v10102_v57  ;;  %v2319_v33 = vsel %vm1747_vm0, %v2249_v8, 0.0  ;;  %v3071_v8 = vrot.slane %v3070_v45, 2  ;;  %v2011_v2 = vsel %vm1747_vm0, %v1935_v61, 0.0  ;;  %v1998_v4 = vrot.slane %v1997_v47, 4 }
 0x485   : > { %v4079_v26 = vrot.slane %v4078_v25, 2  ;;  %6215 = vset.pattern.permute.xlu1 %v10060_v12  ;;  %2725 = vperm.xlu2 %6213, %v10080_v53   ;;  %v2320_v50 = vrot.slane %v2319_v33, 4 }
 0x486   : > { %3229 = vperm.xlu1 %6215, %v10080_v53   ;;  %v4730_v55 = vpop.permute.xlu1 %4729  ;;  %v3072_v61 = vadd.f32 %v3071_v8, %v3070_v45 }
 0x487   : > { %v4080_v36 = vadd.f32 %v4079_v26, %v4078_v25  ;;  %v2321_v34 = vadd.f32 %v2320_v50, %v2319_v33  ;;  %v4768_v32 = vmul.f32 %v4730_v55, %v8056_v63  ;;  %v8227_v56 = vpop.permute.xlu0 %1914  ;;  %v4089_v25 = vadd.f32 %v4088_v6, %v4087_v10 }
 0x488   : > { %10104 = vst [vmem:[#allocation55_spill] sm:$0xff] %v8227_v56  ;;  %v4843_v33 = vadd.f32 %v4842_v62, %v4841_v14  ;;  %v2012_v55 = vrot.slane %v2011_v2, 4  ;;  %v3826_v6 = vadd.f32 %v3825_v0, %v3824_v18  ;;  %v4581_v62 = vrot.slane %v4580_v31, 4 }
 0x489   : > { %v4081_v15 = vrot.slane %v4080_v36, 1  ;;  %v2322_v35 = vrot.slane %v2321_v34, 2  ;;  %v4832_v46 = vsel %vm1747_vm0, %v4768_v32, 0.0  ;;  %v1999_v32 = vadd.f32 %v1998_v4, %v1997_v47 }
 0x48a   : > { %v4833_v26 = vrot.slane %v4832_v46, 4  ;;  %v2970_v50 = vpop.permute.xlu2 %2969  ;;  %v4844_v37 = vrot.slane %v4843_v33, 1  ;;  %v2816_v47 = vsel %vm1747_vm0, %v2752_v3, 0.0  ;;  %v3073_v0 = vrot.slane %v3072_v61, 1 }
 0x48b   : > { %v4082_v39 = vadd.f32 %v4081_v15, %v4080_v36  ;;  %v2323_v13 = vadd.f32 %v2322_v35, %v2321_v34  ;;  %v3005_v56 = vmul.f32 %v2970_v50, %v7983_v51  ;;  %v2013_v36 = vadd.f32 %v2012_v55, %v2011_v2 }
 0x48c   : > { %v4834_v28 = vadd.f32 %v4833_v26, %v4832_v46  ;;  %2477 = vperm.xlu0 %6265, %v10106_v9   ;;  %v2318_v46 = vadd.f32 %v2317_v49, %v2316_v29  ;;  %v2000_v35 = vrot.slane %v1999_v32, 2  ;;  %v3827_v49 = vrot.slane %v3826_v6, 2 }
 0x48d   : > { %v8240_v10 = vsel %vm2071_vm13, %v4089_v25, %v4082_v39  ;;  %v2324_v14 = vrot.slane %v2323_v13, 1  ;;  %6216 = vset.pattern.permute.xlu2 %v10107_v1  ;;  %v3075_v15 = vsel %vm1747_vm0, %v3005_v56, 0.0  ;;  %v2831_v39 = vrot.slane %v2830_v48, 4 }
 0x48e   : > { %v4835_v45 = vrot.slane %v4834_v28, 2  ;;  %6218 = vset.pattern.permute.xlu1 %v9921_v54  ;;  %3481 = vperm.xlu2 %6216, %v10080_v53   ;;  %v3076_v59 = vrot.slane %v3075_v15, 4  ;;  %v4582_v2 = vadd.f32 %v4581_v62, %v4580_v31  ;;  %v4845_v50 = vadd.f32 %v4844_v37, %v4843_v33 }
 0x48f   : > { %v2325_v4 = vadd.f32 %v2324_v14, %v2323_v13  ;;  %3985 = vperm.xlu1 %6218, %v10080_v53   ;;  %v2014_v55 = vrot.slane %v2013_v36, 2  ;;  %v2817_v14 = vrot.slane %v2816_v47, 4  ;;  %v2832_v3 = vadd.f32 %v2831_v39, %v2830_v48 }
 0x490   : > { %v4836_v34 = vadd.f32 %v4835_v45, %v4834_v28  ;;  %v3077_v8 = vadd.f32 %v3076_v59, %v3075_v15  ;;  %v1899_v56 = vpop.permute.xlu1 %1898  ;;  %v8248_v18 = vpop.permute.xlu0 %2733  ;;  %v3508_v31 = vmul.f32 %v8080_v27, %v8056_v63  ;;  %v3074_v62 = vadd.f32 %v3073_v0, %v3072_v61 }
 0x491   : > { %10108 = vst [vmem:[#allocation32_spill] sm:$0xff] %v8248_v18  ;;  %v8251_v25 = vsel %vm2071_vm13, %v2325_v4, %v2318_v46  ;;  %v1934_v29 = vmul.f32 %v1899_v56, %v7983_v51  ;;  %v10109_v46 = vld [vmem:[#allocation17_spill] sm:$0xff]  ;;  %v2001_v56 = vadd.f32 %v2000_v35, %v1999_v32  ;;  %v4583_v27 = vrot.slane %v4582_v2, 2 }
 0x492   : > { %v4837_v13 = vrot.slane %v4836_v34, 1  ;;  %v3078_v26 = vrot.slane %v3077_v8, 2  ;;  %v3510_v4 = vmul.f32 %v10109_v46, %v8200_v16  ;;  %v2833_v0 = vrot.slane %v2832_v3, 2 }
 0x493   : > { %v2004_v28 = vsel %vm1747_vm0, %v1934_v29, 0.0  ;;  %v2015_v29 = vadd.f32 %v2014_v55, %v2013_v36 }
 0x494   : > { %v4838_v15 = vadd.f32 %v4837_v13, %v4836_v34  ;;  %v3079_v45 = vadd.f32 %v3078_v26, %v3077_v8  ;;  %2489 = vperm.xlu0 %6265, %v8046_v11   ;;  %v2005_v59 = vrot.slane %v2004_v28, 4  ;;  %v3726_v18 = vpop.permute.xlu2 %3725  ;;  %v10111_v34 = vmov 10  }
 0x495   : > { %v3761_v33 = vmul.f32 %v3726_v18, %v7983_v51  ;;  %v3828_v8 = vadd.f32 %v3827_v49, %v3826_v6  ;;  %v2818_v13 = vadd.f32 %v2817_v14, %v2816_v47  ;;  %v3586_v26 = vsel %vm1747_vm0, %v3510_v4, 0.0 }
 0x496   : > { %v8262_v37 = vsel %vm2071_vm13, %v4845_v50, %v4838_v15  ;;  %v3080_v48 = vrot.slane %v3079_v45, 1  ;;  %v2006_v39 = vadd.f32 %v2005_v59, %v2004_v28  ;;  %6219 = vset.pattern.permute.xlu2 %v10111_v34  ;;  %v2002_v50 = vrot.slane %v2001_v56, 1 }
 0x497   : > { %10110 = vst [vmem:[#allocation71_spill] sm:$0xff] %v8262_v37  ;;  %6221 = vset.pattern.permute.xlu1 %v9904_v5  ;;  %4237 = vperm.xlu2 %6219, %v10080_v53   ;;  %v3831_v32 = vsel %vm1747_vm0, %v3761_v33, 0.0  ;;  %v3572_v6 = vsel %vm1747_vm0, %v3508_v31, 0.0  ;;  %v2016_v59 = vrot.slane %v2015_v29, 1  ;;  %v2819_v46 = vrot.slane %v2818_v13, 2 }
 0x498   : > { %v3081_v35 = vadd.f32 %v3080_v48, %v3079_v45  ;;  %v2007_v18 = vrot.slane %v2006_v39, 2  ;;  %v3832_v61 = vrot.slane %v3831_v32, 4  ;;  %4741 = vperm.xlu1 %6221, %v10080_v53   ;;  %v3829_v45 = vrot.slane %v3828_v8, 1 }
 0x499   : > { %v2718_v36 = vpop.permute.xlu1 %2717  ;;  %v8278_v33 = vadd.f32 %v4583_v27, %v4582_v2  ;;  %v2017_v2 = vadd.f32 %v2016_v59, %v2015_v29  ;;  %v2820_v27 = vadd.f32 %v2819_v46, %v2818_v13  ;;  %v4264_v37 = vmul.f32 %v8113_v41, %v8056_v63 }
 0x49a   : > { %v8272_v47 = vsel %vm2071_vm13, %v3081_v35, %v3074_v62  ;;  %v2008_v49 = vadd.f32 %v2007_v18, %v2006_v39  ;;  %v3833_v55 = vadd.f32 %v3832_v61, %v3831_v32  ;;  %v2753_v14 = vmul.f32 %v2718_v36, %v7983_v51  ;;  %v8275_v28 = vpop.permute.xlu0 %3489 }
 0x49b   : > { %10112 = vst [vmem:[#allocation36_spill] sm:$0xff] %v8272_v47  ;;  %v2834_v62 = vadd.f32 %v2833_v0, %v2832_v3  ;;  %v3587_v39 = vrot.slane %v3586_v26, 4  ;;  %v3573_v32 = vrot.slane %v3572_v6, 4  ;;  %v2003_v61 = vadd.f32 %v2002_v50, %v2001_v56  ;;  %v10114_v3 = vld [vmem:[#allocation20_spill] sm:$0xff] }
 0x49c   : > { %10113 = vst [vmem:[#allocation93_spill] sm:$0xff] %v8275_v28  ;;  %v2009_v4 = vrot.slane %v2008_v49, 1  ;;  %v3834_v48 = vrot.slane %v3833_v55, 2  ;;  %6270 = vset.pattern.permute.xlu0 %v10060_v12  ;;  %v2823_v31 = vsel %vm1747_vm0, %v2753_v14, 0.0  ;;  %v4266_v0 = vmul.f32 %v10114_v3, %v8200_v16 }
 0x49d   : > { %3245 = vperm.xlu0 %6270, %v8046_v11   ;;  %v2824_v35 = vrot.slane %v2823_v31, 4  ;;  %v4482_v18 = vpop.permute.xlu2 %4481  ;;  %v3574_v29 = vadd.f32 %v3573_v32, %v3572_v6  ;;  %v3588_v59 = vadd.f32 %v3587_v39, %v3586_v26  ;;  %v8302_v6 = vsel %vm1747_vm0, %v8189_v58, 0.0 }
 0x49e   : > { %v2010_v36 = vadd.f32 %v2009_v4, %v2008_v49  ;;  %v3835_v15 = vadd.f32 %v3834_v48, %v3833_v55  ;;  %v4517_v28 = vmul.f32 %v4482_v18, %v7983_v51  ;;  %v3830_v49 = vadd.f32 %v3829_v45, %v3828_v8 }
 0x49f   : > { %v2825_v12 = vadd.f32 %v2824_v35, %v2823_v31  ;;  %6222 = vset.pattern.permute.xlu2 %v9991_v24  ;;  %v2835_v55 = vrot.slane %v2834_v62, 1  ;;  %v2821_v4 = vrot.slane %v2820_v27, 1  ;;  %v4328_v48 = vsel %vm1747_vm0, %v4264_v37, 0.0 }
 0x4a0   : > { %v2085_v14 = vsel %vm2071_vm13, %v2010_v36, %v2003_v61  ;;  %v3836_v47 = vrot.slane %v3835_v15, 1  ;;  %6224 = vset.pattern.permute.xlu1 %v9917_v21  ;;  %4993 = vperm.xlu2 %6222, %v10080_v53   ;;  %v4587_v56 = vsel %vm1747_vm0, %v4517_v28, 0.0  ;;  %v4585_v28 = vrot.slane %v8278_v33, 1 }
 0x4a1   : > { %v2826_v13 = vrot.slane %v2825_v12, 2  ;;  %v4588_v50 = vrot.slane %v4587_v56, 4  ;;  %1910 = vperm.xlu1 %6224, %v10106_v9   ;;  %v8295_v41 = vsel %vm2073_vm14, %v2017_v2, %v2085_v14  ;;  %v4342_v26 = vsel %vm1747_vm0, %v4266_v0, 0.0  ;;  %v10116_v0 = vld [vmem:[#allocation23_spill] sm:$0xff] }
 0x4a2   : > { %v3837_v46 = vadd.f32 %v3836_v47, %v3835_v15  ;;  %v3575_v47 = vrot.slane %v3574_v29, 2  ;;  %v2836_v15 = vadd.f32 %v2835_v55, %v2834_v62  ;;  %v3589_v45 = vrot.slane %v3588_v59, 2 }
 0x4a3   : > { %v2827_v31 = vadd.f32 %v2826_v13, %v2825_v12  ;;  %v4589_v35 = vadd.f32 %v4588_v50, %v4587_v56  ;;  %v3474_v18 = vpop.permute.xlu1 %3473  ;;  %v8298_v61 = vpop.permute.xlu0 %4245  ;;  %v4329_v39 = vrot.slane %v4328_v48, 4  ;;  %v2822_v36 = vadd.f32 %v2821_v4, %v2820_v27 }
 0x4a4   : > { %10115 = vst [vmem:[#allocation74_spill] sm:$0xff] %v8298_v61  ;;  %v8306_v32 = vsel %vm2071_vm13, %v3837_v46, %v3830_v49  ;;  %v3509_v8 = vmul.f32 %v3474_v18, %v7983_v51  ;;  %v4343_v13 = vrot.slane %v4342_v26, 4  ;;  %v5022_v50 = vmul.f32 %v10116_v0, %v8200_v16  ;;  %v8346_v0 = vld [vmem:[%s7463_s24 + $0x58] sm:$0xff] }
 0x4a5   : > { %v2828_v37 = vrot.slane %v2827_v31, 1  ;;  %v4590_v12 = vrot.slane %v4589_v35, 2  ;;  %6273 = vset.pattern.permute.xlu0 %v9921_v54  ;;  %v5020_v49 = vmul.f32 %v8151_v20, %v8056_v63  ;;  %v10117_v46 = vmov 2  }
 0x4a6   : > { %4001 = vperm.xlu0 %6273, %v8046_v11   ;;  %v3579_v58 = vsel %vm1747_vm0, %v3509_v8, 0.0  ;;  %v3576_v55 = vadd.f32 %v3575_v47, %v3574_v29  ;;  %v3590_v4 = vadd.f32 %v3589_v45, %v3588_v59  ;;  %v4586_v20 = vadd.f32 %v4585_v28, %v8278_v33 }
 0x4a7   : > { %v2829_v2 = vadd.f32 %v2828_v37, %v2827_v31  ;;  %v4591_v3 = vadd.f32 %v4590_v12, %v4589_v35  ;;  %v3580_v14 = vrot.slane %v3579_v58, 4  ;;  %v1704_v56 = vpop.permute.xlu2 %1703  ;;  %v4330_v31 = vadd.f32 %v4329_v39, %v4328_v48 }
 0x4a8   : > { %6225 = vset.pattern.permute.xlu2 %v10117_v46  ;;  %v1741_v62 = vmul.f32 %v1704_v56, %v8200_v16  ;;  %v10118_v12 = vrot.slane %v8170_v42, 2  ;;  %v4344_v59 = vadd.f32 %v4343_v13, %v4342_v26  ;;  %v5098_v48 = vsel %vm1747_vm0, %v5022_v50, 0.0 }
 0x4a9   : > { %v2897_v18 = vsel %vm2071_vm13, %v2829_v2, %v2822_v36  ;;  %v4592_v8 = vrot.slane %v4591_v3, 1  ;;  %v3581_v27 = vadd.f32 %v3580_v14, %v3579_v58  ;;  %6226 = vset.pattern.permute.xlu1 %v10102_v57  ;;  %2225 = vperm.xlu2 %6225, %v10106_v9   ;;  %v5084_v45 = vsel %vm1747_vm0, %v5020_v49, 0.0 }
 0x4aa   : > { %v1818_v35 = vsel %vm1747_vm0, %v1741_v62, 0.0  ;;  %2729 = vperm.xlu1 %6226, %v10106_v9   ;;  %v8325_v63 = vsel %vm2073_vm14, %v2836_v15, %v2897_v18  ;;  %v8331_v58 = vadd.f32 %v10118_v12, %v8170_v42  ;;  %v3577_v36 = vrot.slane %v3576_v55, 1 }
 0x4ab   : > { %v4593_v29 = vadd.f32 %v4592_v8, %v4591_v3  ;;  %v3582_v47 = vrot.slane %v3581_v27, 2  ;;  %v1819_v37 = vrot.slane %v1818_v35, 4  ;;  %v10120_v3 = vld [vmem:[#allocation56_spill] sm:$0xff]  ;;  %v3591_v42 = vrot.slane %v3590_v4, 1 }
 0x4ac   : > { %v4230_v39 = vpop.permute.xlu1 %4229  ;;  %v3252_v14 = vmul.f32 %v10120_v3, %v7971_v23  ;;  %v4331_v56 = vrot.slane %v4330_v31, 2  ;;  %v3566_v13 = vrot.slane %v8302_v6, 4  ;;  %v5085_v50 = vrot.slane %v5084_v45, 4  ;;  %v10122_v3 = vld [vmem:[#allocation25_spill] sm:$0xff] }
 0x4ad   : > { %v8336_v15 = vsel %vm2071_vm13, %v4593_v29, %v4586_v20  ;;  %v3583_v33 = vadd.f32 %v3582_v47, %v3581_v27  ;;  %v1820_v28 = vadd.f32 %v1819_v37, %v1818_v35  ;;  %v8338_v2 = vpop.permute.xlu0 %2233  ;;  %v4265_v26 = vmul.f32 %v4230_v39, %v7983_v51 }
 0x4ae   : > { %10119 = vst [vmem:[#allocation14_spill] sm:$0xff] %v8338_v2  ;;  %6276 = vset.pattern.permute.xlu0 %v9904_v5  ;;  %v10121_v18 = vrot.slane %v8210_v7, 4  ;;  %v4345_v23 = vrot.slane %v4344_v59, 2  ;;  %v5099_v27 = vrot.slane %v5098_v48, 4  ;;  %v3578_v51 = vadd.f32 %v3577_v36, %v3576_v55 }
 0x4af   : > { %v3584_v49 = vrot.slane %v3583_v33, 1  ;;  %v1821_v62 = vrot.slane %v1820_v28, 2  ;;  %4757 = vperm.xlu0 %6276, %v8046_v11   ;;  %v4335_v35 = vsel %vm1747_vm0, %v4265_v26, 0.0  ;;  %v3292_v12 = vsel %vm1747_vm0, %v3252_v14, 0.0 }
 0x4b0   : > { %v3042_v8 = vadd.f32 %v10121_v18, %v8210_v7  ;;  %v8353_v20 = vpop.permute.xlu2 %2469  ;;  %v4336_v37 = vrot.slane %v4335_v35, 4  ;;  %v3592_v39 = vadd.f32 %v3591_v42, %v3590_v4  ;;  %v2251_v2 = vmul.f32 %v10122_v3, %v8346_v0  ;;  %v10127_v3 = vld [vmem:[#allocation24_spill] sm:$0xff] }
 0x4b1   : > { %v3585_v29 = vadd.f32 %v3584_v49, %v3583_v33  ;;  %v1822_v47 = vadd.f32 %v1821_v62, %v1820_v28  ;;  %6227 = vset.pattern.permute.xlu2 %v10008_v60  ;;  %v4332_v61 = vadd.f32 %v4331_v56, %v4330_v31  ;;  %v5086_v7 = vadd.f32 %v5085_v50, %v5084_v45 }
 0x4b2   : > { %6229 = vset.pattern.permute.xlu1 %v10107_v1  ;;  %2981 = vperm.xlu2 %6227, %v10106_v9   ;;  %v4337_v36 = vadd.f32 %v4336_v37, %v4335_v35  ;;  %v3043_v33 = vrot.slane %v3042_v8, 2  ;;  %v4346_v28 = vadd.f32 %v4345_v23, %v4344_v59  ;;  %v3293_v4 = vrot.slane %v3292_v12, 4  ;;  %v10124_v35 = vld [vmem:[#allocation40_spill] sm:$0xff] }
 0x4b3   : > { %v3653_v26 = vsel %vm2071_vm13, %v3585_v29, %v3578_v51  ;;  %v1823_v55 = vrot.slane %v1822_v47, 1  ;;  %3485 = vperm.xlu1 %6229, %v10106_v9   ;;  %v5100_v42 = vadd.f32 %v5099_v27, %v5098_v48  ;;  %v3567_v49 = vadd.f32 %v3566_v13, %v8302_v6  ;;  %v8381_v6 = vld [vmem:[%s7463_s24 + $0x48] sm:$0xff] }
 0x4b4   : > { %v8364_v14 = vsel %vm2073_vm14, %v3592_v39, %v3653_v26  ;;  %v4338_v56 = vrot.slane %v4337_v36, 2  ;;  %v2333_v45 = vsel %vm1747_vm0, %v2251_v2, 0.0  ;;  %v4333_v50 = vrot.slane %v4332_v61, 1 }
 0x4b5   : > { %v1824_v31 = vadd.f32 %v1823_v55, %v1822_v47  ;;  %v8373_v59 = vsel %vm2077_vm1, %v8217_v22, %v10124_v35  ;;  %v5087_v23 = vrot.slane %v5086_v7, 2  ;;  %v9836_v51 = vmov 14   ;;  %v8386_v47 = vld [vmem:[%s7463_s24 + $0x20] sm:$0xff]  ;;  %v10126_v22 = vld [vmem:[#allocation57_spill] sm:$0xff] }
 0x4b6   : > { %v4986_v62 = vpop.permute.xlu1 %4985  ;;  %v8368_v18 = vpop.permute.xlu0 %2989  ;;  %10125 = vst [vmem:[#allocation20_spill] sm:$0xff] %v8373_v59  ;;  %v4339_v27 = vadd.f32 %v4338_v56, %v4337_v36  ;;  %v2541_v13 = vrot.slane %v8331_v58, 1  ;;  %v3044_v29 = vadd.f32 %v3043_v33, %v3042_v8  ;;  %v3504_v37 = vmul.f32 %v8386_v47, %v10126_v22 }
 0x4b7   : > { %10123 = vst [vmem:[#allocation17_spill] sm:$0xff] %v8368_v18  ;;  %v8377_v48 = vsel %vm2073_vm14, %v1824_v31, %v8120_v44  ;;  %6277 = vset.pattern.permute.xlu0 %v9836_v51  ;;  %v5021_v2 = vmul.f32 %v8381_v6, %v4986_v62  ;;  %v4347_v39 = vrot.slane %v4346_v28, 1  ;;  %v3294_v44 = vadd.f32 %v3293_v4, %v3292_v12  ;;  %v10128_v31 = vld [vmem:[#allocation58_spill] sm:$0xff] }
 0x4b8   : > { %5233 = vperm.xlu0 %6277, %v10127_v3   ;;  %v5101_v26 = vrot.slane %v5100_v42, 2  ;;  %v4340_v55 = vrot.slane %v4339_v27, 1  ;;  %v4263_v56 = vmul.f32 %v10128_v31, %v8078_v30  ;;  %v2334_v62 = vrot.slane %v2333_v45, 4 }
 0x4b9   : > { %v5091_v36 = vsel %vm1747_vm0, %v5021_v2, 0.0  ;;  %v4334_v35 = vadd.f32 %v4333_v50, %v4332_v61  ;;  %v3568_v33 = vrot.slane %v3567_v49, 2  ;;  %v5088_v59 = vadd.f32 %v5087_v23, %v5086_v7  ;;  %v10129_v50 = vld [vmem:[#allocation29_spill] sm:$0xff] }
 0x4ba   : > { %v5092_v51 = vrot.slane %v5091_v36, 4  ;;  %6230 = vset.pattern.permute.xlu2 %v10020_v40  ;;  %v3226_v8 = vpop.permute.xlu2 %3225  ;;  %v4341_v22 = vadd.f32 %v4340_v55, %v4339_v27  ;;  %v3045_v4 = vrot.slane %v3044_v29, 1  ;;  %v3544_v2 = vsel %vm1747_vm0, %v3504_v37, 0.0 }
 0x4bb   : > { %6232 = vset.pattern.permute.xlu1 %v10111_v34  ;;  %v3258_v12 = vmul.f32 %v3226_v8, %v8200_v16  ;;  %3737 = vperm.xlu2 %6230, %v10106_v9   ;;  %v4348_v18 = vadd.f32 %v4347_v39, %v4346_v28  ;;  %v5102_v61 = vadd.f32 %v5101_v26, %v5100_v42  ;;  %v3295_v28 = vrot.slane %v3294_v44, 2 }
 0x4bc   : > { %v5093_v30 = vadd.f32 %v5092_v51, %v5091_v36  ;;  %4241 = vperm.xlu1 %6232, %v10106_v9   ;;  %v3007_v31 = vmul.f32 %v10129_v50, %v8346_v0  ;;  %v4409_v7 = vsel %vm2071_vm13, %v4341_v22, %v4334_v35  ;;  %v2335_v27 = vadd.f32 %v2334_v62, %v2333_v45  ;;  %v10132_v22 = vld [vmem:[#allocation5_spill] sm:$0xff] }
 0x4bd   : > { %v3334_v23 = vsel %vm1747_vm0, %v3258_v12, 0.0  ;;  %v8405_v24 = vsel %vm2073_vm14, %v4348_v18, %v4409_v7  ;;  %v8408_v37 = vadd.f32 %v2541_v13, %v8331_v58  ;;  %v8410_v51 = vadd.f32 %v3568_v33, %v3567_v49 }
 0x4be   : > { %v5094_v55 = vrot.slane %v5093_v30, 2  ;;  %v3335_v8 = vrot.slane %v3334_v23, 4  ;;  %v5089_v42 = vrot.slane %v5088_v59, 1  ;;  %v4321_v26 = vsel %vm1747_vm0, %v4263_v56, 0.0 }
 0x4bf   : > { %10130 = vst [vmem:[#allocation23_spill] sm:$0xff] %v8408_v37  ;;  %v2218_v39 = vpop.permute.xlu1 %2217  ;;  %v3046_v18 = vadd.f32 %v3045_v4, %v3044_v29  ;;  %v3545_v12 = vrot.slane %v3544_v2, 4  ;;  %v5103_v50 = vrot.slane %v5102_v61, 1  ;;  %v3089_v58 = vsel %vm1747_vm0, %v3007_v31, 0.0 }
 0x4c0   : > { %10131 = vst [vmem:[#allocation56_spill] sm:$0xff] %v8410_v51  ;;  %v5095_v36 = vadd.f32 %v5094_v55, %v5093_v30  ;;  %v3336_v35 = vadd.f32 %v3335_v8, %v3334_v23  ;;  %5201 = vperm.xlu0 %6277, %v10132_v22   ;;  %v2250_v45 = vmul.f32 %v2218_v39, %v8200_v16  ;;  %v8415_v62 = vpop.permute.xlu0 %3745  ;;  %v2336_v13 = vrot.slane %v2335_v27, 2  ;;  %v10134_v22 = vld [vmem:[#allocation59_spill] sm:$0xff] }
 0x4c1   : > { %10133 = vst [vmem:[#allocation25_spill] sm:$0xff] %v8415_v62  ;;  %v8419_v37 = vadd.f32 %v3295_v28, %v3294_v44  ;;  %v4322_v56 = vrot.slane %v4321_v26, 4  ;;  %v5090_v30 = vadd.f32 %v5089_v42, %v5088_v59  ;;  %v3090_v8 = vrot.slane %v3089_v58, 4 }
 0x4c2   : > { %v5096_v49 = vrot.slane %v5095_v36, 1  ;;  %v3337_v33 = vrot.slane %v3336_v35, 2  ;;  %v2326_v7 = vsel %vm1747_vm0, %v2250_v45, 0.0  ;;  %v3546_v31 = vadd.f32 %v3545_v12, %v3544_v2 }
 0x4c3   : > { %v2327_v23 = vrot.slane %v2326_v7, 4  ;;  %6233 = vset.pattern.permute.xlu2 %v10029_v52  ;;  %v3982_v55 = vpop.permute.xlu2 %3981  ;;  %v4008_v44 = vmul.f32 %v8386_v47, %v10134_v22  ;;  %v5104_v28 = vadd.f32 %v5103_v50, %v5102_v61  ;;  %v2337_v59 = vadd.f32 %v2336_v13, %v2335_v27 }
 0x4c4   : > { %v5097_v39 = vadd.f32 %v5096_v49, %v5095_v36  ;;  %v3338_v29 = vadd.f32 %v3337_v33, %v3336_v35  ;;  %6237 = vset.pattern.permute.xlu1 %v10117_v46  ;;  %v4014_v4 = vmul.f32 %v3982_v55, %v8200_v16  ;;  %4493 = vperm.xlu2 %6233, %v10106_v9   ;;  %v10135_v35 = vld [vmem:[#allocation34_spill] sm:$0xff] }
 0x4c5   : > { %v2328_v45 = vadd.f32 %v2327_v23, %v2326_v7  ;;  %2229 = vperm.xlu1 %6237, %v7702_v38   ;;  %v3763_v49 = vmul.f32 %v10135_v35, %v8346_v0  ;;  %v4323_v61 = vadd.f32 %v4322_v56, %v4321_v26  ;;  %v3091_v12 = vadd.f32 %v3090_v8, %v3089_v58  ;;  %v10136_v7 = vld [vmem:[#allocation7_spill] sm:$0xff] }
 0x4c6   : > { %v5165_v42 = vsel %vm2071_vm13, %v5097_v39, %v5090_v30  ;;  %v3339_v62 = vrot.slane %v3338_v29, 1  ;;  %v4090_v36 = vsel %vm1747_vm0, %v4014_v4, 0.0  ;;  %v4048_v27 = vsel %vm1747_vm0, %v4008_v44, 0.0  ;;  %v10138_v4 = vld [vmem:[#allocation42_spill] sm:$0xff] }
 0x4c7   : > { %v2329_v33 = vrot.slane %v2328_v45, 2  ;;  %v4091_v55 = vrot.slane %v4090_v36, 4  ;;  %v8433_v2 = vsel %vm2073_vm14, %v5104_v28, %v5165_v42  ;;  %v3145_v35 = vsel %vm2077_vm1, %v3046_v18, %v10138_v4  ;;  %v10139_v18 = vld [vmem:[#allocation38_spill] sm:$0xff] }
 0x4c8   : > { %v3340_v50 = vadd.f32 %v3339_v62, %v3338_v29  ;;  %5209 = vperm.xlu0 %6277, %v10136_v7   ;;  %v3297_v28 = vrot.slane %v8419_v37, 1  ;;  %v2338_v42 = vrot.slane %v2337_v59, 1  ;;  %v3547_v58 = vrot.slane %v3546_v31, 2 }
 0x4c9   : > { %v2330_v13 = vadd.f32 %v2329_v33, %v2328_v45  ;;  %v4092_v30 = vadd.f32 %v4091_v55, %v4090_v36  ;;  %v2974_v23 = vpop.permute.xlu1 %2973  ;;  %v8438_v39 = vpop.permute.xlu0 %4501  ;;  %v3845_v56 = vsel %vm1747_vm0, %v3763_v49, 0.0  ;;  %v4049_v44 = vrot.slane %v4048_v27, 4  ;;  %v10141_v49 = vld [vmem:[#allocation60_spill] sm:$0xff] }
 0x4ca   : > { %10137 = vst [vmem:[#allocation40_spill] sm:$0xff] %v8438_v39  ;;  %v8445_v26 = vsel %vm2073_vm14, %v3340_v50, %v8207_v43  ;;  %v3006_v62 = vmul.f32 %v2974_v23, %v8200_v16  ;;  %v3092_v45 = vrot.slane %v3091_v12, 2  ;;  %v8453_v33 = vsel %vm2079_vm2, %v10139_v18, %v3145_v35  ;;  %v10142_v35 = vld [vmem:[#allocation43_spill] sm:$0xff] }
 0x4cb   : > { %v2331_v8 = vrot.slane %v2330_v13, 1  ;;  %v4093_v29 = vrot.slane %v4092_v30, 2  ;;  %10140 = vst [vmem:[#allocation57_spill] sm:$0xff] %v8453_v33  ;;  %v4324_v55 = vrot.slane %v4323_v61, 2  ;;  %v3756_v22 = vmul.f32 %v8386_v47, %v10141_v49 }
 0x4cc   : > { %v3082_v36 = vsel %vm1747_vm0, %v3006_v62, 0.0  ;;  %6235 = vset.pattern.permute.xlu2 %v10038_v17  ;;  %v2339_v7 = vadd.f32 %v2338_v42, %v2337_v59  ;;  %v3846_v62 = vrot.slane %v3845_v56, 4  ;;  %v4050_v18 = vadd.f32 %v4049_v44, %v4048_v27  ;;  %v10143_v27 = vld [vmem:[#allocation61_spill] sm:$0xff] }
 0x4cd   : > { %v2332_v43 = vadd.f32 %v2331_v8, %v2330_v13  ;;  %v4094_v50 = vadd.f32 %v4093_v29, %v4092_v30  ;;  %v3083_v4 = vrot.slane %v3082_v36, 4  ;;  %6240 = vset.pattern.permute.xlu1 %v10008_v60  ;;  %v4738_v23 = vpop.permute.xlu2 %4737  ;;  %1718 = vperm.xlu2 %6235, %v7702_v38   ;;  %v4519_v13 = vmul.f32 %v10142_v35, %v8346_v0 }
 0x4ce   : > { %v4770_v51 = vmul.f32 %v4738_v23, %v8200_v16  ;;  %2985 = vperm.xlu1 %6240, %v7702_v38   ;;  %v3093_v33 = vadd.f32 %v3092_v45, %v3091_v12  ;;  %v8470_v42 = vadd.f32 %v3547_v58, %v3546_v31  ;;  %v3298_v35 = vadd.f32 %v3297_v28, %v8419_v37 }
 0x4cf   : > { %v2394_v30 = vsel %vm2073_vm14, %v2332_v43, %v8251_v25  ;;  %v4095_v8 = vrot.slane %v4094_v50, 1  ;;  %v3084_v29 = vadd.f32 %v3083_v4, %v3082_v36  ;;  %v3796_v25 = vsel %vm1747_vm0, %v3756_v22, 0.0  ;;  %v6361_v36 = vld [vmem:[%s7463_s24 + $0x38] sm:$0xff] }
 0x4d0   : > { %v4846_v39 = vsel %vm1747_vm0, %v4770_v51, 0.0  ;;  %5261 = vperm.xlu0 %6277, %v8046_v11   ;;  %v8468_v59 = vsel %vm2075_vm15, %v2339_v7, %v2394_v30  ;;  %v5019_v12 = vmul.f32 %v6361_v36, %v10143_v27  ;;  %v3847_v44 = vadd.f32 %v3846_v62, %v3845_v56  ;;  %v8488_v56 = vld [vmem:[%s7463_s24 + $0x60] sm:$0xff] }
 0x4d1   : > { %v4096_v23 = vadd.f32 %v4095_v8, %v4094_v50  ;;  %v3085_v49 = vrot.slane %v3084_v29, 2  ;;  %v4847_v60 = vrot.slane %v4846_v39, 4  ;;  %v4601_v45 = vsel %vm1747_vm0, %v4519_v13, 0.0  ;;  %v10146_v27 = vld [vmem:[#allocation47_spill] sm:$0xff] }
 0x4d2   : > { %v3730_v51 = vpop.permute.xlu1 %3729  ;;  %v8483_v50 = vadd.f32 %v4324_v55, %v4323_v61  ;;  %v4051_v37 = vrot.slane %v4050_v18, 2  ;;  %v3094_v28 = vrot.slane %v3093_v33, 1  ;;  %v3549_v4 = vrot.slane %v8470_v42, 1 }
 0x4d3   : > { %v8479_v7 = vsel %vm2073_vm14, %v4096_v23, %v8240_v10  ;;  %v3086_v31 = vadd.f32 %v3085_v49, %v3084_v29  ;;  %v4848_v58 = vadd.f32 %v4847_v60, %v4846_v39  ;;  %v8481_v43 = vpop.permute.xlu0 %1728  ;;  %v3762_v22 = vmul.f32 %v3730_v51, %v8200_v16 }
 0x4d4   : > { %10144 = vst [vmem:[#allocation24_spill] sm:$0xff] %v8481_v43  ;;  %v3797_v10 = vrot.slane %v3796_v25, 4  ;;  %v3848_v30 = vrot.slane %v3847_v44, 2  ;;  %v4602_v8 = vrot.slane %v4601_v45, 4  ;;  %v5077_v39 = vsel %vm1747_vm0, %v5019_v12, 0.0 }
 0x4d5   : > { %10145 = vst [vmem:[#allocation58_spill] sm:$0xff] %v8483_v50  ;;  %v3087_v62 = vrot.slane %v3086_v31, 1  ;;  %v4849_v13 = vrot.slane %v4848_v58, 2  ;;  %6238 = vset.pattern.permute.xlu2 %v10049_v19  ;;  %v3838_v60 = vsel %vm1747_vm0, %v3762_v22, 0.0  ;;  %v4052_v49 = vadd.f32 %v4051_v37, %v4050_v18 }
 0x4d6   : > { %6243 = vset.pattern.permute.xlu1 %v10020_v40  ;;  %v1907_v61 = vpop.permute.xlu2 %1906  ;;  %2481 = vperm.xlu2 %6238, %v7702_v38   ;;  %v3839_v23 = vrot.slane %v3838_v60, 4  ;;  %v3095_v36 = vadd.f32 %v3094_v28, %v3093_v33  ;;  %v1743_v51 = vmul.f32 %v10146_v27, %v8488_v56  ;;  %v9845_v22 = vmov 15   ;;  %v10147_v40 = vld [vmem:[#allocation36_spill] sm:$0xff] }
 0x4d7   : > { %v3088_v55 = vadd.f32 %v3087_v62, %v3086_v31  ;;  %v4850_v29 = vadd.f32 %v4849_v13, %v4848_v58  ;;  %3741 = vperm.xlu1 %6243, %v7702_v38   ;;  %v1936_v43 = vmul.f32 %v1907_v61, %v8346_v0  ;;  %v10148_v31 = vld [vmem:[#allocation41_spill] sm:$0xff]  ;;  %v3849_v33 = vadd.f32 %v3848_v30, %v3847_v44  ;;  %v10152_v44 = vld [vmem:[#allocation71_spill] sm:$0xff] }
 0x4d8   : > { %6282 = vset.pattern.permute.xlu0 %v9845_v22  ;;  %v3840_v12 = vadd.f32 %v3839_v23, %v3838_v60  ;;  %v8505_v58 = vsel %vm2077_vm1, %v3298_v35, %v10148_v31  ;;  %v4603_v18 = vadd.f32 %v4602_v8, %v4601_v45  ;;  %v5078_v62 = vrot.slane %v5077_v39, 4  ;;  %v10150_v60 = vld [vmem:[#allocation62_spill] sm:$0xff] }
 0x4d9   : > { %v3150_v46 = vsel %vm2073_vm14, %v3088_v55, %v10147_v40  ;;  %v4851_v9 = vrot.slane %v4850_v29, 1  ;;  %5485 = vperm.xlu0 %6282, %v10127_v3   ;;  %10149 = vst [vmem:[#allocation29_spill] sm:$0xff] %v8505_v58  ;;  %v2018_v37 = vsel %vm1747_vm0, %v1936_v43, 0.0  ;;  %v4053_v40 = vrot.slane %v4052_v49, 1 }
 0x4da   : > { %v8509_v28 = vsel %vm2075_vm15, %v3095_v36, %v3150_v46  ;;  %v3841_v61 = vrot.slane %v3840_v12, 2  ;;  %v2019_v27 = vrot.slane %v2018_v37, 4  ;;  %v3798_v55 = vadd.f32 %v3797_v10, %v3796_v25 }
 0x4db   : > { %v4852_v13 = vadd.f32 %v4851_v9, %v4850_v29  ;;  %v4764_v3 = vmul.f32 %v8386_v47, %v10150_v60  ;;  %v1832_v23 = vsel %vm1747_vm0, %v1743_v51, 0.0  ;;  %v8522_v30 = vadd.f32 %v3549_v4, %v8470_v42 }
 0x4dc   : > { %v4486_v35 = vpop.permute.xlu1 %4485  ;;  %v8514_v31 = vpop.permute.xlu0 %5001  ;;  %v3842_v46 = vadd.f32 %v3841_v61, %v3840_v12  ;;  %v2020_v43 = vadd.f32 %v2019_v27, %v2018_v37  ;;  %v3850_v10 = vrot.slane %v3849_v33, 1  ;;  %v4604_v8 = vrot.slane %v4603_v18, 2 }
 0x4dd   : > { %10151 = vst [vmem:[#allocation59_spill] sm:$0xff] %v8514_v31  ;;  %v8518_v45 = vsel %vm2073_vm14, %v4852_v13, %v10152_v44  ;;  %v4518_v9 = vmul.f32 %v4486_v35, %v8200_v16  ;;  %v10153_v29 = vmov 6   ;;  %v5079_v36 = vadd.f32 %v5078_v62, %v5077_v39 }
 0x4de   : > { %6241 = vset.pattern.permute.xlu2 %v10153_v29  ;;  %v3843_v51 = vrot.slane %v3842_v46, 1  ;;  %v2021_v60 = vrot.slane %v2020_v43, 2  ;;  %v3799_v16 = vrot.slane %v3798_v55, 2  ;;  %v1833_v37 = vrot.slane %v1832_v23, 4 }
 0x4df   : > { %v4594_v22 = vsel %vm1747_vm0, %v4518_v9, 0.0  ;;  %6246 = vset.pattern.permute.xlu1 %v10029_v52  ;;  %v2726_v12 = vpop.permute.xlu2 %2725  ;;  %3237 = vperm.xlu2 %6241, %v7702_v38   ;;  %v8531_v13 = vadd.f32 %v4053_v40, %v4052_v49  ;;  %v4804_v39 = vsel %vm1747_vm0, %v4764_v3, 0.0  ;;  %v3851_v27 = vadd.f32 %v3850_v10, %v3849_v33 }
 0x4e0   : > { %v4595_v42 = vrot.slane %v4594_v22, 4  ;;  %v2755_v4 = vmul.f32 %v2726_v12, %v8346_v0  ;;  %4497 = vperm.xlu1 %6246, %v7702_v38   ;;  %v3844_v62 = vadd.f32 %v3843_v51, %v3842_v46  ;;  %v2022_v61 = vadd.f32 %v2021_v60, %v2020_v43  ;;  %v6362_v43 = vld [vmem:[%s7463_s24 + $0x40] sm:$0xff] }
 0x4e1   : > { %5497 = vperm.xlu0 %6282, %v10080_v53   ;;  %v4605_v35 = vadd.f32 %v4604_v8, %v4603_v18  ;;  %v5080_v25 = vrot.slane %v5079_v36, 2  ;;  %v4805_v49 = vrot.slane %v4804_v39, 4  ;;  %v1834_v40 = vadd.f32 %v1833_v37, %v1832_v23  ;;  %v10154_v51 = vld [vmem:[#allocation51_spill] sm:$0xff]  ;;  %v10158_v37 = vld [vmem:[#allocation52_spill] sm:$0xff] }
 0x4e2   : > { %v4596_v44 = vadd.f32 %v4595_v42, %v4594_v22  ;;  %v2837_v9 = vsel %vm1747_vm0, %v2755_v4, 0.0  ;;  %v3906_v12 = vsel %vm2073_vm14, %v3844_v62, %v8306_v32  ;;  %v2023_v31 = vrot.slane %v2022_v61, 1  ;;  %v10155_v8 = vld [vmem:[#allocation63_spill] sm:$0xff] }
 0x4e3   : > { %v2838_v50 = vrot.slane %v2837_v9, 4  ;;  %v8539_v3 = vsel %vm2075_vm15, %v3851_v27, %v3906_v12  ;;  %v3800_v46 = vadd.f32 %v3799_v16, %v3798_v55  ;;  %v2500_v33 = vmul.f32 %v6362_v43, %v10154_v51  ;;  %v10159_v43 = vld [vmem:[#allocation27_spill] sm:$0xff] }
 0x4e4   : > { %v4597_v58 = vrot.slane %v4596_v44, 2  ;;  %v2024_v18 = vadd.f32 %v2023_v31, %v2022_v61  ;;  %v4260_v60 = vmul.f32 %v8386_v47, %v10155_v8  ;;  %v4606_v42 = vrot.slane %v4605_v35, 1  ;;  %v6363_v8 = vld [vmem:[%s7463_s24 + $0x50] sm:$0xff] }
 0x4e5   : > { %v2839_v22 = vadd.f32 %v2838_v50, %v2837_v9  ;;  %v1709_v10 = vpop.permute.xlu1 %1708  ;;  %v8548_v23 = vadd.f32 %v5080_v25, %v5079_v36  ;;  %v3260_v55 = vmul.f32 %v10158_v37, %v8488_v56  ;;  %v8557_v31 = vadd.f32 %v4805_v49, %v4804_v39 }
 0x4e6   : > { %v4598_v32 = vadd.f32 %v4597_v58, %v4596_v44  ;;  %v1742_v4 = vmul.f32 %v1709_v10, %v8346_v0  ;;  %v8546_v62 = vpop.permute.xlu0 %2433  ;;  %v8555_v50 = vsel %vm2075_vm15, %v2024_v18, %v8295_v41  ;;  %v1835_v61 = vrot.slane %v1834_v40, 2  ;;  %v10160_v41 = vld [vmem:[#allocation6_spill] sm:$0xff] }
 0x4e7   : > { %10156 = vst [vmem:[#allocation34_spill] sm:$0xff] %v8546_v62  ;;  %v2840_v16 = vrot.slane %v2839_v22, 2  ;;  %6244 = vset.pattern.permute.xlu2 %v9921_v54  ;;  %v3801_v36 = vrot.slane %v3800_v46, 1  ;;  %v2564_v44 = vsel %vm1747_vm0, %v2500_v33, 0.0  ;;  %v4300_v39 = vsel %vm1747_vm0, %v4260_v60, 0.0 }
 0x4e8   : > { %10157 = vst [vmem:[#allocation42_spill] sm:$0xff] %v8548_v23  ;;  %v4599_v58 = vrot.slane %v4598_v32, 1  ;;  %v1825_v27 = vsel %vm1747_vm0, %v1742_v4, 0.0  ;;  %6248 = vset.pattern.permute.xlu1 %v10038_v17  ;;  %v3482_v25 = vpop.permute.xlu2 %3481  ;;  %3993 = vperm.xlu2 %6244, %v7702_v38   ;;  %v4607_v49 = vadd.f32 %v4606_v42, %v4605_v35  ;;  %v3348_v10 = vsel %vm1747_vm0, %v3260_v55, 0.0 }
 0x4e9   : > { %v2841_v9 = vadd.f32 %v2840_v16, %v2839_v22  ;;  %v1826_v12 = vrot.slane %v1825_v27, 4  ;;  %1723 = vperm.xlu1 %6248, %v10159_v43   ;;  %5457 = vperm.xlu0 %6282, %v10160_v41   ;;  %v3511_v18 = vmul.f32 %v3482_v25, %v8346_v0  ;;  %v2502_v4 = vmul.f32 %v6363_v8, %v8353_v20  ;;  %v10162_v20 = vld [vmem:[#allocation46_spill] sm:$0xff] }
 0x4ea   : > { %v4600_v51 = vadd.f32 %v4599_v58, %v4598_v32  ;;  %v2565_v33 = vrot.slane %v2564_v44, 4  ;;  %v1836_v22 = vadd.f32 %v1835_v61, %v1834_v40  ;;  %v3349_v55 = vrot.slane %v3348_v10, 4  ;;  %v10164_v61 = vld [vmem:[#allocation45_spill] sm:$0xff] }
 0x4eb   : > { %v2842_v37 = vrot.slane %v2841_v9, 1  ;;  %v1827_v62 = vadd.f32 %v1826_v12, %v1825_v27  ;;  %v3593_v41 = vsel %vm1747_vm0, %v3511_v18, 0.0  ;;  %v8582_v40 = vsel %vm2077_vm1, %v8522_v30, %v10162_v20  ;;  %v10167_v32 = vld [vmem:[#allocation65_spill] sm:$0xff] }
 0x4ec   : > { %v4662_v16 = vsel %vm2073_vm14, %v4600_v51, %v8336_v15  ;;  %v3594_v35 = vrot.slane %v3593_v41, 4  ;;  %10163 = vst [vmem:[#allocation60_spill] sm:$0xff] %v8582_v40  ;;  %v8587_v15 = vsel %vm2077_vm1, %v8531_v13, %v10164_v61  ;;  %v2578_v27 = vsel %vm1747_vm0, %v2502_v4, 0.0  ;;  %v10172_v40 = vld [vmem:[#allocation67_spill] sm:$0xff] }
 0x4ed   : > { %v2843_v53 = vadd.f32 %v2842_v37, %v2841_v9  ;;  %v1828_v60 = vrot.slane %v1827_v62, 2  ;;  %v8574_v42 = vsel %vm2075_vm15, %v4607_v49, %v4662_v16  ;;  %10165 = vst [vmem:[#allocation43_spill] sm:$0xff] %v8587_v15  ;;  %v4301_v51 = vrot.slane %v4300_v39, 4 }
 0x4ee   : > { %v8577_v58 = vpop.permute.xlu0 %2453  ;;  %v3595_v12 = vadd.f32 %v3594_v35, %v3593_v41  ;;  %v2566_v18 = vadd.f32 %v2565_v33, %v2564_v44  ;;  %v1837_v8 = vrot.slane %v1836_v22, 1  ;;  %v3802_v37 = vadd.f32 %v3801_v36, %v3800_v46 }
 0x4ef   : > { %10161 = vst [vmem:[#allocation38_spill] sm:$0xff] %v8577_v58  ;;  %v8592_v25 = vsel %vm2075_vm15, %v2843_v53, %v8325_v63  ;;  %v1829_v9 = vadd.f32 %v1828_v60, %v1827_v62  ;;  %v2474_v49 = vpop.permute.xlu1 %2473  ;;  %v4807_v13 = vrot.slane %v8557_v31, 2  ;;  %v10166_v63 = vld [vmem:[#allocation96_spill] sm:$0xff]  ;;  %v2579_v44 = vrot.slane %v2578_v27, 4 }
 0x4f0   : > { %v2503_v30 = vmul.f32 %v2474_v49, %v8346_v0  ;;  %6247 = vset.pattern.permute.xlu2 %v9904_v5  ;;  %v3596_v20 = vrot.slane %v3595_v12, 2  ;;  %v4016_v62 = vmul.f32 %v10166_v63, %v8488_v56  ;;  %v3350_v46 = vadd.f32 %v3349_v55, %v3348_v10  ;;  %v8609_v63 = vld [vmem:[%s7463_s24 + $0x28] sm:$0xff] }
 0x4f1   : > { %v1830_v16 = vrot.slane %v1829_v9, 1  ;;  %6251 = vset.pattern.permute.xlu1 %v10049_v19  ;;  %5509 = vperm.xlu0 %6282, %v10159_v43   ;;  %v4238_v53 = vpop.permute.xlu2 %4237  ;;  %v8605_v60 = vadd.f32 %v4301_v51, %v4300_v39  ;;  %v2567_v35 = vrot.slane %v2566_v18, 2  ;;  %v1838_v61 = vadd.f32 %v1837_v8, %v1836_v22 }
 0x4f2   : > { %v2585_v41 = vsel %vm1747_vm0, %v2503_v30, 0.0  ;;  %v4267_v4 = vmul.f32 %v4238_v53, %v8346_v0  ;;  %4749 = vperm.xlu2 %6247, %v7702_v38   ;;  %2485 = vperm.xlu1 %6251, %v10159_v43   ;;  %v3597_v33 = vadd.f32 %v3596_v20, %v3595_v12  ;;  %v1736_v30 = vmul.f32 %v8609_v63, %v10167_v32 }
 0x4f3   : > { %v1831_v36 = vadd.f32 %v1830_v16, %v1829_v9  ;;  %v2586_v19 = vrot.slane %v2585_v41, 4  ;;  %v4104_v10 = vsel %vm1747_vm0, %v4016_v62, 0.0  ;;  %v2580_v55 = vadd.f32 %v2579_v44, %v2578_v27  ;;  %v10170_v44 = vld [vmem:[#allocation11_spill] sm:$0xff] }
 0x4f4   : > { %v4349_v49 = vsel %vm1747_vm0, %v4267_v4, 0.0  ;;  %v3598_v53 = vrot.slane %v3597_v33, 1  ;;  %v8620_v22 = vadd.f32 %v4807_v13, %v8557_v31  ;;  %v3351_v51 = vrot.slane %v3350_v46, 2 }
 0x4f5   : > { %v4350_v58 = vrot.slane %v4349_v49, 4  ;;  %v2144_v23 = vsel %vm2075_vm15, %v1831_v36, %v8377_v48  ;;  %v2587_v9 = vadd.f32 %v2586_v19, %v2585_v41  ;;  %v2568_v20 = vadd.f32 %v2567_v35, %v2566_v18  ;;  %v10169_v36 = vld [vmem:[#allocation48_spill] sm:$0xff] }
 0x4f6   : > { %v2466_v39 = vpop.permute.xlu0 %2465  ;;  %v8617_v12 = vsel %vm2077_vm1, %v1838_v61, %v2144_v23  ;;  %v3599_v8 = vadd.f32 %v3598_v53, %v3597_v33  ;;  %v8626_v27 = vsel %vm2077_vm1, %v3802_v37, %v10169_v36  ;;  %v4105_v62 = vrot.slane %v4104_v10, 4 }
 0x4f7   : > { %10168 = vst [vmem:[#allocation61_spill] sm:$0xff] %v8617_v12  ;;  %v4351_v16 = vadd.f32 %v4350_v58, %v4349_v49  ;;  %v2501_v4 = vmul.f32 %v8381_v6, %v2466_v39  ;;  %v8635_v58 = vsel %vm1747_vm0, %v1736_v30, 0.0  ;;  %v2581_v18 = vrot.slane %v2580_v55, 2  ;;  %v10171_v49 = vld [vmem:[#allocation101_spill] sm:$0xff] }
 0x4f8   : > { %v3230_v48 = vpop.permute.xlu1 %3229  ;;  %v8630_v23 = vsel %vm2075_vm15, %v3599_v8, %v8364_v14  ;;  %v2588_v6 = vrot.slane %v2587_v9, 2  ;;  %v3352_v33 = vadd.f32 %v3351_v51, %v3350_v46  ;;  %v2569_v61 = vrot.slane %v2568_v20, 1 }
 0x4f9   : > { %v4352_v31 = vrot.slane %v4351_v16, 2  ;;  %v3259_v13 = vmul.f32 %v3230_v48, %v8346_v0  ;;  %5469 = vperm.xlu0 %6282, %v10170_v44   ;;  %v2571_v41 = vsel %vm1747_vm0, %v2501_v4, 0.0  ;;  %v4772_v30 = vmul.f32 %v10171_v49, %v8488_v56 }
 0x4fa   : > { %6249 = vset.pattern.permute.xlu2 %v9917_v21  ;;  %6254 = vset.pattern.permute.xlu1 %v10153_v29  ;;  %v4994_v37 = vpop.permute.xlu2 %4993  ;;  %v2572_v19 = vrot.slane %v2571_v41, 4  ;;  %v1784_v8 = vrot.slane %v8635_v58, 4  ;;  %v4106_v29 = vadd.f32 %v4105_v62, %v4104_v10  ;;  %v2589_v4 = vadd.f32 %v2588_v6, %v2587_v9  ;;  %v8652_v62 = vld [vmem:[%s7463_s24 + $0x68] sm:$0xff] }
 0x4fb   : > { %v4353_v14 = vadd.f32 %v4352_v31, %v4351_v16  ;;  %v3341_v35 = vsel %vm1747_vm0, %v3259_v13, 0.0  ;;  %1918 = vperm.xlu2 %6249, %v10159_v43   ;;  %3241 = vperm.xlu1 %6254, %v10159_v43   ;;  %v5023_v39 = vmul.f32 %v4994_v37, %v8346_v0  ;;  %v2582_v16 = vadd.f32 %v2581_v18, %v2580_v55 }
 0x4fc   : > { %v3342_v53 = vrot.slane %v3341_v35, 4  ;;  %v2573_v51 = vadd.f32 %v2572_v19, %v2571_v41  ;;  %v3353_v31 = vrot.slane %v3352_v33, 1  ;;  %v4512_v49 = vmul.f32 %v8386_v47, %v10172_v40  ;;  %v10174_v41 = vld [vmem:[#allocation12_spill] sm:$0xff] }
 0x4fd   : > { %v4354_v46 = vrot.slane %v4353_v14, 1  ;;  %v5105_v36 = vsel %vm1747_vm0, %v5023_v39, 0.0  ;;  %v2570_v44 = vadd.f32 %v2569_v61, %v2568_v20  ;;  %v4860_v37 = vsel %vm1747_vm0, %v4772_v30, 0.0 }
 0x4fe   : > { %v3343_v48 = vadd.f32 %v3342_v53, %v3341_v35  ;;  %v2574_v32 = vrot.slane %v2573_v51, 2  ;;  %v5106_v15 = vrot.slane %v5105_v36, 4  ;;  %v4107_v10 = vrot.slane %v4106_v29, 2 }
 0x4ff   : > { %v4355_v13 = vadd.f32 %v4354_v46, %v4353_v14  ;;  %v2583_v14 = vrot.slane %v2582_v16, 1  ;;  %v2590_v19 = vrot.slane %v2589_v4, 1  ;;  %v3354_v20 = vadd.f32 %v3353_v31, %v3352_v33 }
 0x500   : > { %v3344_v38 = vrot.slane %v3343_v48, 2  ;;  %v2575_v9 = vadd.f32 %v2574_v32, %v2573_v51  ;;  %v5107_v18 = vadd.f32 %v5106_v15, %v5105_v36  ;;  %v4861_v61 = vrot.slane %v4860_v37, 4  ;;  %v10175_v32 = vld [vmem:[#allocation55_spill] sm:$0xff] }
 0x501   : > { %v8656_v55 = vsel %vm2075_vm15, %v4355_v13, %v8405_v24  ;;  %v3986_v6 = vpop.permute.xlu1 %3985  ;;  %5481 = vperm.xlu0 %6282, %v10174_v41   ;;  %v1938_v15 = vmul.f32 %v10175_v32, %v8652_v62  ;;  %v4108_v33 = vadd.f32 %v4107_v10, %v4106_v29  ;;  %v2584_v31 = vadd.f32 %v2583_v14, %v2582_v16 }
 0x502   : > { %10173 = vst [vmem:[#allocation47_spill] sm:$0xff] %v8656_v55  ;;  %v3345_v35 = vadd.f32 %v3344_v38, %v3343_v48  ;;  %v4015_v40 = vmul.f32 %v3986_v6, %v8346_v0  ;;  %v2576_v30 = vrot.slane %v2575_v9, 1  ;;  %v5108_v53 = vrot.slane %v5107_v18, 2 }
 0x503   : > { %6252 = vset.pattern.permute.xlu2 %v10102_v57  ;;  %6257 = vset.pattern.permute.xlu1 %v9921_v54  ;;  %v2226_v24 = vpop.permute.xlu2 %2225  ;;  %v2591_v13 = vadd.f32 %v2590_v19, %v2589_v4  ;;  %v4862_v55 = vadd.f32 %v4861_v61, %v4860_v37  ;;  %v2032_v12 = vsel %vm1747_vm0, %v1938_v15, 0.0  ;;  %v1785_v37 = vadd.f32 %v1784_v8, %v8635_v58 }
 0x504   : > { %v3346_v39 = vrot.slane %v3345_v35, 1  ;;  %v4097_v46 = vsel %vm1747_vm0, %v4015_v40, 0.0  ;;  %2737 = vperm.xlu2 %6252, %v10159_v43   ;;  %v2252_v38 = vmul.f32 %v2226_v24, %v8488_v56  ;;  %3997 = vperm.xlu1 %6257, %v10159_v43   ;;  %v2577_v51 = vadd.f32 %v2576_v30, %v2575_v9 }
 0x505   : > { %v5109_v48 = vadd.f32 %v5108_v53, %v5107_v18  ;;  %v4098_v36 = vrot.slane %v4097_v46, 4  ;;  %v4552_v14 = vsel %vm1747_vm0, %v4512_v49, 0.0  ;;  %v4809_v53 = vrot.slane %v8620_v22, 1 }
 0x506   : > { %v3347_v54 = vadd.f32 %v3346_v39, %v3345_v35  ;;  %v2340_v6 = vsel %vm1747_vm0, %v2252_v38, 0.0  ;;  %v2645_v32 = vsel %vm2071_vm13, %v2577_v51, %v2570_v44  ;;  %v10176_v44 = vrot.slane %v8605_v60, 2  ;;  %v10177_v51 = vld [vmem:[#allocation32_spill] sm:$0xff] }
 0x507   : > { %v5110_v41 = vrot.slane %v5109_v48, 1  ;;  %v4099_v52 = vadd.f32 %v4098_v36, %v4097_v46  ;;  %v2341_v40 = vrot.slane %v2340_v6, 4  ;;  %v2646_v24 = vsel %vm2073_vm14, %v2584_v31, %v2645_v32 }
 0x508   : > { %v3403_v29 = vsel %vm2075_vm15, %v3347_v54, %v8445_v26  ;;  %v8675_v16 = vsel %vm2075_vm15, %v2591_v13, %v2646_v24  ;;  %v4304_v18 = vadd.f32 %v10176_v44, %v8605_v60  ;;  %v4109_v15 = vrot.slane %v4108_v33, 1  ;;  %v10178_v13 = vld [vmem:[#allocation69_spill] sm:$0xff] }
 0x509   : > { %v5111_v10 = vadd.f32 %v5110_v41, %v5109_v48  ;;  %v4100_v4 = vrot.slane %v4099_v52, 2  ;;  %v2342_v9 = vadd.f32 %v2341_v40, %v2340_v6  ;;  %6286 = vset.pattern.permute.xlu0 %v10038_v17  ;;  %v8684_v35 = vsel %vm2077_vm1, %v3354_v20, %v3403_v29 }
 0x50a   : > { %v4742_v19 = vpop.permute.xlu1 %4741  ;;  %v4863_v60 = vrot.slane %v4862_v55, 2  ;;  %v2033_v39 = vrot.slane %v2032_v12, 4  ;;  %v4553_v46 = vrot.slane %v4552_v14, 4  ;;  %v2757_v48 = vmul.f32 %v10177_v51, %v8652_v62 }
 0x50b   : > { %v8688_v26 = vsel %vm2075_vm15, %v5111_v10, %v8433_v2  ;;  %v4101_v41 = vadd.f32 %v4100_v4, %v4099_v52  ;;  %v2343_v61 = vrot.slane %v2342_v9, 2  ;;  %v4771_v30 = vmul.f32 %v4742_v19, %v8346_v0 }
 0x50c   : > { %6255 = vset.pattern.permute.xlu2 %v10107_v1  ;;  %6260 = vset.pattern.permute.xlu1 %v9904_v5  ;;  %v2982_v58 = vpop.permute.xlu2 %2981  ;;  %v4305_v0 = vrot.slane %v4304_v18, 1  ;;  %v1786_v2 = vrot.slane %v1785_v37, 2  ;;  %v1930_v54 = vmul.f32 %v8609_v63, %v10178_v13  ;;  %v4110_v6 = vadd.f32 %v4109_v15, %v4108_v33 }
 0x50d   : > { %v4102_v8 = vrot.slane %v4101_v41, 1  ;;  %v2344_v49 = vadd.f32 %v2343_v61, %v2342_v9  ;;  %v4853_v20 = vsel %vm1747_vm0, %v4771_v30, 0.0  ;;  %3493 = vperm.xlu2 %6255, %v10159_v43   ;;  %v3008_v52 = vmul.f32 %v2982_v58, %v8488_v56  ;;  %4753 = vperm.xlu1 %6260, %v10159_v43  }
 0x50e   : > { %v4854_v38 = vrot.slane %v4853_v20, 4  ;;  %v4864_v24 = vadd.f32 %v4863_v60, %v4862_v55  ;;  %v2034_v29 = vadd.f32 %v2033_v39, %v2032_v12  ;;  %v1787_v9 = vadd.f32 %v1786_v2, %v1785_v37 }
 0x50f   : > { %v4103_v36 = vadd.f32 %v4102_v8, %v4101_v41  ;;  %v2345_v5 = vrot.slane %v2344_v49, 1  ;;  %v3096_v31 = vsel %vm1747_vm0, %v3008_v52, 0.0  ;;  %v10179_v41 = vld [vmem:[#allocation39_spill] sm:$0xff]  ;;  %v4554_v30 = vadd.f32 %v4553_v46, %v4552_v14 }
 0x510   : > { %v4855_v32 = vadd.f32 %v4854_v38, %v4853_v20  ;;  %v3097_v40 = vrot.slane %v3096_v31, 4  ;;  %v8708_v61 = vsel %vm2079_vm2, %v10179_v41, %v8626_v27  ;;  %v2851_v58 = vsel %vm1747_vm0, %v2757_v48, 0.0  ;;  %v10181_v38 = vld [vmem:[#allocation93_spill] sm:$0xff] }
 0x511   : > { %v4159_v10 = vsel %vm2075_vm15, %v4103_v36, %v8479_v7  ;;  %v2346_v4 = vadd.f32 %v2345_v5, %v2344_v49  ;;  %10180 = vst [vmem:[#allocation36_spill] sm:$0xff] %v8708_v61  ;;  %v4810_v7 = vadd.f32 %v4809_v53, %v8620_v22  ;;  %v4306_v39 = vadd.f32 %v4305_v0, %v4304_v18  ;;  %v10183_v41 = vld [vmem:[#allocation81_spill] sm:$0xff] }
 0x512   : > { %v4856_v44 = vrot.slane %v4855_v32, 2  ;;  %v3098_v19 = vadd.f32 %v3097_v40, %v3096_v31  ;;  %v8716_v55 = vsel %vm2077_vm1, %v4110_v6, %v4159_v10  ;;  %v1976_v27 = vsel %vm1747_vm0, %v1930_v54, 0.0 }
 0x513   : > { %v8713_v33 = vsel %vm2077_vm1, %v2346_v4, %v8468_v59  ;;  %v1911_v12 = vpop.permute.xlu1 %1910  ;;  %v4865_v14 = vrot.slane %v4864_v24, 1  ;;  %v2035_v8 = vrot.slane %v2034_v29, 2  ;;  %v2852_v49 = vrot.slane %v2851_v58, 4  ;;  %v10182_v4 = vld [vmem:[#allocation53_spill] sm:$0xff] }
 0x514   : > { %v4857_v37 = vadd.f32 %v4856_v44, %v4855_v32  ;;  %v3099_v15 = vrot.slane %v3098_v19, 2  ;;  %v1937_v60 = vmul.f32 %v1911_v12, %v8488_v56  ;;  %v1788_v22 = vrot.slane %v1787_v9, 1 }
 0x515   : > { %6258 = vset.pattern.permute.xlu2 %v10111_v34  ;;  %6262 = vset.pattern.permute.xlu1 %v9917_v21  ;;  %v3738_v59 = vpop.permute.xlu2 %3737  ;;  %v4555_v18 = vrot.slane %v4554_v30, 2  ;;  %v1977_v46 = vrot.slane %v1976_v27, 4  ;;  %v3513_v51 = vmul.f32 %v10181_v38, %v8652_v62  ;;  %v4866_v36 = vadd.f32 %v4865_v14, %v4864_v24  ;;  %v2478_v14 = vpop.permute.xlu0 %2477 }
 0x516   : > { %v4858_v20 = vrot.slane %v4857_v37, 1  ;;  %v3100_v52 = vadd.f32 %v3099_v15, %v3098_v19  ;;  %v2025_v2 = vsel %vm1747_vm0, %v1937_v60, 0.0  ;;  %4249 = vperm.xlu2 %6258, %v10159_v43   ;;  %1922 = vperm.xlu1 %6262, %v8046_v11   ;;  %v3764_v0 = vmul.f32 %v3738_v59, %v8488_v56  ;;  %v10184_v60 = vld [vmem:[#allocation70_spill] sm:$0xff] }
 0x517   : > { %v2026_v53 = vrot.slane %v2025_v2, 4  ;;  %v2036_v5 = vadd.f32 %v2035_v8, %v2034_v29  ;;  %v2853_v54 = vadd.f32 %v2852_v49, %v2851_v58  ;;  %v8734_v44 = vsel %vm2077_vm1, %v4306_v39, %v10182_v4 }
 0x518   : > { %v4859_v21 = vadd.f32 %v4858_v20, %v4857_v37  ;;  %v3101_v48 = vrot.slane %v3100_v52, 1  ;;  %v3852_v13 = vsel %vm1747_vm0, %v3764_v0, 0.0  ;;  %v8741_v24 = vsel %vm2077_vm1, %v4810_v7, %v10183_v41 }
 0x519   : > { %v2027_v31 = vadd.f32 %v2026_v53, %v2025_v2  ;;  %v3853_v40 = vrot.slane %v3852_v13, 4  ;;  %v4556_v29 = vadd.f32 %v4555_v18, %v4554_v30  ;;  %v3607_v58 = vsel %vm1747_vm0, %v3513_v51, 0.0  ;;  %v10187_v51 = vld [vmem:[#allocation74_spill] sm:$0xff] }
 0x51a   : > { %v4915_v6 = vsel %vm2075_vm15, %v4859_v21, %v8518_v45  ;;  %v3102_v32 = vadd.f32 %v3101_v48, %v3100_v52  ;;  %v8748_v15 = vadd.f32 %v1788_v22, %v1787_v9  ;;  %v5016_v39 = vmul.f32 %v8386_v47, %v10184_v60  ;;  %v10186_v22 = vld [vmem:[#allocation79_spill] sm:$0xff] }
 0x51b   : > { %v2028_v10 = vrot.slane %v2027_v31, 2  ;;  %v8737_v19 = vsel %vm2077_vm1, %v4866_v36, %v4915_v6  ;;  %v3854_v12 = vadd.f32 %v3853_v40, %v3852_v13  ;;  %v1978_v7 = vadd.f32 %v1977_v46, %v1976_v27 }
 0x51c   : > { %v8746_v45 = vsel %vm2077_vm1, %v3102_v32, %v8509_v28  ;;  %v2730_v37 = vpop.permute.xlu1 %2729  ;;  %v2037_v49 = vrot.slane %v2036_v5, 1  ;;  %v2854_v30 = vrot.slane %v2853_v54, 2  ;;  %v10185_v52 = vmov 13  }
 0x51d   : > { %v2029_v8 = vadd.f32 %v2028_v10, %v2027_v31  ;;  %v2756_v59 = vmul.f32 %v2730_v37, %v8488_v56  ;;  %v3855_v20 = vrot.slane %v3854_v12, 2  ;;  %v3608_v2 = vrot.slane %v3607_v58, 4 }
 0x51e   : > { %6266 = vset.pattern.permute.xlu2 %v10185_v52  ;;  %6263 = vset.pattern.permute.xlu1 %v10185_v52  ;;  %v4494_v28 = vpop.permute.xlu2 %4493  ;;  %v4557_v53 = vrot.slane %v4556_v29, 1  ;;  %v2504_v27 = vmul.f32 %v2478_v14, %v8488_v56  ;;  %v5056_v38 = vsel %vm1747_vm0, %v5016_v39, 0.0  ;;  %v4269_v21 = vmul.f32 %v10187_v51, %v8652_v62 }
 0x51f   : > { %v2030_v18 = vrot.slane %v2029_v8, 1  ;;  %v2844_v9 = vsel %vm1747_vm0, %v2756_v59, 0.0  ;;  %5005 = vperm.xlu2 %6266, %v10159_v43   ;;  %v4520_v47 = vmul.f32 %v4494_v28, %v8488_v56  ;;  %4997 = vperm.xlu1 %6263, %v10186_v22   ;;  %v3856_v0 = vadd.f32 %v3855_v20, %v3854_v12 }
 0x520   : > { %v2845_v46 = vrot.slane %v2844_v9, 4  ;;  %v1979_v31 = vrot.slane %v1978_v7, 2  ;;  %v2038_v40 = vadd.f32 %v2037_v49, %v2036_v5  ;;  %v2855_v10 = vadd.f32 %v2854_v30, %v2853_v54  ;;  %v8774_v5 = vld [vmem:[%s7463_s24 + $0x70] sm:$0xff] }
 0x521   : > { %v2031_v48 = vadd.f32 %v2030_v18, %v2029_v8  ;;  %v4608_v36 = vsel %vm1747_vm0, %v4520_v47, 0.0  ;;  %v3857_v13 = vrot.slane %v3856_v0, 1  ;;  %v3609_v4 = vadd.f32 %v3608_v2, %v3607_v58 }
 0x522   : > { %v2846_v6 = vadd.f32 %v2845_v46, %v2844_v9  ;;  %v4609_v32 = vrot.slane %v4608_v36, 4  ;;  %v2592_v12 = vsel %vm1747_vm0, %v2504_v27, 0.0  ;;  %v4558_v14 = vadd.f32 %v4557_v53, %v4556_v29  ;;  %v10189_v46 = vld [vmem:[#allocation72_spill] sm:$0xff] }
 0x523   : > { %v2088_v41 = vsel %vm2077_vm1, %v2031_v48, %v8555_v50  ;;  %v3858_v37 = vadd.f32 %v3857_v13, %v3856_v0  ;;  %v5057_v8 = vrot.slane %v5056_v38, 4  ;;  %v4363_v59 = vsel %vm1747_vm0, %v4269_v21, 0.0  ;;  %v10190_v21 = vld [vmem:[#allocation14_spill] sm:$0xff] }
 0x524   : > { %v2847_v60 = vrot.slane %v2846_v6, 2  ;;  %v4610_v39 = vadd.f32 %v4609_v32, %v4608_v36  ;;  %v8769_v28 = vsel %vm2079_vm2, %v2038_v40, %v2088_v41  ;;  %v8771_v18 = vadd.f32 %v1979_v31, %v1978_v7 }
 0x525   : > { %v3486_v20 = vpop.permute.xlu1 %3485  ;;  %v8778_v50 = vsel %vm2077_vm1, %v3858_v37, %v8539_v3  ;;  %v2856_v49 = vrot.slane %v2855_v10, 1  ;;  %v3610_v30 = vrot.slane %v3609_v4, 2  ;;  %v2593_v29 = vrot.slane %v2592_v12, 4 }
 0x526   : > { %v2848_v54 = vadd.f32 %v2847_v60, %v2846_v6  ;;  %v4611_v58 = vrot.slane %v4610_v39, 2  ;;  %v3512_v2 = vmul.f32 %v3486_v20, %v8488_v56  ;;  %v10188_v9 = vmov 2  }
 0x527   : > { %6267 = vset.pattern.permute.xlu2 %v10188_v9  ;;  %6268 = vset.pattern.permute.xlu1 %v10102_v57  ;;  %v1719_v47 = vpop.permute.xlu2 %1718  ;;  %v4364_v7 = vrot.slane %v4363_v59, 4  ;;  %v5058_v3 = vadd.f32 %v5057_v8, %v5056_v38  ;;  %v2749_v51 = vmul.f32 %v8609_v63, %v10189_v46  ;;  %v2254_v48 = vmul.f32 %v10190_v21, %v8774_v5  ;;  %v10193_v9 = vld [vmem:[#allocation98_spill] sm:$0xff] }
 0x528   : > { %v2849_v53 = vrot.slane %v2848_v54, 1  ;;  %v4612_v27 = vadd.f32 %v4611_v58, %v4610_v39  ;;  %v1744_v0 = vmul.f32 %v1719_v47, %v8652_v62  ;;  %2237 = vperm.xlu2 %6267, %v8046_v11   ;;  %2741 = vperm.xlu1 %6268, %v8046_v11   ;;  %v3600_v36 = vsel %vm1747_vm0, %v3512_v2, 0.0  ;;  %v10191_v58 = vld [vmem:[#allocation64_spill] sm:$0xff] }
 0x529   : > { %v3601_v13 = vrot.slane %v3600_v36, 4  ;;  %v2857_v32 = vadd.f32 %v2856_v49, %v2855_v10  ;;  %v3611_v40 = vadd.f32 %v3610_v30, %v3609_v4  ;;  %v2594_v41 = vadd.f32 %v2593_v29, %v2592_v12 }
 0x52a   : > { %v2850_v57 = vadd.f32 %v2849_v53, %v2848_v54  ;;  %v4613_v31 = vrot.slane %v4612_v27, 1  ;;  %v1839_v6 = vsel %vm1747_vm0, %v1744_v0, 0.0  ;;  %v4365_v60 = vadd.f32 %v4364_v7, %v4363_v59 }
 0x52b   : > { %v1840_v37 = vrot.slane %v1839_v6, 4  ;;  %v3602_v8 = vadd.f32 %v3601_v13, %v3600_v36  ;;  %v8797_v2 = vsel %vm2079_vm2, %v8748_v15, %v10191_v58  ;;  %v4657_v10 = vsel %vm2077_vm1, %v4558_v14, %v10193_v9  ;;  %v10196_v13 = vld [vmem:[#allocation44_spill] sm:$0xff] }
 0x52c   : > { %v2900_v38 = vsel %vm2077_vm1, %v2850_v57, %v8592_v25  ;;  %v4614_v39 = vadd.f32 %v4613_v31, %v4612_v27  ;;  %v1981_v4 = vrot.slane %v8771_v18, 1  ;;  %v2354_v12 = vsel %vm1747_vm0, %v2254_v48, 0.0 }
 0x52d   : > { %v1841_v20 = vadd.f32 %v1840_v37, %v1839_v6  ;;  %v8800_v54 = vsel %vm2079_vm2, %v2857_v32, %v2900_v38  ;;  %v3603_v59 = vrot.slane %v3602_v8, 2  ;;  %v5059_v30 = vrot.slane %v5058_v3, 2 }
 0x52e   : > { %10192 = vst [vmem:[#allocation41_spill] sm:$0xff] %v8800_v54  ;;  %v8808_v25 = vsel %vm2077_vm1, %v4614_v39, %v8574_v42  ;;  %v4242_v49 = vpop.permute.xlu1 %4241  ;;  %v2595_v29 = vrot.slane %v2594_v41, 2  ;;  %v2795_v7 = vsel %vm1747_vm0, %v2749_v51, 0.0  ;;  %v3612_v53 = vrot.slane %v3611_v40, 1  ;;  %v10230_v54 = vld [vmem:[#allocation94_spill] sm:$0xff] }
 0x52f   : > { %v1842_v15 = vrot.slane %v1841_v20, 2  ;;  %v4268_v47 = vmul.f32 %v4242_v49, %v8488_v56  ;;  %v4366_v27 = vrot.slane %v4365_v60, 2  ;;  %v3604_v14 = vadd.f32 %v3603_v59, %v3602_v8  ;;  %v10195_v56 = vld [vmem:[#allocation17_spill] sm:$0xff] }
 0x530   : > { %v10194_v0 = vmov 5   ;;  %6271 = vset.pattern.permute.xlu1 %v10107_v1  ;;  %v2482_v46 = vpop.permute.xlu2 %2481  ;;  %v2355_v21 = vrot.slane %v2354_v12, 4  ;;  %v3010_v51 = vmul.f32 %v10195_v56, %v8774_v5  ;;  %v8822_v6 = vsel %vm2079_vm2, %v10196_v13, %v4657_v10 }
 0x531   : > { %6269 = vset.pattern.permute.xlu2 %v10194_v0  ;;  %v1843_v42 = vadd.f32 %v1842_v15, %v1841_v20  ;;  %v4356_v48 = vsel %vm1747_vm0, %v4268_v47, 0.0  ;;  %v2505_v36 = vmul.f32 %v2482_v46, %v8652_v62  ;;  %3497 = vperm.xlu1 %6271, %v8046_v11   ;;  %v3605_v57 = vrot.slane %v3604_v14, 1  ;;  %10197 = vst [vmem:[#allocation62_spill] sm:$0xff] %v8822_v6 }
 0x532   : > { %2993 = vperm.xlu2 %6269, %v8046_v11   ;;  %v4357_v31 = vrot.slane %v4356_v48, 4  ;;  %v2796_v1 = vrot.slane %v2795_v7, 4  ;;  %v2596_v32 = vadd.f32 %v2595_v29, %v2594_v41  ;;  %v8825_v39 = vadd.f32 %v5059_v30, %v5058_v3 }
 0x533   : > { %v1844_v37 = vrot.slane %v1843_v42, 1  ;;  %v2599_v38 = vsel %vm1747_vm0, %v2505_v36, 0.0  ;;  %v3606_v8 = vadd.f32 %v3605_v57, %v3604_v14  ;;  %v3613_v9 = vadd.f32 %v3612_v53, %v3611_v40  ;;  %v10198_v36 = vld [vmem:[#allocation61_spill] sm:$0xff] }
 0x534   : > { %v4358_v20 = vadd.f32 %v4357_v31, %v4356_v48  ;;  %v2600_v58 = vrot.slane %v2599_v38, 4  ;;  %v4367_v59 = vadd.f32 %v4366_v27, %v4365_v60  ;;  %v2356_v49 = vadd.f32 %v2355_v21, %v2354_v12  ;;  %v10200_v40 = vld [vmem:[#allocation73_spill] sm:$0xff] }
 0x535   : > { %v1845_v15 = vadd.f32 %v1844_v37, %v1843_v42  ;;  %v3110_v47 = vsel %vm1747_vm0, %v3010_v51, 0.0  ;;  %v3656_v10 = vsel %vm2077_vm1, %v3606_v8, %v8630_v23  ;;  %v2797_v41 = vadd.f32 %v2796_v1, %v2795_v7 }
 0x536   : > { %v4359_v0 = vrot.slane %v4358_v20, 2  ;;  %v2601_v46 = vadd.f32 %v2600_v58, %v2599_v38  ;;  %v2597_v29 = vrot.slane %v2596_v32, 1  ;;  %v8835_v30 = vsel %vm2079_vm2, %v3613_v9, %v3656_v10  ;;  %v10202_v9 = vld [vmem:[#allocation25_spill] sm:$0xff] }
 0x537   : > { %v2230_v56 = vpop.permute.xlu1 %2229  ;;  %v8832_v3 = vsel %vm2079_vm2, %v1845_v15, %v10198_v36  ;;  %10199 = vst [vmem:[#allocation71_spill] sm:$0xff] %v8835_v30  ;;  %v2497_v60 = vmul.f32 %v8609_v63, %v10200_v40  ;;  %v1982_v23 = vadd.f32 %v1981_v4, %v8771_v18  ;;  %v4368_v14 = vrot.slane %v4367_v59, 1  ;;  %v10203_v36 = vld [vmem:[#allocation47_spill] sm:$0xff] }
 0x538   : > { %v4360_v12 = vadd.f32 %v4359_v0, %v4358_v20  ;;  %v2602_v53 = vrot.slane %v2601_v46, 2  ;;  %v2253_v27 = vmul.f32 %v2230_v56, %v8652_v62  ;;  %v2357_v7 = vrot.slane %v2356_v49, 2 }
 0x539   : > { %v3111_v21 = vrot.slane %v3110_v47, 4  ;;  %v10201_v42 = vmov 8   ;;  %6274 = vset.pattern.permute.xlu1 %v10111_v34  ;;  %v3238_v48 = vpop.permute.xlu2 %3237  ;;  %v5061_v18 = vrot.slane %v8825_v39, 1  ;;  %v2798_v4 = vrot.slane %v2797_v41, 2 }
 0x53a   : > { %6272 = vset.pattern.permute.xlu2 %v10201_v42  ;;  %v4361_v51 = vrot.slane %v4360_v12, 1  ;;  %v2603_v57 = vadd.f32 %v2602_v53, %v2601_v46  ;;  %v2347_v31 = vsel %vm1747_vm0, %v2253_v27, 0.0  ;;  %v3261_v13 = vmul.f32 %v3238_v48, %v8652_v62  ;;  %4253 = vperm.xlu1 %6274, %v8046_v11   ;;  %v10204_v27 = vld [vmem:[#allocation75_spill] sm:$0xff]  ;;  %v10205_v48 = vld [vmem:[#allocation68_spill] sm:$0xff] }
 0x53b   : > { %3749 = vperm.xlu2 %6272, %v8046_v11   ;;  %v2598_v1 = vadd.f32 %v2597_v29, %v2596_v32  ;;  %v2348_v37 = vrot.slane %v2347_v31, 4  ;;  %v2543_v38 = vsel %vm1747_vm0, %v2497_v60, 0.0  ;;  %v4369_v58 = vadd.f32 %v4368_v14, %v4367_v59 }
 0x53c   : > { %v4362_v8 = vadd.f32 %v4361_v51, %v4360_v12  ;;  %v2604_v34 = vrot.slane %v2603_v57, 1  ;;  %v3355_v20 = vsel %vm1747_vm0, %v3261_v13, 0.0  ;;  %v3766_v15 = vmul.f32 %v10202_v9, %v8774_v5 }
 0x53d   : > { %v2349_v10 = vadd.f32 %v2348_v37, %v2347_v31  ;;  %v3356_v0 = vrot.slane %v3355_v20, 4  ;;  %v2358_v46 = vadd.f32 %v2357_v7, %v2356_v49  ;;  %v3112_v56 = vadd.f32 %v3111_v21, %v3110_v47  ;;  %v10207_v31 = vld [vmem:[#allocation76_spill] sm:$0xff] }
 0x53e   : > { %v4412_v40 = vsel %vm2077_vm1, %v4362_v8, %v10203_v36  ;;  %v2605_v53 = vadd.f32 %v2604_v34, %v2603_v57  ;;  %v2648_v32 = vsel %vm2077_vm1, %v2598_v1, %v8675_v16  ;;  %v2544_v59 = vrot.slane %v2543_v38, 4 }
 0x53f   : > { %v2350_v29 = vrot.slane %v2349_v10, 2  ;;  %v3357_v60 = vadd.f32 %v3356_v0, %v3355_v20  ;;  %v8857_v12 = vsel %vm2079_vm2, %v4369_v58, %v4412_v40  ;;  %v3505_v14 = vmul.f32 %v8609_v63, %v10204_v27 }
 0x540   : > { %v2986_v42 = vpop.permute.xlu1 %2985  ;;  %v8863_v49 = vsel %vm2079_vm2, %v1982_v23, %v10205_v48  ;;  %v8866_v47 = vsel %vm2079_vm2, %v2605_v53, %v2648_v32  ;;  %v3866_v7 = vsel %vm1747_vm0, %v3766_v15, 0.0  ;;  %v8870_v57 = vadd.f32 %v2798_v4, %v2797_v41  ;;  %v10210_v41 = vld [vmem:[#allocation50_spill] sm:$0xff] }
 0x541   : > { %10206 = vst [vmem:[#allocation51_spill] sm:$0xff] %v8866_v47  ;;  %v2351_v16 = vadd.f32 %v2350_v29, %v2349_v10  ;;  %v3358_v21 = vrot.slane %v3357_v60, 2  ;;  %v3009_v51 = vmul.f32 %v2986_v42, %v8652_v62  ;;  %v3253_v13 = vmul.f32 %v8609_v63, %v10207_v31 }
 0x542   : > { %v2359_v1 = vrot.slane %v2358_v46, 1  ;;  %v3113_v37 = vrot.slane %v3112_v56, 2  ;;  %v10208_v8 = vmov 11   ;;  %v10209_v23 = vmov 14   ;;  %v3994_v34 = vpop.permute.xlu2 %3993 }
 0x543   : > { %6275 = vset.pattern.permute.xlu2 %v10208_v8  ;;  %6279 = vset.pattern.permute.xlu1 %v10209_v23  ;;  %v2352_v20 = vrot.slane %v2351_v16, 1  ;;  %v3359_v58 = vadd.f32 %v3358_v21, %v3357_v60  ;;  %v3103_v9 = vsel %vm1747_vm0, %v3009_v51, 0.0  ;;  %v4017_v15 = vmul.f32 %v3994_v34, %v8652_v62  ;;  %v10211_v21 = vld [vmem:[#allocation40_spill] sm:$0xff] }
 0x544   : > { %4505 = vperm.xlu2 %6275, %v8046_v11   ;;  %5241 = vperm.xlu1 %6279, %v10210_v41   ;;  %v8880_v4 = vadd.f32 %v2544_v59, %v2543_v38  ;;  %v3551_v10 = vsel %vm1747_vm0, %v3505_v14, 0.0  ;;  %v3867_v0 = vrot.slane %v3866_v7, 4  ;;  %v3104_v36 = vrot.slane %v3103_v9, 4 }
 0x545   : > { %v2353_v40 = vadd.f32 %v2352_v20, %v2351_v16  ;;  %v3360_v53 = vrot.slane %v3359_v58, 1  ;;  %v4111_v32 = vsel %vm1747_vm0, %v4017_v15, 0.0  ;;  %v3299_v29 = vsel %vm1747_vm0, %v3253_v13, 0.0 }
 0x546   : > { %v2360_v60 = vadd.f32 %v2359_v1, %v2358_v46  ;;  %v3105_v27 = vadd.f32 %v3104_v36, %v3103_v9  ;;  %v4112_v42 = vrot.slane %v4111_v32, 4  ;;  %v3114_v48 = vadd.f32 %v3113_v37, %v3112_v56 }
 0x547   : > { %v4522_v51 = vmul.f32 %v10211_v21, %v8774_v5  ;;  %v3361_v38 = vadd.f32 %v3360_v53, %v3359_v58  ;;  %v2397_v59 = vsel %vm2079_vm2, %v2353_v40, %v8713_v33  ;;  %v3868_v14 = vadd.f32 %v3867_v0, %v3866_v7  ;;  %v10213_v33 = vld [vmem:[#allocation80_spill] sm:$0xff] }
 0x548   : > { %v3106_v31 = vrot.slane %v3105_v27, 2  ;;  %v4113_v16 = vadd.f32 %v4112_v42, %v4111_v32  ;;  %v8890_v8 = vsel %vm2081_vm3, %v2360_v60, %v2397_v59  ;;  %v8895_v46 = vadd.f32 %v5061_v18, %v8825_v39  ;;  %v10214_v32 = vld [vmem:[#allocation37_spill] sm:$0xff] }
 0x549   : > { %v3300_v13 = vrot.slane %v3299_v29, 4  ;;  %v3742_v1 = vpop.permute.xlu1 %3741  ;;  %v8900_v37 = vsel %vm2079_vm2, %v3361_v38, %v8684_v35  ;;  %v4009_v7 = vmul.f32 %v8609_v63, %v10213_v33  ;;  %v3552_v15 = vrot.slane %v3551_v10, 4 }
 0x54a   : > { %10212 = vst [vmem:[#allocation63_spill] sm:$0xff] %v8900_v37  ;;  %v3107_v34 = vadd.f32 %v3106_v31, %v3105_v27  ;;  %v4114_v20 = vrot.slane %v4113_v16, 2  ;;  %v3765_v58 = vmul.f32 %v3742_v1, %v8652_v62  ;;  %v3115_v39 = vrot.slane %v3114_v48, 1  ;;  %v10215_v27 = vld [vmem:[#allocation78_spill] sm:$0xff] }
 0x54b   : > { %v4622_v18 = vsel %vm1747_vm0, %v4522_v51, 0.0  ;;  %v3869_v0 = vrot.slane %v3868_v14, 2  ;;  %v8912_v60 = vadd.f32 %v3300_v13, %v3299_v29  ;;  %v4261_v42 = vmul.f32 %v8609_v63, %v10215_v27 }
 0x54c   : > { %6278 = vset.pattern.permute.xlu2 %v10209_v23  ;;  %6280 = vset.pattern.permute.xlu1 %v10185_v52  ;;  %v3108_v35 = vrot.slane %v3107_v34, 1  ;;  %v4115_v36 = vadd.f32 %v4114_v20, %v4113_v16  ;;  %v3859_v40 = vsel %vm1747_vm0, %v3765_v58, 0.0  ;;  %v4750_v53 = vpop.permute.xlu2 %4749  ;;  %v4055_v52 = vsel %vm1747_vm0, %v4009_v7, 0.0  ;;  %v10216_v16 = vld [vmem:[#allocation84_spill] sm:$0xff] }
 0x54d   : > { %5237 = vperm.xlu2 %6278, %v10214_v32   ;;  %5009 = vperm.xlu1 %6280, %v8046_v11   ;;  %v3860_v21 = vrot.slane %v3859_v40, 4  ;;  %v4773_v51 = vmul.f32 %v4750_v53, %v8652_v62  ;;  %v4623_v38 = vrot.slane %v4622_v18, 4  ;;  %v4765_v1 = vmul.f32 %v8609_v63, %v10216_v16 }
 0x54e   : > { %v3109_v59 = vadd.f32 %v3108_v35, %v3107_v34  ;;  %v4116_v31 = vrot.slane %v4115_v36, 1  ;;  %v3116_v33 = vadd.f32 %v3115_v39, %v3114_v48  ;;  %v3870_v29 = vadd.f32 %v3869_v0, %v3868_v14 }
 0x54f   : > { %v3861_v20 = vadd.f32 %v3860_v21, %v3859_v40  ;;  %v4867_v58 = vsel %vm1747_vm0, %v4773_v51, 0.0  ;;  %v8923_v56 = vadd.f32 %v3552_v15, %v3551_v10  ;;  %v4307_v7 = vsel %vm1747_vm0, %v4261_v42, 0.0 }
 0x550   : > { %v4117_v13 = vadd.f32 %v4116_v31, %v4115_v36  ;;  %v4868_v9 = vrot.slane %v4867_v58, 4  ;;  %v3153_v27 = vsel %vm2079_vm2, %v3109_v59, %v8746_v45  ;;  %v4056_v35 = vrot.slane %v4055_v52, 4  ;;  %v10218_v45 = vld [vmem:[#allocation82_spill] sm:$0xff]  ;;  %v10221_v31 = vld [vmem:[#allocation89_spill] sm:$0xff] }
 0x551   : > { %v3862_v53 = vrot.slane %v3861_v20, 2  ;;  %v8927_v34 = vsel %vm2081_vm3, %v3116_v33, %v3153_v27  ;;  %v4624_v48 = vadd.f32 %v4623_v38, %v4622_v18  ;;  %v3302_v0 = vrot.slane %v8912_v60, 2  ;;  %v10219_v18 = vld [vmem:[#allocation66_spill] sm:$0xff] }
 0x552   : > { %10217 = vst [vmem:[#allocation52_spill] sm:$0xff] %v8927_v34  ;;  %v4869_v39 = vadd.f32 %v4868_v9, %v4867_v58  ;;  %v4498_v40 = vpop.permute.xlu1 %4497  ;;  %v8931_v14 = vsel %vm2079_vm2, %v4117_v13, %v8716_v55  ;;  %v5017_v10 = vmul.f32 %v8609_v63, %v10218_v45  ;;  %v4308_v42 = vrot.slane %v4307_v7, 4  ;;  %v8941_v9 = vld [vmem:[%s7463_s24 + $0x30] sm:$0xff]  ;;  %v10220_v55 = vld [vmem:[#allocation87_spill] sm:$0xff] }
 0x553   : > { %v3863_v15 = vadd.f32 %v3862_v53, %v3861_v20  ;;  %v4521_v36 = vmul.f32 %v4498_v40, %v8652_v62  ;;  %v4811_v21 = vsel %vm1747_vm0, %v4765_v1, 0.0  ;;  %v3871_v51 = vrot.slane %v3870_v29, 1  ;;  %v10222_v53 = vld [vmem:[#allocation92_spill] sm:$0xff] }
 0x554   : > { %v4870_v59 = vrot.slane %v4869_v39, 2  ;;  %v2246_v38 = vmul.f32 %v8941_v9, %v10220_v55  ;;  %v1737_v63 = vmul.f32 %v8941_v9, %v10221_v31  ;;  %v4057_v1 = vadd.f32 %v4056_v35, %v4055_v52 }
 0x555   : > { %5245 = vperm.xlu2 %6278, %v10219_v18   ;;  %6281 = vset.pattern.permute.xlu1 %v10209_v23  ;;  %v3864_v16 = vrot.slane %v3863_v15, 1  ;;  %v4615_v62 = vsel %vm1747_vm0, %v4521_v36, 0.0  ;;  %v8948_v33 = vpop.permute.xlu2 %1918  ;;  %v4625_v20 = vrot.slane %v4624_v48, 2  ;;  %v5063_v23 = vsel %vm1747_vm0, %v5017_v10, 0.0  ;;  %v10223_v18 = vld [vmem:[#allocation91_spill] sm:$0xff] }
 0x556   : > { %5249 = vperm.xlu1 %6281, %v10186_v22   ;;  %v4871_v58 = vadd.f32 %v4870_v59, %v4869_v39  ;;  %v4616_v13 = vrot.slane %v4615_v62, 4  ;;  %v4812_v27 = vrot.slane %v4811_v21, 4  ;;  %v1931_v40 = vmul.f32 %v8941_v9, %v10222_v53 }
 0x557   : > { %v3865_v45 = vadd.f32 %v3864_v16, %v3863_v15  ;;  %v3002_v55 = vmul.f32 %v8941_v9, %v10223_v18  ;;  %v3872_v31 = vadd.f32 %v3871_v51, %v3870_v29  ;;  %v4309_v37 = vadd.f32 %v4308_v42, %v4307_v7 }
 0x558   : > { %v4872_v36 = vrot.slane %v4871_v58, 1  ;;  %v4617_v30 = vadd.f32 %v4616_v13, %v4615_v62  ;;  %v2298_v34 = vsel %vm1747_vm0, %v2246_v38, 0.0  ;;  %v1790_v52 = vsel %vm1747_vm0, %v1737_v63, 0.0  ;;  %v10225_v62 = vld [vmem:[#allocation6_spill] sm:$0xff]  ;;  %v10226_v13 = vld [vmem:[#allocation95_spill] sm:$0xff] }
 0x559   : > { %v3909_v35 = vsel %vm2079_vm2, %v3865_v45, %v8778_v50  ;;  %v4626_v39 = vadd.f32 %v4625_v20, %v4624_v48  ;;  %v3554_v15 = vrot.slane %v8923_v56, 2  ;;  %v4058_v16 = vrot.slane %v4057_v1, 2  ;;  %v10227_v45 = vld [vmem:[#allocation54_spill] sm:$0xff] }
 0x55a   : > { %v4873_v10 = vadd.f32 %v4872_v36, %v4871_v58  ;;  %v4618_v59 = vrot.slane %v4617_v30, 2  ;;  %v8961_v53 = vsel %vm2081_vm3, %v3872_v31, %v3909_v35  ;;  %v5064_v29 = vrot.slane %v5063_v23, 4 }
 0x55b   : > { %10224 = vst [vmem:[#allocation27_spill] sm:$0xff] %v8961_v53  ;;  %v1983_v51 = vsel %vm1747_vm0, %v1931_v40, 0.0  ;;  %v8965_v7 = vpop.permute.xlu1 %1723  ;;  %v4813_v42 = vadd.f32 %v4812_v27, %v4811_v21  ;;  %v3054_v38 = vsel %vm1747_vm0, %v3002_v55, 0.0  ;;  %v3303_v48 = vadd.f32 %v3302_v0, %v8912_v60 }
 0x55c   : > { %v4619_v63 = vadd.f32 %v4618_v59, %v4617_v30  ;;  %v8971_v50 = vsel %vm2079_vm2, %v4873_v10, %v8737_v19  ;;  %v2299_v20 = vrot.slane %v2298_v34, 4  ;;  %v1791_v58 = vrot.slane %v1790_v52, 4 }
 0x55d   : > { %5205 = vperm.xlu2 %6278, %v10225_v62   ;;  %v8978_v40 = vsel %vm2077_vm1, %v8895_v46, %v10227_v45  ;;  %v4310_v21 = vrot.slane %v4309_v37, 2  ;;  %v1984_v27 = vrot.slane %v1983_v51, 4  ;;  %v4627_v30 = vrot.slane %v4626_v39, 1 }
 0x55e   : > { %5253 = vperm.xlu1 %6281, %v10226_v13   ;;  %v4620_v18 = vrot.slane %v4619_v63, 1  ;;  %v8980_v55 = vpop.permute.xlu2 %2737  ;;  %v10228_v19 = vrot.slane %v8870_v57, 1  ;;  %v10229_v60 = vrot.slane %v8880_v4, 2  ;;  %v5065_v36 = vadd.f32 %v5064_v29, %v5063_v23 }
 0x55f   : > { %v3055_v35 = vrot.slane %v3054_v38, 4  ;;  %v3555_v10 = vadd.f32 %v3554_v15, %v8923_v56  ;;  %v4059_v46 = vadd.f32 %v4058_v16, %v4057_v1  ;;  %v4814_v59 = vrot.slane %v4813_v42, 2  ;;  %v10231_v56 = vld [vmem:[#allocation13_spill] sm:$0xff] }
 0x560   : > { %v2801_v31 = vadd.f32 %v10228_v19, %v8870_v57  ;;  %v2547_v0 = vadd.f32 %v10229_v60, %v8880_v4  ;;  %v4621_v62 = vadd.f32 %v4620_v18, %v4619_v63  ;;  %v3304_v45 = vrot.slane %v3303_v48, 1 }
 0x561   : > { %v2300_v53 = vadd.f32 %v2299_v20, %v2298_v34  ;;  %v1792_v6 = vadd.f32 %v1791_v58, %v1790_v52  ;;  %v3758_v61 = vmul.f32 %v8941_v9, %v10230_v54  ;;  %v4311_v17 = vadd.f32 %v4310_v21, %v4309_v37  ;;  %v10234_v20 = vld [vmem:[#allocation9_spill] sm:$0xff] }
 0x562   : > { %v1985_v47 = vadd.f32 %v1984_v27, %v1983_v51  ;;  %v4628_v57 = vadd.f32 %v4627_v30, %v4626_v39  ;;  %v4665_v4 = vsel %vm2079_vm2, %v4621_v62, %v8808_v25  ;;  %v2548_v23 = vrot.slane %v2547_v0, 1  ;;  %v9003_v51 = vld [vmem:[%s7463_s24 + $0x38] sm:$0xff]  ;;  %v10235_v27 = vld [vmem:[#allocation20_spill] sm:$0xff] }
 0x563   : > { %v5066_v29 = vrot.slane %v5065_v36, 2  ;;  %v3056_v19 = vadd.f32 %v3055_v35, %v3054_v38  ;;  %v2750_v1 = vmul.f32 %v8941_v9, %v10231_v56  ;;  %v3556_v15 = vrot.slane %v3555_v10, 1  ;;  %v10233_v38 = vld [vmem:[#allocation19_spill] sm:$0xff] }
 0x564   : > { %v4060_v16 = vrot.slane %v4059_v46, 1  ;;  %v4815_v34 = vadd.f32 %v4814_v59, %v4813_v42  ;;  %v8995_v52 = vpop.permute.xlu1 %2485  ;;  %v8999_v54 = vsel %vm2081_vm3, %v4628_v57, %v4665_v4  ;;  %v2301_v37 = vrot.slane %v2300_v53, 2  ;;  %v10237_v35 = vld [vmem:[#allocation15_spill] sm:$0xff] }
 0x565   : > { %5257 = vperm.xlu2 %6278, %v10159_v43   ;;  %10232 = vst [vmem:[#allocation46_spill] sm:$0xff] %v8999_v54  ;;  %v1793_v39 = vrot.slane %v1792_v6, 2  ;;  %v3810_v25 = vsel %vm1747_vm0, %v3758_v61, 0.0  ;;  %v1738_v63 = vmul.f32 %v9003_v51, %v10233_v38  ;;  %v3305_v58 = vadd.f32 %v3304_v45, %v3303_v48  ;;  %v10239_v54 = vld [vmem:[#allocation29_spill] sm:$0xff] }
 0x566   : > { %5213 = vperm.xlu1 %6281, %v10234_v20   ;;  %v4312_v42 = vrot.slane %v4311_v17, 1  ;;  %v1986_v21 = vrot.slane %v1985_v47, 2  ;;  %v9010_v43 = vsel %vm2079_vm2, %v2801_v31, %v10235_v27  ;;  %v5067_v30 = vadd.f32 %v5066_v29, %v5065_v36 }
 0x567   : > { %10236 = vst [vmem:[#allocation45_spill] sm:$0xff] %v9010_v43  ;;  %v3057_v18 = vrot.slane %v3056_v19, 2  ;;  %v2802_v60 = vsel %vm1747_vm0, %v2750_v1, 0.0  ;;  %v4514_v61 = vmul.f32 %v8941_v9, %v10237_v35  ;;  %v9015_v59 = vpop.permute.xlu2 %3493  ;;  %v9017_v62 = vadd.f32 %v2548_v23, %v2547_v0  ;;  %v10240_v0 = vld [vmem:[#allocation90_spill] sm:$0xff] }
 0x568   : > { %10238 = vst [vmem:[#allocation96_spill] sm:$0xff] %v9015_v59  ;;  %v3557_v57 = vadd.f32 %v3556_v15, %v3555_v10  ;;  %v4061_v4 = vadd.f32 %v4060_v16, %v4059_v46  ;;  %v3811_v48 = vrot.slane %v3810_v25, 4  ;;  %v4816_v45 = vrot.slane %v4815_v34, 1  ;;  %v10241_v15 = vld [vmem:[#allocation11_spill] sm:$0xff] }
 0x569   : > { %v2302_v56 = vadd.f32 %v2301_v37, %v2300_v53  ;;  %v1794_v38 = vadd.f32 %v1793_v39, %v1792_v6  ;;  %v1797_v31 = vsel %vm1747_vm0, %v1738_v63, 0.0  ;;  %v4313_v27 = vadd.f32 %v4312_v42, %v4311_v17  ;;  %v10242_v53 = vld [vmem:[#allocation60_spill] sm:$0xff]  ;;  %v10244_v17 = vld [vmem:[#allocation43_spill] sm:$0xff]  ;;  %v10246_v63 = vld [vmem:[#allocation49_spill] sm:$0xff] }
 0x56a   : > { %v1987_v36 = vadd.f32 %v1986_v21, %v1985_v47  ;;  %v2803_v29 = vrot.slane %v2802_v60, 4  ;;  %v3398_v1 = vsel %vm2079_vm2, %v3305_v58, %v10239_v54  ;;  %v5068_v43 = vrot.slane %v5067_v30, 1 }
 0x56b   : > { %v3058_v35 = vadd.f32 %v3057_v18, %v3056_v19  ;;  %v4566_v59 = vsel %vm1747_vm0, %v4514_v61, 0.0  ;;  %v1995_v23 = vrot.slane %v10240_v0, 1  ;;  %v3812_v10 = vadd.f32 %v3811_v48, %v3810_v25  ;;  %v10245_v19 = vld [vmem:[#allocation8_spill] sm:$0xff] }
 0x56c   : > { %v1798_v46 = vrot.slane %v1797_v31, 4  ;;  %v9027_v6 = vsel %vm2079_vm2, %v3557_v57, %v10242_v53  ;;  %v4154_v47 = vsel %vm2079_vm2, %v4061_v4, %v10244_v17  ;;  %v4817_v16 = vadd.f32 %v4816_v45, %v4815_v34  ;;  %v10249_v4 = vld [vmem:[#allocation86_spill] sm:$0xff] }
 0x56d   : > { %5217 = vperm.xlu2 %6278, %v10241_v15   ;;  %10243 = vst [vmem:[#allocation65_spill] sm:$0xff] %v9027_v6  ;;  %v2303_v37 = vrot.slane %v2302_v56, 1  ;;  %v1795_v54 = vrot.slane %v1794_v38, 1  ;;  %v9031_v39 = vpop.permute.xlu1 %3241  ;;  %v9036_v25 = vsel %vm2081_vm3, %v10246_v63, %v3398_v1  ;;  %v1988_v58 = vrot.slane %v1987_v36, 1  ;;  %v10251_v1 = vld [vmem:[#allocation100_spill] sm:$0xff] }
 0x56e   : > { %5221 = vperm.xlu1 %6281, %v10245_v19   ;;  %10247 = vst [vmem:[#allocation48_spill] sm:$0xff] %v9036_v25  ;;  %v2804_v42 = vadd.f32 %v2803_v29, %v2802_v60  ;;  %v4567_v21 = vrot.slane %v4566_v59, 4  ;;  %v9040_v18 = vsel %vm2079_vm2, %v4313_v27, %v8734_v44  ;;  %v5069_v61 = vadd.f32 %v5068_v43, %v5067_v30  ;;  %v10254_v29 = vld [vmem:[#allocation56_spill] sm:$0xff]  ;;  %v9057_v30 = vpop.permute.xlu0 %2489 }
 0x56f   : > { %10248 = vst [vmem:[#allocation101_spill] sm:$0xff] %v9040_v18  ;;  %v3059_v57 = vrot.slane %v3058_v35, 1  ;;  %v1996_v34 = vadd.f32 %v1995_v23, %v10240_v0  ;;  %v9045_v48 = vsel %vm2081_vm3, %v10249_v4, %v4154_v47  ;;  %v3813_v45 = vrot.slane %v3812_v10, 2  ;;  %v10257_v23 = vld [vmem:[#allocation58_spill] sm:$0xff] }
 0x570   : > { %10250 = vst [vmem:[#allocation67_spill] sm:$0xff] %v9045_v48  ;;  %v1799_v15 = vadd.f32 %v1798_v46, %v1797_v31  ;;  %v4250_v53 = vpop.permute.xlu2 %4249  ;;  %v10252_v17 = vrot.slane %v10251_v1, 1  ;;  %v10255_v44 = vrot.slane %v10254_v29, 1  ;;  %v2304_v43 = vadd.f32 %v2303_v37, %v2302_v56  ;;  %v10261_v37 = vld [vmem:[#allocation42_spill] sm:$0xff] }
 0x571   : > { %v1796_v0 = vadd.f32 %v1795_v54, %v1794_v38  ;;  %v10258_v47 = vrot.slane %v10257_v23, 1  ;;  %v4910_v31 = vsel %vm2079_vm2, %v4817_v16, %v8741_v24  ;;  %v2805_v46 = vrot.slane %v2804_v42, 2 }
 0x572   : > { %v9050_v60 = vadd.f32 %v10252_v17, %v10251_v1  ;;  %v9055_v27 = vadd.f32 %v10255_v44, %v10254_v29  ;;  %v4568_v4 = vadd.f32 %v4567_v21, %v4566_v59  ;;  %v4270_v1 = vmul.f32 %v4250_v53, %v8774_v5  ;;  %v10260_v29 = vld [vmem:[#allocation16_spill] sm:$0xff]  ;;  %v10267_v21 = vld [vmem:[#allocation10_spill] sm:$0xff] }
 0x573   : > { %v9062_v63 = vadd.f32 %v10258_v47, %v10257_v23  ;;  %v1989_v17 = vadd.f32 %v1988_v58, %v1987_v36  ;;  %v3060_v48 = vadd.f32 %v3059_v57, %v3058_v35  ;;  %v3506_v56 = vmul.f32 %v8941_v9, %v10260_v29  ;;  %v10266_v36 = vld [vmem:[#allocation21_spill] sm:$0xff]  ;;  %v10268_v57 = vld [vmem:[#allocation99_spill] sm:$0xff] }
 0x574   : > { %10253 = vst [vmem:[#allocation55_spill] sm:$0xff] %v9050_v60  ;;  %v10262_v38 = vrot.slane %v10261_v37, 1  ;;  %v9076_v44 = vsel %vm2079_vm2, %v5069_v61, %v8978_v40  ;;  %v3814_v23 = vadd.f32 %v3813_v45, %v3812_v10  ;;  %v1800_v24 = vrot.slane %v1799_v15, 2  ;;  %v10269_v10 = vld [vmem:[#allocation97_spill] sm:$0xff] }
 0x575   : > { %10256 = vst [vmem:[#allocation32_spill] sm:$0xff] %v9055_v27  ;;  %v4370_v59 = vsel %vm1747_vm0, %v4270_v1, 0.0  ;;  %v10265_v16 = vmov 15   ;;  %v2499_v35 = vmul.f32 %v9003_v51, %v10266_v36  ;;  %v9086_v40 = vsel %vm2081_vm3, %v2304_v43, %v10268_v57  ;;  %v10272_v43 = vld [vmem:[#allocation34_spill] sm:$0xff]  ;;  %v10273_v36 = vld [vmem:[#allocation57_spill] sm:$0xff] }
 0x576   : > { %10259 = vst [vmem:[#allocation69_spill] sm:$0xff] %v9062_v63  ;;  %v9072_v54 = vadd.f32 %v10262_v38, %v10261_v37  ;;  %6283 = vset.pattern.permute.xlu2 %v10265_v16  ;;  %v4371_v58 = vrot.slane %v4370_v59, 4  ;;  %5225 = vperm.xlu1 %6281, %v10267_v21   ;;  %v9090_v61 = vsel %vm2081_vm3, %v10269_v10, %v4910_v31  ;;  %v4569_v53 = vrot.slane %v4568_v4, 2  ;;  %v3998_v47 = vpop.permute.xlu1 %3997  ;;  %v9100_v37 = vld [vmem:[%s7463_s24 + $0x8] sm:$0xff] }
 0x577   : > { %10264 = vst [vmem:[#allocation93_spill] sm:$0xff] %v9076_v44  ;;  %5489 = vperm.xlu2 %6283, %v10214_v32   ;;  %v2806_v45 = vadd.f32 %v2805_v46, %v2804_v42  ;;  %v2082_v1 = vsel %vm2081_vm3, %v1989_v17, %v8863_v49  ;;  %v9096_v29 = vsel %vm2081_vm3, %v1796_v0, %v8797_v2  ;;  %v3558_v32 = vsel %vm1747_vm0, %v3506_v56, 0.0 }
 0x578   : > { %10263 = vst [vmem:[#allocation39_spill] sm:$0xff] %v9072_v54  ;;  %v2493_v38 = vmul.f32 %v9100_v37, %v10272_v43  ;;  %v4372_v31 = vadd.f32 %v4371_v58, %v4370_v59  ;;  %v9106_v42 = vsel %vm2081_vm3, %v3060_v48, %v10273_v36  ;;  %v3815_v46 = vrot.slane %v3814_v23, 1 }
 0x579   : > { %10270 = vst [vmem:[#allocation53_spill] sm:$0xff] %v9090_v61  ;;  %v1801_v57 = vadd.f32 %v1800_v24, %v1799_v15  ;;  %v1939_v49 = vmul.f32 %v8948_v33, %v8774_v5  ;;  %v4018_v2 = vmul.f32 %v3998_v47, %v8774_v5  ;;  %v2557_v0 = vsel %vm1747_vm0, %v2499_v35, 0.0  ;;  %v9114_v10 = vpop.permute.xlu2 %5005  ;;  %v9122_v24 = vld [vmem:[%s7463_s24 + $0x78] sm:$0xff]  ;;  %v10275_v47 = vld [vmem:[#allocation88_spill] sm:$0xff] }
 0x57a   : > { %10271 = vst [vmem:[#allocation81_spill] sm:$0xff] %v9100_v37  ;;  %v1745_v17 = vmul.f32 %v8965_v7, %v8774_v5  ;;  %v4373_v56 = vrot.slane %v4372_v31, 2  ;;  %v9117_v59 = vsel %vm2083_vm4, %v1996_v34, %v2082_v1  ;;  %v2807_v48 = vrot.slane %v2806_v45, 1  ;;  %v9128_v7 = vpop.permute.xlu0 %3245  ;;  %v10276_v1 = vld [vmem:[#allocation24_spill] sm:$0xff] }
 0x57b   : > { %10274 = vst [vmem:[#allocation70_spill] sm:$0xff] %v9106_v42  ;;  %v9119_v58 = vadd.f32 %v4569_v53, %v4568_v4  ;;  %v3559_v15 = vrot.slane %v3558_v32, 4  ;;  %v4118_v33 = vsel %vm1747_vm0, %v4018_v2, 0.0  ;;  %v2247_v35 = vmul.f32 %v9003_v51, %v10275_v47 }
 0x57c   : > { %v2515_v43 = vsel %vm1747_vm0, %v2493_v38, 0.0  ;;  %v4374_v36 = vadd.f32 %v4373_v56, %v4372_v31  ;;  %v4119_v37 = vrot.slane %v4118_v33, 4  ;;  %v9130_v61 = vadd.f32 %v3815_v46, %v3814_v23  ;;  %v10277_v38 = vld [vmem:[#allocation12_spill] sm:$0xff] }
 0x57d   : > { %v2558_v34 = vrot.slane %v2557_v0, 4  ;;  %v2039_v4 = vsel %vm1747_vm0, %v1939_v49, 0.0  ;;  %v1802_v53 = vrot.slane %v1801_v57, 1  ;;  %v1746_v54 = vmul.f32 %v10276_v1, %v9122_v24 }
 0x57e   : > { %v1846_v2 = vsel %vm1747_vm0, %v1745_v17, 0.0  ;;  %v4375_v63 = vrot.slane %v4374_v36, 1  ;;  %v4120_v44 = vadd.f32 %v4119_v37, %v4118_v33  ;;  %5229 = vperm.xlu1 %6281, %v10277_v38   ;;  %v9138_v47 = vadd.f32 %v2807_v48, %v2806_v45  ;;  %v10278_v38 = vld [vmem:[#allocation18_spill] sm:$0xff] }
 0x57f   : > { %5493 = vperm.xlu2 %6283, %v10210_v41   ;;  %v9141_v31 = vadd.f32 %v3559_v15, %v3558_v32  ;;  %v2516_v46 = vrot.slane %v2515_v43, 4  ;;  %v2305_v49 = vsel %vm1747_vm0, %v2247_v35, 0.0  ;;  %v2040_v56 = vrot.slane %v2039_v4, 4  ;;  %v4754_v17 = vpop.permute.xlu1 %4753 }
 0x580   : > { %v4376_v1 = vadd.f32 %v4375_v63, %v4374_v36  ;;  %v4121_v18 = vrot.slane %v4120_v44, 2  ;;  %v2559_v25 = vadd.f32 %v2558_v34, %v2557_v0  ;;  %v1847_v37 = vrot.slane %v1846_v2, 4  ;;  %v9155_v63 = vld [vmem:[%s7463_s24 + $0x68] sm:$0xff]  ;;  %v10281_v36 = vld [vmem:[#allocation59_spill] sm:$0xff] }
 0x581   : > { %v4774_v41 = vmul.f32 %v4754_v17, %v8774_v5  ;;  %v1803_v33 = vadd.f32 %v1802_v53, %v1801_v57  ;;  %v9147_v45 = vmul.f32 %v8941_v9, %v10278_v38  ;;  %v1853_v32 = vsel %vm1747_vm0, %v1746_v54, 0.0  ;;  %10280 = vst [vmem:[#allocation74_spill] sm:$0xff] %v9155_v63 }
 0x582   : > { %v4122_v48 = vadd.f32 %v4121_v18, %v4120_v44  ;;  %v9152_v15 = vsel %vm2081_vm3, %v4376_v1, %v8857_v12  ;;  %v2306_v35 = vrot.slane %v2305_v49, 4  ;;  %v5025_v0 = vmul.f32 %v9155_v63, %v10281_v36  ;;  %v2238_v53 = vpop.permute.xlu2 %2237 }
 0x583   : > { %10279 = vst [vmem:[#allocation79_spill] sm:$0xff] %v9152_v15  ;;  %v2517_v34 = vadd.f32 %v2516_v46, %v2515_v43  ;;  %v4874_v57 = vsel %vm1747_vm0, %v4774_v41, 0.0  ;;  %v2041_v17 = vadd.f32 %v2040_v56, %v2039_v4  ;;  %v2255_v54 = vmul.f32 %v2238_v53, %v9122_v24  ;;  %v9166_v15 = vpop.permute.xlu0 %4001  ;;  %v10283_v41 = vld [vmem:[#allocation5_spill] sm:$0xff] }
 0x584   : > { %v4123_v38 = vrot.slane %v4122_v48, 1  ;;  %v4875_v23 = vrot.slane %v4874_v57, 4  ;;  %v2560_v18 = vrot.slane %v2559_v25, 2  ;;  %v1854_v44 = vrot.slane %v1853_v32, 4  ;;  %10282 = vst [vmem:[#allocation72_spill] sm:$0xff] %v9166_v15 }
 0x585   : > { %v1848_v42 = vadd.f32 %v1847_v37, %v1846_v2  ;;  %v9163_v12 = vsel %vm2083_vm4, %v1803_v33, %v9096_v29  ;;  %v2506_v43 = vmul.f32 %v8995_v52, %v8774_v5  ;;  %v2307_v56 = vadd.f32 %v2306_v35, %v2305_v49 }
 0x586   : > { %v4124_v46 = vadd.f32 %v4123_v38, %v4122_v48  ;;  %v4876_v4 = vadd.f32 %v4875_v23, %v4874_v57  ;;  %6284 = vset.pattern.permute.xlu1 %v10265_v16  ;;  %v5119_v2 = vsel %vm1747_vm0, %v5025_v0, 0.0  ;;  %v2518_v37 = vrot.slane %v2517_v34, 2  ;;  %v10285_v23 = vld [vmem:[#allocation38_spill] sm:$0xff] }
 0x587   : > { %5501 = vperm.xlu2 %6283, %v10186_v22   ;;  %v5026_v29 = vmul.f32 %v9114_v10, %v8774_v5  ;;  %5453 = vperm.xlu1 %6284, %v10283_v41   ;;  %v2042_v33 = vrot.slane %v2041_v17, 2  ;;  %v2361_v53 = vsel %vm1747_vm0, %v2255_v54, 0.0  ;;  %v9181_v22 = vadd.f32 %v2560_v18, %v2559_v25 }
 0x588   : > { %v4877_v36 = vrot.slane %v4876_v4, 2  ;;  %v9179_v52 = vsel %vm2081_vm3, %v4124_v46, %v8931_v14  ;;  %v1855_v16 = vadd.f32 %v1854_v44, %v1853_v32  ;;  %v2498_v49 = vmul.f32 %v8941_v9, %v10285_v23  ;;  %v1923_v10 = vpop.permute.xlu1 %1922 }
 0x589   : > { %10284 = vst [vmem:[#allocation14_spill] sm:$0xff] %v9179_v52  ;;  %v2507_v48 = vmul.f32 %v9057_v30, %v9122_v24  ;;  %v1849_v35 = vrot.slane %v1848_v42, 2  ;;  %v2606_v0 = vsel %vm1747_vm0, %v2506_v43, 0.0  ;;  %v1940_v38 = vmul.f32 %v1923_v10, %v9122_v24  ;;  %v10286_v52 = vld [vmem:[#allocation7_spill] sm:$0xff] }
 0x58a   : > { %v4878_v57 = vadd.f32 %v4877_v36, %v4876_v4  ;;  %v5120_v54 = vrot.slane %v5119_v2, 4  ;;  %v2519_v41 = vadd.f32 %v2518_v37, %v2517_v34  ;;  %v5126_v14 = vsel %vm1747_vm0, %v5026_v29, 0.0 }
 0x58b   : > { %v2362_v25 = vrot.slane %v2361_v53, 4  ;;  %v2308_v18 = vrot.slane %v2307_v56, 2  ;;  %v2043_v32 = vadd.f32 %v2042_v33, %v2041_v17  ;;  %v2046_v46 = vsel %vm1747_vm0, %v1940_v38, 0.0 }
 0x58c   : > { %v4879_v44 = vrot.slane %v4878_v57, 1  ;;  %v9191_v23 = vpop.permute.xlu2 %2993  ;;  %v2550_v30 = vsel %vm1747_vm0, %v2498_v49, 0.0  ;;  %v2613_v1 = vsel %vm1747_vm0, %v2507_v48, 0.0  ;;  %v2607_v43 = vrot.slane %v2606_v0, 4  ;;  %v9197_v49 = vpop.permute.xlu0 %4757 }
 0x58d   : > { %v2047_v4 = vrot.slane %v2046_v46, 4  ;;  %v1856_v36 = vrot.slane %v1855_v16, 2  ;;  %v1850_v10 = vadd.f32 %v1849_v35, %v1848_v42  ;;  %v5127_v63 = vrot.slane %v5126_v14, 4  ;;  %10287 = vst [vmem:[#allocation64_spill] sm:$0xff] %v9197_v49  ;;  %v10289_v42 = vld [vmem:[#allocation26_spill] sm:$0xff] }
 0x58e   : > { %v4880_v34 = vadd.f32 %v4879_v44, %v4878_v57  ;;  %v5121_v37 = vadd.f32 %v5120_v54, %v5119_v2  ;;  %v2520_v29 = vrot.slane %v2519_v41, 1  ;;  %v2363_v17 = vadd.f32 %v2362_v25, %v2361_v53 }
 0x58f   : > { %5505 = vperm.xlu2 %6283, %v10226_v13   ;;  %v2048_v33 = vadd.f32 %v2047_v4, %v2046_v46  ;;  %5461 = vperm.xlu1 %6284, %v10286_v52   ;;  %v2551_v38 = vrot.slane %v2550_v30, 4  ;;  %v2614_v27 = vrot.slane %v2613_v1, 4  ;;  %v2044_v48 = vrot.slane %v2043_v32, 1 }
 0x590   : > { %v9201_v15 = vsel %vm2081_vm3, %v4880_v34, %v8971_v50  ;;  %v9205_v35 = vmul.f32 %v9003_v51, %v10289_v42  ;;  %v2758_v13 = vmul.f32 %v8980_v55, %v8774_v5  ;;  %v2608_v2 = vadd.f32 %v2607_v43, %v2606_v0  ;;  %v9212_v50 = vld [vmem:[%s7463_s24 + $0x60] sm:$0xff]  ;;  %v10290_v0 = vld [vmem:[#allocation28_spill] sm:$0xff] }
 0x591   : > { %10288 = vst [vmem:[#allocation98_spill] sm:$0xff] %v9201_v15  ;;  %v2049_v53 = vrot.slane %v2048_v33, 2  ;;  %v9209_v52 = vadd.f32 %v2308_v18, %v2307_v56  ;;  %v1857_v57 = vadd.f32 %v1856_v36, %v1855_v16  ;;  %v1851_v54 = vrot.slane %v1850_v10, 1  ;;  %v4998_v44 = vpop.permute.xlu1 %4997 }
 0x592   : > { %v5128_v25 = vadd.f32 %v5127_v63, %v5126_v14  ;;  %v5122_v46 = vrot.slane %v5121_v37, 2  ;;  %v2364_v4 = vrot.slane %v2363_v17, 2  ;;  %v5024_v34 = vmul.f32 %v9212_v50, %v4998_v44 }
 0x593   : > { %v2050_v49 = vadd.f32 %v2049_v53, %v2048_v33  ;;  %v2521_v42 = vadd.f32 %v2520_v29, %v2519_v41  ;;  %v2552_v15 = vadd.f32 %v2551_v38, %v2550_v30  ;;  %v2615_v6 = vadd.f32 %v2614_v27, %v2613_v1 }
 0x594   : > { %v2045_v60 = vadd.f32 %v2044_v48, %v2043_v32  ;;  %v2858_v5 = vsel %vm1747_vm0, %v2758_v13, 0.0  ;;  %v2609_v55 = vrot.slane %v2608_v2, 2  ;;  %v5112_v56 = vsel %vm1747_vm0, %v5024_v34, 0.0  ;;  %v10291_v32 = vld [vmem:[#allocation85_spill] sm:$0xff] }
 0x595   : > { %v9217_v16 = vpop.permute.xlu2 %3749  ;;  %v2051_v63 = vrot.slane %v2050_v49, 1  ;;  %v3003_v14 = vmul.f32 %v9003_v51, %v10290_v0  ;;  %v1852_v18 = vadd.f32 %v1851_v54, %v1850_v10  ;;  %v5129_v43 = vrot.slane %v5128_v25, 2 }
 0x596   : > { %v5113_v36 = vrot.slane %v5112_v56, 4  ;;  %v1858_v41 = vrot.slane %v1857_v57, 1  ;;  %v5123_v30 = vadd.f32 %v5122_v46, %v5121_v37  ;;  %v2365_v27 = vadd.f32 %v2364_v4, %v2363_v17  ;;  %v10292_v4 = vld [vmem:[#allocation22_spill] sm:$0xff] }
 0x597   : > { %5465 = vperm.xlu2 %6283, %v10234_v20   ;;  %5513 = vperm.xlu1 %6284, %v8046_v11   ;;  %v2052_v1 = vadd.f32 %v2051_v63, %v2050_v49  ;;  %v2638_v29 = vsel %vm2071_vm13, %v2521_v42, %v10291_v32  ;;  %v2859_v33 = vrot.slane %v2858_v5, 4  ;;  %v2090_v48 = vsel %vm2081_vm3, %v2045_v60, %v8769_v28  ;;  %v9228_v20 = vpop.permute.xlu0 %5233 }
 0x598   : > { %v5114_v38 = vadd.f32 %v5113_v36, %v5112_v56  ;;  %v2553_v13 = vrot.slane %v2552_v15, 2  ;;  %v2616_v10 = vrot.slane %v2615_v6, 2  ;;  %v2610_v53 = vadd.f32 %v2609_v55, %v2608_v2 }
 0x599   : > { %v2091_v54 = vsel %vm2083_vm4, %v2052_v1, %v2090_v48  ;;  %v5130_v37 = vadd.f32 %v5129_v43, %v5128_v25  ;;  %v3011_v11 = vmul.f32 %v9191_v23, %v9122_v24  ;;  %v2147_v49 = vsel %vm2081_vm3, %v1852_v18, %v8832_v3 }
 0x59a   : > { %v5115_v17 = vrot.slane %v5114_v38, 2  ;;  %5917 = vmatpush.xpose.msk.msra.mxu3 %vm1747_vm0, %v2091_v54  ;;  %v2310_v44 = vrot.slane %v9209_v52, 1  ;;  %v5124_v28 = vrot.slane %v5123_v30, 1  ;;  %v2366_v60 = vrot.slane %v2365_v27, 1  ;;  %v2742_v46 = vpop.permute.xlu1 %2741 }
 0x59b   : > { %v1859_v2 = vadd.f32 %v1858_v41, %v1857_v57  ;;  %v2639_v34 = vsel %vm2073_vm14, %v10292_v4, %v2638_v29  ;;  %v2860_v42 = vadd.f32 %v2859_v33, %v2858_v5  ;;  %v2759_v23 = vmul.f32 %v2742_v46, %v9122_v24  ;;  %v9252_v5 = vld [vmem:[%s7463_s24 + $0x70] sm:$0xff]  ;;  %v10294_v46 = vld [vmem:[#allocation23_spill] sm:$0xff] }
 0x59c   : > { %v5116_v25 = vadd.f32 %v5115_v17, %v5114_v38  ;;  %v2554_v55 = vadd.f32 %v2553_v13, %v2552_v15  ;;  %v2617_v56 = vadd.f32 %v2616_v10, %v2615_v6  ;;  %v2611_v63 = vrot.slane %v2610_v53, 1  ;;  %v5916_v6 = vld [vmem:[%s9759_s9 + $0x8] sm:$0xff]  ;;  %v10295_v4 = vld [vmem:[#allocation83_spill] sm:$0xff] }
 0x59d   : > { %v2148_v0 = vsel %vm2083_vm4, %v1859_v2, %v2147_v49  ;;  %v5131_v3 = vrot.slane %v5130_v37, 1  ;;  %v3117_v18 = vsel %vm1747_vm0, %v3011_v11, 0.0  ;;  %v2865_v36 = vsel %vm1747_vm0, %v2759_v23, 0.0  ;;  %v10296_v23 = vld [vmem:[#allocation51_spill] sm:$0xff] }
 0x59e   : > { %v5117_v43 = vrot.slane %v5116_v25, 1  ;;  %v9243_v57 = vpop.permute.xlu2 %4505  ;;  %5918 = vmatpush.xpose.msk.msra.mxu3 %vm1747_vm0, %v9117_v59  ;;  %v3061_v15 = vsel %vm1747_vm0, %v3003_v14, 0.0  ;;  %v3262_v41 = vmul.f32 %v9252_v5, %v9031_v39  ;;  %v2367_v1 = vadd.f32 %v2366_v60, %v2365_v27  ;;  %v10293_v14 = vld [vmem:[#allocation35_spill] sm:$0xff] }
 0x59f   : > { %5473 = vperm.xlu2 %6283, %v10245_v19   ;;  %v2866_v32 = vrot.slane %v2865_v36, 4  ;;  %5477 = vperm.xlu1 %6284, %v10267_v21   ;;  %v5125_v19 = vadd.f32 %v5124_v28, %v5123_v30  ;;  %v2861_v29 = vrot.slane %v2860_v42, 2  ;;  %v2311_v33 = vadd.f32 %v2310_v44, %v9209_v52 }
 0x5a0   : > { %v5118_v59 = vadd.f32 %v5117_v43, %v5116_v25  ;;  %v2555_v38 = vrot.slane %v2554_v55, 1  ;;  %v3118_v48 = vrot.slane %v3117_v18, 4  ;;  %v2640_v10 = vsel %vm2075_vm15, %v10293_v14, %v2639_v34 }
 0x5a1   : > { %v2867_v13 = vadd.f32 %v2866_v32, %v2865_v36  ;;  %5919 = vmatmul.msk.f32.vlgmr.msra.gmra.mxu3 %vm1747_vm0, %v5916_v6  ;;  %v2618_v39 = vrot.slane %v2617_v56, 1  ;;  %v2612_v27 = vadd.f32 %v2611_v63, %v2610_v53  ;;  %v5132_v54 = vadd.f32 %v5131_v3, %v5130_v37  ;;  %v9272_v53 = vpop.permute.xlu0 %5201 }
 0x5a2   : > { %5920 = vmatpush.xpose.msk.msrb.mxu3 %vm1747_vm0, %v2148_v0  ;;  %v5168_v21 = vsel %vm2077_vm1, %v5118_v59, %v8688_v26  ;;  %v3362_v30 = vsel %vm1747_vm0, %v3262_v41, 0.0  ;;  %v2399_v52 = vsel %vm2083_vm4, %v2367_v1, %v8890_v8  ;;  %v3062_v49 = vrot.slane %v3061_v15, 4  ;;  %v10298_v1 = vld [vmem:[#allocation96_spill] sm:$0xff] }
 0x5a3   : > { %v2868_v11 = vrot.slane %v2867_v13, 2  ;;  %v5169_v17 = vsel %vm2079_vm2, %v5125_v19, %v5168_v21  ;;  %v3263_v44 = vmul.f32 %v9128_v7, %v9122_v24  ;;  %v2862_v37 = vadd.f32 %v2861_v29, %v2860_v42  ;;  %v3498_v28 = vpop.permute.xlu1 %3497  ;;  %v1860_v42 = vld [vmem:[%s9759_s9] sm:$0xff] }
 0x5a4   : > { %v9276_v26 = vsel %vm2081_vm3, %v5132_v54, %v5169_v17  ;;  %v3119_v60 = vadd.f32 %v3118_v48, %v3117_v18  ;;  %v2641_v2 = vsel %vm2077_vm1, %v10294_v46, %v2640_v10  ;;  %v5018_v7 = vmul.f32 %v8941_v9, %v10295_v4  ;;  %v10302_v4 = vld [vmem:[#allocation45_spill] sm:$0xff] }
 0x5a5   : > { %v2869_v8 = vadd.f32 %v2868_v11, %v2867_v13  ;;  %v2556_v34 = vadd.f32 %v2555_v38, %v2554_v55  ;;  %v3363_v25 = vrot.slane %v3362_v30, 4  ;;  %v2650_v63 = vsel %vm2081_vm3, %v2612_v27, %v10296_v23  ;;  %v10300_v27 = vld [vmem:[#allocation36_spill] sm:$0xff] }
 0x5a6   : > { %5921 = vmatpush.xpose.msk.msrb.mxu3 %vm1747_vm0, %v9163_v12  ;;  %v4314_v12 = vsel %vm1747_vm0, %v9147_v45, 0.0  ;;  %v10297_v0 = vmov 0   ;;  %v2562_v45 = vrot.slane %v9181_v22, 1  ;;  %v3313_v3 = vsel %vm1747_vm0, %v9205_v35, 0.0 }
 0x5a7   : > { %6285 = vset.pattern.permute.xlu2 %v10297_v0  ;;  %v2619_v18 = vadd.f32 %v2618_v39, %v2617_v56  ;;  %v9293_v43 = vpop.permute.xlu2 %5237  ;;  %v2392_v9 = vsel %vm2083_vm4, %v2311_v33, %v9086_v40  ;;  %v3063_v55 = vadd.f32 %v3062_v49, %v3061_v15  ;;  %v3369_v36 = vsel %vm1747_vm0, %v3263_v44, 0.0 }
 0x5a8   : > { %v2863_v6 = vrot.slane %v2862_v37, 1  ;;  %v2642_v41 = vsel %vm2079_vm2, %v9017_v62, %v2641_v2  ;;  %v3514_v32 = vmul.f32 %v9252_v5, %v10298_v1  ;;  %v3120_v19 = vrot.slane %v3119_v60, 2 }
 0x5a9   : > { %v2870_v35 = vrot.slane %v2869_v8, 1  ;;  %5922 = vmatmul.msk.f32.vlgmr.msrb.gmra.mxu3 %vm1747_vm0, %v1860_v42  ;;  %v2651_v56 = vsel %vm2083_vm4, %v2619_v18, %v2650_v63  ;;  %v3314_v29 = vrot.slane %v3313_v3, 4  ;;  %v3364_v40 = vadd.f32 %v3363_v25, %v3362_v30  ;;  %v9322_v44 = vpop.permute.xlu0 %5209  ;;  %v10303_v25 = vld [vmem:[#allocation30_spill] sm:$0xff]  ;;  %v10304_v63 = vld [vmem:[#allocation41_spill] sm:$0xff] }
 0x5aa   : > { %5924 = vmatpush.xpose.msk.msra.mxu3 %vm1747_vm0, %v2399_v52  ;;  %v3515_v15 = vmul.f32 %v3498_v28, %v9122_v24  ;;  %v2643_v59 = vsel %vm2081_vm3, %v2556_v34, %v2642_v41  ;;  %v10299_v62 = vrot.slane %v9141_v31, 2  ;;  %v5070_v38 = vsel %vm1747_vm0, %v5018_v7, 0.0  ;;  %v10305_v41 = vld [vmem:[#allocation31_spill] sm:$0xff] }
 0x5ab   : > { %v3370_v48 = vrot.slane %v3369_v36, 4  ;;  %v2563_v13 = vadd.f32 %v2562_v45, %v9181_v22  ;;  %v4315_v14 = vrot.slane %v4314_v12, 4  ;;  %v3064_v10 = vrot.slane %v3063_v55, 2 }
 0x5ac   : > { %v3562_v33 = vadd.f32 %v10299_v62, %v9141_v31  ;;  %v2864_v39 = vadd.f32 %v2863_v6, %v2862_v37  ;;  %v9316_v54 = vsel %vm2081_vm3, %v9130_v61, %v10300_v27  ;;  %v3614_v21 = vsel %vm1747_vm0, %v3514_v32, 0.0  ;;  %v9319_v52 = vpop.permute.xlu1 %4253  ;;  %v5923_v61 = vld [vmem:[%s9759_s9 + $0x10] sm:$0xff]  ;;  %v5927_v27 = vld [vmem:[%s9759_s9 + $0x18] sm:$0xff] }
 0x5ad   : > { %v3121_v30 = vadd.f32 %v3120_v19, %v3119_v60  ;;  %v2871_v11 = vadd.f32 %v2870_v35, %v2869_v8  ;;  %v2644_v31 = vsel %vm2083_vm4, %v2563_v13, %v2643_v59  ;;  %v5071_v17 = vrot.slane %v5070_v38, 4  ;;  %v10308_v59 = vld [vmem:[#allocation62_spill] sm:$0xff] }
 0x5ae   : > { %5925 = vmatpush.xpose.msk.msra.mxu3 %vm1747_vm0, %v2392_v9  ;;  %v3315_v49 = vadd.f32 %v3314_v29, %v3313_v3  ;;  %v3365_v22 = vrot.slane %v3364_v40, 2  ;;  %v3621_v37 = vsel %vm1747_vm0, %v3515_v15, 0.0  ;;  %v10301_v28 = vrot.slane %v9119_v58, 1 }
 0x5af   : > { %v3563_v8 = vrot.slane %v3562_v33, 1  ;;  %v3371_v46 = vadd.f32 %v3370_v48, %v3369_v36  ;;  %v9332_v2 = vpop.permute.xlu2 %5245  ;;  %v2895_v7 = vsel %vm2081_vm3, %v9138_v47, %v10302_v4  ;;  %v4316_v34 = vadd.f32 %v4315_v14, %v4314_v12 }
 0x5b0   : > { %v4572_v60 = vadd.f32 %v10301_v28, %v9119_v58  ;;  %v4011_v42 = vmul.f32 %v9003_v51, %v10303_v25  ;;  %v3615_v23 = vrot.slane %v3614_v21, 4  ;;  %v2902_v0 = vsel %vm2081_vm3, %v2864_v39, %v10304_v63  ;;  %v10311_v25 = vld [vmem:[#allocation52_spill] sm:$0xff] }
 0x5b1   : > { %v3065_v45 = vadd.f32 %v3064_v10, %v3063_v55  ;;  %v3122_v3 = vrot.slane %v3121_v30, 1  ;;  %v3622_v18 = vrot.slane %v3621_v37, 4  ;;  %5926 = vmatmul.msk.f32.vlgmr.msra.gmra.mxu3 %vm1747_vm0, %v5923_v61  ;;  %v2903_v58 = vsel %vm2083_vm4, %v2871_v11, %v2902_v0  ;;  %v10306_v55 = vld [vmem:[#allocation55_spill] sm:$0xff]  ;;  %v10309_v11 = vld [vmem:[#allocation77_spill] sm:$0xff] }
 0x5b2   : > { %5928 = vmatpush.xpose.msk.msrb.mxu3 %vm1747_vm0, %v2651_v56  ;;  %v5072_v9 = vadd.f32 %v5071_v17, %v5070_v38  ;;  %v3316_v36 = vrot.slane %v3315_v49, 2  ;;  %v3366_v6 = vadd.f32 %v3365_v22, %v3364_v40  ;;  %v3767_v47 = vmul.f32 %v9217_v16, %v9122_v24  ;;  %v10307_v56 = vld [vmem:[#allocation33_spill] sm:$0xff] }
 0x5b3   : > { %v3564_v12 = vadd.f32 %v3563_v8, %v3562_v33  ;;  %v4767_v1 = vmul.f32 %v9003_v51, %v10305_v41  ;;  %v3372_v32 = vrot.slane %v3371_v46, 2  ;;  %v2896_v19 = vsel %vm2083_vm4, %v10306_v55, %v2895_v7 }
 0x5b4   : > { %v4317_v35 = vrot.slane %v4316_v34, 2  ;;  %v3759_v29 = vmul.f32 %v9003_v51, %v10307_v56  ;;  %v3616_v15 = vadd.f32 %v3615_v23, %v3614_v21  ;;  %v9354_v40 = vsel %vm2081_vm3, %v4572_v60, %v10308_v59  ;;  %v9372_v60 = vpop.permute.xlu0 %5261 }
 0x5b5   : > { %v4069_v16 = vsel %vm1747_vm0, %v4011_v42, 0.0  ;;  %v3066_v62 = vrot.slane %v3065_v45, 1  ;;  %v3123_v33 = vadd.f32 %v3122_v3, %v3121_v30  ;;  %v3623_v38 = vadd.f32 %v3622_v18, %v3621_v37 }
 0x5b6   : > { %5929 = vmatpush.xpose.msk.msrb.mxu3 %vm1747_vm0, %v2644_v31  ;;  %v5073_v48 = vrot.slane %v5072_v9, 2  ;;  %v3317_v13 = vadd.f32 %v3316_v36, %v3315_v49  ;;  %v3367_v14 = vrot.slane %v3366_v6, 1  ;;  %v3873_v10 = vsel %vm1747_vm0, %v3767_v47, 0.0  ;;  %v9359_v39 = vpop.permute.xlu1 %5241  ;;  %v10310_v49 = vld [vmem:[#allocation65_spill] sm:$0xff] }
 0x5b7   : > { %v4825_v21 = vsel %vm1747_vm0, %v4767_v1, 0.0  ;;  %v4515_v31 = vmul.f32 %v9003_v51, %v10309_v11  ;;  %v3373_v30 = vadd.f32 %v3372_v32, %v3371_v46  ;;  %v9367_v17 = vpop.permute.xlu2 %5205  ;;  %v3651_v22 = vsel %vm2081_vm3, %v3564_v12, %v10310_v49  ;;  %v10313_v12 = vld [vmem:[#allocation64_spill] sm:$0xff] }
 0x5b8   : > { %v4318_v37 = vadd.f32 %v4317_v35, %v4316_v34  ;;  %v4070_v61 = vrot.slane %v4069_v16, 4  ;;  %v3817_v28 = vsel %vm1747_vm0, %v3759_v29, 0.0  ;;  %v3617_v8 = vrot.slane %v3616_v15, 2  ;;  %v10314_v32 = vld [vmem:[#allocation32_spill] sm:$0xff] }
 0x5b9   : > { %v3874_v4 = vrot.slane %v3873_v10, 4  ;;  %v3624_v7 = vrot.slane %v3623_v38, 2  ;;  %5930 = vmatmul.msk.f32.vlgmr.msrb.gmra.mxu3 %vm1747_vm0, %v5927_v27  ;;  %v3155_v51 = vsel %vm2083_vm4, %v3123_v33, %v10311_v25  ;;  %v3067_v46 = vadd.f32 %v3066_v62, %v3065_v45 }
 0x5ba   : > { %5932 = vmatpush.xpose.msk.msra.mxu3 %vm1747_vm0, %v2903_v58  ;;  %v5074_v42 = vadd.f32 %v5073_v48, %v5072_v9  ;;  %v3318_v23 = vrot.slane %v3317_v13, 1  ;;  %v4826_v63 = vrot.slane %v4825_v21, 4  ;;  %v3368_v0 = vadd.f32 %v3367_v14, %v3366_v6  ;;  %v10312_v58 = vld [vmem:[#allocation72_spill] sm:$0xff] }
 0x5bb   : > { %v3818_v34 = vrot.slane %v3817_v28, 4  ;;  %v4573_v3 = vsel %vm1747_vm0, %v4515_v31, 0.0  ;;  %v3374_v18 = vrot.slane %v3373_v30, 1  ;;  %v4019_v36 = vmul.f32 %v10312_v58, %v9122_v24  ;;  %v9402_v31 = vld [vmem:[%s7463_s24 + $0x40] sm:$0xff] }
 0x5bc   : > { %v4071_v47 = vadd.f32 %v4070_v61, %v4069_v16  ;;  %v4775_v41 = vmul.f32 %v10313_v12, %v9122_v24  ;;  %v3618_v1 = vadd.f32 %v3617_v8, %v3616_v15  ;;  %v9385_v45 = vsel %vm2083_vm4, %v10314_v32, %v3651_v22  ;;  %v5931_v15 = vld [vmem:[%s9759_s9 + $0x20] sm:$0xff] }
 0x5bd   : > { %v4319_v9 = vrot.slane %v4318_v37, 1  ;;  %v3875_v6 = vadd.f32 %v3874_v4, %v3873_v10  ;;  %v3625_v55 = vadd.f32 %v3624_v7, %v3623_v38  ;;  %v5075_v56 = vrot.slane %v5074_v42, 1  ;;  %v10316_v16 = vld [vmem:[#allocation63_spill] sm:$0xff] }
 0x5be   : > { %5933 = vmatpush.xpose.msk.msra.mxu3 %vm1747_vm0, %v2896_v19  ;;  %v10315_v19 = vld [vmem:[#allocation70_spill] sm:$0xff]  ;;  %v4827_v29 = vadd.f32 %v4826_v63, %v4825_v21  ;;  %v4574_v59 = vrot.slane %v4573_v3, 4  ;;  %v3406_v62 = vsel %vm2081_vm3, %v3368_v0, %v10316_v16  ;;  %v3819_v33 = vadd.f32 %v3818_v34, %v3817_v28  ;;  %v9407_v61 = vld [vmem:[%s7463_s24] sm:$0xff]  ;;  %v9417_v0 = vld [vmem:[%s7463_s24 + $0x10] sm:$0xff] }
 0x5bf   : > { %v3148_v35 = vsel %vm2083_vm4, %v3067_v46, %v10315_v19  ;;  %v3375_v48 = vadd.f32 %v3374_v18, %v3373_v30  ;;  %v4125_v38 = vsel %vm1747_vm0, %v4019_v36, 0.0  ;;  %v9396_v14 = vpop.permute.xlu2 %5257  ;;  %v9398_v10 = vpop.permute.xlu1 %5009  ;;  %v3319_v27 = vadd.f32 %v3318_v23, %v3317_v13  ;;  %v10318_v16 = vld [vmem:[#allocation71_spill] sm:$0xff] }
 0x5c0   : > { %v4072_v21 = vrot.slane %v4071_v47, 2  ;;  %v4881_v11 = vsel %vm1747_vm0, %v4775_v41, 0.0  ;;  %v5272_v49 = vmul.f32 %v9402_v31, %v9228_v20  ;;  %v3619_v22 = vrot.slane %v3618_v1, 1 }
 0x5c1   : > { %v5264_v30 = vmul.f32 %v9407_v61, %v9272_v53  ;;  %v3876_v28 = vrot.slane %v3875_v6, 2  ;;  %v3626_v8 = vrot.slane %v3625_v55, 1  ;;  %5934 = vmatmul.msk.f32.vlgmr.msra.gmra.mxu3 %vm1747_vm0, %v5931_v15  ;;  %v3407_v13 = vsel %vm2083_vm4, %v3375_v48, %v3406_v62 }
 0x5c2   : > { %5936 = vmatpush.xpose.msk.msrb.mxu3 %vm1747_vm0, %v3155_v51  ;;  %v4828_v4 = vrot.slane %v4827_v29, 2  ;;  %v4575_v7 = vadd.f32 %v4574_v59, %v4573_v3  ;;  %v4126_v25 = vrot.slane %v4125_v38, 4  ;;  %v5486_v51 = vpop.permute.xlu0 %5485  ;;  %v4271_v20 = vmul.f32 %v9319_v52, %v9122_v24  ;;  %v10317_v3 = vld [vmem:[#allocation48_spill] sm:$0xff] }
 0x5c3   : > { %v4320_v46 = vadd.f32 %v4319_v9, %v4318_v37  ;;  %v3820_v23 = vrot.slane %v3819_v33, 2  ;;  %v4882_v63 = vrot.slane %v4881_v11, 4  ;;  %v5266_v53 = vmul.f32 %v9417_v0, %v9322_v44  ;;  %v5935_v44 = vld [vmem:[%s9759_s9 + $0x28] sm:$0xff] }
 0x5c4   : > { %v5076_v34 = vadd.f32 %v5075_v56, %v5074_v42  ;;  %v5336_v18 = vsel %vm1747_vm0, %v5272_v49, 0.0  ;;  %v3620_v58 = vadd.f32 %v3619_v22, %v3618_v1  ;;  %v3400_v36 = vsel %vm2083_vm4, %v3319_v27, %v10317_v3  ;;  %v10321_v3 = vld [vmem:[#allocation69_spill] sm:$0xff] }
 0x5c5   : > { %v4073_v12 = vadd.f32 %v4072_v21, %v4071_v47  ;;  %v5280_v52 = vsel %vm1747_vm0, %v5264_v30, 0.0  ;;  %v3877_v41 = vadd.f32 %v3876_v28, %v3875_v6  ;;  %v3627_v32 = vadd.f32 %v3626_v8, %v3625_v55  ;;  %v10320_v8 = vld [vmem:[#allocation93_spill] sm:$0xff] }
 0x5c6   : > { %5937 = vmatpush.xpose.msk.msrb.mxu3 %vm1747_vm0, %v3148_v35  ;;  %v4829_v37 = vadd.f32 %v4828_v4, %v4827_v29  ;;  %v4576_v9 = vrot.slane %v4575_v7, 2  ;;  %v4127_v19 = vadd.f32 %v4126_v25, %v4125_v38  ;;  %v4377_v35 = vsel %vm1747_vm0, %v4271_v20, 0.0 }
 0x5c7   : > { %v3821_v42 = vadd.f32 %v3820_v23, %v3819_v33  ;;  %v4883_v1 = vadd.f32 %v4882_v63, %v4881_v11  ;;  %v5337_v56 = vrot.slane %v5336_v18, 4  ;;  %v5294_v47 = vsel %vm1747_vm0, %v5266_v53, 0.0  ;;  %v9431_v59 = vpop.permute.xlu2 %5217 }
 0x5c8   : > { %v5281_v6 = vrot.slane %v5280_v52, 4  ;;  %v5279_v55 = vmul.f32 %v9372_v60, %v9122_v24  ;;  %v4523_v29 = vmul.f32 %v9243_v57, %v9122_v24  ;;  %v9437_v15 = vpop.permute.xlu1 %5249  ;;  %v3658_v62 = vsel %vm2081_vm3, %v3620_v58, %v10318_v16  ;;  %v10319_v60 = vld [vmem:[#allocation101_spill] sm:$0xff] }
 0x5c9   : > { %v4074_v48 = vrot.slane %v4073_v12, 1  ;;  %v3878_v33 = vrot.slane %v3877_v41, 1  ;;  %v4378_v38 = vrot.slane %v4377_v35, 4  ;;  %5938 = vmatmul.msk.f32.vlgmr.msrb.gmra.mxu3 %vm1747_vm0, %v5935_v44  ;;  %v3659_v27 = vsel %vm2083_vm4, %v3627_v32, %v3658_v62  ;;  %v10324_v62 = vld [vmem:[#allocation67_spill] sm:$0xff] }
 0x5ca   : > { %5940 = vmatpush.xpose.msk.msra.mxu3 %vm1747_vm0, %v3407_v13  ;;  %v4577_v21 = vadd.f32 %v4576_v9, %v4575_v7  ;;  %v4128_v11 = vrot.slane %v4127_v19, 2  ;;  %v5295_v49 = vrot.slane %v5294_v47, 4  ;;  %v4407_v57 = vsel %vm2081_vm3, %v4320_v46, %v10319_v60  ;;  %v5498_v23 = vpop.permute.xlu0 %5497  ;;  %v10325_v60 = vld [vmem:[#allocation53_spill] sm:$0xff] }
 0x5cb   : > { %v4830_v22 = vrot.slane %v4829_v37, 1  ;;  %v3822_v30 = vrot.slane %v3821_v42, 1  ;;  %v4884_v28 = vrot.slane %v4883_v1, 2  ;;  %v5163_v13 = vsel %vm2081_vm3, %v5076_v34, %v10320_v8 }
 0x5cc   : > { %v5338_v4 = vadd.f32 %v5337_v56, %v5336_v18  ;;  %v5282_v25 = vadd.f32 %v5281_v6, %v5280_v52  ;;  %v5385_v20 = vsel %vm1747_vm0, %v5279_v55, 0.0  ;;  %v4629_v7 = vsel %vm1747_vm0, %v4523_v29, 0.0  ;;  %v5939_v18 = vld [vmem:[%s9759_s9 + $0x30] sm:$0xff] }
 0x5cd   : > { %v3879_v63 = vadd.f32 %v3878_v33, %v3877_v41  ;;  %v4379_v53 = vadd.f32 %v4378_v38, %v4377_v35  ;;  %v4075_v58 = vadd.f32 %v4074_v48, %v4073_v12  ;;  %v4578_v46 = vrot.slane %v4577_v21, 1  ;;  %v10322_v35 = vld [vmem:[#allocation39_spill] sm:$0xff] }
 0x5ce   : > { %5941 = vmatpush.xpose.msk.msra.mxu3 %vm1747_vm0, %v3400_v36  ;;  %v9452_v36 = vsel %vm2083_vm4, %v10321_v3, %v4407_v57  ;;  %v4129_v32 = vadd.f32 %v4128_v11, %v4127_v19  ;;  %v5296_v9 = vadd.f32 %v5295_v49, %v5294_v47  ;;  %v5524_v34 = vmul.f32 %v9402_v31, %v5486_v51  ;;  %v9481_v11 = vld [vmem:[%s7463_s24 + $0x50] sm:$0xff] }
 0x5cf   : > { %v5386_v52 = vrot.slane %v5385_v20, 4  ;;  %v4630_v41 = vrot.slane %v4629_v7, 4  ;;  %v4831_v12 = vadd.f32 %v4830_v22, %v4829_v37  ;;  %v9462_v44 = vsel %vm2083_vm4, %v10322_v35, %v5163_v13  ;;  %v10323_v37 = vld [vmem:[#allocation27_spill] sm:$0xff] }
 0x5d0   : > { %v4885_v56 = vadd.f32 %v4884_v28, %v4883_v1  ;;  %v5339_v6 = vrot.slane %v5338_v4, 2  ;;  %v5283_v19 = vrot.slane %v5282_v25, 2  ;;  %v5254_v31 = vpop.permute.xlu1 %5253  ;;  %v3823_v51 = vadd.f32 %v3822_v30, %v3821_v42 }
 0x5d1   : > { %v9464_v47 = vpop.permute.xlu2 %5489  ;;  %v4380_v29 = vrot.slane %v4379_v53, 2  ;;  %5942 = vmatmul.msk.f32.vlgmr.msra.gmra.mxu3 %vm1747_vm0, %v5939_v18  ;;  %v3911_v16 = vsel %vm2083_vm4, %v3879_v63, %v10323_v37  ;;  %v9476_v1 = vsel %vm2083_vm4, %v4075_v58, %v10324_v62  ;;  %v4130_v48 = vrot.slane %v4129_v32, 1 }
 0x5d2   : > { %5944 = vmatpush.xpose.msk.msrb.mxu3 %vm1747_vm0, %v3659_v27  ;;  %v5297_v33 = vrot.slane %v5296_v9, 2  ;;  %v5588_v42 = vsel %vm1747_vm0, %v5524_v34, 0.0  ;;  %v4579_v38 = vadd.f32 %v4578_v46, %v4577_v21  ;;  %v5387_v27 = vadd.f32 %v5386_v52, %v5385_v20  ;;  %v9494_v46 = vpop.permute.xlu0 %5457 }
 0x5d3   : > { %v5274_v49 = vmul.f32 %v9481_v11, %v9359_v39  ;;  %v9487_v57 = vsel %vm2083_vm4, %v4831_v12, %v10325_v60  ;;  %v4886_v22 = vrot.slane %v4885_v56, 1  ;;  %v5340_v30 = vadd.f32 %v5339_v6, %v5338_v4  ;;  %v5943_v4 = vld [vmem:[%s9759_s9 + $0x38] sm:$0xff] }
 0x5d4   : > { %v5284_v28 = vadd.f32 %v5283_v19, %v5282_v25  ;;  %v3904_v8 = vsel %vm2083_vm4, %v3823_v51, %v9316_v54  ;;  %v5589_v13 = vrot.slane %v5588_v42, 4  ;;  %v4381_v20 = vadd.f32 %v4380_v29, %v4379_v53  ;;  %v10327_v19 = vld [vmem:[#allocation14_spill] sm:$0xff] }
 0x5d5   : > { %v4131_v58 = vadd.f32 %v4130_v48, %v4129_v32  ;;  %v5298_v3 = vadd.f32 %v5297_v33, %v5296_v9  ;;  %v9502_v54 = vsel %vm2083_vm4, %v4579_v38, %v9354_v40  ;;  %v5388_v25 = vrot.slane %v5387_v27, 2 }
 0x5d6   : > { %5945 = vmatpush.xpose.msk.msrb.mxu3 %vm1747_vm0, %v9385_v45  ;;  %v9467_v45 = vld [vmem:[%s7463_s24 + $0x48] sm:$0xff]  ;;  %v5350_v34 = vsel %vm1747_vm0, %v5274_v49, 0.0  ;;  %v5341_v9 = vrot.slane %v5340_v30, 1  ;;  %v5285_v18 = vrot.slane %v5284_v28, 1  ;;  %v5590_v35 = vadd.f32 %v5589_v13, %v5588_v42  ;;  %v10328_v49 = vld [vmem:[#allocation74_spill] sm:$0xff] }
 0x5d7   : > { %v5273_v55 = vmul.f32 %v9467_v45, %v9293_v43  ;;  %v4631_v43 = vadd.f32 %v4630_v41, %v4629_v7  ;;  %v6376_v7 = vld [vmem:[%s7463_s24 + $0x58] sm:$0xff]  ;;  %v4382_v6 = vrot.slane %v4381_v20, 1  ;;  %v4163_v51 = vsel %vm2083_vm4, %v4131_v58, %v10327_v19 }
 0x5d8   : > { %v5275_v63 = vmul.f32 %v6376_v7, %v9332_v2  ;;  %v5527_v39 = vmul.f32 %v6376_v7, %v5498_v23  ;;  %v10326_v2 = vld [vmem:[#allocation81_spill] sm:$0xff]  ;;  %v9507_v23 = vadd.f32 %v4886_v22, %v4885_v56  ;;  %v5214_v12 = vpop.permute.xlu1 %5213  ;;  %v5351_v56 = vrot.slane %v5350_v34, 4 }
 0x5d9   : > { %v5343_v21 = vsel %vm1747_vm0, %v5273_v55, 0.0  ;;  %v4632_v53 = vrot.slane %v4631_v43, 2  ;;  %v5265_v32 = vmul.f32 %v10326_v2, %v9367_v17  ;;  %v9509_v41 = vpop.permute.xlu2 %5493  ;;  %5946 = vmatmul.msk.f32.vlgmr.msrb.gmra.mxu3 %vm1747_vm0, %v5943_v4  ;;  %v5299_v55 = vrot.slane %v5298_v3, 1 }
 0x5da   : > { %5948 = vmatpush.xpose.msk.msra.mxu3 %vm1747_vm0, %v3911_v16  ;;  %v5344_v52 = vrot.slane %v5343_v21, 4  ;;  %v5357_v40 = vsel %vm1747_vm0, %v5275_v63, 0.0  ;;  %v5609_v17 = vsel %vm1747_vm0, %v5527_v39, 0.0  ;;  %v5027_v29 = vmul.f32 %v9398_v10, %v9122_v24  ;;  %v9540_v39 = vld [vmem:[%s7463_s24 + $0x18] sm:$0xff] }
 0x5db   : > { %v5389_v37 = vadd.f32 %v5388_v25, %v5387_v27  ;;  %v4633_v16 = vadd.f32 %v4632_v53, %v4631_v43  ;;  %v5287_v62 = vsel %vm1747_vm0, %v5265_v32, 0.0  ;;  %v5276_v48 = vmul.f32 %v9212_v50, %v9437_v15  ;;  %v5947_v15 = vld [vmem:[%s9759_s9 + $0x40] sm:$0xff] }
 0x5dc   : > { %v9522_v33 = vadd.f32 %v5341_v9, %v5340_v30  ;;  %v5345_v42 = vadd.f32 %v5344_v52, %v5343_v21  ;;  %v5358_v38 = vrot.slane %v5357_v40, 4  ;;  %v5277_v60 = vmul.f32 %v10328_v49, %v5254_v31 }
 0x5dd   : > { %v9525_v22 = vadd.f32 %v5285_v18, %v5284_v28  ;;  %v5610_v13 = vrot.slane %v5609_v17, 4  ;;  %v4383_v24 = vadd.f32 %v4382_v6, %v4381_v20  ;;  %v5352_v10 = vadd.f32 %v5351_v56, %v5350_v34  ;;  %v5510_v20 = vpop.permute.xlu0 %5509  ;;  %v10329_v34 = vld [vmem:[#allocation79_spill] sm:$0xff] }
 0x5de   : > { %5949 = vmatpush.xpose.msk.msra.mxu3 %vm1747_vm0, %v3904_v8  ;;  %v5591_v8 = vrot.slane %v5590_v35, 2  ;;  %v5288_v27 = vrot.slane %v5287_v62, 4  ;;  %v5278_v43 = vmul.f32 %v9252_v5, %v9396_v14  ;;  %v5133_v7 = vsel %vm1747_vm0, %v5027_v29, 0.0  ;;  %v9560_v29 = vld [vmem:[%s7463_s24 + $0x28] sm:$0xff] }
 0x5df   : > { %v9535_v31 = vadd.f32 %v5299_v55, %v5298_v3  ;;  %v5390_v30 = vrot.slane %v5389_v37, 1  ;;  %v4634_v28 = vrot.slane %v4633_v16, 1  ;;  %v5364_v21 = vsel %vm1747_vm0, %v5276_v48, 0.0 }
 0x5e0   : > { %v5346_v63 = vrot.slane %v5345_v42, 2  ;;  %v5359_v58 = vadd.f32 %v5358_v38, %v5357_v40  ;;  %v5371_v14 = vsel %vm1747_vm0, %v5277_v60, 0.0  ;;  %v5222_v4 = vpop.permute.xlu1 %5221  ;;  %v9543_v25 = vadd.f32 %v5591_v8, %v5590_v35  ;;  %v6378_v35 = vld [vmem:[%s7463_s24 + $0x8] sm:$0xff]  ;;  %v6380_v60 = vld [vmem:[%s7463_s24 + $0x20] sm:$0xff] }
 0x5e1   : > { %v9545_v53 = vadd.f32 %v5610_v13, %v5609_v17  ;;  %v5134_v3 = vrot.slane %v5133_v7, 4  ;;  %5950 = vmatmul.msk.f32.vlgmr.msra.gmra.mxu3 %vm1747_vm0, %v5947_v15  ;;  %v4415_v2 = vsel %vm2083_vm4, %v4383_v24, %v10329_v34  ;;  %v5353_v32 = vrot.slane %v5352_v10, 2  ;;  %v9551_v6 = vpop.permute.xlu2 %5501  ;;  %v5951_v13 = vld [vmem:[%s9759_s9 + $0x48] sm:$0xff] }
 0x5e2   : > { %5952 = vmatpush.xpose.msk.msrb.mxu3 %vm1747_vm0, %v4163_v51  ;;  %v5289_v9 = vadd.f32 %v5288_v27, %v5287_v62  ;;  %v5378_v18 = vsel %vm1747_vm0, %v5278_v43, 0.0  ;;  %v5365_v52 = vrot.slane %v5364_v21, 4  ;;  %v5517_v40 = vmul.f32 %v6378_v35, %v9494_v46 }
 0x5e3   : > { %v4635_v19 = vadd.f32 %v4634_v28, %v4633_v16  ;;  %v5372_v51 = vrot.slane %v5371_v14, 4  ;;  %v5347_v55 = vadd.f32 %v5346_v63, %v5345_v42  ;;  %v5360_v17 = vrot.slane %v5359_v58, 2  ;;  %v10330_v28 = vld [vmem:[#allocation46_spill] sm:$0xff] }
 0x5e4   : > { %v5269_v62 = vmul.f32 %v9560_v29, %v5222_v4  ;;  %v5593_v48 = vrot.slane %v9543_v25, 1  ;;  %v5379_v38 = vrot.slane %v5378_v18, 4  ;;  %v5135_v49 = vadd.f32 %v5134_v3, %v5133_v7  ;;  %v9581_v4 = vld [vmem:[%s7463_s24 + $0x30] sm:$0xff] }
 0x5e5   : > { %v5612_v8 = vrot.slane %v9545_v53, 2  ;;  %v5354_v46 = vadd.f32 %v5353_v32, %v5352_v10  ;;  %v5290_v16 = vrot.slane %v5289_v9, 2  ;;  %v5366_v42 = vadd.f32 %v5365_v52, %v5364_v21 }
 0x5e6   : > { %5953 = vmatpush.xpose.msk.msrb.mxu3 %vm1747_vm0, %v9476_v1  ;;  %v5267_v1 = vmul.f32 %v9540_v39, %v5214_v12  ;;  %v9554_v12 = vadd.f32 %v5390_v30, %v5389_v37  ;;  %v5268_v37 = vmul.f32 %v6380_v60, %v9431_v59  ;;  %v9573_v24 = vsel %vm1747_vm0, %v5517_v40, 0.0 }
 0x5e7   : > { %v5530_v27 = vmul.f32 %v9252_v5, %v5510_v20  ;;  %v5373_v43 = vadd.f32 %v5372_v51, %v5371_v14  ;;  %v5348_v7 = vrot.slane %v5347_v55, 1  ;;  %v5361_v15 = vadd.f32 %v5360_v17, %v5359_v58  ;;  %v5470_v20 = vpop.permute.xlu0 %5469 }
 0x5e8   : > { %v5301_v56 = vsel %vm1747_vm0, %v5267_v1, 0.0  ;;  %v5315_v10 = vsel %vm1747_vm0, %v5269_v62, 0.0  ;;  %v5226_v30 = vpop.permute.xlu1 %5225  ;;  %v4667_v21 = vsel %vm2083_vm4, %v4635_v19, %v10330_v28  ;;  %v5136_v63 = vrot.slane %v5135_v49, 2 }
 0x5e9   : > { %v5302_v59 = vrot.slane %v5301_v56, 4  ;;  %v5308_v1 = vsel %vm1747_vm0, %v5268_v37, 0.0  ;;  %v5270_v3 = vmul.f32 %v9581_v4, %v5226_v30  ;;  %5954 = vmatmul.msk.f32.vlgmr.msrb.gmra.mxu3 %vm1747_vm0, %v5951_v13  ;;  %v5540_v5 = vrot.slane %v9573_v24, 4  ;;  %v5506_v51 = vpop.permute.xlu2 %5505 }
 0x5ea   : > { %5956 = vmatpush.xpose.msk.msra.mxu3 %vm1747_vm0, %v4415_v2  ;;  %v5355_v58 = vrot.slane %v5354_v46, 1  ;;  %v5291_v14 = vadd.f32 %v5290_v16, %v5289_v9  ;;  %v5367_v34 = vrot.slane %v5366_v42, 2  ;;  %v5374_v2 = vrot.slane %v5373_v43, 2 }
 0x5eb   : > { %v5303_v32 = vadd.f32 %v5302_v59, %v5301_v56  ;;  %v5322_v52 = vsel %vm1747_vm0, %v5270_v3, 0.0  ;;  %v9589_v35 = vsel %vm1747_vm0, %v5530_v27, 0.0  ;;  %v5349_v40 = vadd.f32 %v5348_v7, %v5347_v55  ;;  %v5955_v55 = vld [vmem:[%s9759_s9 + $0x50] sm:$0xff]  ;;  %v10331_v7 = vld [vmem:[#allocation98_spill] sm:$0xff] }
 0x5ec   : > { %v5309_v19 = vrot.slane %v5308_v1, 4  ;;  %v5323_v17 = vrot.slane %v5322_v52, 4  ;;  %v9591_v62 = vmul.f32 %v6380_v60, %v5470_v20  ;;  %v5137_v9 = vadd.f32 %v5136_v63, %v5135_v49  ;;  %v9608_v3 = vld [vmem:[%s7463_s24 + $0x38] sm:$0xff] }
 0x5ed   : > { %v5356_v16 = vadd.f32 %v5355_v58, %v5354_v46  ;;  %v5292_v13 = vrot.slane %v5291_v14, 1  ;;  %v5368_v30 = vadd.f32 %v5367_v34, %v5366_v42  ;;  %v5525_v56 = vmul.f32 %v9467_v45, %v9464_v47 }
 0x5ee   : > { %5957 = vmatpush.xpose.msk.msra.mxu3 %vm1747_vm0, %v9452_v36  ;;  %v5380_v36 = vadd.f32 %v5379_v38, %v5378_v18  ;;  %v5316_v18 = vrot.slane %v5315_v10, 4  ;;  %v5362_v38 = vrot.slane %v5361_v15, 1  ;;  %v5375_v27 = vadd.f32 %v5374_v2, %v5373_v43 }
 0x5ef   : > { %v5304_v60 = vrot.slane %v5303_v32, 2  ;;  %v4919_v49 = vsel %vm2083_vm4, %v9507_v23, %v10331_v7  ;;  %v5417_v46 = vsel %vm2071_vm13, %v5349_v40, %v9522_v33  ;;  %v5310_v42 = vadd.f32 %v5309_v19, %v5308_v1 }
 0x5f0   : > { %v5381_v37 = vrot.slane %v5380_v36, 2  ;;  %v5317_v59 = vadd.f32 %v5316_v18, %v5315_v10  ;;  %v5526_v47 = vmul.f32 %v9481_v11, %v9509_v41  ;;  %v5324_v45 = vadd.f32 %v5323_v17, %v5322_v52 }
 0x5f1   : > { %v5363_v28 = vadd.f32 %v5362_v38, %v5361_v15  ;;  %v5138_v63 = vrot.slane %v5137_v9, 1  ;;  %5958 = vmatmul.msk.f32.vlgmr.msra.gmra.mxu3 %vm1747_vm0, %v5955_v55  ;;  %v5418_v23 = vsel %vm2073_vm14, %v5356_v16, %v5417_v46  ;;  %v5293_v10 = vadd.f32 %v5292_v13, %v5291_v14  ;;  %v6383_v38 = vld [vmem:[%s7463_s24 + $0x68] sm:$0xff]  ;;  %v5959_v13 = vld [vmem:[%s9759_s9 + $0x58] sm:$0xff] }
 0x5f2   : > { %5960 = vmatpush.xpose.msk.msrb.mxu3 %vm1747_vm0, %v4667_v21  ;;  %v5382_v21 = vadd.f32 %v5381_v37, %v5380_v36  ;;  %v5369_v20 = vrot.slane %v5368_v30, 1  ;;  %v5595_v33 = vsel %vm1747_vm0, %v5525_v56, 0.0  ;;  %v5376_v11 = vrot.slane %v5375_v27, 1  ;;  %v5466_v37 = vpop.permute.xlu2 %5465 }
 0x5f3   : > { %v5305_v41 = vadd.f32 %v5304_v60, %v5303_v32  ;;  %v5318_v15 = vrot.slane %v5317_v59, 2  ;;  %v5311_v1 = vrot.slane %v5310_v42, 2  ;;  %v5602_v58 = vsel %vm1747_vm0, %v5526_v47, 0.0 }
 0x5f4   : > { %v5325_v34 = vrot.slane %v5324_v45, 2  ;;  %v5383_v18 = vrot.slane %v5382_v21, 1  ;;  %v5139_v52 = vadd.f32 %v5138_v63, %v5137_v9  ;;  %v5596_v40 = vrot.slane %v5595_v33, 4 }
 0x5f5   : > { %v5528_v14 = vmul.f32 %v9212_v50, %v9551_v6  ;;  %v5410_v19 = vsel %vm2071_vm13, %v5293_v10, %v9525_v22  ;;  %v5370_v17 = vadd.f32 %v5369_v20, %v5368_v30  ;;  %v5529_v32 = vmul.f32 %v6383_v38, %v5506_v51 }
 0x5f6   : > { %5961 = vmatpush.xpose.msk.msrb.mxu3 %vm1747_vm0, %v9502_v54  ;;  %v5230_v54 = vpop.permute.xlu1 %5229  ;;  %v5377_v9 = vadd.f32 %v5376_v11, %v5375_v27  ;;  %v5603_v56 = vrot.slane %v5602_v58, 4  ;;  %v5306_v55 = vrot.slane %v5305_v41, 1  ;;  %v5319_v60 = vadd.f32 %v5318_v15, %v5317_v59 }
 0x5f7   : > { %v5271_v43 = vmul.f32 %v9608_v3, %v5230_v54  ;;  %v5312_v50 = vadd.f32 %v5311_v1, %v5310_v42  ;;  %v5419_v6 = vsel %vm2075_vm15, %v5363_v28, %v5418_v23  ;;  %v5326_v22 = vadd.f32 %v5325_v34, %v5324_v45 }
 0x5f8   : > { %v5384_v7 = vadd.f32 %v5383_v18, %v5382_v21  ;;  %v5597_v51 = vadd.f32 %v5596_v40, %v5595_v33  ;;  %v5420_v27 = vsel %vm2077_vm1, %v5370_v17, %v5419_v6  ;;  %v5623_v47 = vsel %vm1747_vm0, %v5529_v32, 0.0 }
 0x5f9   : > { %v5329_v36 = vsel %vm1747_vm0, %v5271_v43, 0.0  ;;  %5962 = vmatmul.msk.f32.vlgmr.msrb.gmra.mxu3 %vm1747_vm0, %v5959_v13  ;;  %v5604_v45 = vadd.f32 %v5603_v56, %v5602_v58  ;;  %v5307_v54 = vadd.f32 %v5306_v55, %v5305_v41  ;;  %v5320_v28 = vrot.slane %v5319_v60, 1 }
 0x5fa   : > { %5964 = vmatpush.xpose.msk.msra.mxu3 %vm1747_vm0, %v4919_v49  ;;  %v5330_v2 = vrot.slane %v5329_v36, 4  ;;  %v5616_v49 = vsel %vm1747_vm0, %v5528_v14, 0.0  ;;  %v5421_v21 = vsel %vm2079_vm2, %v5377_v9, %v5420_v27  ;;  %v5313_v63 = vrot.slane %v5312_v50, 1  ;;  %v5474_v40 = vpop.permute.xlu2 %5473 }
 0x5fb   : > { %v5617_v43 = vrot.slane %v5616_v49, 4  ;;  %v5327_v23 = vrot.slane %v5326_v22, 1  ;;  %v5624_v20 = vrot.slane %v5623_v47, 4  ;;  %v5519_v33 = vmul.f32 %v9540_v39, %v5466_v37 }
 0x5fc   : > { %v5331_v16 = vadd.f32 %v5330_v2, %v5329_v36  ;;  %v5631_v11 = vrot.slane %v9589_v35, 4  ;;  %v5411_v41 = vsel %vm2073_vm14, %v9535_v31, %v5410_v19  ;;  %v5963_v36 = vld [vmem:[%s9759_s9 + $0x60] sm:$0xff]  ;;  %v5422_v1 = vsel %vm2081_vm3, %v5384_v7, %v5421_v21 }
 0x5fd   : > { %v5605_v58 = vrot.slane %v5604_v45, 2  ;;  %v5412_v39 = vsel %vm2075_vm15, %v5307_v54, %v5411_v41  ;;  %v5321_v34 = vadd.f32 %v5320_v28, %v5319_v60  ;;  %v5560_v2 = vsel %vm1747_vm0, %v9591_v62, 0.0 }
 0x5fe   : > { %5965 = vmatpush.xpose.msk.msra.mxu3 %vm1747_vm0, %v9487_v57  ;;  %v5332_v30 = vrot.slane %v5331_v16, 2  ;;  %v5454_v46 = vpop.permute.xlu1 %5453  ;;  %v5171_v57 = vsel %vm2083_vm4, %v5139_v52, %v9276_v26  ;;  %v5541_v26 = vadd.f32 %v5540_v5, %v9573_v24  ;;  %v5482_v24 = vpop.permute.xlu0 %5481  ;;  %v5598_v5 = vrot.slane %v5597_v51, 2 }
 0x5ff   : > { %v5516_v42 = vmul.f32 %v9407_v61, %v5454_v46  ;;  %v5314_v31 = vadd.f32 %v5313_v63, %v5312_v50  ;;  %v5618_v18 = vadd.f32 %v5617_v43, %v5616_v49  ;;  %v5328_v52 = vadd.f32 %v5327_v23, %v5326_v22  ;;  %v5967_v49 = vld [vmem:[%s9759_s9 + $0x68] sm:$0xff] }
 0x600   : > { %v5333_v59 = vadd.f32 %v5332_v30, %v5331_v16  ;;  %v5553_v14 = vsel %vm1747_vm0, %v5519_v33, 0.0  ;;  %v5423_v38 = vsel %vm2083_vm4, %v9554_v12, %v5422_v1  ;;  %v5523_v32 = vmul.f32 %v9608_v3, %v5482_v24 }
 0x601   : > { %v5532_v10 = vsel %vm1747_vm0, %v5516_v42, 0.0  ;;  %5966 = vmatmul.msk.f32.vlgmr.msra.gmra.mxu3 %vm1747_vm0, %v5963_v36  ;;  %v5413_v62 = vsel %vm2077_vm1, %v5314_v31, %v5412_v39  ;;  %v5599_v13 = vadd.f32 %v5598_v5, %v5597_v51  ;;  %v5606_v9 = vadd.f32 %v5605_v58, %v5604_v45  ;;  %v5971_v31 = vld [vmem:[%s9759_s9 + $0x70] sm:$0xff] }
 0x602   : > { %5968 = vmatpush.xpose.msk.msrb.mxu3 %vm1747_vm0, %v5171_v57  ;;  %v5334_v61 = vrot.slane %v5333_v59, 1  ;;  %v5533_v15 = vrot.slane %v5532_v10, 4  ;;  %v5521_v56 = vmul.f32 %v9560_v29, %v5474_v40  ;;  %v5414_v55 = vsel %vm2079_vm2, %v5321_v34, %v5413_v62 }
 0x603   : > { %v5619_v60 = vrot.slane %v5618_v18, 2  ;;  %v5554_v50 = vrot.slane %v5553_v14, 4  ;;  %v5415_v12 = vsel %vm2081_vm3, %v5328_v52, %v5414_v55  ;;  %v5542_v3 = vrot.slane %v5541_v26, 2 }
 0x604   : > { %v5335_v19 = vadd.f32 %v5334_v61, %v5333_v59  ;;  %v5534_v37 = vadd.f32 %v5533_v15, %v5532_v10  ;;  %v5594_v7 = vadd.f32 %v5593_v48, %v9543_v25  ;;  %v5632_v51 = vadd.f32 %v5631_v11, %v9589_v35  ;;  %v6384_v10 = vld [vmem:[%s7463_s24 + $0x78] sm:$0xff]  ;;  %s5724_s24 = scalar_lea.hbm %s9761_s11, %s5980_s23 }
 0x605   : > { %v5561_v46 = vrot.slane %v5560_v2, 4  ;;  %v5600_v57 = vrot.slane %v5599_v13, 1  ;;  %v5567_v27 = vsel %vm1747_vm0, %v5521_v56, 0.0  ;;  %v5581_v59 = vsel %vm1747_vm0, %v5523_v32, 0.0  ;;  %s5728_s15 = sshll.u32 %s5724_s24, 4  ;;  %s5729_s15 = int_to_ptr.hbm [resolvable:$true] %s5728_s15 }
 0x606   : > { %5969 = vmatpush.xpose.msk.msrb.mxu3 %vm1747_vm0, %v9462_v44  ;;  %v5625_v44 = vadd.f32 %v5624_v20, %v5623_v47  ;;  %v5462_v17 = vpop.permute.xlu1 %5461  ;;  %v5535_v29 = vrot.slane %v5534_v37, 2  ;;  %v5607_v42 = vrot.slane %v5606_v9, 1  ;;  %v5620_v45 = vadd.f32 %v5619_v60, %v5618_v18  ;;  %s6399_s0 = sshra.s32 %s5729_s15, 4  ;;  %s6400_s0 = int_to_ptr.hbm [resolvable:$true] %s6399_s0 }
 0x607   : > { %v5518_v16 = vmul.f32 %v9417_v0, %v5462_v17  ;;  %v5416_v0 = vsel %vm2083_vm4, %v5335_v19, %v5415_v12  ;;  %v5555_v25 = vadd.f32 %v5554_v50, %v5553_v14  ;;  %v5613_v48 = vadd.f32 %v5612_v8, %v9545_v53  ;;  %s6401_s1 = scalar_lea.hbm %s6400_s0, 8  ;;  %p6406_p1 = scmp.lt.s32.totalorder %s6400_s0, %s9761_s11 }
 0x608   : > { %v5626_v22 = vrot.slane %v5625_v44, 2  ;;  %v5543_v35 = vadd.f32 %v5542_v3, %v5541_v26  ;;  %v5633_v63 = vrot.slane %v5632_v51, 2  ;;  %v5568_v43 = vrot.slane %v5567_v27, 4  ;;  %p6402_p12 = scmp.ne.s32.totalorder %s6400_s0, %s6401_s1  ;;  %p6407_p2 = scmp.lt.s32.totalorder %s6405_s16, %s6401_s1 }
 0x609   : > { %v5546_v6 = vsel %vm1747_vm0, %v5518_v16, 0.0  ;;  %5970 = vmatmul.msk.f32.vlgmr.msrb.gmra.mxu3 %vm1747_vm0, %v5967_v49  ;;  %v5536_v23 = vadd.f32 %v5535_v29, %v5534_v37  ;;  %v5562_v33 = vadd.f32 %v5561_v46, %v5560_v2  ;;  %v5582_v61 = vrot.slane %v5581_v59, 4 }
 0x60a   : > { %5972 = vmatpush.xpose.msk.msra.mxu3 %vm1747_vm0, %v5423_v38  ;;  %v5547_v30 = vrot.slane %v5546_v6, 4  ;;  %v5627_v54 = vadd.f32 %v5626_v22, %v5625_v44  ;;  %v5601_v11 = vadd.f32 %v5600_v57, %v5599_v13  ;;  %v5608_v15 = vadd.f32 %v5607_v42, %v5606_v9  ;;  %p6403_p13 = pnand %p6402_p12, %p6582_p4  ;;  %p6408_p3 = por %p6407_p2, %p6406_p1 }
 0x60b   : > { %v5621_v36 = vrot.slane %v5620_v45, 1  ;;  %v5556_v1 = vrot.slane %v5555_v25, 2  ;;  %v5614_v8 = vrot.slane %v5613_v48, 1  ;;  %v5544_v26 = vrot.slane %v5543_v35, 1 }
 0x60c   : > { %v5548_v47 = vadd.f32 %v5547_v30, %v5546_v6  ;;  %v5628_v24 = vrot.slane %v5627_v54, 1  ;;  %v5634_v58 = vadd.f32 %v5633_v63, %v5632_v51  ;;  %v5569_v39 = vadd.f32 %v5568_v43, %v5567_v27  ;;  %p6404_p0 = pneg %p6403_p13 }
 0x60d   : > { %v5537_v34 = vrot.slane %v5536_v23, 1  ;;  %v5563_v2 = vrot.slane %v5562_v33, 2  ;;  %v5669_v18 = vsel %vm2071_vm13, %v5601_v11, %v5594_v7  ;;  %v5583_v44 = vadd.f32 %v5582_v61, %v5581_v59 }
 0x60e   : > { %5973 = vmatpush.xpose.msk.msra.mxu3 %vm1747_vm0, %v5416_v0  ;;  %v5549_v28 = vrot.slane %v5548_v47, 2  ;;  %v5514_v21 = vpop.permute.xlu1 %5513  ;;  %v5670_v14 = vsel %vm2073_vm14, %v5608_v15, %v5669_v18  ;;  %v5622_v19 = vadd.f32 %v5621_v36, %v5620_v45  ;;  %v5557_v17 = vadd.f32 %v5556_v1, %v5555_v25  ;;  %v5975_v36 = vld [vmem:[%s9759_s9 + $0x78] sm:$0xff]  ;;  %p6409_p5 = pnand %p6408_p3, %p6404_p0 }
 0x60f   : > { %v5531_v20 = vmul.f32 %v6384_v10, %v5514_v21  ;;  %v5615_v38 = vadd.f32 %v5614_v8, %v5613_v48  ;;  %v5545_v32 = vadd.f32 %v5544_v26, %v5543_v35  ;;  %v5629_v37 = vadd.f32 %v5628_v24, %v5627_v54  ;;  %v5704_v26 = vld [vmem:[%s9760_s10] sm:$0xff] }
 0x610   : > { %v5550_v41 = vadd.f32 %v5549_v28, %v5548_v47  ;;  %v5635_v13 = vrot.slane %v5634_v58, 1  ;;  %v5570_v9 = vrot.slane %v5569_v39, 2  ;;  %v5538_v56 = vadd.f32 %v5537_v34, %v5536_v23  ;;  %5707 = vperm.xlu2 %6285, %v5704_v26  }
 0x611   : > { %v5637_v53 = vsel %vm1747_vm0, %v5531_v20, 0.0  ;;  %5974 = vmatmul.msk.f32.vlgmr.msra.gmra.mxu3 %vm1747_vm0, %v5971_v31  ;;  %v5564_v60 = vadd.f32 %v5563_v2, %v5562_v33  ;;  %v5671_v50 = vsel %vm2075_vm15, %v5615_v38, %v5670_v14  ;;  %v5584_v3 = vrot.slane %v5583_v44, 2 }
 0x612   : > { %v5638_v5 = vrot.slane %v5637_v53, 4  ;;  %v5551_v52 = vrot.slane %v5550_v41, 1  ;;  %v5672_v22 = vsel %vm2077_vm1, %v5622_v19, %v5671_v50  ;;  %v5558_v30 = vrot.slane %v5557_v17, 1 }
 0x613   : > { %v5673_v29 = vsel %vm2079_vm2, %v5629_v37, %v5672_v22  ;;  %v5636_v49 = vadd.f32 %v5635_v13, %v5634_v58  ;;  %v5571_v46 = vadd.f32 %v5570_v9, %v5569_v39  ;;  %v5662_v57 = vsel %vm2071_vm13, %v5545_v32, %v5538_v56 }
 0x614   : > { %v5639_v40 = vadd.f32 %v5638_v5, %v5637_v53  ;;  %v5552_v6 = vadd.f32 %v5551_v52, %v5550_v41  ;;  %v5585_v42 = vadd.f32 %v5584_v3, %v5583_v44  ;;  %v5559_v45 = vadd.f32 %v5558_v30, %v5557_v17 }
 0x615   : > { %v5674_v25 = vsel %vm2081_vm3, %v5636_v49, %v5673_v29  ;;  %v5572_v54 = vrot.slane %v5571_v46, 1 }
 0x616   : > { %v5640_v16 = vrot.slane %v5639_v40, 2  ;;  %v5478_v62 = vpop.permute.xlu1 %5477  ;;  %v5663_v27 = vsel %vm2073_vm14, %v5552_v6, %v5662_v57  ;;  %v5586_v43 = vrot.slane %v5585_v42, 1 }
 0x617   : > { %v5522_v55 = vmul.f32 %v9581_v4, %v5478_v62  ;;  %v5565_v4 = vrot.slane %v5564_v60, 1  ;;  %v5664_v28 = vsel %vm2075_vm15, %v5559_v45, %v5663_v27  ;;  %v5573_v20 = vadd.f32 %v5572_v54, %v5571_v46 }
 0x618   : > { %v5641_v12 = vadd.f32 %v5640_v16, %v5639_v40  ;;  %v5587_v61 = vadd.f32 %v5586_v43, %v5585_v42 }
 0x619   : > { %v5574_v0 = vsel %vm1747_vm0, %v5522_v55, 0.0  ;;  %v5566_v21 = vadd.f32 %v5565_v4, %v5564_v60 }
 0x61a   : > { %v5642_v7 = vrot.slane %v5641_v12, 1  ;;  %v5575_v51 = vrot.slane %v5574_v0, 4 }
 0x61b   : > { %v5665_v10 = vsel %vm2077_vm1, %v5566_v21, %v5664_v28 }
 0x61c   : > { %v5643_v47 = vadd.f32 %v5642_v7, %v5641_v12  ;;  %v5576_v59 = vadd.f32 %v5575_v51, %v5574_v0  ;;  %v5666_v11 = vsel %vm2079_vm2, %v5573_v20, %v5665_v10 }
 0x61e   : > { %v5577_v48 = vrot.slane %v5576_v59, 2  ;;  %v5675_v35 = vsel %vm2083_vm4, %v5643_v47, %v5674_v25 }
 0x61f   : > { %5976 = vmatpush.xpose.msk.msrb.mxu3 %vm1747_vm0, %v5675_v35 }
 0x620   : > { %v5578_v63 = vadd.f32 %v5577_v48, %v5576_v59 }
 0x622   : > { %v5579_v23 = vrot.slane %v5578_v63, 1 }
 0x624   : > { %v5580_v33 = vadd.f32 %v5579_v23, %v5578_v63  ;;  %v2116_v1 = vpop.f32.mrf.mxu3 }
 0x626   : > { %v5667_v41 = vsel %vm2081_vm3, %v5580_v33, %v5666_v11 }
 0x627   : > { %v5668_v15 = vsel %vm2083_vm4, %v5587_v61, %v5667_v41 }
 0x628   : > { %5977 = vmatpush.xpose.msk.msrb.mxu3 %vm1747_vm0, %v5668_v15 }
 0x62b   : > { %5978 = vmatmul.msk.f32.vlgmr.msrb.gmra.mxu3 %vm1747_vm0, %v5975_v36 }
 0x62c   : > { %v2173_v53 = vpop.f32.mrf.mxu3 }
 0x62d   : > { %v2174_v8 = vadd.f32 %v2173_v53, %v2116_v1 }
 0x634   : > { %v2424_v24 = vpop.f32.mrf.mxu3 }
 0x635   : > { %v2427_v5 = vadd.f32 %v2424_v24, %v2174_v8 }
 0x63c   : > { %v2676_v58 = vpop.f32.mrf.mxu3 }
 0x63d   : > { %v2679_v39 = vadd.f32 %v2676_v58, %v2427_v5 }
 0x644   : > { %v2928_v34 = vpop.f32.mrf.mxu3 }
 0x645   : > { %v2931_v31 = vadd.f32 %v2928_v34, %v2679_v39 }
 0x64c   : > { %v3180_v2 = vpop.f32.mrf.mxu3 }
 0x64d   : > { %v3183_v38 = vadd.f32 %v3180_v2, %v2931_v31 }
 0x654   : > { %v3432_v18 = vpop.f32.mrf.mxu3 }
 0x655   : > { %v3435_v37 = vadd.f32 %v3432_v18, %v3183_v38 }
 0x65c   : > { %v3684_v52 = vpop.f32.mrf.mxu3 }
 0x65d   : > { %v3687_v16 = vadd.f32 %v3684_v52, %v3435_v37 }
 0x664   : > { %v3936_v40 = vpop.f32.mrf.mxu3 }
 0x665   : > { %v3939_v62 = vadd.f32 %v3936_v40, %v3687_v16 }
 0x66a   : > { %v5708_v3 = vpop.permute.xlu2 %5707 }
 0x66c   : > { %v4188_v44 = vpop.f32.mrf.mxu3 }
 0x66d   : > { %v4191_v13 = vadd.f32 %v4188_v44, %v3939_v62 }
 0x674   : > { %v4440_v14 = vpop.f32.mrf.mxu3 }
 0x675   : > { %v4443_v9 = vadd.f32 %v4440_v14, %v4191_v13 }
 0x67c   : > { %v4692_v19 = vpop.f32.mrf.mxu3 }
 0x67d   : > { %v4695_v55 = vadd.f32 %v4692_v19, %v4443_v9 }
 0x684   : > { %v4944_v17 = vpop.f32.mrf.mxu3 }
 0x685   : > { %v4947_v60 = vadd.f32 %v4944_v17, %v4695_v55 }
 0x68c   : > { %v5196_v32 = vpop.f32.mrf.mxu3 }
 0x68d   : > { %v5199_v50 = vadd.f32 %v5196_v32, %v4947_v60 }
 0x694   : > { %v5448_v56 = vpop.f32.mrf.mxu3 }
 0x695   : > { %v5451_v6 = vadd.f32 %v5448_v56, %v5199_v50 }
 0x6ae   : > { %v5700_v12 = vpop.f32.mrf.mxu3 }
 0x6af   : > { %v5703_v22 = vadd.f32 %v5700_v12, %v5451_v6 }
 0x6b1   : > { %v5710_v30 = vadd.f32 %v5708_v3, %v5703_v22 }
 0x6b3   : > { %5711 = vst.msk [vmem:[%s456_s26] sm:$0xff] %vm1370_vm5, %v5710_v30 }
 0x6b4   : > { %6412 = shalt.err (!%p6409_p5)
}
 0x6b5   : > { %5986 = dma.vmem_to_hbm [thread:$0]  (%p6582_p4), %s5727_s14, 128, %s5729_s15, %s5713_s20  }
 0x6b6 PF: > { %p5992_p6 = scmp.ge.s32.totalorder %s6463_s22, 2  ;;  %s5740_s28 = sand.u32 1, %s6443_s17  }
 0x6b7   : > { %s5741_s26 = scalar_lea.sflag [#allocation3], %s5740_s28 }
 0x6b8   : > { %p5989_p7 = pnand %p5992_p6, %p6589_p8 }
 0x6ba   : > { %p5990_p9 = pneg %p5989_p7 }
 0x6bc   : > { %6438 = dma.done.wait (%p5990_p9), %s5741_s26, 128  }
 0x6bd   : > { %6440 = vsyncadd (%p5990_p9), %s5741_s26, 4294967168  ;;  %s24_s22 = sadd.s32 1, %s6463_s22   ;;  %s10332_s17 = smov %s6447_s18 }
 0x6be   : > { %p21_p10 = scmp.ge.s32.totalorder %s24_s22, 4   ;;  %s10333_s18 = smov %s6451_s19 }
 0x6bf   : > { %s10334_s19 = smov %s6595_s30  ;;  %s10335_s20 = smov %s6459_s21 }
 0x6c0   : > { %s10336_s21 = smov %s10338_s25  ;;  %23 = sbr.rel (!%p21_p10) target bundleno = 7 (0x7), region = 120 }
 0x6c5   :  { %5747 = vsyncpa [#allocation3], 1 }
 0x6c6   :  { %5749 = vsyncpa [#allocation3 + $0x1], 1 }

</bundles_post_ra>
